<compile_context>
chip_gen: v6e
topology: v6e:2x2x1
jax: 0.10.0
libtpu: 0.0.40
codegen_flags: <defaults>
</compile_context>

<pallas_src>
import jax
import jax.numpy as jnp
from jax import lax
from jax.experimental import pallas as pl
from jax.experimental.pallas import tpu as pltpu


# ---------------------------------------------------------------------------
# Plain-XLA ResNet-18 backbone (NHWC).  Mirrors exactly the layers the
# reference forward uses: conv1, bn1, maxpool, layer1..layer4 (note: no ReLU
# after bn1, just like the PyTorch forward).
# ---------------------------------------------------------------------------
_RESNET18_STAGES = ((64, 1), (128, 2), (256, 2), (512, 2))  # (out_c, stride of first block)


def conv2d(x, w, stride, padding):
    # x: (B, H, W, Cin), w: (kh, kw, Cin, Cout)
    return lax.conv_general_dilated(
        x, w, (stride, stride),
        padding=((padding, padding), (padding, padding)),
        dimension_numbers=("NHWC", "HWIO", "NHWC"))


def batchnorm(x, p, eps=1e-5):
    # NHWC: per-channel params broadcast over the last axis.
    return (x - p["mean"]) * lax.rsqrt(p["var"] + eps) * p["gamma"] + p["beta"]


def maxpool_3x3_s2(x):
    return lax.reduce_window(
        x, -jnp.inf, lax.max,
        window_dimensions=(1, 3, 3, 1), window_strides=(1, 2, 2, 1),
        padding=((0, 0), (1, 1), (1, 1), (0, 0)))


def basic_block(x, bp, stride):
    out = conv2d(x, bp["conv1"], stride, 1)
    out = batchnorm(out, bp["bn1"])
    out = jnp.maximum(out, 0.0)
    out = conv2d(out, bp["conv2"], 1, 1)
    out = batchnorm(out, bp["bn2"])
    if "down_conv" in bp:
        identity = batchnorm(conv2d(x, bp["down_conv"], stride, 0), bp["down_bn"])
    else:
        identity = x
    return jnp.maximum(out + identity, 0.0)


def backbone_features(x_nchw, p):
    # One cheap NCHW -> NHWC transpose (3 input channels), then all convs in
    # the TPU-preferred NHWC layout.
    x = jnp.transpose(x_nchw, (0, 2, 3, 1))
    x = conv2d(x, p["conv1"], 2, 3)
    x = batchnorm(x, p["bn1"])
    x = maxpool_3x3_s2(x)
    for li, (_, stride) in enumerate(_RESNET18_STAGES):
        for bi in range(2):
            x = basic_block(x, p["layers"][li][bi], stride if bi == 0 else 1)
    B, H, W, C = x.shape
    # Features land directly as (B, HW, C): channels on lanes, spatial on
    # sublanes; contiguous reshape (no extra HBM transpose round trip).
    return x.reshape(B, H * W, C)


# ---------------------------------------------------------------------------
# Deterministic parameter init (arrays only — no Python ints in the pytree).
# ---------------------------------------------------------------------------
def _init_conv(key, in_c, out_c, k):
    fan_in = in_c * k * k
    std = (2.0 / fan_in) ** 0.5
    return jax.random.normal(key, (k, k, in_c, out_c), jnp.float32) * std


def _init_bn(c):
    return dict(gamma=jnp.ones((c,), jnp.float32),
                beta=jnp.zeros((c,), jnp.float32),
                mean=jnp.zeros((c,), jnp.float32),
                var=jnp.ones((c,), jnp.float32))


def _init_linear(key, in_f, out_f):
    kw, kb = jax.random.split(key)
    bound = 1.0 / (in_f ** 0.5)
    w = jax.random.uniform(kw, (out_f, in_f), jnp.float32, -bound, bound)
    b = jax.random.uniform(kb, (out_f,), jnp.float32, -bound, bound)
    return w, b


def init_resnet18(key):
    keys = jax.random.split(key, 24)
    ki = iter(keys)
    p = {"conv1": _init_conv(next(ki), 3, 64, 7), "bn1": _init_bn(64)}
    layers = []
    in_c = 64
    for out_c, stride in _RESNET18_STAGES:
        blocks = []
        for bi in range(2):
            s = stride if bi == 0 else 1
            bp = {"conv1": _init_conv(next(ki), in_c, out_c, 3),
                  "bn1": _init_bn(out_c),
                  "conv2": _init_conv(next(ki), out_c, out_c, 3),
                  "bn2": _init_bn(out_c)}
            if s != 1 or in_c != out_c:
                bp["down_conv"] = _init_conv(next(ki), in_c, out_c, 1)
                bp["down_bn"] = _init_bn(out_c)
            blocks.append(bp)
            in_c = out_c
        layers.append(blocks)
    p["layers"] = layers
    p["fc_w"], p["fc_b"] = _init_linear(next(ki), 512, 1000)   # resnet fc (1000, 512)
    return p


def init_net(key):
    ks = jax.random.split(key, 8)
    params = {
        "resnet1": init_resnet18(ks[0]),
        "resnet2": init_resnet18(ks[1]),
        "resnet3": init_resnet18(ks[2]),
    }
    # Attention 1x1 conv.  The PyTorch forward only ever uses self.conv1
    # (conv2/conv3 are dead parameters) so one shared weight suffices.
    # Stored directly as (C_in, C_out) — lane-major for the MXU, no transpose.
    kw, kb = jax.random.split(ks[3])
    bound = 1.0 / (512 ** 0.5)
    params["attn_conv_w"] = jax.random.uniform(kw, (512, 512), jnp.float32, -bound, bound)
    params["attn_conv_b"] = jax.random.uniform(kb, (512,), jnp.float32, -bound, bound)
    params["fc1_w"], params["fc1_b"] = _init_linear(ks[4], 1000, 3)
    params["fc2_w"], params["fc2_b"] = _init_linear(ks[5], 1000, 3)
    params["fc3_w"], params["fc3_b"] = _init_linear(ks[6], 1000, 3)
    params["finalfc_w"], params["finalfc_b"] = _init_linear(ks[7], 9, 3)
    return params


# ---------------------------------------------------------------------------
# Fused Pallas head: all three branches, whole batch, single kernel invocation
# ---------------------------------------------------------------------------
F1, F1P = 1000, 1024   # resnet fc width, zero-padded to a lane multiple


def _fused_head_kernel(x0_ref, x1_ref, x2_ref, wc_ref, bc_ref,
                       wfc_ref, bfc_ref, wb_ref, bb_ref, out_ref):
    # x{0,1,2}_ref : (B, HW, C)   bf16   per-branch backbone features
    # wc_ref       : (C, C)       bf16   shared attention 1x1 conv (C_in, C_out)
    # bc_ref       : (1, 1, C)    f32
    # wfc_ref      : (3, C, F1P)  bf16   per-branch resnet fc (zero-padded cols)
    # bfc_ref      : (3, 1, F1P)  f32
    # wb_ref       : (3, 3, F1P)  bf16   per-branch fc_i, lane-major over F1P
    # bb_ref       : (3, 3)       f32
    # out_ref      : (3, 3)       f32
    B, HW, C = x0_ref.shape

    # The attention conv weight is shared across branches: merge them into one
    # MXU matmul with M = 3*B*HW rows.  Keep the tile 3-D and contract the
    # lane (channel) axis directly — no (B*HW, C) reshape / relayout copy.
    x = jnp.concatenate([x0_ref[...], x1_ref[...], x2_ref[...]], axis=0)  # (3B, HW, C) bf16
    att = lax.dot_general(x, wc_ref[...],
                          dimension_numbers=(((2,), (0,)), ((), ())),
                          preferred_element_type=jnp.float32)
    att = att + bc_ref[...]                                               # (3B, HW, C) f32

    # softmax over the spatial axis followed by division by the per-channel
    # spatial max collapses algebraically to exp(att - spatial_max(att))
    # (the softmax denominators cancel).
    att = jnp.exp(att - jnp.max(att, axis=1, keepdims=True))

    # Feature re-weighting + global average pool, f32 accumulation.
    pooled = jnp.sum(x.astype(jnp.float32) * att, axis=1) * (1.0 / HW)    # (3B, C)
    pooled = pooled.reshape(3, B, C)                                      # tiny relayout

    # Per-branch ResNet fc 512 -> 1024 (=1000 zero-padded): batched MXU matmul.
    out = lax.dot_general(pooled.astype(jnp.bfloat16), wfc_ref[...],
                          dimension_numbers=(((2,), (1,)), ((0,), (0,))),
                          preferred_element_type=jnp.float32)
    out = out + bfc_ref[...]                                              # (3, B, F1P)

    # torch.max(out, 0, keepdim=True)[0] per branch, then fc_i (1000 -> 3) as a
    # lane-major VPU multiply + lane reduce (padded columns are exactly 0).
    mx = jnp.max(out, axis=1, keepdims=True)                              # (3, 1, F1P)
    res = jnp.sum(mx * wb_ref[...].astype(jnp.float32), axis=-1)          # (3, 3)
    out_ref[...] = res + bb_ref[...]


def fused_heads(f0, f1, f2, wc, bc, wfc, bfc, wb, bb):
    """f{0,1,2}: (B, HW, C) bf16 per-branch features.  Returns (3, 3) f32."""
    vmem_spec = pl.BlockSpec(memory_space=pltpu.MemorySpace.VMEM)
    return pl.pallas_call(
        _fused_head_kernel,
        out_shape=jax.ShapeDtypeStruct((3, 3), jnp.float32),
        in_specs=[vmem_spec] * 9,
        out_specs=vmem_spec,
        compiler_params=pltpu.CompilerParams(
            # Explicit budget: safe on v5e/v6e (128 MiB) and within v7x's
            # 64 MiB physical; plenty for bf16 features + the 3 MiB fc weight.
            vmem_limit_bytes=32 * 1024 * 1024),
    )(f0, f1, f2, wc, bc, wfc, bfc, wb, bb)


# ---------------------------------------------------------------------------
# Full Net forward
# ---------------------------------------------------------------------------
@jax.jit
def net_forward(params, x, x1, x2):
    x = jnp.squeeze(x, axis=0)
    x1 = jnp.squeeze(x1, axis=0)
    x2 = jnp.squeeze(x2, axis=0)

    # Backbones (plain-XLA glue); features land as (B, HW, C) and are staged
    # in bf16 to halve the head kernel's DMA/VMEM footprint.
    f0 = backbone_features(x, params["resnet1"]).astype(jnp.bfloat16)
    f1 = backbone_features(x1, params["resnet2"]).astype(jnp.bfloat16)
    f2 = backbone_features(x2, params["resnet3"]).astype(jnp.bfloat16)

    wc = params["attn_conv_w"].astype(jnp.bfloat16)        # (C_in, C_out)
    bc = params["attn_conv_b"].reshape(1, 1, 512)

    pad = ((0, 0), (0, F1P - F1))
    # Per-branch resnet fc (512 -> 1000), transposed to (C, F1) and zero-padded
    # to 1024 so every lane is dense; padded columns contribute exactly 0.
    wfc = jnp.stack([jnp.pad(params[f"resnet{i}"]["fc_w"].T, pad)
                     for i in (1, 2, 3)]).astype(jnp.bfloat16)             # (3, 512, 1024)
    bfc = jnp.stack([jnp.pad(params[f"resnet{i}"]["fc_b"],
                             (0, F1P - F1)).reshape(1, F1P)
                     for i in (1, 2, 3)])                                  # (3, 1, 1024)
    # Branch fc_i (1000 -> 3), kept lane-major over the 1000 axis.
    wb = jnp.stack([jnp.pad(params[f"fc{i}_w"], pad)
                    for i in (1, 2, 3)]).astype(jnp.bfloat16)              # (3, 3, 1024)
    bb = jnp.stack([params[f"fc{i}_b"] for i in (1, 2, 3)])                # (3, 3)

    branch_outs = fused_heads(f0, f1, f2, wc, bc, wfc, bfc, wb, bb)        # (3, 3)

    # final fc (9 -> 3): 27 MACs — plain jnp, a Pallas launch is pure overhead.
    flat = branch_outs.reshape(9)
    return params["finalfc_w"] @ flat + params["finalfc_b"]               # (3,)


if __name__ == "__main__":
    key = jax.random.PRNGKey(0)
    kp, kx, kx1, kx2 = jax.random.split(key, 4)
    params = init_net(kp)

    # Inputs mimic the torch call: (1, B, 3, H, W), squeezed on dim 0.
    # H = W = 64 -> backbone spatial 2x2 (HW = 4), C = 512.
    B, H, W = 2, 64, 64
    x = jax.random.normal(kx, (1, B, 3, H, W), jnp.float32)
    x1 = jax.random.normal(kx1, (1, B, 3, H, W), jnp.float32)
    x2 = jax.random.normal(kx2, (1, B, 3, H, W), jnp.float32)

    final = jax.block_until_ready(net_forward(params, x, x1, x2))
    assert final.shape == (3,) and bool(jnp.all(jnp.isfinite(final)))
    print("KERNEL_OK")
</pallas_src>

<mosaic_0001>
module attributes {stable_mosaic.version = 11 : i64} {
  func.func @_fused_head_kernel(%arg0: memref<2x4x512xbf16, #tpu.memory_space<vmem>>, %arg1: memref<2x4x512xbf16, #tpu.memory_space<vmem>>, %arg2: memref<2x4x512xbf16, #tpu.memory_space<vmem>>, %arg3: memref<512x512xbf16, #tpu.memory_space<vmem>>, %arg4: memref<1x1x512xf32, #tpu.memory_space<vmem>>, %arg5: memref<3x512x1024xbf16, #tpu.memory_space<vmem>>, %arg6: memref<3x1x1024xf32, #tpu.memory_space<vmem>>, %arg7: memref<3x3x1024xbf16, #tpu.memory_space<vmem>>, %arg8: memref<3x3xf32, #tpu.memory_space<vmem>>, %arg9: memref<3x3xf32, #tpu.memory_space<vmem>>) attributes {dimension_semantics = [], scalar_prefetch = 0 : i64, scratch_operands = 0 : i64, tpu.core_type = #tpu.core_type<tc>} {
    %c0 = arith.constant 0 : index
    %c0_0 = arith.constant 0 : index
    %c0_1 = arith.constant 0 : index
    %0 = vector.load %arg0[%c0, %c0_0, %c0_1] : memref<2x4x512xbf16, #tpu.memory_space<vmem>>, vector<2x4x512xbf16>
    %c0_2 = arith.constant 0 : index
    %c0_3 = arith.constant 0 : index
    %c0_4 = arith.constant 0 : index
    %1 = vector.load %arg1[%c0_2, %c0_3, %c0_4] : memref<2x4x512xbf16, #tpu.memory_space<vmem>>, vector<2x4x512xbf16>
    %c0_5 = arith.constant 0 : index
    %c0_6 = arith.constant 0 : index
    %c0_7 = arith.constant 0 : index
    %2 = vector.load %arg2[%c0_5, %c0_6, %c0_7] : memref<2x4x512xbf16, #tpu.memory_space<vmem>>, vector<2x4x512xbf16>
    %3 = tpu.concatenate %0, %1, %2 in 0 : vector<2x4x512xbf16>, vector<2x4x512xbf16>, vector<2x4x512xbf16> -> vector<6x4x512xbf16>
    %c0_8 = arith.constant 0 : index
    %c0_9 = arith.constant 0 : index
    %4 = vector.load %arg3[%c0_8, %c0_9] : memref<512x512xbf16, #tpu.memory_space<vmem>>, vector<512x512xbf16>
    %cst = arith.constant dense<0.000000e+00> : vector<6x4x512xf32>
    %5 = tpu.matmul %3, %4, %cst {dimension_numbers = #tpu.dot_dimension_numbers<[2], [0], [0, 1], [1], [0, 0, 0, 1, 1, 1], [], []>} : vector<6x4x512xbf16>, vector<512x512xbf16>, vector<6x4x512xf32> -> vector<6x4x512xf32>
    %c0_10 = arith.constant 0 : index
    %c0_11 = arith.constant 0 : index
    %c0_12 = arith.constant 0 : index
    %6 = vector.load %arg4[%c0_10, %c0_11, %c0_12] : memref<1x1x512xf32, #tpu.memory_space<vmem>>, vector<1x1x512xf32>
    %7 = vector.broadcast %6 : vector<1x1x512xf32> to vector<6x4x512xf32>
    %8 = arith.addf %5, %7 : vector<6x4x512xf32>
    %cst_13 = arith.constant dense<0xFF800000> : vector<6x512xf32>
    %9 = vector.multi_reduction <maximumf>, %8, %cst_13 [1] : vector<6x4x512xf32> to vector<6x512xf32>
    %10 = vector.shape_cast %9 : vector<6x512xf32> to vector<6x1x512xf32>
    %11 = vector.broadcast %10 : vector<6x1x512xf32> to vector<6x4x512xf32>
    %12 = arith.subf %8, %11 : vector<6x4x512xf32>
    %13 = math.exp %12 : vector<6x4x512xf32>
    %14 = arith.extf %3 : vector<6x4x512xbf16> to vector<6x4x512xf32>
    %15 = arith.mulf %14, %13 : vector<6x4x512xf32>
    %cst_14 = arith.constant dense<0.000000e+00> : vector<6x512xf32>
    %16 = vector.multi_reduction <add>, %15, %cst_14 [1] : vector<6x4x512xf32> to vector<6x512xf32>
    %cst_15 = arith.constant 2.500000e-01 : f32
    %17 = vector.broadcast %cst_15 : f32 to vector<6x512xf32>
    %18 = arith.mulf %16, %17 : vector<6x512xf32>
    %19 = vector.shape_cast %18 : vector<6x512xf32> to vector<3x2x512xf32>
    %20 = arith.truncf %19 : vector<3x2x512xf32> to vector<3x2x512xbf16>
    %c0_16 = arith.constant 0 : index
    %c0_17 = arith.constant 0 : index
    %c0_18 = arith.constant 0 : index
    %21 = vector.load %arg5[%c0_16, %c0_17, %c0_18] : memref<3x512x1024xbf16, #tpu.memory_space<vmem>>, vector<3x512x1024xbf16>
    %cst_19 = arith.constant dense<0.000000e+00> : vector<3x2x1024xf32>
    %22 = tpu.matmul %20, %21, %cst_19 {dimension_numbers = #tpu.dot_dimension_numbers<[2], [1], [1], [2], [0, 0, 0, 1, 1, 2], [0], [0]>} : vector<3x2x512xbf16>, vector<3x512x1024xbf16>, vector<3x2x1024xf32> -> vector<3x2x1024xf32>
    %c0_20 = arith.constant 0 : index
    %c0_21 = arith.constant 0 : index
    %c0_22 = arith.constant 0 : index
    %23 = vector.load %arg6[%c0_20, %c0_21, %c0_22] : memref<3x1x1024xf32, #tpu.memory_space<vmem>>, vector<3x1x1024xf32>
    %24 = vector.broadcast %23 : vector<3x1x1024xf32> to vector<3x2x1024xf32>
    %25 = arith.addf %22, %24 : vector<3x2x1024xf32>
    %cst_23 = arith.constant dense<0xFF800000> : vector<3x1024xf32>
    %26 = vector.multi_reduction <maximumf>, %25, %cst_23 [1] : vector<3x2x1024xf32> to vector<3x1024xf32>
    %27 = vector.shape_cast %26 : vector<3x1024xf32> to vector<3x1x1024xf32>
    %c0_24 = arith.constant 0 : index
    %c0_25 = arith.constant 0 : index
    %c0_26 = arith.constant 0 : index
    %28 = vector.load %arg7[%c0_24, %c0_25, %c0_26] : memref<3x3x1024xbf16, #tpu.memory_space<vmem>>, vector<3x3x1024xbf16>
    %29 = arith.extf %28 : vector<3x3x1024xbf16> to vector<3x3x1024xf32>
    %30 = vector.broadcast %27 : vector<3x1x1024xf32> to vector<3x3x1024xf32>
    %31 = arith.mulf %30, %29 : vector<3x3x1024xf32>
    %cst_27 = arith.constant dense<0.000000e+00> : vector<3x3xf32>
    %32 = vector.multi_reduction <add>, %31, %cst_27 [2] : vector<3x3x1024xf32> to vector<3x3xf32>
    %c0_28 = arith.constant 0 : index
    %c0_29 = arith.constant 0 : index
    %33 = vector.load %arg8[%c0_28, %c0_29] : memref<3x3xf32, #tpu.memory_space<vmem>>, vector<3x3xf32>
    %34 = arith.addf %32, %33 : vector<3x3xf32>
    %c0_30 = arith.constant 0 : index
    %c0_31 = arith.constant 0 : index
    %35 = vector.load %arg9[%c0_30, %c0_31] : memref<3x3xf32, #tpu.memory_space<vmem>>, vector<3x3xf32>
    tpu.vector_store %arg9[%c0_30, %c0_31], %34 {strides = array<i32>} : memref<3x3xf32, #tpu.memory_space<vmem>>, vector<3x3xf32>,
    return
  }
}

</mosaic_0001>

<bundles_post_ra>
// kernel: reverse.6
= control target key start
LH: loop header
LB: loop body
LE: loop exit
PB: predicated region body
PF: predicated region fallthrough
CT: control target
= control target key end

     0   :  { %s1790_s6 = smov 0   ;;  %s1792_s7 = smov 0   ;;  %s2287_s0 = inlined_call_operand.vmem [shape: f32[3,3,512,512], index: 0, kind: input, shape index: {}]   ;;  %s2288_s1 = inlined_call_operand.vmem [shape: bf16[3,3,512,512], index: 1, kind: output, shape index: {}]  }
   0x1   :  { %s1794_s8 = smov 0   ;;  %s1796_s9 = smov 0  }
   0x2   :  { %s1798_s10 = smov 0   ;;  %s1800_s11 = smov 0  }
   0x3   :  { %s1802_s12 = smov 0   ;;  %s1804_s13 = smov 0  }
   0x4   :  { %s1806_s14 = smov 0   ;;  %s1808_s15 = smov 0  }
   0x5   :  { %s1810_s16 = smov 0   ;;  %s1812_s17 = smov 0  }
   0x6   :  { %s1814_s18 = smov 0   ;;  %s1816_s19 = smov 0  }
   0x7   :  { %s1818_s20 = smov 0   ;;  %s1820_s21 = smov 0  }
   0x8   :  { %s1822_s22 = smov 0   ;;  %s1824_s23 = smov 0  }
   0x9   :  { %s1826_s24 = smov 0  }
   0xa LB: > { %s65_s25 = sadd.s32 1, %s1766_s21  ;;  %s69_s26 = sadd.s32 1, %s1770_s22  ;;  %s1778_s24 = sphi %s1826_s24, %s7_s24   ;;  %s1774_s23 = sphi %s1824_s23, %s2307_s23   ;;  %s1770_s22 = sphi %s1822_s22, %s2306_s22   ;;  %s1766_s21 = sphi %s1820_s21, %s2305_s21   ;;  %s1762_s20 = sphi %s1818_s20, %s2304_s20   ;;  %s1758_s19 = sphi %s1816_s19, %s2303_s19   ;;  %s1754_s18 = sphi %s1814_s18, %s2302_s18   ;;  %s1750_s17 = sphi %s1812_s17, %s2301_s17   ;;  %s1746_s16 = sphi %s1810_s16, %s2300_s16   ;;  %s1742_s15 = sphi %s1808_s15, %s2299_s15   ;;  %s1738_s14 = sphi %s1806_s14, %s2298_s14   ;;  %s1734_s13 = sphi %s1804_s13, %s2297_s13   ;;  %s1730_s12 = sphi %s1802_s12, %s2296_s12   ;;  %s1726_s11 = sphi %s1800_s11, %s2295_s11   ;;  %s1722_s10 = sphi %s1798_s10, %s2294_s10   ;;  %s1718_s9 = sphi %s1796_s9, %s2293_s9   ;;  %s1714_s8 = sphi %s1794_s8, %s2292_s8   ;;  %s1710_s7 = sphi %s1792_s7, %s2291_s7   ;;  %s1706_s6 = sphi %s1790_s6, %s2290_s6  }
   0xb   : > { %p67_p0 = scmp.ge.s32.totalorder %s65_s25, 2  ;;  %p1208_p1 = scmp.ge.s32.totalorder %s1778_s24, 5 }
   0xc   : > { %p113_p2 = scmp.lt.s32.totalorder %s1778_s24, 23  ;;  %s73_s27 = sadd.s32 1, %s1774_s23 }
   0xd   : > { %s2309_s25 = smov (%p67_p0, %s65_s25), 0  ;;  %s2311_s26 = smov (!%p67_p0, %s69_s26), %s1770_s22 }
   0xe   : > { %p114_p3 = pnand %p1208_p1, %p113_p2  ;;  %p71_p4 = scmp.ge.s32.totalorder %s2311_s26, 3 }
   0xf   : > { %s159_s28 = ssub.s32 (!%p114_p3), 2, %s1714_s8  ;;  %s160_s29 = ssub.s32 (!%p114_p3), 2, %s1710_s7 }
  0x10   : > { %s2313_s26 = smov (%p71_p4, %s2311_s26), 0  ;;  %s2315_s27 = smov (!%p71_p4, %s73_s27), %s1774_s23 }
  0x11   : > { %p75_p5 = scmp.ge.s32.totalorder %s2315_s27, 3  ;;  %117 = sbr.rel (%p114_p3) target bundleno = 90 (0x5a), region = 20 }
  0x12   : > { %s1209_s30 = sshll.u32 (!%p114_p3), %s1706_s6, 5  ;;  %p163_p6 = scmp.lt.s32.totalorder (!%p114_p3), %s159_s28, 2 }
  0x13   : > { %s2317_s27 = smov (%p75_p5, %s2315_s27), 0  ;;  %p165_p7 = scmp.lt.s32.totalorder (!%p114_p3), %s160_s29, 2 }
  0x14   : > { %p167_p8 = scmp.lt.s32.totalorder (!%p114_p3), %s1209_s30, 63  ;;  %p185_p9 = scmp.lt.s32.totalorder (!%p114_p3), %s1714_s8, 2 }
  0x15   : > { %p187_p10 = scmp.lt.s32.totalorder (!%p114_p3), %s1710_s7, 2 }
  0x16   : > { %s2319_s28 = smov (!%p163_p6, %s159_s28), 2  ;;  %s2321_s29 = smov (!%p165_p7, %s160_s29), 2 }
  0x17   : > { %s2323_s30 = smov (!%p167_p8, %s1209_s30), 63  ;;  %s1211_s2 = sshll.u32 %s2321_s29, 8 }
  0x18   : > { %s1474_s3 = smul.u32 768, %s2319_s28  ;;  %s1210_s4 = sshll.u32 %s2323_s30, 2 }
  0x19   : > { %s174_s5 = sadd.s32 %s1211_s2, %s1210_s4  ;;  %s2325_s8 = smov (!%p185_p9, %s1714_s8), 2 }
  0x1a   : > { %s176_s6 = sadd.s32 %s1474_s3, %s174_s5  ;;  %s2327_s7 = smov (!%p187_p10, %s1710_s7), 2 }
  0x1b   : > { %s1212_s28 = sshll.u32 %s176_s6, 3  ;;  %s1475_s8 = smul.u32 768, %s2325_s8 }
  0x1c   : > { %s1908_s2 = scalar_lea.vmem %s2287_s0, %s1212_s28  ;;  %s1215_s7 = sshll.u32 %s2327_s7, 8 }
  0x1d   : > { %s196_s3 = sadd.s32 %s1215_s7, %s1210_s4  ;;  %v203_v0 = vld [vmem:[%s1908_s2] sm:$0xff]  ;;  %v1248_v13 = vld [vmem:[%s1908_s2 + $0x8] sm:$0xff] }
  0x1e   : > { %s198_s4 = sadd.s32 %s1475_s8, %s196_s3  ;;  %v1217_v1 = vld [vmem:[%s1908_s2 + $0x20] sm:$0xff]  ;;  %v303_v17 = vpack.c.bf16 %v1248_v13, %v203_v0  ;;  %v1251_v18 = vld [vmem:[%s1908_s2 + $0x28] sm:$0xff] }
  0x1f   : > { %s1216_s5 = sshll.u32 %s198_s4, 2  ;;  %v1218_v2 = vld [vmem:[%s1908_s2 + $0x40] sm:$0xff]  ;;  %v1254_v19 = vld [vmem:[%s1908_s2 + $0x48] sm:$0xff]  ;;  %v311_v24 = vpack.c.bf16 %v1251_v18, %v1217_v1 }
  0x20   : > { %v1219_v3 = vld [vmem:[%s1908_s2 + $0x60] sm:$0xff]  ;;  %s1923_s8 = scalar_lea.vmem %s2288_s1, %s1216_s5  ;;  %v1257_v20 = vld [vmem:[%s1908_s2 + $0x68] sm:$0xff]  ;;  %v319_v25 = vpack.c.bf16 %v1254_v19, %v1218_v2 }
  0x21   : > { %v1220_v4 = vld [vmem:[%s1908_s2 + $0x80] sm:$0xff]  ;;  %v327_v26 = vpack.c.bf16 %v1257_v20, %v1219_v3  ;;  %v1260_v27 = vld [vmem:[%s1908_s2 + $0x88] sm:$0xff]  ;;  %1250 = vst [vmem:[%s1923_s8] sm:$0xff] %v303_v17  ;;  %1253 = vst [vmem:[%s1923_s8 + $0x10] sm:$0xff] %v311_v24 }
  0x22   : > { %v1221_v5 = vld [vmem:[%s1908_s2 + $0xa0] sm:$0xff]  ;;  %v1263_v28 = vld [vmem:[%s1908_s2 + $0xa8] sm:$0xff]  ;;  %v335_v33 = vpack.c.bf16 %v1260_v27, %v1220_v4  ;;  %1256 = vst [vmem:[%s1923_s8 + $0x20] sm:$0xff] %v319_v25 }
  0x23   : > { %v1222_v6 = vld [vmem:[%s1908_s2 + $0xc0] sm:$0xff]  ;;  %v1266_v29 = vld [vmem:[%s1908_s2 + $0xc8] sm:$0xff]  ;;  %v343_v34 = vpack.c.bf16 %v1263_v28, %v1221_v5  ;;  %1259 = vst [vmem:[%s1923_s8 + $0x30] sm:$0xff] %v327_v26 }
  0x24   : > { %v1223_v7 = vld [vmem:[%s1908_s2 + $0xe0] sm:$0xff]  ;;  %v351_v35 = vpack.c.bf16 %v1266_v29, %v1222_v6  ;;  %v1269_v36 = vld [vmem:[%s1908_s2 + $0xe8] sm:$0xff]  ;;  %1262 = vst [vmem:[%s1923_s8 + $0x40] sm:$0xff] %v335_v33  ;;  %v1345_v33 = vld [vmem:[%s1908_s2 + $0x30] sm:$0xff] }
  0x25   : > { %v1224_v8 = vld [vmem:[%s1908_s2 + $0x100] sm:$0xff]  ;;  %v1272_v37 = vld [vmem:[%s1908_s2 + $0x108] sm:$0xff]  ;;  %v359_v42 = vpack.c.bf16 %v1269_v36, %v1223_v7  ;;  %1265 = vst [vmem:[%s1923_s8 + $0x50] sm:$0xff] %v343_v34  ;;  %v1346_v34 = vld [vmem:[%s1908_s2 + $0x50] sm:$0xff] }
  0x26   : > { %v1225_v9 = vld [vmem:[%s1908_s2 + $0x120] sm:$0xff]  ;;  %v1275_v38 = vld [vmem:[%s1908_s2 + $0x128] sm:$0xff]  ;;  %v367_v43 = vpack.c.bf16 %v1272_v37, %v1224_v8  ;;  %1268 = vst [vmem:[%s1923_s8 + $0x60] sm:$0xff] %v351_v35  ;;  %v1347_v35 = vld [vmem:[%s1908_s2 + $0x70] sm:$0xff] }
  0x27   : > { %v1926_v10 = vld [vmem:[%s1908_s2 + $0x140] sm:$0xff]  ;;  %v375_v44 = vpack.c.bf16 %v1275_v38, %v1225_v9  ;;  %v1278_v45 = vld [vmem:[%s1908_s2 + $0x148] sm:$0xff]  ;;  %1271 = vst [vmem:[%s1923_s8 + $0x70] sm:$0xff] %v359_v42  ;;  %v1348_v36 = vld [vmem:[%s1908_s2 + $0x90] sm:$0xff] }
  0x28   : > { %v1929_v11 = vld [vmem:[%s1908_s2 + $0x160] sm:$0xff]  ;;  %v1281_v46 = vld [vmem:[%s1908_s2 + $0x168] sm:$0xff]  ;;  %v383_v51 = vpack.c.bf16 %v1278_v45, %v1926_v10  ;;  %1274 = vst [vmem:[%s1923_s8 + $0x80] sm:$0xff] %v367_v43  ;;  %v1349_v37 = vld [vmem:[%s1908_s2 + $0xb0] sm:$0xff] }
  0x29   : > { %v1932_v12 = vld [vmem:[%s1908_s2 + $0x180] sm:$0xff]  ;;  %v1284_v47 = vld [vmem:[%s1908_s2 + $0x188] sm:$0xff]  ;;  %v391_v52 = vpack.c.bf16 %v1281_v46, %v1929_v11  ;;  %1277 = vst [vmem:[%s1923_s8 + $0x90] sm:$0xff] %v375_v44  ;;  %v1350_v38 = vld [vmem:[%s1908_s2 + $0xd0] sm:$0xff] }
  0x2a   : > { %v1936_v14 = vld [vmem:[%s1908_s2 + $0x1a0] sm:$0xff]  ;;  %v399_v53 = vpack.c.bf16 %v1284_v47, %v1932_v12  ;;  %v1287_v54 = vld [vmem:[%s1908_s2 + $0x1a8] sm:$0xff]  ;;  %1280 = vst [vmem:[%s1923_s8 + $0xa0] sm:$0xff] %v383_v51  ;;  %v2078_v42 = vld [vmem:[%s1908_s2 + $0x150] sm:$0xff] }
  0x2b   : > { %v1939_v15 = vld [vmem:[%s1908_s2 + $0x1c0] sm:$0xff]  ;;  %v1290_v55 = vld [vmem:[%s1908_s2 + $0x1c8] sm:$0xff]  ;;  %v407_v60 = vpack.c.bf16 %v1287_v54, %v1936_v14  ;;  %1283 = vst [vmem:[%s1923_s8 + $0xb0] sm:$0xff] %v391_v52  ;;  %v2081_v43 = vld [vmem:[%s1908_s2 + $0x170] sm:$0xff] }
  0x2c   : > { %v1942_v16 = vld [vmem:[%s1908_s2 + $0x1e0] sm:$0xff]  ;;  %v1293_v56 = vld [vmem:[%s1908_s2 + $0x1e8] sm:$0xff]  ;;  %v415_v61 = vpack.c.bf16 %v1290_v55, %v1939_v15  ;;  %1286 = vst [vmem:[%s1923_s8 + $0xc0] sm:$0xff] %v399_v53  ;;  %v2084_v44 = vld [vmem:[%s1908_s2 + $0x190] sm:$0xff] }
  0x2d   : > { %v1948_v21 = vld [vmem:[%s1908_s2 + $0x200] sm:$0xff]  ;;  %v423_v62 = vpack.c.bf16 %v1293_v56, %v1942_v16  ;;  %v1296_v63 = vld [vmem:[%s1908_s2 + $0x208] sm:$0xff]  ;;  %1289 = vst [vmem:[%s1923_s8 + $0xd0] sm:$0xff] %v407_v60  ;;  %v2087_v45 = vld [vmem:[%s1908_s2 + $0x1b0] sm:$0xff] }
  0x2e   : > { %v1951_v22 = vld [vmem:[%s1908_s2 + $0x220] sm:$0xff]  ;;  %v1299_v0 = vld [vmem:[%s1908_s2 + $0x228] sm:$0xff]  ;;  %v431_v3 = vpack.c.bf16 %v1296_v63, %v1948_v21  ;;  %1292 = vst [vmem:[%s1923_s8 + $0xe0] sm:$0xff] %v415_v61  ;;  %v2090_v46 = vld [vmem:[%s1908_s2 + $0x1d0] sm:$0xff] }
  0x2f   : > { %v1954_v23 = vld [vmem:[%s1908_s2 + $0x240] sm:$0xff]  ;;  %v1302_v1 = vld [vmem:[%s1908_s2 + $0x248] sm:$0xff]  ;;  %v439_v4 = vpack.c.bf16 %v1299_v0, %v1951_v22  ;;  %1295 = vst [vmem:[%s1923_s8 + $0xf0] sm:$0xff] %v423_v62  ;;  %v1376_v47 = vld [vmem:[%s1908_s2 + $0x18] sm:$0xff] }
  0x30   : > { %v1960_v30 = vld [vmem:[%s1908_s2 + $0x260] sm:$0xff]  ;;  %v447_v5 = vpack.c.bf16 %v1302_v1, %v1954_v23  ;;  %v1305_v6 = vld [vmem:[%s1908_s2 + $0x268] sm:$0xff]  ;;  %1298 = vst [vmem:[%s1923_s8 + $0x100] sm:$0xff] %v431_v3  ;;  %v2099_v51 = vld [vmem:[%s1908_s2 + $0x210] sm:$0xff] }
  0x31   : > { %v1963_v31 = vld [vmem:[%s1908_s2 + $0x280] sm:$0xff]  ;;  %v1308_v7 = vld [vmem:[%s1908_s2 + $0x288] sm:$0xff]  ;;  %v455_v9 = vpack.c.bf16 %v1305_v6, %v1960_v30  ;;  %1301 = vst [vmem:[%s1923_s8 + $0x110] sm:$0xff] %v439_v4  ;;  %v2102_v52 = vld [vmem:[%s1908_s2 + $0x230] sm:$0xff] }
  0x32   : > { %v1966_v32 = vld [vmem:[%s1908_s2 + $0x2a0] sm:$0xff]  ;;  %v1311_v8 = vld [vmem:[%s1908_s2 + $0x2a8] sm:$0xff]  ;;  %v463_v10 = vpack.c.bf16 %v1308_v7, %v1963_v31  ;;  %1304 = vst [vmem:[%s1923_s8 + $0x120] sm:$0xff] %v447_v5  ;;  %v1385_v56 = vld [vmem:[%s1908_s2 + $0x78] sm:$0xff] }
  0x33   : > { %v1973_v39 = vld [vmem:[%s1908_s2 + $0x2c0] sm:$0xff]  ;;  %v471_v11 = vpack.c.bf16 %v1311_v8, %v1966_v32  ;;  %v1314_v12 = vld [vmem:[%s1908_s2 + $0x2c8] sm:$0xff]  ;;  %1307 = vst [vmem:[%s1923_s8 + $0x130] sm:$0xff] %v455_v9  ;;  %v1344_v32 = vld [vmem:[%s1908_s2 + $0x10] sm:$0xff]  ;;  %v679_v62 = vpack.c.bf16 %v1385_v56, %v1347_v35 }
  0x34   : > { %v1976_v40 = vld [vmem:[%s1908_s2 + $0x2e0] sm:$0xff]  ;;  %v1317_v13 = vld [vmem:[%s1908_s2 + $0x2e8] sm:$0xff]  ;;  %v479_v15 = vpack.c.bf16 %v1314_v12, %v1973_v39  ;;  %1310 = vst [vmem:[%s1923_s8 + $0x140] sm:$0xff] %v463_v10  ;;  %v1351_v39 = vld [vmem:[%s1908_s2 + $0xf0] sm:$0xff]  ;;  %v655_v53 = vpack.c.bf16 %v1376_v47, %v1344_v32 }
  0x35   : > { %v1979_v41 = vld [vmem:[%s1908_s2 + $0x300] sm:$0xff]  ;;  %v1320_v14 = vld [vmem:[%s1908_s2 + $0x308] sm:$0xff]  ;;  %v487_v16 = vpack.c.bf16 %v1317_v13, %v1976_v40  ;;  %1313 = vst [vmem:[%s1923_s8 + $0x150] sm:$0xff] %v471_v11  ;;  %v1352_v40 = vld [vmem:[%s1908_s2 + $0x110] sm:$0xff] }
  0x36   : > { %v1988_v48 = vld [vmem:[%s1908_s2 + $0x320] sm:$0xff]  ;;  %v495_v17 = vpack.c.bf16 %v1320_v14, %v1979_v41  ;;  %v1323_v18 = vld [vmem:[%s1908_s2 + $0x328] sm:$0xff]  ;;  %1316 = vst [vmem:[%s1923_s8 + $0x160] sm:$0xff] %v479_v15  ;;  %v2075_v41 = vld [vmem:[%s1908_s2 + $0x130] sm:$0xff] }
  0x37   : > { %v1991_v49 = vld [vmem:[%s1908_s2 + $0x340] sm:$0xff]  ;;  %v1326_v19 = vld [vmem:[%s1908_s2 + $0x348] sm:$0xff]  ;;  %v503_v21 = vpack.c.bf16 %v1323_v18, %v1988_v48  ;;  %1319 = vst [vmem:[%s1923_s8 + $0x170] sm:$0xff] %v487_v16  ;;  %v1379_v48 = vld [vmem:[%s1908_s2 + $0x38] sm:$0xff] }
  0x38   : > { %v1994_v50 = vld [vmem:[%s1908_s2 + $0x360] sm:$0xff]  ;;  %v1329_v20 = vld [vmem:[%s1908_s2 + $0x368] sm:$0xff]  ;;  %v511_v22 = vpack.c.bf16 %v1326_v19, %v1991_v49  ;;  %1322 = vst [vmem:[%s1923_s8 + $0x180] sm:$0xff] %v495_v17  ;;  %v1382_v49 = vld [vmem:[%s1908_s2 + $0x58] sm:$0xff]  ;;  %v663_v54 = vpack.c.bf16 %v1379_v48, %v1345_v33 }
  0x39   : > { %v1244_v57 = vld [vmem:[%s1908_s2 + $0x380] sm:$0xff]  ;;  %v519_v23 = vpack.c.bf16 %v1329_v20, %v1994_v50  ;;  %v1332_v24 = vld [vmem:[%s1908_s2 + $0x388] sm:$0xff]  ;;  %1325 = vst [vmem:[%s1923_s8 + $0x190] sm:$0xff] %v503_v21  ;;  %v2096_v50 = vld [vmem:[%s1908_s2 + $0x1f0] sm:$0xff]  ;;  %v671_v55 = vpack.c.bf16 %v1382_v49, %v1346_v34 }
  0x3a   : > { %v1245_v58 = vld [vmem:[%s1908_s2 + $0x3a0] sm:$0xff]  ;;  %v1335_v25 = vld [vmem:[%s1908_s2 + $0x3a8] sm:$0xff]  ;;  %v527_v27 = vpack.c.bf16 %v1332_v24, %v1244_v57  ;;  %1328 = vst [vmem:[%s1923_s8 + $0x1a0] sm:$0xff] %v511_v22  ;;  %v1388_v57 = vld [vmem:[%s1908_s2 + $0x98] sm:$0xff] }
  0x3b   : > { %v1246_v59 = vld [vmem:[%s1908_s2 + $0x3c0] sm:$0xff]  ;;  %v1338_v26 = vld [vmem:[%s1908_s2 + $0x3c8] sm:$0xff]  ;;  %v535_v28 = vpack.c.bf16 %v1335_v25, %v1245_v58  ;;  %1331 = vst [vmem:[%s1923_s8 + $0x1b0] sm:$0xff] %v519_v23  ;;  %v1391_v58 = vld [vmem:[%s1908_s2 + $0xb8] sm:$0xff]  ;;  %v687_v63 = vpack.c.bf16 %v1388_v57, %v1348_v36 }
  0x3c   : > { %v1247_v2 = vld [vmem:[%s1908_s2 + $0x3e0] sm:$0xff]  ;;  %v543_v29 = vpack.c.bf16 %v1338_v26, %v1246_v59  ;;  %v1341_v30 = vld [vmem:[%s1908_s2 + $0x3e8] sm:$0xff]  ;;  %1334 = vst [vmem:[%s1923_s8 + $0x1c0] sm:$0xff] %v527_v27  ;;  %v2108_v59 = vld [vmem:[%s1908_s2 + $0x250] sm:$0xff]  ;;  %v695_v0 = vpack.c.bf16 %v1391_v58, %v1349_v37 }
  0x3d   : > { %v551_v31 = vpack.c.bf16 %v1341_v30, %v1247_v2  ;;  %1337 = vst [vmem:[%s1923_s8 + $0x1d0] sm:$0xff] %v535_v28  ;;  %v2111_v60 = vld [vmem:[%s1908_s2 + $0x270] sm:$0xff]  ;;  %v1394_v1 = vld [vmem:[%s1908_s2 + $0xd8] sm:$0xff]  ;;  %1378 = vst [vmem:[%s1923_s8 + $0x8] sm:$0xff] %v655_v53 }
  0x3e   : > { %1340 = vst [vmem:[%s1923_s8 + $0x1e0] sm:$0xff] %v543_v29  ;;  %v2114_v61 = vld [vmem:[%s1908_s2 + $0x290] sm:$0xff]  ;;  %v1397_v2 = vld [vmem:[%s1908_s2 + $0xf8] sm:$0xff]  ;;  %1381 = vst [vmem:[%s1923_s8 + $0x18] sm:$0xff] %v663_v54  ;;  %v703_v7 = vpack.c.bf16 %v1394_v1, %v1350_v38 }
  0x3f   : > { %1343 = vst [vmem:[%s1923_s8 + $0x1f0] sm:$0xff] %v551_v31  ;;  %v1400_v3 = vld [vmem:[%s1908_s2 + $0x118] sm:$0xff]  ;;  %v2120_v4 = vld [vmem:[%s1908_s2 + $0x2b0] sm:$0xff]  ;;  %1384 = vst [vmem:[%s1923_s8 + $0x28] sm:$0xff] %v671_v55  ;;  %v711_v8 = vpack.c.bf16 %v1397_v2, %v1351_v39 }
  0x40   : > { %v2123_v5 = vld [vmem:[%s1908_s2 + $0x2d0] sm:$0xff]  ;;  %v719_v9 = vpack.c.bf16 %v1400_v3, %v1352_v40  ;;  %v1403_v10 = vld [vmem:[%s1908_s2 + $0x138] sm:$0xff]  ;;  %1387 = vst [vmem:[%s1923_s8 + $0x38] sm:$0xff] %v679_v62  ;;  %1390 = vst [vmem:[%s1923_s8 + $0x48] sm:$0xff] %v687_v63 }
  0x41   : > { %v2126_v6 = vld [vmem:[%s1908_s2 + $0x2f0] sm:$0xff]  ;;  %v1406_v11 = vld [vmem:[%s1908_s2 + $0x158] sm:$0xff]  ;;  %1393 = vst [vmem:[%s1923_s8 + $0x58] sm:$0xff] %v695_v0  ;;  %v727_v16 = vpack.c.bf16 %v1403_v10, %v2075_v41  ;;  %1396 = vst [vmem:[%s1923_s8 + $0x68] sm:$0xff] %v703_v7 }
  0x42   : > { %v1409_v12 = vld [vmem:[%s1908_s2 + $0x178] sm:$0xff]  ;;  %v2135_v13 = vld [vmem:[%s1908_s2 + $0x310] sm:$0xff]  ;;  %v735_v17 = vpack.c.bf16 %v1406_v11, %v2078_v42  ;;  %1399 = vst [vmem:[%s1923_s8 + $0x78] sm:$0xff] %v711_v8  ;;  %1402 = vst [vmem:[%s1923_s8 + $0x88] sm:$0xff] %v719_v9 }
  0x43   : > { %v2138_v14 = vld [vmem:[%s1908_s2 + $0x330] sm:$0xff]  ;;  %v743_v18 = vpack.c.bf16 %v1409_v12, %v2081_v43  ;;  %v1412_v19 = vld [vmem:[%s1908_s2 + $0x198] sm:$0xff]  ;;  %1405 = vst [vmem:[%s1923_s8 + $0x98] sm:$0xff] %v727_v16 }
  0x44   : > { %v2141_v15 = vld [vmem:[%s1908_s2 + $0x350] sm:$0xff]  ;;  %v1415_v20 = vld [vmem:[%s1908_s2 + $0x1b8] sm:$0xff]  ;;  %v751_v25 = vpack.c.bf16 %v1412_v19, %v2084_v44  ;;  %1408 = vst [vmem:[%s1923_s8 + $0xa8] sm:$0xff] %v735_v17 }
  0x45   : > { %v1418_v21 = vld [vmem:[%s1908_s2 + $0x1d8] sm:$0xff]  ;;  %v2153_v22 = vld [vmem:[%s1908_s2 + $0x370] sm:$0xff]  ;;  %v759_v26 = vpack.c.bf16 %v1415_v20, %v2087_v45  ;;  %1411 = vst [vmem:[%s1923_s8 + $0xb8] sm:$0xff] %v743_v18 }
  0x46   : > { %v2156_v23 = vld [vmem:[%s1908_s2 + $0x390] sm:$0xff]  ;;  %v767_v27 = vpack.c.bf16 %v1418_v21, %v2090_v46  ;;  %v1421_v28 = vld [vmem:[%s1908_s2 + $0x1f8] sm:$0xff]  ;;  %1414 = vst [vmem:[%s1923_s8 + $0xc8] sm:$0xff] %v751_v25 }
  0x47   : > { %v2159_v24 = vld [vmem:[%s1908_s2 + $0x3b0] sm:$0xff]  ;;  %v1424_v29 = vld [vmem:[%s1908_s2 + $0x218] sm:$0xff]  ;;  %v775_v33 = vpack.c.bf16 %v1421_v28, %v2096_v50  ;;  %1417 = vst [vmem:[%s1923_s8 + $0xd8] sm:$0xff] %v759_v26 }
  0x48   : > { %v1427_v30 = vld [vmem:[%s1908_s2 + $0x238] sm:$0xff]  ;;  %v1374_v31 = vld [vmem:[%s1908_s2 + $0x3d0] sm:$0xff]  ;;  %v783_v34 = vpack.c.bf16 %v1424_v29, %v2099_v51  ;;  %1420 = vst [vmem:[%s1923_s8 + $0xe8] sm:$0xff] %v767_v27 }
  0x49   : > { %v1375_v32 = vld [vmem:[%s1908_s2 + $0x3f0] sm:$0xff]  ;;  %v791_v35 = vpack.c.bf16 %v1427_v30, %v2102_v52  ;;  %v1430_v36 = vld [vmem:[%s1908_s2 + $0x258] sm:$0xff]  ;;  %1423 = vst [vmem:[%s1923_s8 + $0xf8] sm:$0xff] %v775_v33 }
  0x4a   : > { %v1433_v37 = vld [vmem:[%s1908_s2 + $0x278] sm:$0xff]  ;;  %v799_v39 = vpack.c.bf16 %v1430_v36, %v2108_v59  ;;  %1426 = vst [vmem:[%s1923_s8 + $0x108] sm:$0xff] %v783_v34 }
  0x4b   : > { %v1436_v38 = vld [vmem:[%s1908_s2 + $0x298] sm:$0xff]  ;;  %v807_v40 = vpack.c.bf16 %v1433_v37, %v2111_v60  ;;  %1429 = vst [vmem:[%s1923_s8 + $0x118] sm:$0xff] %v791_v35 }
  0x4c   : > { %v815_v41 = vpack.c.bf16 %v1436_v38, %v2114_v61  ;;  %v1439_v42 = vld [vmem:[%s1908_s2 + $0x2b8] sm:$0xff]  ;;  %1432 = vst [vmem:[%s1923_s8 + $0x128] sm:$0xff] %v799_v39 }
  0x4d   : > { %v1442_v43 = vld [vmem:[%s1908_s2 + $0x2d8] sm:$0xff]  ;;  %v823_v45 = vpack.c.bf16 %v1439_v42, %v2120_v4  ;;  %1435 = vst [vmem:[%s1923_s8 + $0x138] sm:$0xff] %v807_v40 }
  0x4e   : > { %v1445_v44 = vld [vmem:[%s1908_s2 + $0x2f8] sm:$0xff]  ;;  %v831_v46 = vpack.c.bf16 %v1442_v43, %v2123_v5  ;;  %1438 = vst [vmem:[%s1923_s8 + $0x148] sm:$0xff] %v815_v41 }
  0x4f   : > { %v839_v47 = vpack.c.bf16 %v1445_v44, %v2126_v6  ;;  %v1448_v48 = vld [vmem:[%s1908_s2 + $0x318] sm:$0xff]  ;;  %1441 = vst [vmem:[%s1923_s8 + $0x158] sm:$0xff] %v823_v45 }
  0x50   : > { %v1451_v49 = vld [vmem:[%s1908_s2 + $0x338] sm:$0xff]  ;;  %v847_v51 = vpack.c.bf16 %v1448_v48, %v2135_v13  ;;  %1444 = vst [vmem:[%s1923_s8 + $0x168] sm:$0xff] %v831_v46 }
  0x51   : > { %v1454_v50 = vld [vmem:[%s1908_s2 + $0x358] sm:$0xff]  ;;  %v855_v52 = vpack.c.bf16 %v1451_v49, %v2138_v14  ;;  %1447 = vst [vmem:[%s1923_s8 + $0x178] sm:$0xff] %v839_v47 }
  0x52   : > { %v863_v53 = vpack.c.bf16 %v1454_v50, %v2141_v15  ;;  %v1457_v54 = vld [vmem:[%s1908_s2 + $0x378] sm:$0xff]  ;;  %1450 = vst [vmem:[%s1923_s8 + $0x188] sm:$0xff] %v847_v51 }
  0x53   : > { %v1460_v55 = vld [vmem:[%s1908_s2 + $0x398] sm:$0xff]  ;;  %v871_v57 = vpack.c.bf16 %v1457_v54, %v2153_v22  ;;  %1453 = vst [vmem:[%s1923_s8 + $0x198] sm:$0xff] %v855_v52 }
  0x54   : > { %v1463_v56 = vld [vmem:[%s1908_s2 + $0x3b8] sm:$0xff]  ;;  %v879_v58 = vpack.c.bf16 %v1460_v55, %v2156_v23  ;;  %1456 = vst [vmem:[%s1923_s8 + $0x1a8] sm:$0xff] %v863_v53 }
  0x55   : > { %v887_v59 = vpack.c.bf16 %v1463_v56, %v2159_v24  ;;  %v1466_v60 = vld [vmem:[%s1908_s2 + $0x3d8] sm:$0xff]  ;;  %1459 = vst [vmem:[%s1923_s8 + $0x1b8] sm:$0xff] %v871_v57 }
  0x56   : > { %v1469_v61 = vld [vmem:[%s1908_s2 + $0x3f8] sm:$0xff]  ;;  %v895_v62 = vpack.c.bf16 %v1466_v60, %v1374_v31  ;;  %1462 = vst [vmem:[%s1923_s8 + $0x1c8] sm:$0xff] %v879_v58 }
  0x57   : > { %v903_v63 = vpack.c.bf16 %v1469_v61, %v1375_v32  ;;  %1465 = vst [vmem:[%s1923_s8 + $0x1d8] sm:$0xff] %v887_v59 }
  0x58   : > { %1468 = vst [vmem:[%s1923_s8 + $0x1e8] sm:$0xff] %v895_v62 }
  0x59   : > { %1471 = vst [vmem:[%s1923_s8 + $0x1f8] sm:$0xff] %v903_v63 }
  0x5a PF: > { %s7_s24 = sadd.s32 1, %s1778_s24   ;;  %s2290_s6 = smov %s1718_s9 }
  0x5b   : > { %p2225_p11 = scmp.ge.s32.totalorder %s7_s24, 28   ;;  %s2291_s7 = smov %s1722_s10 }
  0x5c   : > { %s2292_s8 = smov %s1726_s11  ;;  %s2293_s9 = smov %s1730_s12 }
  0x5d   : > { %s2294_s10 = smov %s1734_s13  ;;  %s2295_s11 = smov %s1738_s14 }
  0x5e   : > { %s2296_s12 = smov %s1742_s15  ;;  %s2297_s13 = smov %s1746_s16 }
  0x5f   : > { %s2298_s14 = smov %s1750_s17  ;;  %s2299_s15 = smov %s1754_s18 }
  0x60   : > { %s2300_s16 = smov %s1758_s19  ;;  %s2301_s17 = smov %s1762_s20 }
  0x61   : > { %s2302_s18 = smov %s1766_s21  ;;  %s2303_s19 = smov %s1770_s22 }
  0x62   : > { %s2304_s20 = smov %s1774_s23  ;;  %s2305_s21 = smov %s2309_s25 }
  0x63   : > { %s2306_s22 = smov %s2313_s26  ;;  %s2307_s23 = smov %s2317_s27 }
  0x64   :  { %6 = sbr.rel (!%p2225_p11) target bundleno = 10 (0xa), region = 359 }

// kernel: net_forward.1
= control target key start
LH: loop header
LB: loop body
LE: loop exit
PB: predicated region body
PF: predicated region fallthrough
CT: control target
= control target key end

     0   :  { %v168_v38 = vlaneseq  ;;  %v9011_v39 = vmov 1983009808   ;;  %vm1166_vm0 = vcmask 1043456   ;;  %vm2605_vm1 = vcmask 1041409   ;;  %s12535_s3 = inlined_call_operand.vmem [shape: bf16[512,512], index: 3, kind: input, shape index: {}]   ;;  %s12536_s0 = inlined_call_operand.vmem [shape: bf16[2,4,512], index: 0, kind: input, shape index: {}]   ;;  %s12537_s1 = inlined_call_operand.vmem [shape: bf16[2,4,512], index: 1, kind: input, shape index: {}]   ;;  %s12538_s2 = inlined_call_operand.vmem [shape: bf16[2,4,512], index: 2, kind: input, shape index: {}]   ;;  %s12539_s5 = inlined_call_operand.vmem [shape: bf16[3,512,1024], index: 5, kind: input, shape index: {}]   ;;  %s12540_s4 = inlined_call_operand.vmem [shape: f32[1,1,512], index: 4, kind: input, shape index: {}]   ;;  %s12541_s6 = inlined_call_operand.vmem [shape: f32[3,1,1024], index: 6, kind: input, shape index: {}]   ;;  %s12542_s7 = inlined_call_operand.vmem [shape: bf16[3,3,1024], index: 7, kind: input, shape index: {}]   ;;  %s12543_s8 = inlined_call_operand.vmem [shape: f32[3,3], index: 8, kind: input, shape index: {}]   ;;  %s12544_s9 = inlined_call_operand.vmem [shape: f32[3,3], index: 9, kind: output, shape index: {}]  }
   0x1   :  { %v8778_v0 = vld [vmem:[%s12535_s3 + $0xe4] ss:$16 sps:$4 sm:$0xff]   ;;  %v8782_v2 = vld [vmem:[%s12535_s3 + $0xe0] ss:$16 sps:$4 sm:$0xff]   ;;  %v197_v40 = vunpack.c.l.s4 %v9011_v39  ;;  %v33_v55 = vld [vmem:[%s12536_s0 + $0x8] sm:$0xff]  ;;  %vm7498_vm2 = vcmask 1041408  }
   0x2   :  { %v8780_v1 = vld [vmem:[%s12535_s3 + $0x2e4] ss:$16 sps:$4 sm:$0xff]   ;;  %902 = vmatprep.subr.bf16.mxu0 %v8778_v0  ;;  %v8783_v3 = vld [vmem:[%s12535_s3 + $0x2e0] ss:$16 sps:$4 sm:$0xff]   ;;  %v9190_v45 = vshrl.u32 %v168_v38, 7  ;;  %v35_v57 = vld [vmem:[%s12537_s1 + $0x8] sm:$0xff] }
   0x3   :  { %953 = vmatprep.subr.bf16.mxu1 %v8780_v1  ;;  %v8784_v4 = vld [vmem:[%s12535_s3 + $0xc4] ss:$16 sps:$4 sm:$0xff]   ;;  %903 = vmatpush1.bf16.msra.mxu0 %v8782_v2  ;;  %v8788_v6 = vld [vmem:[%s12535_s3 + $0xc0] ss:$16 sps:$4 sm:$0xff]   ;;  %v198_v46 = vunpack.c.0.s8 %v197_v40  ;;  %vm7745_vm3 = vcmask 1042432   ;;  %vm7853_vm4 = vcmask 1042434  }
   0x4   :  { %954 = vmatpush1.bf16.msra.mxu1 %v8783_v3  ;;  %v8786_v5 = vld [vmem:[%s12535_s3 + $0x2c4] ss:$16 sps:$4 sm:$0xff]   ;;  %904 = vmatprep.subr.bf16.mxu0 %v8784_v4  ;;  %v8789_v7 = vld [vmem:[%s12535_s3 + $0x2c0] ss:$16 sps:$4 sm:$0xff]   ;;  %vm7856_vm5 = vcmask 18432  }
   0x5   :  { %955 = vmatprep.subr.bf16.mxu1 %v8786_v5  ;;  %v8790_v8 = vld [vmem:[%s12535_s3 + $0xa4] ss:$16 sps:$4 sm:$0xff]   ;;  %v8794_v10 = vld [vmem:[%s12535_s3 + $0xa0] ss:$16 sps:$4 sm:$0xff]   ;;  %v9214_v54 = vsub.s32 %v198_v46, %v9190_v45  ;;  %v8896_v46 = vld [vmem:[%s12535_s3 + $0x88] ss:$16 sps:$4 sm:$0xff]  }
   0x6   :  { %v8792_v9 = vld [vmem:[%s12535_s3 + $0x2a4] ss:$16 sps:$4 sm:$0xff]   ;;  %v8795_v11 = vld [vmem:[%s12535_s3 + $0x2a0] ss:$16 sps:$4 sm:$0xff]  }
   0x7   :  { %905 = vmatpush1.bf16.msra.mxu0 %v8788_v6  ;;  %v8796_v12 = vld [vmem:[%s12535_s3 + $0x84] ss:$16 sps:$4 sm:$0xff]   ;;  %v8800_v14 = vld [vmem:[%s12535_s3 + $0x80] ss:$16 sps:$4 sm:$0xff]  }
   0x8   :  { %956 = vmatpush1.bf16.msra.mxu1 %v8789_v7  ;;  %906 = vmatprep.subr.bf16.mxu0 %v8790_v8  ;;  %v8798_v13 = vld [vmem:[%s12535_s3 + $0x284] ss:$16 sps:$4 sm:$0xff]   ;;  %v8801_v15 = vld [vmem:[%s12535_s3 + $0x280] ss:$16 sps:$4 sm:$0xff]  }
   0x9   :  { %957 = vmatprep.subr.bf16.mxu1 %v8792_v9  ;;  %v8802_v16 = vld [vmem:[%s12535_s3 + $0x64] ss:$16 sps:$4 sm:$0xff]   ;;  %v8806_v18 = vld [vmem:[%s12535_s3 + $0x60] ss:$16 sps:$4 sm:$0xff]  }
   0xa   :  { %v8804_v17 = vld [vmem:[%s12535_s3 + $0x264] ss:$16 sps:$4 sm:$0xff]   ;;  %v8807_v19 = vld [vmem:[%s12535_s3 + $0x260] ss:$16 sps:$4 sm:$0xff]  }
   0xb   :  { %907 = vmatpush1.bf16.msra.mxu0 %v8794_v10  ;;  %v8808_v20 = vld [vmem:[%s12535_s3 + $0x44] ss:$16 sps:$4 sm:$0xff]   ;;  %v8812_v22 = vld [vmem:[%s12535_s3 + $0x40] ss:$16 sps:$4 sm:$0xff]  }
   0xc   :  { %958 = vmatpush1.bf16.msra.mxu1 %v8795_v11  ;;  %908 = vmatprep.subr.bf16.mxu0 %v8796_v12  ;;  %v8810_v21 = vld [vmem:[%s12535_s3 + $0x244] ss:$16 sps:$4 sm:$0xff]   ;;  %v8813_v23 = vld [vmem:[%s12535_s3 + $0x240] ss:$16 sps:$4 sm:$0xff]  }
   0xd   :  { %959 = vmatprep.subr.bf16.mxu1 %v8798_v13  ;;  %v8814_v24 = vld [vmem:[%s12535_s3 + $0x24] ss:$16 sps:$4 sm:$0xff]   ;;  %v8818_v26 = vld [vmem:[%s12535_s3 + $0x20] ss:$16 sps:$4 sm:$0xff]  }
   0xe   :  { %v8816_v25 = vld [vmem:[%s12535_s3 + $0x224] ss:$16 sps:$4 sm:$0xff]   ;;  %v8819_v27 = vld [vmem:[%s12535_s3 + $0x220] ss:$16 sps:$4 sm:$0xff]  }
   0xf   :  { %909 = vmatpush1.bf16.msra.mxu0 %v8800_v14  ;;  %v8820_v28 = vld [vmem:[%s12535_s3 + $0x4] ss:$16 sps:$4 sm:$0xff]   ;;  %v8824_v30 = vld [vmem:[%s12535_s3] ss:$16 sps:$4 sm:$0xff]  }
  0x10   :  { %960 = vmatpush1.bf16.msra.mxu1 %v8801_v15  ;;  %910 = vmatprep.subr.bf16.mxu0 %v8802_v16  ;;  %v8822_v29 = vld [vmem:[%s12535_s3 + $0x204] ss:$16 sps:$4 sm:$0xff]   ;;  %v8825_v31 = vld [vmem:[%s12535_s3 + $0x200] ss:$16 sps:$4 sm:$0xff]  }
  0x11   :  { %961 = vmatprep.subr.bf16.mxu1 %v8804_v17  ;;  %v8826_v32 = vld [vmem:[%s12535_s3 + $0x1e4] ss:$16 sps:$4 sm:$0xff]   ;;  %v8830_v34 = vld [vmem:[%s12535_s3 + $0x1e0] ss:$16 sps:$4 sm:$0xff]  }
  0x12   :  { %v8828_v33 = vld [vmem:[%s12535_s3 + $0x3e4] ss:$16 sps:$4 sm:$0xff]   ;;  %v8831_v35 = vld [vmem:[%s12535_s3 + $0x3e0] ss:$16 sps:$4 sm:$0xff]  }
  0x13   :  { %911 = vmatpush1.bf16.msra.mxu0 %v8806_v18  ;;  %v8832_v36 = vld [vmem:[%s12535_s3 + $0x1c4] ss:$16 sps:$4 sm:$0xff]   ;;  %v8836_v41 = vld [vmem:[%s12535_s3 + $0x1c0] ss:$16 sps:$4 sm:$0xff]  }
  0x14   :  { %962 = vmatpush1.bf16.msra.mxu1 %v8807_v19  ;;  %912 = vmatprep.subr.bf16.mxu0 %v8808_v20  ;;  %v8834_v37 = vld [vmem:[%s12535_s3 + $0x3c4] ss:$16 sps:$4 sm:$0xff]   ;;  %v8837_v42 = vld [vmem:[%s12535_s3 + $0x3c0] ss:$16 sps:$4 sm:$0xff]   ;;  %v8880_v20 = vld [vmem:[%s12535_s3 + $0xec] ss:$16 sps:$4 sm:$0xff]  }
  0x15   :  { %963 = vmatprep.subr.bf16.mxu1 %v8810_v21  ;;  %v8838_v43 = vld [vmem:[%s12535_s3 + $0x1a4] ss:$16 sps:$4 sm:$0xff]   ;;  %v8842_v47 = vld [vmem:[%s12535_s3 + $0x1a0] ss:$16 sps:$4 sm:$0xff]   ;;  %v8883_v21 = vld [vmem:[%s12535_s3 + $0x2ec] ss:$16 sps:$4 sm:$0xff]  }
  0x16   :  { %v8840_v44 = vld [vmem:[%s12535_s3 + $0x3a4] ss:$16 sps:$4 sm:$0xff]   ;;  %v8843_v48 = vld [vmem:[%s12535_s3 + $0x3a0] ss:$16 sps:$4 sm:$0xff]  }
  0x17   :  { %913 = vmatpush1.bf16.msra.mxu0 %v8812_v22  ;;  %v8844_v49 = vld [vmem:[%s12535_s3 + $0x184] ss:$16 sps:$4 sm:$0xff]   ;;  %v8848_v51 = vld [vmem:[%s12535_s3 + $0x180] ss:$16 sps:$4 sm:$0xff]  }
  0x18   :  { %964 = vmatpush1.bf16.msra.mxu1 %v8813_v23  ;;  %914 = vmatprep.subr.bf16.mxu0 %v8814_v24  ;;  %v8846_v50 = vld [vmem:[%s12535_s3 + $0x384] ss:$16 sps:$4 sm:$0xff]   ;;  %v8849_v52 = vld [vmem:[%s12535_s3 + $0x380] ss:$16 sps:$4 sm:$0xff]   ;;  %v8878_v24 = vld [vmem:[%s12535_s3 + $0xe8] ss:$16 sps:$4 sm:$0xff]  }
  0x19   :  { %965 = vmatprep.subr.bf16.mxu1 %v8816_v25  ;;  %v32_v53 = vld [vmem:[%s12536_s0] sm:$0xff]  ;;  %v8881_v25 = vld [vmem:[%s12535_s3 + $0x2e8] ss:$16 sps:$4 sm:$0xff]  }
  0x1a   :  { %v34_v56 = vld [vmem:[%s12537_s1] sm:$0xff]  ;;  %v192_v59 = vcombine.low %v32_v53, %v33_v55  ;;  %v193_v0 = vcombine.high %v32_v53, %v33_v55  ;;  %v8913_v53 = vld [vmem:[%s12535_s3 + $0x24c] ss:$16 sps:$4 sm:$0xff]   ;;  %v8911_v55 = vld [vmem:[%s12535_s3 + $0x248] ss:$16 sps:$4 sm:$0xff]  }
  0x1b   :  { %915 = vmatpush1.bf16.msra.mxu0 %v8818_v26  ;;  %v8850_v58 = vld [vmem:[%s12535_s3 + $0x164] ss:$16 sps:$4 sm:$0xff]   ;;  %v194_v60 = vcombine.low %v34_v56, %v35_v57  ;;  %v195_v1 = vcombine.high %v34_v56, %v35_v57  ;;  %v8854_v2 = vld [vmem:[%s12535_s3 + $0x160] ss:$16 sps:$4 sm:$0xff]   ;;  %v8886_v26 = vld [vmem:[%s12535_s3 + $0xcc] ss:$16 sps:$4 sm:$0xff]  }
  0x1c   :  { %966 = vmatpush1.bf16.msra.mxu1 %v8819_v27  ;;  %916 = vmatprep.subr.bf16.mxu0 %v8820_v28  ;;  %v8852_v61 = vld [vmem:[%s12535_s3 + $0x364] ss:$16 sps:$4 sm:$0xff]   ;;  %v202_v62 = vrot.slane %v192_v59, %v9214_v54  ;;  %v8855_v3 = vld [vmem:[%s12535_s3 + $0x360] ss:$16 sps:$4 sm:$0xff]   ;;  %v209_v6 = vrot.slane %v193_v0, %v9214_v54  ;;  %v8889_v27 = vld [vmem:[%s12535_s3 + $0x2cc] ss:$16 sps:$4 sm:$0xff]  }
  0x1d   :  { %967 = vmatprep.subr.bf16.mxu1 %v8822_v29  ;;  %v216_v63 = vrot.slane %v194_v60, %v9214_v54  ;;  %v8856_v4 = vld [vmem:[%s12535_s3 + $0x144] ss:$16 sps:$4 sm:$0xff]   ;;  %v223_v7 = vrot.slane %v195_v1, %v9214_v54  ;;  %v8860_v10 = vld [vmem:[%s12535_s3 + $0x140] ss:$16 sps:$4 sm:$0xff]   ;;  %v37_v29 = vld [vmem:[%s12538_s2 + $0x8] sm:$0xff] }
  0x1e   :  { %v8858_v8 = vld [vmem:[%s12535_s3 + $0x344] ss:$16 sps:$4 sm:$0xff]   ;;  %v8861_v11 = vld [vmem:[%s12535_s3 + $0x340] ss:$16 sps:$4 sm:$0xff]   ;;  %v8916_v56 = vld [vmem:[%s12535_s3 + $0x2c] ss:$16 sps:$4 sm:$0xff]  }
  0x1f   :  { %917 = vmatpush1.bf16.msra.mxu0 %v8824_v30  ;;  %v9242_v5 = vcombine.high %v202_v62, %v216_v63  ;;  %v9250_v9 = vcombine.high %v209_v6, %v223_v7  ;;  %v8862_v12 = vld [vmem:[%s12535_s3 + $0x124] ss:$16 sps:$4 sm:$0xff]   ;;  %v8866_v14 = vld [vmem:[%s12535_s3 + $0x120] ss:$16 sps:$4 sm:$0xff]   ;;  %v9289_v22 = vcombine.low %v202_v62, %v216_v63  ;;  %v9291_v23 = vcombine.low %v209_v6, %v223_v7  ;;  %v8919_v57 = vld [vmem:[%s12535_s3 + $0x22c] ss:$16 sps:$4 sm:$0xff]  }
  0x20   :  { %968 = vmatpush1.bf16.msra.mxu1 %v8825_v31  ;;  %918 = vmatprep.subr.bf16.mxu0 %v8826_v32  ;;  %v8864_v13 = vld [vmem:[%s12535_s3 + $0x324] ss:$16 sps:$4 sm:$0xff]   ;;  %v8867_v15 = vld [vmem:[%s12535_s3 + $0x320] ss:$16 sps:$4 sm:$0xff]   ;;  %v8884_v32 = vld [vmem:[%s12535_s3 + $0xc8] ss:$16 sps:$4 sm:$0xff]  }
  0x21   :  { %969 = vmatprep.subr.bf16.mxu1 %v8828_v33  ;;  %934 = vmatprep.mubr.bf16.mxu0 %v9242_v5  ;;  %v8868_v16 = vld [vmem:[%s12535_s3 + $0x104] ss:$16 sps:$4 sm:$0xff]   ;;  %v8872_v18 = vld [vmem:[%s12535_s3 + $0x100] ss:$16 sps:$4 sm:$0xff]   ;;  %v8887_v33 = vld [vmem:[%s12535_s3 + $0x2c8] ss:$16 sps:$4 sm:$0xff]  }
  0x22   :  { %985 = vmatprep.mubr.bf16.mxu1 %v9250_v9  ;;  %v8870_v17 = vld [vmem:[%s12535_s3 + $0x304] ss:$16 sps:$4 sm:$0xff]   ;;  %v8873_v19 = vld [vmem:[%s12535_s3 + $0x300] ss:$16 sps:$4 sm:$0xff]   ;;  %v8917_v59 = vld [vmem:[%s12535_s3 + $0x228] ss:$16 sps:$4 sm:$0xff]  }
  0x23   :  { %919 = vmatpush2.bf16.msra.mxu0 %v8830_v34  ;;  %v36_v28 = vld [vmem:[%s12538_s2] sm:$0xff]  ;;  %v8922_v60 = vld [vmem:[%s12535_s3 + $0xc] ss:$16 sps:$4 sm:$0xff]   ;;  %v8920_v62 = vld [vmem:[%s12535_s3 + $0x8] ss:$16 sps:$4 sm:$0xff]  }
  0x24   :  { %970 = vmatpush2.bf16.msra.mxu1 %v8831_v35  ;;  %920 = vmatprep.subr.bf16.mxu0 %v8832_v36  ;;  %v228_v30 = vcombine.low %v36_v28, %v37_v29  ;;  %v229_v31 = vcombine.high %v36_v28, %v37_v29  ;;  %v8892_v35 = vld [vmem:[%s12535_s3 + $0xac] ss:$16 sps:$4 sm:$0xff]   ;;  %v8923_v63 = vld [vmem:[%s12535_s3 + $0x208] ss:$16 sps:$4 sm:$0xff]  }
  0x25   :  { %971 = vmatprep.subr.bf16.mxu1 %v8834_v37  ;;  %v8895_v36 = vld [vmem:[%s12535_s3 + $0x2ac] ss:$16 sps:$4 sm:$0xff]   ;;  %v8934_v6 = vld [vmem:[%s12535_s3 + $0x1c8] ss:$16 sps:$4 sm:$0xff]  }
  0x26   :  { %v9320_v34 = vrot.slane %v228_v30, %v9214_v54  ;;  %v9329_v37 = vrot.slane %v229_v31, %v9214_v54  ;;  %v8908_v54 = vld [vmem:[%s12535_s3 + $0x48] ss:$16 sps:$4 sm:$0xff]   ;;  %v8929_v0 = vld [vmem:[%s12535_s3 + $0x1ec] ss:$16 sps:$4 sm:$0xff]  }
  0x27   :  { %921 = vmatpush2.bf16.msra.mxu0 %v8836_v41  ;;  %v8890_v41 = vld [vmem:[%s12535_s3 + $0xa8] ss:$16 sps:$4 sm:$0xff]   ;;  %v8932_v1 = vld [vmem:[%s12535_s3 + $0x3ec] ss:$16 sps:$4 sm:$0xff]  }
  0x28   :  { %972 = vmatpush2.bf16.msra.mxu1 %v8837_v42  ;;  %922 = vmatprep.subr.bf16.mxu0 %v8838_v43  ;;  %v9333_v39 = vcombine.high %v9320_v34, %v9320_v34  ;;  %v9337_v40 = vcombine.high %v9329_v37, %v9329_v37  ;;  %v8893_v42 = vld [vmem:[%s12535_s3 + $0x2a8] ss:$16 sps:$4 sm:$0xff]   ;;  %v8898_v43 = vld [vmem:[%s12535_s3 + $0x8c] ss:$16 sps:$4 sm:$0xff]  }
  0x29   :  { %973 = vmatprep.subr.bf16.mxu1 %v8840_v44  ;;  %v8901_v44 = vld [vmem:[%s12535_s3 + $0x28c] ss:$16 sps:$4 sm:$0xff]   ;;  %v8937_v7 = vld [vmem:[%s12535_s3 + $0x3c8] ss:$16 sps:$4 sm:$0xff]  }
  0x2a   :  { %v8964_v28 = vld [vmem:[%s12535_s3 + $0x128] ss:$16 sps:$4 sm:$0xff]   ;;  %v8972_v30 = vld [vmem:[%s12535_s3 + $0x10c] ss:$16 sps:$4 sm:$0xff]  }
  0x2b   :  { %923 = vmatpush2.bf16.msra.mxu0 %v8842_v47  ;;  %v8899_v47 = vld [vmem:[%s12535_s3 + $0x288] ss:$16 sps:$4 sm:$0xff]   ;;  %v8975_v31 = vld [vmem:[%s12535_s3 + $0x30c] ss:$16 sps:$4 sm:$0xff]  }
  0x2c   :  { %974 = vmatpush2.bf16.msra.mxu1 %v8843_v48  ;;  %924 = vmatprep.subr.bf16.mxu0 %v8844_v49  ;;  %v8904_v48 = vld [vmem:[%s12535_s3 + $0x6c] ss:$16 sps:$4 sm:$0xff]   ;;  %v8967_v29 = vld [vmem:[%s12535_s3 + $0x328] ss:$16 sps:$4 sm:$0xff]  }
  0x2d   :  { %975 = vmatprep.subr.bf16.mxu1 %v8846_v50  ;;  %v8907_v49 = vld [vmem:[%s12535_s3 + $0x26c] ss:$16 sps:$4 sm:$0xff]   ;;  %v8902_v50 = vld [vmem:[%s12535_s3 + $0x68] ss:$16 sps:$4 sm:$0xff]  }
  0x2f   :  { %925 = vmatpush2.bf16.msra.mxu0 %v8848_v51  ;;  %v8905_v51 = vld [vmem:[%s12535_s3 + $0x268] ss:$16 sps:$4 sm:$0xff]  }
  0x30   :  { %976 = vmatpush2.bf16.msra.mxu1 %v8849_v52  ;;  %926 = vmatprep.subr.bf16.mxu0 %v8850_v58  ;;  %v8910_v52 = vld [vmem:[%s12535_s3 + $0x4c] ss:$16 sps:$4 sm:$0xff]   ;;  %v8914_v58 = vld [vmem:[%s12535_s3 + $0x28] ss:$16 sps:$4 sm:$0xff]  }
  0x31   :  { %977 = vmatprep.subr.bf16.mxu1 %v8852_v61  ;;  %v8925_v61 = vld [vmem:[%s12535_s3 + $0x20c] ss:$16 sps:$4 sm:$0xff]  }
  0x33   :  { %927 = vmatpush2.bf16.msra.mxu0 %v8854_v2  ;;  %v8927_v2 = vld [vmem:[%s12535_s3 + $0x1e8] ss:$16 sps:$4 sm:$0xff]  }
  0x34   :  { %978 = vmatpush2.bf16.msra.mxu1 %v8855_v3  ;;  %928 = vmatprep.subr.bf16.mxu0 %v8856_v4  ;;  %v8930_v3 = vld [vmem:[%s12535_s3 + $0x3e8] ss:$16 sps:$4 sm:$0xff]   ;;  %v8936_v4 = vld [vmem:[%s12535_s3 + $0x1cc] ss:$16 sps:$4 sm:$0xff]  }
  0x35   :  { %979 = vmatprep.subr.bf16.mxu1 %v8858_v8  ;;  %v8942_v8 = vld [vmem:[%s12535_s3 + $0x1ac] ss:$16 sps:$4 sm:$0xff]  }
  0x37   :  { %929 = vmatpush2.bf16.msra.mxu0 %v8860_v10  ;;  %v8940_v10 = vld [vmem:[%s12535_s3 + $0x1a8] ss:$16 sps:$4 sm:$0xff]  }
  0x38   :  { %980 = vmatpush2.bf16.msra.mxu1 %v8861_v11  ;;  %930 = vmatprep.subr.bf16.mxu0 %v8862_v12  ;;  %v8943_v11 = vld [vmem:[%s12535_s3 + $0x3a8] ss:$16 sps:$4 sm:$0xff]   ;;  %v8948_v12 = vld [vmem:[%s12535_s3 + $0x18c] ss:$16 sps:$4 sm:$0xff]  }
  0x39   :  { %981 = vmatprep.subr.bf16.mxu1 %v8864_v13  ;;  %v8951_v13 = vld [vmem:[%s12535_s3 + $0x38c] ss:$16 sps:$4 sm:$0xff]  }
  0x3b   :  { %931 = vmatpush2.bf16.msra.mxu0 %v8866_v14  ;;  %v8946_v14 = vld [vmem:[%s12535_s3 + $0x188] ss:$16 sps:$4 sm:$0xff]  }
  0x3c   :  { %982 = vmatpush2.bf16.msra.mxu1 %v8867_v15  ;;  %932 = vmatprep.subr.bf16.mxu0 %v8868_v16  ;;  %v8949_v15 = vld [vmem:[%s12535_s3 + $0x388] ss:$16 sps:$4 sm:$0xff]   ;;  %v8954_v16 = vld [vmem:[%s12535_s3 + $0x16c] ss:$16 sps:$4 sm:$0xff]  }
  0x3d   :  { %983 = vmatprep.subr.bf16.mxu1 %v8870_v17  ;;  %v8957_v17 = vld [vmem:[%s12535_s3 + $0x36c] ss:$16 sps:$4 sm:$0xff]  }
  0x3f   :  { %933 = vmatpush2.bf16.msra.mxu0 %v8872_v18  ;;  %v8952_v18 = vld [vmem:[%s12535_s3 + $0x168] ss:$16 sps:$4 sm:$0xff]  }
  0x40   :  { %984 = vmatpush2.bf16.msra.mxu1 %v8873_v19  ;;  %1004 = vmatprep.subr.bf16.mxu0 %v8880_v20  ;;  %v8955_v19 = vld [vmem:[%s12535_s3 + $0x368] ss:$16 sps:$4 sm:$0xff]   ;;  %v8960_v20 = vld [vmem:[%s12535_s3 + $0x14c] ss:$16 sps:$4 sm:$0xff]  }
  0x41   :  { %1055 = vmatprep.subr.bf16.mxu1 %v8883_v21  ;;  %v8963_v21 = vld [vmem:[%s12535_s3 + $0x34c] ss:$16 sps:$4 sm:$0xff]  }
  0x42   :  { %935 = vmatmul.mubr.bf16.vlgmr.msra.gmra.mxu0 %v9289_v22 }
  0x43   :  { %986 = vmatmul.mubr.bf16.vlgmr.msra.gmra.mxu1 %v9291_v23  ;;  %1005 = vmatpush1.bf16.msra.mxu0 %v8878_v24  ;;  %v8958_v24 = vld [vmem:[%s12535_s3 + $0x148] ss:$16 sps:$4 sm:$0xff]  }
  0x44   :  { %1056 = vmatpush1.bf16.msra.mxu1 %v8881_v25  ;;  %1006 = vmatprep.subr.bf16.mxu0 %v8886_v26  ;;  %v8961_v25 = vld [vmem:[%s12535_s3 + $0x348] ss:$16 sps:$4 sm:$0xff]   ;;  %v8966_v26 = vld [vmem:[%s12535_s3 + $0x12c] ss:$16 sps:$4 sm:$0xff]  }
  0x45   :  { %1057 = vmatprep.subr.bf16.mxu1 %v8889_v27  ;;  %944 = vmatprep.mubr.bf16.mxu0 %v9333_v39  ;;  %v8969_v27 = vld [vmem:[%s12535_s3 + $0x32c] ss:$16 sps:$4 sm:$0xff]  }
  0x46   :  { %995 = vmatprep.mubr.bf16.mxu1 %v9337_v40 }
  0x47   :  { %1007 = vmatpush1.bf16.msra.mxu0 %v8884_v32  ;;  %v8970_v32 = vld [vmem:[%s12535_s3 + $0x108] ss:$16 sps:$4 sm:$0xff]  }
  0x48   :  { %1058 = vmatpush1.bf16.msra.mxu1 %v8887_v33  ;;  %1008 = vmatprep.subr.bf16.mxu0 %v8892_v35  ;;  %v8973_v33 = vld [vmem:[%s12535_s3 + $0x308] ss:$16 sps:$4 sm:$0xff]   ;;  %v1751_v35 = vld [vmem:[%s12539_s5 + $0x1c0] sm:$0xff] }
  0x49   :  { %1059 = vmatprep.subr.bf16.mxu1 %v8895_v36  ;;  %v1755_v36 = vld [vmem:[%s12539_s5 + $0x1e0] sm:$0xff] }
  0x4a   :  { %945 = vmatmul.mubr.bf16.gmra.mxu0 %v9320_v34 }
  0x4b   :  { %996 = vmatmul.mubr.bf16.gmra.mxu1 %v9329_v37  ;;  %1009 = vmatpush1.bf16.msra.mxu0 %v8890_v41  ;;  %v8063_v41 = vcombine.high %v1751_v35, %v1755_v36 }
  0x4c   :  { %1060 = vmatpush1.bf16.msra.mxu1 %v8893_v42  ;;  %1010 = vmatprep.subr.bf16.mxu0 %v8898_v43  ;;  %v8062_v42 = vcombine.low %v1751_v35, %v1755_v36  ;;  %v1735_v43 = vld [vmem:[%s12539_s5 + $0x140] sm:$0xff] }
  0x4d   :  { %1061 = vmatprep.subr.bf16.mxu1 %v8901_v44  ;;  %1036 = vmatprep.mubr.bf16.mxu0 %v9242_v5  ;;  %v8939_v5 = vld [vmem:[%s12535_s3 + $0x3cc] ss:$16 sps:$4 sm:$0xff]  }
  0x4e   :  { %1087 = vmatprep.mubr.bf16.mxu1 %v9250_v9  ;;  %v8945_v9 = vld [vmem:[%s12535_s3 + $0x3ac] ss:$16 sps:$4 sm:$0xff]  }
  0x4f   :  { %1011 = vmatpush1.bf16.msra.mxu0 %v8896_v46  ;;  %v1727_v46 = vld [vmem:[%s12539_s5 + $0x100] sm:$0xff] }
  0x50   :  { %1062 = vmatpush1.bf16.msra.mxu1 %v8899_v47  ;;  %1012 = vmatprep.subr.bf16.mxu0 %v8904_v48  ;;  %v1731_v47 = vld [vmem:[%s12539_s5 + $0x120] sm:$0xff] }
  0x51   :  { %1063 = vmatprep.subr.bf16.mxu1 %v8907_v49  ;;  %v8039_v48 = vcombine.high %v1727_v46, %v1731_v47  ;;  %v8038_v49 = vcombine.low %v1727_v46, %v1731_v47 }
  0x53   :  { %1013 = vmatpush1.bf16.msra.mxu0 %v8902_v50  ;;  %v1719_v50 = vld [vmem:[%s12539_s5 + $0xc0] sm:$0xff] }
  0x54   :  { %1064 = vmatpush1.bf16.msra.mxu1 %v8905_v51  ;;  %1014 = vmatprep.subr.bf16.mxu0 %v8910_v52  ;;  %v1723_v51 = vld [vmem:[%s12539_s5 + $0xe0] sm:$0xff] }
  0x55   :  { %1065 = vmatprep.subr.bf16.mxu1 %v8913_v53  ;;  %v8031_v52 = vcombine.high %v1719_v50, %v1723_v51  ;;  %v8030_v53 = vcombine.low %v1719_v50, %v1723_v51 }
  0x57   :  { %1015 = vmatpush1.bf16.msra.mxu0 %v8908_v54  ;;  %v1711_v54 = vld [vmem:[%s12539_s5 + $0x80] sm:$0xff] }
  0x58   :  { %1066 = vmatpush1.bf16.msra.mxu1 %v8911_v55  ;;  %1016 = vmatprep.subr.bf16.mxu0 %v8916_v56  ;;  %v1715_v55 = vld [vmem:[%s12539_s5 + $0xa0] sm:$0xff] }
  0x59   :  { %1067 = vmatprep.subr.bf16.mxu1 %v8919_v57  ;;  %v8023_v56 = vcombine.high %v1711_v54, %v1715_v55  ;;  %v8022_v57 = vcombine.low %v1711_v54, %v1715_v55 }
  0x5b   :  { %1017 = vmatpush1.bf16.msra.mxu0 %v8914_v58  ;;  %v1703_v58 = vld [vmem:[%s12539_s5 + $0x40] sm:$0xff] }
  0x5c   :  { %1068 = vmatpush1.bf16.msra.mxu1 %v8917_v59  ;;  %1018 = vmatprep.subr.bf16.mxu0 %v8922_v60  ;;  %v1707_v59 = vld [vmem:[%s12539_s5 + $0x60] sm:$0xff] }
  0x5d   :  { %1069 = vmatprep.subr.bf16.mxu1 %v8925_v61  ;;  %v8015_v60 = vcombine.high %v1703_v58, %v1707_v59  ;;  %v8014_v61 = vcombine.low %v1703_v58, %v1707_v59 }
  0x5f   :  { %1019 = vmatpush1.bf16.msra.mxu0 %v8920_v62  ;;  %v1695_v62 = vld [vmem:[%s12539_s5] sm:$0xff] }
  0x60   :  { %1070 = vmatpush1.bf16.msra.mxu1 %v8923_v63  ;;  %1020 = vmatprep.subr.bf16.mxu0 %v8929_v0  ;;  %v1699_v63 = vld [vmem:[%s12539_s5 + $0x20] sm:$0xff] }
  0x61   :  { %1071 = vmatprep.subr.bf16.mxu1 %v8932_v1  ;;  %v8007_v0 = vcombine.high %v1695_v62, %v1699_v63  ;;  %v8006_v1 = vcombine.low %v1695_v62, %v1699_v63 }
  0x63   :  { %1021 = vmatpush2.bf16.msra.mxu0 %v8927_v2  ;;  %v1815_v2 = vld [vmem:[%s12539_s5 + $0x3c0] sm:$0xff] }
  0x64   :  { %1072 = vmatpush2.bf16.msra.mxu1 %v8930_v3  ;;  %1022 = vmatprep.subr.bf16.mxu0 %v8936_v4  ;;  %v1819_v3 = vld [vmem:[%s12539_s5 + $0x3e0] sm:$0xff] }
  0x65   :  { %1073 = vmatprep.subr.bf16.mxu1 %v8939_v5  ;;  %v8126_v4 = vcombine.low %v1815_v2, %v1819_v3  ;;  %v8127_v5 = vcombine.high %v1815_v2, %v1819_v3 }
  0x67   :  { %1023 = vmatpush2.bf16.msra.mxu0 %v8934_v6  ;;  %v1807_v6 = vld [vmem:[%s12539_s5 + $0x380] sm:$0xff] }
  0x68   :  { %1074 = vmatpush2.bf16.msra.mxu1 %v8937_v7  ;;  %1024 = vmatprep.subr.bf16.mxu0 %v8942_v8  ;;  %v1811_v7 = vld [vmem:[%s12539_s5 + $0x3a0] sm:$0xff] }
  0x69   :  { %1075 = vmatprep.subr.bf16.mxu1 %v8945_v9  ;;  %v8119_v8 = vcombine.high %v1807_v6, %v1811_v7  ;;  %v8118_v9 = vcombine.low %v1807_v6, %v1811_v7 }
  0x6b   :  { %1025 = vmatpush2.bf16.msra.mxu0 %v8940_v10  ;;  %v1799_v10 = vld [vmem:[%s12539_s5 + $0x340] sm:$0xff] }
  0x6c   :  { %1076 = vmatpush2.bf16.msra.mxu1 %v8943_v11  ;;  %1026 = vmatprep.subr.bf16.mxu0 %v8948_v12  ;;  %v1803_v11 = vld [vmem:[%s12539_s5 + $0x360] sm:$0xff] }
  0x6d   :  { %1077 = vmatprep.subr.bf16.mxu1 %v8951_v13  ;;  %v8111_v12 = vcombine.high %v1799_v10, %v1803_v11  ;;  %v8110_v13 = vcombine.low %v1799_v10, %v1803_v11 }
  0x6f   :  { %1027 = vmatpush2.bf16.msra.mxu0 %v8946_v14  ;;  %v1791_v14 = vld [vmem:[%s12539_s5 + $0x300] sm:$0xff] }
  0x70   :  { %1078 = vmatpush2.bf16.msra.mxu1 %v8949_v15  ;;  %1028 = vmatprep.subr.bf16.mxu0 %v8954_v16  ;;  %v1795_v15 = vld [vmem:[%s12539_s5 + $0x320] sm:$0xff] }
  0x71   :  { %1079 = vmatprep.subr.bf16.mxu1 %v8957_v17  ;;  %v1783_v16 = vld [vmem:[%s12539_s5 + $0x2c0] sm:$0xff]  ;;  %v8102_v17 = vcombine.low %v1791_v14, %v1795_v15 }
  0x73   :  { %1029 = vmatpush2.bf16.msra.mxu0 %v8952_v18  ;;  %v8103_v18 = vcombine.high %v1791_v14, %v1795_v15 }
  0x74   :  { %1080 = vmatpush2.bf16.msra.mxu1 %v8955_v19  ;;  %1030 = vmatprep.subr.bf16.mxu0 %v8960_v20  ;;  %v1787_v19 = vld [vmem:[%s12539_s5 + $0x2e0] sm:$0xff] }
  0x75   :  { %1081 = vmatprep.subr.bf16.mxu1 %v8963_v21  ;;  %v8095_v20 = vcombine.high %v1783_v16, %v1787_v19  ;;  %v1775_v21 = vld [vmem:[%s12539_s5 + $0x280] sm:$0xff] }
  0x77   :  { %1031 = vmatpush2.bf16.msra.mxu0 %v8958_v24  ;;  %v1779_v24 = vld [vmem:[%s12539_s5 + $0x2a0] sm:$0xff] }
  0x78   :  { %1082 = vmatpush2.bf16.msra.mxu1 %v8961_v25  ;;  %1032 = vmatprep.subr.bf16.mxu0 %v8966_v26  ;;  %v8094_v25 = vcombine.low %v1783_v16, %v1787_v19  ;;  %v8087_v26 = vcombine.high %v1775_v21, %v1779_v24  ;;  %v1927_v16 = vld [vmem:[%s12539_s5 + $0x740] sm:$0xff] }
  0x79   :  { %1083 = vmatprep.subr.bf16.mxu1 %v8969_v27  ;;  %v1767_v27 = vld [vmem:[%s12539_s5 + $0x240] sm:$0xff] }
  0x7b   :  { %1033 = vmatpush2.bf16.msra.mxu0 %v8964_v28  ;;  %v1771_v28 = vld [vmem:[%s12539_s5 + $0x260] sm:$0xff] }
  0x7c   :  { %1084 = vmatpush2.bf16.msra.mxu1 %v8967_v29  ;;  %1034 = vmatprep.subr.bf16.mxu0 %v8972_v30  ;;  %v8086_v29 = vcombine.low %v1775_v21, %v1779_v24  ;;  %v8079_v30 = vcombine.high %v1767_v27, %v1771_v28  ;;  %v1923_v21 = vld [vmem:[%s12539_s5 + $0x720] sm:$0xff] }
  0x7d   :  { %1085 = vmatprep.subr.bf16.mxu1 %v8975_v31  ;;  %v8078_v31 = vcombine.low %v1767_v27, %v1771_v28  ;;  %v1915_v27 = vld [vmem:[%s12539_s5 + $0x6e0] sm:$0xff] }
  0x7f   :  { %1035 = vmatpush2.bf16.msra.mxu0 %v8970_v32  ;;  %v1759_v32 = vld [vmem:[%s12539_s5 + $0x200] sm:$0xff] }
  0x80   :  { %1086 = vmatpush2.bf16.msra.mxu1 %v8973_v33  ;;  %3898 = vmatprep.subr.bf16.mxu0 %v8063_v41  ;;  %v1763_v33 = vld [vmem:[%s12539_s5 + $0x220] sm:$0xff] }
  0x81   :  { %v8071_v35 = vcombine.high %v1759_v32, %v1763_v33  ;;  %v8070_v36 = vcombine.low %v1759_v32, %v1763_v33  ;;  %v1879_v41 = vld [vmem:[%s12539_s5 + $0x5c0] sm:$0xff]  ;;  %v9710_v32 = vsub.s32 1, %v9190_v45 }
  0x82   :  { %1037 = vmatmul.mubr.bf16.vlgmr.msra.gmra.mxu0 %v9289_v22  ;;  %v1743_v22 = vld [vmem:[%s12539_s5 + $0x180] sm:$0xff] }
  0x83   :  { %1088 = vmatmul.mubr.bf16.vlgmr.msra.gmra.mxu1 %v9291_v23  ;;  %1046 = vmatprep.mubr.bf16.mxu0 %v9333_v39  ;;  %v1747_v23 = vld [vmem:[%s12539_s5 + $0x1a0] sm:$0xff] }
  0x84   :  { %1097 = vmatprep.mubr.bf16.mxu1 %v9337_v40  ;;  %3899 = vmatpush1.bf16.msra.mxu0 %v8062_v42  ;;  %v8055_v39 = vcombine.high %v1743_v22, %v1747_v23  ;;  %v8054_v40 = vcombine.low %v1743_v22, %v1747_v23  ;;  %v1883_v42 = vld [vmem:[%s12539_s5 + $0x5e0] sm:$0xff]  ;;  %v9618_v22 = vld [vmem:[%s12539_s5 + $0x1c8] sm:$0xff] }
  0x85   :  { %v8191_v23 = vcombine.high %v1879_v41, %v1883_v42  ;;  %v1903_v33 = vld [vmem:[%s12539_s5 + $0x680] sm:$0xff] }
  0x86   :  { %3900 = vmatprep.subr.bf16.mxu0 %v8055_v39  ;;  %v9623_v39 = vld [vmem:[%s12539_s5 + $0x1e8] sm:$0xff] }
  0x87   :  { %3939 = vmatprep.subr.bf16.mxu1 %v8191_v23 }
  0x88   :  { %3901 = vmatpush1.bf16.msra.mxu0 %v8054_v40  ;;  %v8190_v40 = vcombine.low %v1879_v41, %v1883_v42 }
  0x8a   :  { %1047 = vmatmul.mubr.bf16.gmra.mxu0 %v9320_v34  ;;  %v1739_v34 = vld [vmem:[%s12539_s5 + $0x160] sm:$0xff]  ;;  %3940 = vmatpush1.bf16.msra.mxu1 %v8190_v40 }
  0x8b   :  { %1098 = vmatmul.mubr.bf16.gmra.mxu1 %v9329_v37  ;;  %v8047_v37 = vcombine.high %v1735_v43, %v1739_v34  ;;  %v8046_v44 = vcombine.low %v1735_v43, %v1739_v34  ;;  %v8064_v43 = vcombine.low %v9618_v22, %v9623_v39  ;;  %v8065_v34 = vcombine.high %v9618_v22, %v9623_v39  ;;  %v1895_v40 = vld [vmem:[%s12539_s5 + $0x640] sm:$0xff]  ;;  %v9899_v22 = vld [vmem:[%s12539_s5 + $0x88] sm:$0xff] }
  0x8c   :  { %v9904_v39 = vld [vmem:[%s12539_s5 + $0xa8] sm:$0xff] }
  0x8d   :  { %3902 = vmatprep.subr.bf16.mxu0 %v8047_v37  ;;  %v1871_v37 = vld [vmem:[%s12539_s5 + $0x580] sm:$0xff] }
  0x8e   :  { %3903 = vmatpush1.bf16.msra.mxu0 %v8046_v44  ;;  %v1875_v44 = vld [vmem:[%s12539_s5 + $0x5a0] sm:$0xff] }
  0x8f   :  { %3904 = vmatprep.subr.bf16.mxu0 %v8039_v48  ;;  %v8183_v46 = vcombine.high %v1871_v37, %v1875_v44  ;;  %v8182_v47 = vcombine.low %v1871_v37, %v1875_v44  ;;  %v1863_v48 = vld [vmem:[%s12539_s5 + $0x540] sm:$0xff] }
  0x91   :  { %3941 = vmatprep.subr.bf16.mxu1 %v8183_v46 }
  0x92   :  { %3905 = vmatpush1.bf16.msra.mxu0 %v8038_v49  ;;  %3942 = vmatpush1.bf16.msra.mxu1 %v8182_v47  ;;  %v1867_v49 = vld [vmem:[%s12539_s5 + $0x560] sm:$0xff] }
  0x93   :  { %3906 = vmatprep.subr.bf16.mxu0 %v8031_v52  ;;  %v8175_v50 = vcombine.high %v1863_v48, %v1867_v49  ;;  %v8174_v51 = vcombine.low %v1863_v48, %v1867_v49  ;;  %v1855_v52 = vld [vmem:[%s12539_s5 + $0x500] sm:$0xff] }
  0x94   :  { %v1887_v48 = vld [vmem:[%s12539_s5 + $0x600] sm:$0xff] }
  0x95   :  { %3943 = vmatprep.subr.bf16.mxu1 %v8175_v50  ;;  %v1891_v49 = vld [vmem:[%s12539_s5 + $0x620] sm:$0xff] }
  0x96   :  { %3907 = vmatpush1.bf16.msra.mxu0 %v8030_v53  ;;  %3944 = vmatpush1.bf16.msra.mxu1 %v8174_v51  ;;  %v1859_v53 = vld [vmem:[%s12539_s5 + $0x520] sm:$0xff] }
  0x97   :  { %3908 = vmatprep.subr.bf16.mxu0 %v8023_v56  ;;  %v8167_v54 = vcombine.high %v1855_v52, %v1859_v53  ;;  %v8166_v55 = vcombine.low %v1855_v52, %v1859_v53  ;;  %v1847_v56 = vld [vmem:[%s12539_s5 + $0x4c0] sm:$0xff]  ;;  %v8199_v52 = vcombine.high %v1887_v48, %v1891_v49 }
  0x99   :  { %3945 = vmatprep.subr.bf16.mxu1 %v8167_v54  ;;  %v8198_v54 = vcombine.low %v1887_v48, %v1891_v49 }
  0x9a   :  { %3909 = vmatpush1.bf16.msra.mxu0 %v8022_v57  ;;  %3946 = vmatpush1.bf16.msra.mxu1 %v8166_v55  ;;  %v1851_v57 = vld [vmem:[%s12539_s5 + $0x4e0] sm:$0xff] }
  0x9b   :  { %3910 = vmatprep.subr.bf16.mxu0 %v8015_v60  ;;  %v8159_v58 = vcombine.high %v1847_v56, %v1851_v57  ;;  %v8158_v59 = vcombine.low %v1847_v56, %v1851_v57  ;;  %v1839_v60 = vld [vmem:[%s12539_s5 + $0x480] sm:$0xff] }
  0x9d   :  { %3947 = vmatprep.subr.bf16.mxu1 %v8159_v58 }
  0x9e   :  { %3911 = vmatpush1.bf16.msra.mxu0 %v8014_v61  ;;  %3948 = vmatpush1.bf16.msra.mxu1 %v8158_v59  ;;  %v1843_v61 = vld [vmem:[%s12539_s5 + $0x4a0] sm:$0xff] }
  0x9f   :  { %3912 = vmatprep.subr.bf16.mxu0 %v8007_v0  ;;  %v8151_v62 = vcombine.high %v1839_v60, %v1843_v61  ;;  %v8150_v63 = vcombine.low %v1839_v60, %v1843_v61  ;;  %v1831_v0 = vld [vmem:[%s12539_s5 + $0x440] sm:$0xff] }
  0xa1   :  { %3949 = vmatprep.subr.bf16.mxu1 %v8151_v62 }
  0xa2   :  { %3913 = vmatpush1.bf16.msra.mxu0 %v8006_v1  ;;  %3950 = vmatpush1.bf16.msra.mxu1 %v8150_v63  ;;  %v1835_v1 = vld [vmem:[%s12539_s5 + $0x460] sm:$0xff]  ;;  %v9737_v63 = vld [vmem:[%s12539_s5 + $0x5c8] sm:$0xff] }
  0xa3   :  { %3914 = vmatprep.subr.bf16.mxu0 %v8127_v5  ;;  %v8143_v2 = vcombine.high %v1831_v0, %v1835_v1  ;;  %v8142_v3 = vcombine.low %v1831_v0, %v1835_v1  ;;  %v1827_v5 = vld [vmem:[%s12539_s5 + $0x420] sm:$0xff]  ;;  %v9742_v0 = vld [vmem:[%s12539_s5 + $0x5e8] sm:$0xff] }
  0xa5   :  { %3951 = vmatprep.subr.bf16.mxu1 %v8143_v2 }
  0xa6   :  { %3915 = vmatpush2.bf16.msra.mxu0 %v8126_v4  ;;  %3952 = vmatpush1.bf16.msra.mxu1 %v8142_v3  ;;  %v1823_v4 = vld [vmem:[%s12539_s5 + $0x400] sm:$0xff]  ;;  %v8192_v3 = vcombine.low %v9737_v63, %v9742_v0 }
  0xa7   :  { %3916 = vmatprep.subr.bf16.mxu0 %v8119_v8  ;;  %v8135_v6 = vcombine.high %v1823_v4, %v1827_v5  ;;  %v8134_v7 = vcombine.low %v1823_v4, %v1827_v5  ;;  %v1943_v8 = vld [vmem:[%s12539_s5 + $0x7c0] sm:$0xff]  ;;  %v8193_v4 = vcombine.high %v9737_v63, %v9742_v0  ;;  %v10146_v0 = vld [vmem:[%s12539_s5 + $0x110] sm:$0xff] }
  0xa9   :  { %3953 = vmatprep.subr.bf16.mxu1 %v8135_v6 }
  0xaa   :  { %3917 = vmatpush2.bf16.msra.mxu0 %v8118_v9  ;;  %v1947_v9 = vld [vmem:[%s12539_s5 + $0x7e0] sm:$0xff]  ;;  %3954 = vmatpush1.bf16.msra.mxu1 %v8134_v7 }
  0xab   :  { %3918 = vmatprep.subr.bf16.mxu0 %v8111_v12  ;;  %v8254_v10 = vcombine.low %v1943_v8, %v1947_v9  ;;  %v8255_v11 = vcombine.high %v1943_v8, %v1947_v9  ;;  %v1935_v12 = vld [vmem:[%s12539_s5 + $0x780] sm:$0xff] }
  0xad   :  { %3955 = vmatprep.subr.bf16.mxu1 %v8255_v11 }
  0xae   :  { %3919 = vmatpush2.bf16.msra.mxu0 %v8110_v13  ;;  %v1939_v13 = vld [vmem:[%s12539_s5 + $0x7a0] sm:$0xff]  ;;  %3956 = vmatpush2.bf16.msra.mxu1 %v8254_v10 }
  0xaf   :  { %3920 = vmatprep.subr.bf16.mxu0 %v8103_v18  ;;  %v8247_v14 = vcombine.high %v1935_v12, %v1939_v13  ;;  %v8246_v15 = vcombine.low %v1935_v12, %v1939_v13 }
  0xb1   :  { %3957 = vmatprep.subr.bf16.mxu1 %v8247_v14 }
  0xb2   :  { %3921 = vmatpush2.bf16.msra.mxu0 %v8102_v17  ;;  %v1931_v17 = vld [vmem:[%s12539_s5 + $0x760] sm:$0xff]  ;;  %3958 = vmatpush2.bf16.msra.mxu1 %v8246_v15 }
  0xb3   :  { %3922 = vmatprep.subr.bf16.mxu0 %v8095_v20  ;;  %v8239_v18 = vcombine.high %v1927_v16, %v1931_v17  ;;  %v8238_v19 = vcombine.low %v1927_v16, %v1931_v17  ;;  %v1919_v20 = vld [vmem:[%s12539_s5 + $0x700] sm:$0xff] }
  0xb4   :  { %v8231_v24 = vcombine.high %v1919_v20, %v1923_v21 }
  0xb5   :  { %3959 = vmatprep.subr.bf16.mxu1 %v8239_v18 }
  0xb6   :  { %3923 = vmatpush2.bf16.msra.mxu0 %v8094_v25  ;;  %3960 = vmatpush2.bf16.msra.mxu1 %v8238_v19  ;;  %v8230_v25 = vcombine.low %v1919_v20, %v1923_v21 }
  0xb7   :  { %3924 = vmatprep.subr.bf16.mxu0 %v8087_v26  ;;  %3961 = vmatprep.subr.bf16.mxu1 %v8231_v24  ;;  %v1911_v26 = vld [vmem:[%s12539_s5 + $0x6c0] sm:$0xff] }
  0xb8   :  { %v8223_v28 = vcombine.high %v1911_v26, %v1915_v27 }
  0xba   :  { %3925 = vmatpush2.bf16.msra.mxu0 %v8086_v29  ;;  %v9702_v29 = vsub.s32 0, %v9190_v45  ;;  %3962 = vmatpush2.bf16.msra.mxu1 %v8230_v25 }
  0xbb   :  { %3926 = vmatprep.subr.bf16.mxu0 %v8079_v30  ;;  %v8222_v30 = vcombine.low %v1911_v26, %v1915_v27  ;;  %3963 = vmatprep.subr.bf16.mxu1 %v8223_v28 }
  0xbe   :  { %3927 = vmatpush2.bf16.msra.mxu0 %v8078_v31  ;;  %v9707_v31 = vld [vmem:[%s12540_s4] sm:$0xf]  ;;  %3964 = vmatpush2.bf16.msra.mxu1 %v8222_v30 }
  0xbf   :  { %3928 = vmatprep.subr.bf16.mxu0 %v8071_v35  ;;  %v1907_v35 = vld [vmem:[%s12539_s5 + $0x6a0] sm:$0xff]  ;;  %v171_v41 = vrot.slane %v9707_v31, %v9702_v29  ;;  %v175_v23 = vrot.slane %v9707_v31, %v9710_v32 }
  0xc0   :  { %v8214_v42 = vcombine.low %v1903_v33, %v1907_v35 }
  0xc1   :  { %v7990_v44 = vcombine.low %v171_v41, %v171_v41  ;;  %v7991_v47 = vcombine.low %v175_v23, %v175_v23 }
  0xc2   :  { %3929 = vmatpush2.bf16.msra.mxu0 %v8070_v36  ;;  %v8215_v36 = vcombine.high %v1903_v33, %v1907_v35 }
  0xc3   :  { %3980 = vmatprep.subr.bf16.mxu0 %v8065_v34  ;;  %v1899_v34 = vld [vmem:[%s12539_s5 + $0x660] sm:$0xff] }
  0xc4   :  { %3965 = vmatprep.subr.bf16.mxu1 %v8215_v36  ;;  %v8207_v37 = vcombine.high %v1895_v40, %v1899_v34  ;;  %v8206_v46 = vcombine.low %v1895_v40, %v1899_v34 }
  0xc5   :  { %3966 = vmatpush2.bf16.msra.mxu1 %v8214_v42 }
  0xc6   :  { %3967 = vmatprep.subr.bf16.mxu1 %v8207_v37 }
  0xc9   :  { %3968 = vmatpush2.bf16.msra.mxu1 %v8206_v46 }
  0xca   :  { %3969 = vmatprep.subr.bf16.mxu1 %v8199_v52 }
  0xcd   :  { %3970 = vmatpush2.bf16.msra.mxu1 %v8198_v54 }
  0xce   :  { %4021 = vmatprep.subr.bf16.mxu1 %v8193_v4 }
 0x102   :  { %v936_v50 = vpop.f32.mrf.mxu0 }
 0x103   :  { %v987_v51 = vpop.f32.mrf.mxu1  ;;  %v937_v53 = vadd.f32 %v7990_v44, %v936_v50 }
 0x104   :  { %v938_v55 = vpop.f32.mrf.mxu0 }
 0x105   :  { %v989_v56 = vpop.f32.mrf.mxu1  ;;  %v988_v57 = vadd.f32 %v987_v51, %v937_v53  ;;  %v939_v58 = vadd.f32 %v7991_v47, %v938_v55 }
 0x106   :  { %v940_v59 = vpop.f32.mrf.mxu0 }
 0x107   :  { %v991_v60 = vpop.f32.mrf.mxu1  ;;  %v990_v61 = vadd.f32 %v989_v56, %v939_v58  ;;  %v941_v62 = vadd.f32 %v7990_v44, %v940_v59 }
 0x108   :  { %v942_v1 = vpop.f32.mrf.mxu0 }
 0x109   :  { %v993_v2 = vpop.f32.mrf.mxu1  ;;  %v9748_v5 = vcombine.low %v988_v57, %v990_v61  ;;  %v9750_v6 = vcombine.high %v988_v57, %v990_v61  ;;  %v7994_v7 = vcombine.low %v990_v61, %v990_v61  ;;  %v7996_v8 = vcombine.high %v990_v61, %v990_v61 }
 0x10a   :  { %v992_v9 = vadd.f32 %v991_v60, %v941_v62  ;;  %v943_v10 = vadd.f32 %v7991_v47, %v942_v1  ;;  %v946_v11 = vpop.f32.mrf.mxu0 }
 0x10b   :  { %v997_v12 = vpop.f32.mrf.mxu1  ;;  %v1167_v13 = vsel %vm1166_vm0, %v9748_v5, -inf  ;;  %v1174_v14 = vsel %vm1166_vm0, %v7994_v7, -inf  ;;  %v1195_v15 = vsel %vm1166_vm0, %v9750_v6, -inf  ;;  %v1202_v16 = vsel %vm1166_vm0, %v7996_v8, -inf }
 0x10c   :  { %v1168_v17 = vrot.slane %v1167_v13, 4  ;;  %v1175_v18 = vrot.slane %v1174_v14, 4  ;;  %v1196_v19 = vrot.slane %v1195_v15, 4  ;;  %v1203_v20 = vrot.slane %v1202_v16, 4  ;;  %v948_v21 = vpop.f32.mrf.mxu0 }
 0x10d   :  { %v999_v24 = vpop.f32.mrf.mxu1  ;;  %v994_v25 = vadd.f32 %v993_v2, %v943_v10  ;;  %v947_v26 = vadd.f32 %v7990_v44, %v946_v11  ;;  %v949_v27 = vadd.f32 %v7991_v47, %v948_v21 }
 0x10e   :  { %v1169_v28 = vmax.f32 %v1167_v13, %v1168_v17  ;;  %v1176_v30 = vmax.f32 %v1174_v14, %v1175_v18  ;;  %v1197_v33 = vmax.f32 %v1195_v15, %v1196_v19  ;;  %v1204_v35 = vmax.f32 %v1202_v16, %v1203_v20  ;;  %v950_v36 = vpop.f32.mrf.mxu0 }
 0x10f   :  { %v1001_v41 = vpop.f32.mrf.mxu1  ;;  %v9758_v42 = vcombine.low %v992_v9, %v994_v25  ;;  %v9760_v23 = vcombine.high %v992_v9, %v994_v25  ;;  %v7998_v40 = vcombine.low %v994_v25, %v994_v25  ;;  %v8000_v34 = vcombine.high %v994_v25, %v994_v25 }
 0x110   :  { %v1170_v37 = vrot.slane %v1169_v28, 2  ;;  %v1177_v46 = vrot.slane %v1176_v30, 2  ;;  %v1198_v48 = vrot.slane %v1197_v33, 2  ;;  %v1205_v49 = vrot.slane %v1204_v35, 2  ;;  %v951_v50 = vpop.f32.mrf.mxu0 }
 0x111   :  { %v1002_v51 = vpop.f32.mrf.mxu1  ;;  %v1223_v44 = vsel %vm1166_vm0, %v9758_v42, -inf  ;;  %v1230_v47 = vsel %vm1166_vm0, %v7998_v40, -inf  ;;  %v1251_v52 = vsel %vm1166_vm0, %v9760_v23, -inf  ;;  %v1258_v53 = vsel %vm1166_vm0, %v8000_v34, -inf }
 0x112   :  { %v1171_v54 = vmax.f32 %v1169_v28, %v1170_v37  ;;  %v1178_v55 = vmax.f32 %v1176_v30, %v1177_v46  ;;  %v1199_v56 = vmax.f32 %v1197_v33, %v1198_v48  ;;  %v1206_v57 = vmax.f32 %v1204_v35, %v1205_v49 }
 0x113   :  { %v1224_v58 = vrot.slane %v1223_v44, 4  ;;  %v1231_v59 = vrot.slane %v1230_v47, 4  ;;  %v1252_v60 = vrot.slane %v1251_v52, 4  ;;  %v1259_v61 = vrot.slane %v1258_v53, 4 }
 0x114   :  { %v1172_v62 = vrot.slane %v1171_v54, 1  ;;  %v1179_v1 = vrot.slane %v1178_v55, 1  ;;  %v1200_v2 = vrot.slane %v1199_v56, 1  ;;  %v1207_v4 = vrot.slane %v1206_v57, 1 }
 0x115   :  { %v1225_v7 = vmax.f32 %v1223_v44, %v1224_v58  ;;  %v1232_v8 = vmax.f32 %v1230_v47, %v1231_v59  ;;  %v1253_v9 = vmax.f32 %v1251_v52, %v1252_v60  ;;  %v1260_v10 = vmax.f32 %v1258_v53, %v1259_v61 }
 0x116   :  { %v1173_v11 = vmax.f32 %v1171_v54, %v1172_v62  ;;  %v1180_v13 = vmax.f32 %v1178_v55, %v1179_v1  ;;  %v1201_v14 = vmax.f32 %v1199_v56, %v1200_v2  ;;  %v1208_v15 = vmax.f32 %v1206_v57, %v1207_v4 }
 0x117   :  { %v1226_v16 = vrot.slane %v1225_v7, 2  ;;  %v1233_v17 = vrot.slane %v1232_v8, 2  ;;  %v1254_v18 = vrot.slane %v1253_v9, 2  ;;  %v1261_v19 = vrot.slane %v1260_v10, 2 }
 0x118   :  { %v1359_v20 = vcombine.low %v1173_v11, %v1180_v13  ;;  %v1361_v21 = vcombine.low %v1201_v14, %v1208_v15  ;;  %v998_v25 = vadd.f32 %v997_v12, %v947_v26  ;;  %v1000_v28 = vadd.f32 %v999_v24, %v949_v27 }
 0x119   :  { %v1227_v30 = vmax.f32 %v1225_v7, %v1226_v16  ;;  %v1234_v33 = vmax.f32 %v1232_v8, %v1233_v17  ;;  %v1255_v35 = vmax.f32 %v1253_v9, %v1254_v18  ;;  %v1262_v36 = vmax.f32 %v1260_v10, %v1261_v19 }
 0x11a   :  { %v1383_v41 = vsub.f32 %v9748_v5, %v1359_v20  ;;  %v1385_v40 = vsub.f32 %v9750_v6, %v1361_v21  ;;  %v1126_v34 = vcombine.low %v998_v25, %v1000_v28  ;;  %v1127_v37 = vcombine.high %v998_v25, %v1000_v28  ;;  %v9785_v20 = vld [vmem:[%s12536_s0 + $0x8] sm:$0xff] }
 0x11b   :  { %v1228_v46 = vrot.slane %v1227_v30, 1  ;;  %v1235_v48 = vrot.slane %v1234_v33, 1  ;;  %v1256_v49 = vrot.slane %v1255_v35, 1  ;;  %v1263_v50 = vrot.slane %v1262_v36, 1 }
 0x11c   :  { %v1395_v51 = vmul.f32 1.442695, %v1383_v41  ;;  %v1399_v44 = vmul.f32 1.442695, %v1385_v40  ;;  %v8002_v47 = vcombine.low %v1000_v28, %v1000_v28  ;;  %v8004_v52 = vcombine.high %v1000_v28, %v1000_v28 }
 0x11d   :  { %v1229_v12 = vmax.f32 %v1227_v30, %v1228_v46  ;;  %v1236_v24 = vmax.f32 %v1234_v33, %v1235_v48  ;;  %v1257_v26 = vmax.f32 %v1255_v35, %v1256_v49  ;;  %v1264_v27 = vmax.f32 %v1262_v36, %v1263_v50 }
 0x11e   :  { %8976 = vpow2.f32 %v1395_v51  ;;  %v1279_v53 = vsel %vm1166_vm0, %v1126_v34, -inf  ;;  %v1286_v5 = vsel %vm1166_vm0, %v8002_v47, -inf  ;;  %v1307_v6 = vsel %vm1166_vm0, %v1127_v37, -inf }
 0x11f   :  { %8978 = vpow2.f32 %v1399_v44  ;;  %v1363_v54 = vcombine.low %v1229_v12, %v1236_v24  ;;  %v1365_v55 = vcombine.low %v1257_v26, %v1264_v27  ;;  %v1280_v56 = vrot.slane %v1279_v53, 4 }
 0x120   :  { %v1287_v57 = vrot.slane %v1286_v5, 4  ;;  %v1308_v58 = vrot.slane %v1307_v6, 4  ;;  %v1314_v59 = vsel %vm1166_vm0, %v8004_v52, -inf  ;;  %v1421_v21 = vunpack.c.l.bf16 %v9785_v20 }
 0x121   :  { %v1387_v60 = vsub.f32 %v9758_v42, %v1363_v54  ;;  %v1389_v61 = vsub.f32 %v9760_v23, %v1365_v55  ;;  %v1281_v62 = vmax.f32 %v1279_v53, %v1280_v56  ;;  %v1315_v1 = vrot.slane %v1314_v59, 4  ;;  %v9779_v42 = vld [vmem:[%s12536_s0] sm:$0xff] }
 0x122   :  { %v1288_v2 = vmax.f32 %v1286_v5, %v1287_v57  ;;  %v1309_v4 = vmax.f32 %v1307_v6, %v1308_v58  ;;  %v1419_v23 = vunpack.c.l.bf16 %v9779_v42 }
 0x123   :  { %v1282_v7 = vrot.slane %v1281_v62, 2  ;;  %v1316_v8 = vmax.f32 %v1314_v59, %v1315_v1  ;;  %v1403_v48 = vmul.f32 1.442695, %v1387_v60  ;;  %v1407_v51 = vmul.f32 1.442695, %v1389_v61 }
 0x124   :  { %v1289_v9 = vrot.slane %v1288_v2, 2  ;;  %v1310_v10 = vrot.slane %v1309_v4, 2 }
 0x125   :  { %v1283_v11 = vmax.f32 %v1281_v62, %v1282_v7  ;;  %v1317_v13 = vrot.slane %v1316_v8, 2  ;;  %8980 = vpow2.f32 %v1403_v48  ;;  %v9793_v7 = vsub.s32 2, %v9190_v45 }
 0x126   :  { %v1290_v14 = vmax.f32 %v1288_v2, %v1289_v9  ;;  %v1311_v15 = vmax.f32 %v1309_v4, %v1310_v10  ;;  %8982 = vpow2.f32 %v1407_v51 }
 0x127   :  { %v1284_v16 = vrot.slane %v1283_v11, 1  ;;  %v1318_v17 = vmax.f32 %v1316_v8, %v1317_v13  ;;  %v9796_v13 = vsub.s32 3, %v9190_v45 }
 0x128   :  { %v1291_v18 = vrot.slane %v1290_v14, 1  ;;  %v1312_v19 = vrot.slane %v1311_v15, 1 }
 0x129   :  { %v1285_v25 = vmax.f32 %v1283_v11, %v1284_v16  ;;  %v1319_v28 = vrot.slane %v1318_v17, 1 }
 0x12a   :  { %v1292_v30 = vmax.f32 %v1290_v14, %v1291_v18  ;;  %v1313_v33 = vmax.f32 %v1311_v15, %v1312_v19 }
 0x12b   :  { %v8977_v35 = vpop.eup %8976  ;;  %v1320_v36 = vmax.f32 %v1318_v17, %v1319_v28  ;;  %v183_v28 = vrot.slane %v9707_v31, %v9796_v13 }
 0x12c   :  { %v8979_v41 = vpop.eup %8978  ;;  %v1367_v40 = vcombine.low %v1285_v25, %v1292_v30  ;;  %v1431_v46 = vmul.f32 %v8977_v35, %v1419_v23  ;;  %v179_v23 = vrot.slane %v9707_v31, %v9793_v7  ;;  %v9805_v35 = vld [vmem:[%s12537_s1] sm:$0xff]  ;;  %v9813_v31 = vld [vmem:[%s12537_s1 + $0x8] sm:$0xff] }
 0x12d   :  { %v1369_v49 = vcombine.low %v1313_v33, %v1320_v36  ;;  %v1433_v50 = vmul.f32 %v8979_v41, %v1421_v21  ;;  %v1423_v36 = vunpack.c.l.bf16 %v9805_v35 }
 0x12e   :  { %v1391_v44 = vsub.f32 %v1126_v34, %v1367_v40  ;;  %v1455_v47 = vcombine.high %v1431_v46, %v1431_v46  ;;  %v1479_v52 = vsel %vm1166_vm0, %v1431_v46, 0.0  ;;  %v9808_v48 = vcombine.low %v179_v23, %v179_v23 }
 0x12f   :  { %v1393_v12 = vsub.f32 %v1127_v37, %v1369_v49  ;;  %v1457_v24 = vcombine.high %v1433_v50, %v1433_v50  ;;  %v1480_v26 = vrot.slane %v1479_v52, 4  ;;  %v1507_v27 = vsel %vm1166_vm0, %v1433_v50, 0.0 }
 0x130   :  { %v1411_v53 = vmul.f32 1.442695, %v1391_v44  ;;  %v1486_v5 = vsel %vm1166_vm0, %v1455_v47, 0.0  ;;  %v1508_v6 = vrot.slane %v1507_v27, 4  ;;  %v1425_v44 = vunpack.c.l.bf16 %v9813_v31  ;;  %v9004_v47 = vld [vmem:[%s12538_s2] sm:$0xff] }
 0x131   :  { %v1415_v54 = vmul.f32 1.442695, %v1393_v12  ;;  %v1487_v55 = vrot.slane %v1486_v5, 4  ;;  %v1514_v56 = vsel %vm1166_vm0, %v1457_v24, 0.0  ;;  %v1481_v57 = vadd.f32 %v1480_v26, %v1479_v52 }
 0x132   :  { %v1515_v58 = vrot.slane %v1514_v56, 4  ;;  %v1509_v34 = vadd.f32 %v1508_v6, %v1507_v27  ;;  %8984 = vpow2.f32 %v1411_v53  ;;  %v8981_v46 = vpop.eup %8980  ;;  %v1427_v52 = vunpack.c.l.bf16 %v9004_v47  ;;  %v9005_v27 = vld [vmem:[%s12538_s2 + $0x8] sm:$0xff] }
 0x133   :  { %v1488_v59 = vadd.f32 %v1487_v55, %v1486_v5  ;;  %v1482_v60 = vrot.slane %v1481_v57, 2  ;;  %8986 = vpow2.f32 %v1415_v54  ;;  %v8983_v51 = vpop.eup %8982  ;;  %v1429_v53 = vunpack.c.l.bf16 %v9005_v27 }
 0x134   :  { %v1516_v37 = vadd.f32 %v1515_v58, %v1514_v56  ;;  %v1510_v61 = vrot.slane %v1509_v34, 2  ;;  %v9822_v5 = vcombine.low %v183_v28, %v183_v28 }
 0x135   :  { %v1489_v62 = vrot.slane %v1488_v59, 2  ;;  %v1483_v1 = vadd.f32 %v1482_v60, %v1481_v57  ;;  %v1748_v60 = vld [vmem:[%s12539_s5 + $0x1a8] sm:$0xff] }
 0x136   :  { %v1517_v2 = vrot.slane %v1516_v37, 2  ;;  %v1511_v4 = vadd.f32 %v1510_v61, %v1509_v34 }
 0x137   :  { %v1490_v8 = vadd.f32 %v1489_v62, %v1488_v59  ;;  %v1484_v9 = vrot.slane %v1483_v1, 1  ;;  %v1744_v59 = vld [vmem:[%s12539_s5 + $0x188] sm:$0xff] }
 0x138   :  { %v1518_v10 = vadd.f32 %v1517_v2, %v1516_v37  ;;  %v1512_v11 = vrot.slane %v1511_v4, 1  ;;  %v9838_v2 = vmul.f32 %v8981_v46, %v1423_v36 }
 0x139   :  { %v1491_v14 = vrot.slane %v1490_v8, 1  ;;  %v1485_v15 = vadd.f32 %v1484_v9, %v1483_v1  ;;  %v9836_v1 = vld [vmem:[%s12539_s5 + $0x148] sm:$0xff] }
 0x13a   :  { %v1519_v16 = vrot.slane %v1518_v10, 1  ;;  %v1513_v17 = vadd.f32 %v1512_v11, %v1511_v4  ;;  %v9840_v4 = vmul.f32 %v8983_v51, %v1425_v44  ;;  %v9850_v11 = vld [vmem:[%s12539_s5 + $0x168] sm:$0xff] }
 0x13b   :  { %v1492_v18 = vadd.f32 %v1491_v14, %v1490_v8  ;;  %v1647_v19 = vmul.f32 0.25, %v1485_v15  ;;  %v9855_v14 = vld [vmem:[%s12539_s5 + $0x108] sm:$0xff]  ;;  %v8048_v36 = vcombine.low %v9836_v1, %v9850_v11 }
 0x13c   :  { %v1520_v21 = vadd.f32 %v1519_v16, %v1518_v10  ;;  %v1651_v25 = vmul.f32 0.25, %v1513_v17  ;;  %v9860_v15 = vld [vmem:[%s12539_s5 + $0x128] sm:$0xff] }
 0x13d   :  { %v1648_v30 = vmul.f32 0.25, %v1492_v18  ;;  %v1671_v33 = vpack.c.bf16 %v1647_v19, %v1647_v19  ;;  %v8057_v18 = vcombine.high %v1744_v59, %v1748_v60  ;;  %v9885_v44 = vld [vmem:[%s12539_s5 + $0xc8] sm:$0xff] }
 0x13e   :  { %v1652_v41 = vmul.f32 0.25, %v1520_v21  ;;  %v1675_v40 = vpack.c.bf16 %v1651_v25, %v1651_v25 }
 0x13f   :  { %v1672_v49 = vpack.c.bf16 %v1648_v30, %v1648_v30  ;;  %v2597_v50 = vunpack.c.l.b16 %v1671_v33  ;;  %v8985_v26 = vpop.eup %8984  ;;  %v8056_v33 = vcombine.low %v1744_v59, %v1748_v60  ;;  %v8025_v60 = vcombine.high %v9899_v22, %v9904_v39 }
 0x140   :  { %v1676_v12 = vpack.c.bf16 %v1652_v41, %v1652_v41  ;;  %v2601_v24 = vunpack.c.l.b16 %v1675_v40  ;;  %v8987_v54 = vpop.eup %8986  ;;  %v9842_v8 = vmul.f32 %v8985_v26, %v1427_v52  ;;  %v8049_v41 = vcombine.high %v9836_v1, %v9850_v11 }
 0x141   :  { %v2598_v6 = vunpack.c.l.b16 %v1672_v49  ;;  %v9862_v16 = vmul.f32 %v8987_v54, %v1429_v53  ;;  %v8040_v40 = vcombine.low %v9855_v14, %v9860_v15 }
 0x142   :  { %v1038_v55 = vpop.f32.mrf.mxu0  ;;  %v2602_v57 = vunpack.c.l.b16 %v1676_v12  ;;  %v2606_v58 = vsel %vm2605_vm1, %v2601_v24, %v2597_v50  ;;  %v8041_v12 = vcombine.high %v9855_v14, %v9860_v15  ;;  %v9894_v24 = vld [vmem:[%s12539_s5 + $0xe8] sm:$0xff]  ;;  %v8024_v15 = vcombine.low %v9899_v22, %v9904_v39 }
 0x143   :  { %v1089_v56 = vpop.f32.mrf.mxu1  ;;  %v1039_v34 = vadd.f32 %v9808_v48, %v1038_v55  ;;  %v9864_v23 = vpack.c.b16 %v2606_v58, %v2606_v58  ;;  %v8033_v59 = vcombine.high %v9885_v44, %v9894_v24  ;;  %v1459_v22 = vcombine.high %v9838_v2, %v9838_v2 }
 0x144   :  { %v1040_v37 = vpop.f32.mrf.mxu0  ;;  %v2607_v62 = vsel %vm2605_vm1, %v2602_v57, %v2598_v6 }
 0x145   :  { %v1091_v61 = vpop.f32.mrf.mxu1  ;;  %v1041_v9 = vadd.f32 %v9822_v5, %v1040_v37  ;;  %v9845_v10 = vpack.c.b16 %v2607_v62, %v2607_v62  ;;  %v1090_v19 = vadd.f32 %v1089_v56, %v1039_v34  ;;  %v8032_v34 = vcombine.low %v9885_v44, %v9894_v24 }
 0x146   :  { %v1042_v17 = vpop.f32.mrf.mxu0 }
 0x147   :  { %v1092_v21 = vadd.f32 %v1091_v61, %v1041_v9  ;;  %v1043_v25 = vadd.f32 %v9808_v48, %v1042_v17  ;;  %3930 = vmatprep.mubr.bf16.mxu0 %v9845_v10  ;;  %v1093_v28 = vpop.f32.mrf.mxu1 }
 0x148   :  { %3931 = vmatmul.mubr.bf16.vlgmr.msra.gmra.mxu0 %v9864_v23  ;;  %v1044_v30 = vpop.f32.mrf.mxu0 }
 0x149   :  { %v9875_v46 = vcombine.low %v1090_v19, %v1092_v21  ;;  %v9877_v49 = vcombine.high %v1090_v19, %v1092_v21  ;;  %v7995_v50 = vcombine.low %v1092_v21, %v1092_v21  ;;  %v7997_v51 = vcombine.high %v1092_v21, %v1092_v21  ;;  %3981 = vmatpush1.bf16.msra.mxu0 %v8064_v43  ;;  %v1095_v57 = vpop.f32.mrf.mxu1 }
 0x14a   :  { %v1094_v47 = vadd.f32 %v1093_v28, %v1043_v25  ;;  %v1045_v52 = vadd.f32 %v9822_v5, %v1044_v30  ;;  %4012 = vmatprep.mubr.bf16.mxu0 %v9845_v10  ;;  %3982 = vmatprep.subr.bf16.mxu0 %v8057_v18 }
 0x14b   :  { %v1181_v43 = vsel %vm1166_vm0, %v9875_v46, -inf  ;;  %v1188_v26 = vsel %vm1166_vm0, %v7995_v50, -inf  ;;  %v1209_v27 = vsel %vm1166_vm0, %v9877_v49, -inf  ;;  %v1216_v53 = vsel %vm1166_vm0, %v7997_v51, -inf }
 0x14c   :  { %v1182_v6 = vrot.slane %v1181_v43, 4  ;;  %v1189_v54 = vrot.slane %v1188_v26, 4  ;;  %v1210_v55 = vrot.slane %v1209_v27, 4  ;;  %v1217_v56 = vrot.slane %v1216_v53, 4 }
 0x14d   :  { %v1096_v58 = vadd.f32 %v1095_v57, %v1045_v52  ;;  %3983 = vmatpush1.bf16.msra.mxu0 %v8056_v33 }
 0x14e   :  { %v1183_v37 = vmax.f32 %v1181_v43, %v1182_v6  ;;  %v1190_v61 = vmax.f32 %v1188_v26, %v1189_v54  ;;  %v1211_v62 = vmax.f32 %v1209_v27, %v1210_v55  ;;  %v1218_v1 = vmax.f32 %v1216_v53, %v1217_v56  ;;  %3984 = vmatprep.subr.bf16.mxu0 %v8049_v41 }
 0x14f   :  { %v9918_v9 = vcombine.low %v1094_v47, %v1096_v58  ;;  %v9920_v11 = vcombine.high %v1094_v47, %v1096_v58  ;;  %v7999_v17 = vcombine.low %v1096_v58, %v1096_v58  ;;  %v8001_v18 = vcombine.high %v1096_v58, %v1096_v58 }
 0x150   :  { %v1184_v19 = vrot.slane %v1183_v37, 2  ;;  %v1191_v21 = vrot.slane %v1190_v61, 2  ;;  %v1212_v25 = vrot.slane %v1211_v62, 2  ;;  %v1219_v28 = vrot.slane %v1218_v1, 2 }
 0x151   :  { %v1237_v30 = vsel %vm1166_vm0, %v9918_v9, -inf  ;;  %v1244_v33 = vsel %vm1166_vm0, %v7999_v17, -inf  ;;  %v1265_v50 = vsel %vm1166_vm0, %v9920_v11, -inf  ;;  %v1272_v41 = vsel %vm1166_vm0, %v8001_v18, -inf  ;;  %3985 = vmatpush1.bf16.msra.mxu0 %v8048_v36 }
 0x152   :  { %v1185_v51 = vmax.f32 %v1183_v37, %v1184_v19  ;;  %v1192_v44 = vmax.f32 %v1190_v61, %v1191_v21  ;;  %v1213_v47 = vmax.f32 %v1211_v62, %v1212_v25  ;;  %v1220_v52 = vmax.f32 %v1218_v1, %v1219_v28  ;;  %3986 = vmatprep.subr.bf16.mxu0 %v8041_v12  ;;  %v1704_v21 = vld [vmem:[%s12539_s5 + $0x48] sm:$0xff] }
 0x153   :  { %v1238_v24 = vrot.slane %v1237_v30, 4  ;;  %v1245_v43 = vrot.slane %v1244_v33, 4  ;;  %v1266_v26 = vrot.slane %v1265_v50, 4  ;;  %v1273_v27 = vrot.slane %v1272_v41, 4  ;;  %v1708_v25 = vld [vmem:[%s12539_s5 + $0x68] sm:$0xff] }
 0x154   :  { %v1186_v53 = vrot.slane %v1185_v51, 1  ;;  %v1193_v6 = vrot.slane %v1192_v44, 1  ;;  %v1214_v54 = vrot.slane %v1213_v47, 1  ;;  %v1221_v55 = vrot.slane %v1220_v52, 1 }
 0x155   :  { %v1239_v56 = vmax.f32 %v1237_v30, %v1238_v24  ;;  %v1246_v57 = vmax.f32 %v1244_v33, %v1245_v43  ;;  %v1267_v58 = vmax.f32 %v1265_v50, %v1266_v26  ;;  %v1274_v17 = vmax.f32 %v1272_v41, %v1273_v27  ;;  %3987 = vmatpush1.bf16.msra.mxu0 %v8040_v40  ;;  %v1696_v50 = vld [vmem:[%s12539_s5 + $0x8] sm:$0xff] }
 0x156   :  { %v1187_v36 = vmax.f32 %v1185_v51, %v1186_v53  ;;  %v1194_v37 = vmax.f32 %v1192_v44, %v1193_v6  ;;  %v1215_v61 = vmax.f32 %v1213_v47, %v1214_v54  ;;  %v1222_v12 = vmax.f32 %v1220_v52, %v1221_v55  ;;  %3988 = vmatprep.subr.bf16.mxu0 %v8033_v59  ;;  %v1700_v41 = vld [vmem:[%s12539_s5 + $0x28] sm:$0xff] }
 0x157   :  { %v1240_v62 = vrot.slane %v1239_v56, 2  ;;  %v1247_v1 = vrot.slane %v1246_v57, 2  ;;  %v1268_v18 = vrot.slane %v1267_v58, 2  ;;  %v1275_v19 = vrot.slane %v1274_v17, 2 }
 0x158   :  { %v1360_v28 = vcombine.low %v1187_v36, %v1194_v37  ;;  %v1362_v14 = vcombine.low %v1215_v61, %v1222_v12  ;;  %v8017_v47 = vcombine.high %v1704_v21, %v1708_v25  ;;  %v8016_v27 = vcombine.low %v1704_v21, %v1708_v25  ;;  %v1820_v36 = vld [vmem:[%s12539_s5 + $0x3e8] sm:$0xff] }
 0x159   :  { %v1241_v40 = vmax.f32 %v1239_v56, %v1240_v62  ;;  %v1248_v30 = vmax.f32 %v1246_v57, %v1247_v1  ;;  %v1269_v59 = vmax.f32 %v1267_v58, %v1268_v18  ;;  %v1276_v33 = vmax.f32 %v1274_v17, %v1275_v19  ;;  %3989 = vmatpush1.bf16.msra.mxu0 %v8032_v34  ;;  %v1816_v17 = vld [vmem:[%s12539_s5 + $0x3c8] sm:$0xff] }
 0x15a   :  { %v1384_v51 = vsub.f32 %v9875_v46, %v1360_v28  ;;  %v1386_v44 = vsub.f32 %v9877_v49, %v1362_v14  ;;  %3990 = vmatprep.subr.bf16.mxu0 %v8025_v60  ;;  %v8009_v53 = vcombine.high %v1696_v50, %v1700_v41  ;;  %v1461_v46 = vcombine.high %v9840_v4, %v9840_v4  ;;  %v1808_v25 = vld [vmem:[%s12539_s5 + $0x388] sm:$0xff] }
 0x15b   :  { %v1242_v39 = vrot.slane %v1241_v40, 1  ;;  %v1249_v52 = vrot.slane %v1248_v30, 1  ;;  %v1270_v34 = vrot.slane %v1269_v59, 1  ;;  %v1277_v24 = vrot.slane %v1276_v33, 1 }
 0x15c   :  { %v1397_v43 = vmul.f32 1.442695, %v1384_v51  ;;  %v1401_v26 = vmul.f32 1.442695, %v1386_v44  ;;  %v1542_v49 = vsel %vm1166_vm0, %v1459_v22, 0.0  ;;  %v1535_v60 = vsel %vm1166_vm0, %v9838_v2, 0.0 }
 0x15d   :  { %v1243_v6 = vmax.f32 %v1241_v40, %v1242_v39  ;;  %v1250_v54 = vmax.f32 %v1248_v30, %v1249_v52  ;;  %v1271_v55 = vmax.f32 %v1269_v59, %v1270_v34  ;;  %v1278_v56 = vmax.f32 %v1276_v33, %v1277_v24  ;;  %3991 = vmatpush1.bf16.msra.mxu0 %v8024_v15  ;;  %v1800_v30 = vld [vmem:[%s12539_s5 + $0x348] sm:$0xff] }
 0x15e   :  { %8988 = vpow2.f32 %v1397_v43  ;;  %3992 = vmatprep.subr.bf16.mxu0 %v8017_v47  ;;  %v1563_v37 = vsel %vm1166_vm0, %v9840_v4, 0.0  ;;  %v8008_v61 = vcombine.low %v1696_v50, %v1700_v41  ;;  %v1543_v2 = vrot.slane %v1542_v49, 4  ;;  %v1812_v4 = vld [vmem:[%s12539_s5 + $0x3a8] sm:$0xff] }
 0x15f   :  { %8990 = vpow2.f32 %v1401_v26  ;;  %v1364_v57 = vcombine.low %v1243_v6, %v1250_v54  ;;  %v1366_v58 = vcombine.low %v1271_v55, %v1278_v56  ;;  %v1536_v1 = vrot.slane %v1535_v60, 4  ;;  %v1804_v59 = vld [vmem:[%s12539_s5 + $0x368] sm:$0xff] }
 0x160   :  { %v8129_v18 = vcombine.high %v1816_v17, %v1820_v36  ;;  %v1570_v19 = vsel %vm1166_vm0, %v1461_v46, 0.0  ;;  %v1564_v21 = vrot.slane %v1563_v37, 4  ;;  %v1544_v28 = vadd.f32 %v1543_v2, %v1542_v49  ;;  %v1792_v39 = vld [vmem:[%s12539_s5 + $0x308] sm:$0xff] }
 0x161   :  { %v1388_v12 = vsub.f32 %v9918_v9, %v1364_v57  ;;  %v1390_v62 = vsub.f32 %v9920_v11, %v1366_v58  ;;  %3993 = vmatpush1.bf16.msra.mxu0 %v8016_v27  ;;  %v8128_v9 = vcombine.low %v1816_v17, %v1820_v36  ;;  %v1571_v11 = vrot.slane %v1570_v19, 4  ;;  %v1796_v52 = vld [vmem:[%s12539_s5 + $0x328] sm:$0xff] }
 0x162   :  { %3994 = vmatprep.subr.bf16.mxu0 %v8009_v53  ;;  %v1537_v14 = vadd.f32 %v1536_v1, %v1535_v60  ;;  %v8121_v15 = vcombine.high %v1808_v25, %v1812_v4  ;;  %v1565_v40 = vadd.f32 %v1564_v21, %v1563_v37  ;;  %v1545_v33 = vrot.slane %v1544_v28, 2  ;;  %v9988_v54 = vld [vmem:[%s12539_s5 + $0x2c8] sm:$0xff] }
 0x163   :  { %v1572_v50 = vadd.f32 %v1571_v11, %v1570_v19  ;;  %v1420_v41 = vunpack.c.h.bf16 %v9779_v42  ;;  %v1422_v51 = vunpack.c.h.bf16 %v9785_v20  ;;  %v1405_v47 = vmul.f32 1.442695, %v1388_v12  ;;  %v9993_v55 = vld [vmem:[%s12539_s5 + $0x2e8] sm:$0xff] }
 0x164   :  { %v1538_v44 = vrot.slane %v1537_v14, 2  ;;  %v8120_v22 = vcombine.low %v1808_v25, %v1812_v4  ;;  %v1546_v34 = vadd.f32 %v1545_v33, %v1544_v28  ;;  %v8113_v43 = vcombine.high %v1800_v30, %v1804_v59  ;;  %v1776_v33 = vld [vmem:[%s12539_s5 + $0x288] sm:$0xff] }
 0x165   :  { %3995 = vmatpush1.bf16.msra.mxu0 %v8008_v61  ;;  %v1573_v24 = vrot.slane %v1572_v50, 2  ;;  %v1566_v26 = vrot.slane %v1565_v40, 2  ;;  %v8112_v27 = vcombine.low %v1800_v30, %v1804_v59  ;;  %v8104_v6 = vcombine.low %v1792_v39, %v1796_v52 }
 0x166   :  { %3996 = vmatprep.subr.bf16.mxu0 %v8129_v18  ;;  %v1547_v46 = vrot.slane %v1546_v34, 1  ;;  %v1539_v49 = vadd.f32 %v1538_v44, %v1537_v14  ;;  %8992 = vpow2.f32 %v1405_v47  ;;  %v1409_v60 = vmul.f32 1.442695, %v1390_v62  ;;  %v10012_v44 = vld [vmem:[%s12539_s5 + $0x248] sm:$0xff] }
 0x167   :  { %v1574_v20 = vadd.f32 %v1573_v24, %v1572_v50  ;;  %v8105_v57 = vcombine.high %v1792_v39, %v1796_v52  ;;  %v1567_v61 = vadd.f32 %v1566_v26, %v1565_v40  ;;  %v8097_v12 = vcombine.high %v9988_v54, %v9993_v55  ;;  %v1780_v50 = vld [vmem:[%s12539_s5 + $0x2a8] sm:$0xff] }
 0x168   :  { %v1548_v62 = vadd.f32 %v1547_v46, %v1546_v34  ;;  %v1540_v25 = vrot.slane %v1539_v49, 1  ;;  %8994 = vpow2.f32 %v1409_v60  ;;  %v1424_v30 = vunpack.c.h.bf16 %v9805_v35  ;;  %v10017_v47 = vld [vmem:[%s12539_s5 + $0x268] sm:$0xff] }
 0x169   :  { %3997 = vmatpush2.bf16.msra.mxu0 %v8128_v9  ;;  %v1575_v37 = vrot.slane %v1574_v20, 1  ;;  %v1568_v40 = vrot.slane %v1567_v61, 1  ;;  %v1426_v59 = vunpack.c.h.bf16 %v9813_v31  ;;  %v8096_v24 = vcombine.low %v9988_v54, %v9993_v55  ;;  %v10062_v35 = vld [vmem:[%s12539_s5 + $0x588] sm:$0xff]  ;;  %v1745_v31 = vld [vmem:[%s12539_s5 + $0x190] sm:$0xff] }
 0x16a   :  { %3998 = vmatprep.subr.bf16.mxu0 %v8121_v15  ;;  %v1656_v52 = vmul.f32 0.25, %v1548_v62  ;;  %v1541_v34 = vadd.f32 %v1540_v25, %v1539_v49  ;;  %v8088_v46 = vcombine.low %v1776_v33, %v1780_v50  ;;  %v8080_v60 = vcombine.low %v10012_v44, %v10017_v47  ;;  %v10026_v49 = vld [vmem:[%s12539_s5 + $0x208] sm:$0xff] }
 0x16b   :  { %v8989_v42 = vpop.eup %8988  ;;  %v1576_v15 = vadd.f32 %v1575_v37, %v1574_v20  ;;  %v8081_v37 = vcombine.high %v10012_v44, %v10017_v47 }
 0x16c   :  { %v8991_v53 = vpop.eup %8990  ;;  %v1432_v56 = vmul.f32 %v8989_v42, %v1420_v41 }
 0x16d   :  { %3999 = vmatpush2.bf16.msra.mxu0 %v8120_v22  ;;  %v1434_v58 = vmul.f32 %v8991_v53, %v1422_v51  ;;  %v1660_v42 = vmul.f32 0.25, %v1576_v15  ;;  %v10049_v15 = vld [vmem:[%s12539_s5 + $0x1f0] sm:$0xff] }
 0x16e   :  { %4000 = vmatprep.subr.bf16.mxu0 %v8113_v43  ;;  %v1456_v17 = vcombine.high %v1432_v56, %v1432_v56  ;;  %v1493_v36 = vsel %vm1166_vm0, %v1432_v56, 0.0  ;;  %v1569_v56 = vadd.f32 %v1568_v40, %v1567_v61 }
 0x16f   :  { %v1458_v2 = vcombine.high %v1434_v58, %v1434_v58  ;;  %v1494_v1 = vrot.slane %v1493_v36, 4  ;;  %v1521_v18 = vsel %vm1166_vm0, %v1434_v58, 0.0 }
 0x170   :  { %v1500_v19 = vsel %vm1166_vm0, %v1456_v17, 0.0  ;;  %v1522_v21 = vrot.slane %v1521_v18, 4  ;;  %v1680_v17 = vpack.c.bf16 %v1656_v52, %v1656_v52  ;;  %v1659_v62 = vmul.f32 0.25, %v1569_v56 }
 0x171   :  { %4001 = vmatpush2.bf16.msra.mxu0 %v8112_v27  ;;  %v1501_v4 = vrot.slane %v1500_v19, 4  ;;  %v1528_v9 = vsel %vm1166_vm0, %v1458_v2, 0.0  ;;  %v1495_v28 = vadd.f32 %v1494_v1, %v1493_v36  ;;  %v8089_v27 = vcombine.high %v1776_v33, %v1780_v50 }
 0x172   :  { %4002 = vmatprep.subr.bf16.mxu0 %v8105_v57  ;;  %v1529_v11 = vrot.slane %v1528_v9, 4  ;;  %v1523_v14 = vadd.f32 %v1522_v21, %v1521_v18  ;;  %v1655_v36 = vmul.f32 0.25, %v1541_v34  ;;  %v1684_v2 = vpack.c.bf16 %v1660_v42, %v1660_v42 }
 0x173   :  { %v1502_v41 = vadd.f32 %v1501_v4, %v1500_v19  ;;  %v1496_v51 = vrot.slane %v1495_v28, 2  ;;  %v8993_v1 = vpop.eup %8992  ;;  %v4235_v33 = vunpack.c.l.b16 %v1680_v17  ;;  %v1683_v47 = vpack.c.bf16 %v1659_v62, %v1659_v62 }
 0x174   :  { %v1530_v22 = vadd.f32 %v1529_v11, %v1528_v9  ;;  %v1524_v39 = vrot.slane %v1523_v14, 2  ;;  %v1463_v9 = vcombine.high %v9842_v8, %v9842_v8  ;;  %v1679_v50 = vpack.c.bf16 %v1655_v36, %v1655_v36 }
 0x175   :  { %4003 = vmatpush2.bf16.msra.mxu0 %v8104_v6  ;;  %v1503_v43 = vrot.slane %v1502_v41, 2  ;;  %v1497_v26 = vadd.f32 %v1496_v51, %v1495_v28  ;;  %v10031_v6 = vld [vmem:[%s12539_s5 + $0x228] sm:$0xff]  ;;  %v1465_v28 = vcombine.high %v9862_v16, %v9862_v16  ;;  %v4239_v44 = vunpack.c.l.b16 %v1684_v2 }
 0x176   :  { %4004 = vmatprep.subr.bf16.mxu0 %v8097_v12  ;;  %v1531_v20 = vrot.slane %v1530_v22, 2  ;;  %v1525_v53 = vadd.f32 %v1524_v39, %v1523_v14  ;;  %v8072_v18 = vcombine.low %v10026_v49, %v10031_v6  ;;  %v10044_v14 = vld [vmem:[%s12539_s5 + $0x1d0] sm:$0xff]  ;;  %v8073_v39 = vcombine.high %v10026_v49, %v10031_v6 }
 0x177   :  { %v1504_v54 = vadd.f32 %v1503_v43, %v1502_v41  ;;  %v1498_v55 = vrot.slane %v1497_v26, 1 }
 0x178   :  { %v1532_v57 = vadd.f32 %v1531_v20, %v1530_v22  ;;  %v1526_v58 = vrot.slane %v1525_v53, 1  ;;  %v8995_v22 = vpop.eup %8994  ;;  %v1598_v20 = vsel %vm1166_vm0, %v1463_v9, 0.0 }
 0x179   :  { %4005 = vmatpush2.bf16.msra.mxu0 %v8096_v24  ;;  %v1505_v61 = vrot.slane %v1504_v54, 1  ;;  %v1499_v12 = vadd.f32 %v1498_v55, %v1497_v26  ;;  %v1436_v24 = vmul.f32 %v8993_v1, %v1424_v30  ;;  %v8067_v26 = vcombine.high %v10044_v14, %v10049_v15  ;;  %v10067_v30 = vld [vmem:[%s12539_s5 + $0x5a8] sm:$0xff] }
 0x17a   :  { %4006 = vmatprep.subr.bf16.mxu0 %v8089_v27  ;;  %v1533_v19 = vrot.slane %v1532_v57, 1  ;;  %v1527_v21 = vadd.f32 %v1526_v58, %v1525_v53  ;;  %v1048_v27 = vpop.f32.mrf.mxu0  ;;  %v10073_v55 = vsel %vm2605_vm1, %v4239_v44, %v4235_v33  ;;  %v1438_v36 = vmul.f32 %v8995_v22, %v1426_v59  ;;  %v1749_v59 = vld [vmem:[%s12539_s5 + $0x1b0] sm:$0xff] }
 0x17b   :  { %v1506_v25 = vadd.f32 %v1505_v61, %v1504_v54  ;;  %v1649_v4 = vmul.f32 0.25, %v1499_v12  ;;  %v1626_v54 = vsel %vm1166_vm0, %v1465_v28, 0.0  ;;  %v10070_v6 = vadd.f32 %v9808_v48, %v1048_v27  ;;  %v10104_v28 = vld [vmem:[%s12539_s5 + $0x548] sm:$0xff] }
 0x17c   :  { %v1534_v11 = vadd.f32 %v1533_v19, %v1532_v57  ;;  %v1653_v40 = vmul.f32 0.25, %v1527_v21  ;;  %v4238_v57 = vunpack.c.l.b16 %v1683_v47  ;;  %v1050_v17 = vpop.f32.mrf.mxu0  ;;  %v8066_v61 = vcombine.low %v10044_v14, %v10049_v15 }
 0x17d   :  { %4007 = vmatpush2.bf16.msra.mxu0 %v8088_v46  ;;  %v1650_v41 = vmul.f32 0.25, %v1506_v25  ;;  %v1673_v51 = vpack.c.bf16 %v1649_v4, %v1649_v4  ;;  %v4234_v46 = vunpack.c.l.b16 %v1679_v50  ;;  %v10081_v12 = vadd.f32 %v9822_v5, %v1050_v17  ;;  %v1737_v50 = vld [vmem:[%s12539_s5 + $0x150] sm:$0xff] }
 0x17e   :  { %4008 = vmatprep.subr.bf16.mxu0 %v8081_v37  ;;  %v1654_v52 = vmul.f32 0.25, %v1534_v11  ;;  %v1677_v34 = vpack.c.bf16 %v1653_v40, %v1653_v40  ;;  %v1599_v37 = vrot.slane %v1598_v20, 4  ;;  %v8184_v2 = vcombine.low %v10062_v35, %v10067_v30  ;;  %v1052_v19 = vpop.f32.mrf.mxu0  ;;  %v10109_v11 = vld [vmem:[%s12539_s5 + $0x568] sm:$0xff] }
 0x17f   :  { %v1674_v43 = vpack.c.bf16 %v1650_v41, %v1650_v41  ;;  %v2599_v42 = vunpack.c.l.b16 %v1673_v51  ;;  %v8185_v1 = vcombine.high %v10062_v35, %v10067_v30  ;;  %v10095_v5 = vsel %vm2605_vm1, %v4238_v57, %v4234_v46  ;;  %v1741_v41 = vld [vmem:[%s12539_s5 + $0x170] sm:$0xff] }
 0x180   :  { %v1678_v53 = vpack.c.bf16 %v1654_v52, %v1654_v52  ;;  %v2603_v56 = vunpack.c.l.b16 %v1677_v34  ;;  %v1460_v62 = vcombine.high %v1436_v24, %v1436_v24  ;;  %v1462_v25 = vcombine.high %v1438_v36, %v1438_v36  ;;  %v1053_v14 = vpop.f32.mrf.mxu0 }
 0x181   :  { %4009 = vmatpush2.bf16.msra.mxu0 %v8080_v60  ;;  %v2600_v49 = vunpack.c.l.b16 %v1674_v43  ;;  %v1627_v4 = vrot.slane %v1626_v54, 4  ;;  %v1577_v15 = vsel %vm1166_vm0, %v1438_v36, 0.0  ;;  %v1600_v40 = vadd.f32 %v1599_v37, %v1598_v20  ;;  %v10174_v37 = vld [vmem:[%s12539_s5 + $0xd0] sm:$0xff] }
 0x182   :  { %4010 = vmatprep.subr.bf16.mxu0 %v8073_v39  ;;  %v2604_v60 = vunpack.c.l.b16 %v1678_v53  ;;  %v2608_v58 = vsel %vm2605_vm1, %v2603_v56, %v2599_v42  ;;  %v8059_v33 = vcombine.high %v1745_v31, %v1749_v59  ;;  %v1556_v51 = vsel %vm1166_vm0, %v1460_v62, 0.0  ;;  %v10139_v42 = vld [vmem:[%s12539_s5 + $0x528] sm:$0xff] }
 0x183   :  { %v10099_v9 = vpack.c.b16 %v2608_v58, %v2608_v58  ;;  %v1584_v44 = vsel %vm1166_vm0, %v1462_v25, 0.0  ;;  %v8058_v22 = vcombine.low %v1745_v31, %v1749_v59  ;;  %v1557_v39 = vrot.slane %v1556_v51, 4 }
 0x184   :  { %v2609_v48 = vsel %vm2605_vm1, %v2604_v60, %v2600_v49  ;;  %v1585_v52 = vrot.slane %v1584_v44, 4  ;;  %v1578_v34 = vrot.slane %v1577_v15, 4  ;;  %v8177_v43 = vcombine.high %v10104_v28, %v10109_v11  ;;  %v10162_v60 = vld [vmem:[%s12539_s5 + $0x4c8] sm:$0xff] }
 0x185   :  { %4011 = vmatpush2.bf16.msra.mxu0 %v8072_v18  ;;  %v10097_v21 = vpack.c.b16 %v2609_v48, %v2609_v48  ;;  %v1549_v18 = vsel %vm1166_vm0, %v1436_v24, 0.0  ;;  %v8176_v24 = vcombine.low %v10104_v28, %v10109_v11  ;;  %v1628_v27 = vadd.f32 %v1627_v4, %v1626_v54 }
 0x186   :  { %4062 = vmatprep.subr.bf16.mxu0 %v8067_v26  ;;  %v1550_v47 = vrot.slane %v1549_v18, 4  ;;  %v10134_v26 = vld [vmem:[%s12539_s5 + $0x508] sm:$0xff]  ;;  %v8051_v63 = vcombine.high %v1737_v50, %v1741_v41  ;;  %v1558_v20 = vadd.f32 %v1557_v39, %v1556_v51  ;;  %v1586_v53 = vadd.f32 %v1585_v52, %v1584_v44 }
 0x187   :  { %3971 = vmatprep.mubr.bf16.mxu1 %v10097_v21  ;;  %v1601_v56 = vrot.slane %v1600_v40, 2  ;;  %v8050_v46 = vcombine.low %v1737_v50, %v1741_v41  ;;  %v1579_v49 = vadd.f32 %v1578_v34, %v1577_v15  ;;  %v1591_v35 = vsel %vm1166_vm0, %v9842_v8, 0.0  ;;  %v10169_v8 = vld [vmem:[%s12539_s5 + $0x4e8] sm:$0xff]  ;;  %v1717_v41 = vld [vmem:[%s12539_s5 + $0xb0] sm:$0xff] }
 0x188   :  { %4013 = vmatmul.mubr.bf16.vlgmr.msra.gmra.mxu0 %v9864_v23  ;;  %3972 = vmatmul.mubr.bf16.vlgmr.msra.gmra.mxu1 %v10099_v9  ;;  %v1551_v54 = vadd.f32 %v1550_v47, %v1549_v18  ;;  %v8168_v30 = vcombine.low %v10134_v26, %v10139_v42  ;;  %v8169_v57 = vcombine.high %v10134_v26, %v10139_v42  ;;  %v1559_v58 = vrot.slane %v1558_v20, 2  ;;  %v10192_v15 = vld [vmem:[%s12539_s5 + $0x488] sm:$0xff] }
 0x189   :  { %4022 = vmatpush1.bf16.msra.mxu1 %v8192_v3  ;;  %4063 = vmatpush1.bf16.msra.mxu0 %v8066_v61  ;;  %v10151_v3 = vld [vmem:[%s12539_s5 + $0x130] sm:$0xff]  ;;  %v1587_v17 = vrot.slane %v1586_v53, 2  ;;  %v1602_v19 = vadd.f32 %v1601_v56, %v1600_v40  ;;  %v1592_v62 = vrot.slane %v1591_v35, 4  ;;  %v1619_v11 = vsel %vm1166_vm0, %v9862_v16, 0.0  ;;  %v10197_v50 = vld [vmem:[%s12539_s5 + $0x4a8] sm:$0xff] }
 0x18a   :  { %4094 = vmatprep.mubr.bf16.mxu0 %v9845_v10  ;;  %4053 = vmatprep.mubr.bf16.mxu1 %v10097_v21  ;;  %v8043_v36 = vcombine.high %v10146_v0, %v10151_v3  ;;  %v10179_v61 = vld [vmem:[%s12539_s5 + $0xf0] sm:$0xff]  ;;  %v1552_v48 = vrot.slane %v1551_v54, 2  ;;  %v1560_v31 = vadd.f32 %v1559_v58, %v1558_v20  ;;  %v8042_v25 = vcombine.low %v10146_v0, %v10151_v3  ;;  %v1836_v56 = vld [vmem:[%s12539_s5 + $0x468] sm:$0xff] }
 0x18b   :  { %4023 = vmatprep.subr.bf16.mxu1 %v8185_v1  ;;  %4064 = vmatprep.subr.bf16.mxu0 %v8059_v33  ;;  %v1629_v1 = vrot.slane %v1628_v27, 2  ;;  %v1588_v59 = vadd.f32 %v1587_v17, %v1586_v53  ;;  %v8161_v14 = vcombine.high %v10162_v60, %v10169_v8  ;;  %v8035_v18 = vcombine.high %v10174_v37, %v10179_v61  ;;  %v10202_v16 = vld [vmem:[%s12539_s5 + $0x90] sm:$0xff]  ;;  %v1832_v53 = vld [vmem:[%s12539_s5 + $0x448] sm:$0xff] }
 0x18c   :  { %v1553_v4 = vadd.f32 %v1552_v48, %v1551_v54  ;;  %v1561_v40 = vrot.slane %v1560_v31, 1  ;;  %v1603_v47 = vrot.slane %v1602_v19, 1  ;;  %v1593_v34 = vadd.f32 %v1592_v62, %v1591_v35 }
 0x18d   :  { %4024 = vmatpush1.bf16.msra.mxu1 %v8184_v2  ;;  %4065 = vmatpush1.bf16.msra.mxu0 %v8058_v22  ;;  %v1580_v2 = vrot.slane %v1579_v49, 2  ;;  %v1589_v33 = vrot.slane %v1588_v59, 1  ;;  %v1630_v22 = vadd.f32 %v1629_v1, %v1628_v27  ;;  %v8034_v26 = vcombine.low %v10174_v37, %v10179_v61 }
 0x18e   :  { %4025 = vmatprep.subr.bf16.mxu1 %v8177_v43  ;;  %4066 = vmatprep.subr.bf16.mxu0 %v8051_v63  ;;  %v1554_v51 = vrot.slane %v1553_v4, 1  ;;  %v1562_v39 = vadd.f32 %v1561_v40, %v1560_v31  ;;  %v8160_v43 = vcombine.low %v10162_v60, %v10169_v8  ;;  %v8153_v0 = vcombine.high %v10192_v15, %v10197_v50  ;;  %v1709_v8 = vld [vmem:[%s12539_s5 + $0x70] sm:$0xff] }
 0x18f   :  { %v1581_v28 = vadd.f32 %v1580_v2, %v1579_v49  ;;  %v1590_v52 = vadd.f32 %v1589_v33, %v1588_v59  ;;  %v8027_v3 = vcombine.high %v10202_v16, %v1717_v41  ;;  %v1604_v49 = vadd.f32 %v1603_v47, %v1602_v19  ;;  %v1697_v40 = vld [vmem:[%s12539_s5 + $0x10] sm:$0xff] }
 0x190   :  { %v1555_v42 = vadd.f32 %v1554_v51, %v1553_v4  ;;  %v1658_v27 = vmul.f32 0.25, %v1562_v39  ;;  %v1631_v35 = vrot.slane %v1630_v22, 1  ;;  %v1594_v58 = vrot.slane %v1593_v34, 2  ;;  %v1701_v33 = vld [vmem:[%s12539_s5 + $0x30] sm:$0xff] }
 0x191   :  { %4026 = vmatpush1.bf16.msra.mxu1 %v8176_v24  ;;  %4067 = vmatpush1.bf16.msra.mxu0 %v8050_v46  ;;  %v1582_v44 = vrot.slane %v1581_v28, 1  ;;  %v1620_v24 = vrot.slane %v1619_v11, 4  ;;  %v1662_v20 = vmul.f32 0.25, %v1590_v52  ;;  %v8026_v48 = vcombine.low %v10202_v16, %v1717_v41 }
 0x192   :  { %4027 = vmatprep.subr.bf16.mxu1 %v8169_v57  ;;  %4068 = vmatprep.subr.bf16.mxu0 %v8043_v36  ;;  %v1657_v46 = vmul.f32 0.25, %v1555_v42  ;;  %v1682_v57 = vpack.c.bf16 %v1658_v27, %v1658_v27  ;;  %v1705_v36 = vld [vmem:[%s12539_s5 + $0x50] sm:$0xff]  ;;  %v8145_v2 = vcombine.high %v1832_v53, %v1836_v56  ;;  %v1632_v62 = vadd.f32 %v1631_v35, %v1630_v22 }
 0x193   :  { %v1583_v63 = vadd.f32 %v1582_v44, %v1581_v28  ;;  %v1686_v60 = vpack.c.bf16 %v1662_v20, %v1662_v20  ;;  %v1621_v17 = vadd.f32 %v1620_v24, %v1619_v11  ;;  %v8019_v4 = vcombine.high %v1705_v36, %v1709_v8  ;;  %v1824_v28 = vld [vmem:[%s12539_s5 + $0x408] sm:$0xff]  ;;  %v1821_v42 = vld [vmem:[%s12539_s5 + $0x3f0] sm:$0xff] }
 0x194   :  { %v1681_v37 = vpack.c.bf16 %v1657_v46, %v1657_v46  ;;  %v4237_v1 = vunpack.c.l.b16 %v1682_v57  ;;  %v8144_v16 = vcombine.low %v1832_v53, %v1836_v56  ;;  %v1668_v41 = vmul.f32 0.25, %v1632_v62  ;;  %v1948_v24 = vld [vmem:[%s12539_s5 + $0x7e8] sm:$0xff]  ;;  %v1805_v62 = vld [vmem:[%s12539_s5 + $0x370] sm:$0xff] }
 0x195   :  { %4028 = vmatpush1.bf16.msra.mxu1 %v8168_v30  ;;  %4069 = vmatpush1.bf16.msra.mxu0 %v8042_v25  ;;  %v1661_v54 = vmul.f32 0.25, %v1583_v63  ;;  %v8152_v30 = vcombine.low %v10192_v15, %v10197_v50  ;;  %v4241_v31 = vunpack.c.l.b16 %v1686_v60  ;;  %v1664_v25 = vmul.f32 0.25, %v1604_v49  ;;  %v1828_v15 = vld [vmem:[%s12539_s5 + $0x428] sm:$0xff] }
 0x196   :  { %4029 = vmatprep.subr.bf16.mxu1 %v8161_v14  ;;  %4070 = vmatprep.subr.bf16.mxu0 %v8035_v18  ;;  %v4236_v59 = vunpack.c.l.b16 %v1681_v37  ;;  %v1595_v14 = vadd.f32 %v1594_v58, %v1593_v34  ;;  %v1622_v18 = vrot.slane %v1621_v17, 2  ;;  %v8018_v51 = vcombine.low %v1705_v36, %v1709_v8  ;;  %v1944_v34 = vld [vmem:[%s12539_s5 + $0x7c8] sm:$0xff]  ;;  %v1809_v58 = vld [vmem:[%s12539_s5 + $0x390] sm:$0xff] }
 0x197   :  { %v1685_v61 = vpack.c.bf16 %v1661_v54, %v1661_v54  ;;  %v10233_v11 = vsel %vm2605_vm1, %v4241_v31, %v4237_v1  ;;  %v1688_v44 = vpack.c.bf16 %v1664_v25, %v1664_v25  ;;  %v8137_v39 = vcombine.high %v1824_v28, %v1828_v15  ;;  %v1936_v49 = vld [vmem:[%s12539_s5 + $0x788] sm:$0xff] }
 0x198   :  { %v1596_v47 = vrot.slane %v1595_v14, 1  ;;  %v1623_v22 = vadd.f32 %v1622_v18, %v1621_v17  ;;  %v8011_v52 = vcombine.high %v1697_v40, %v1701_v33  ;;  %v8136_v20 = vcombine.low %v1824_v28, %v1828_v15  ;;  %v1940_v60 = vld [vmem:[%s12539_s5 + $0x7a8] sm:$0xff]  ;;  %v1813_v17 = vld [vmem:[%s12539_s5 + $0x3b0] sm:$0xff] }
 0x199   :  { %4030 = vmatpush1.bf16.msra.mxu1 %v8160_v43  ;;  %4071 = vmatpush1.bf16.msra.mxu0 %v8034_v26  ;;  %v4240_v19 = vunpack.c.l.b16 %v1685_v61  ;;  %v1692_v43 = vpack.c.bf16 %v1668_v41, %v1668_v41  ;;  %v1817_v26 = vld [vmem:[%s12539_s5 + $0x3d0] sm:$0xff]  ;;  %v5871_v63 = vunpack.c.l.b16 %v1688_v44  ;;  %v8010_v53 = vcombine.low %v1697_v40, %v1701_v33  ;;  %v1920_v15 = vld [vmem:[%s12539_s5 + $0x708] sm:$0xff]  ;;  %v1099_v40 = vpop.f32.mrf.mxu1 }
 0x19a   :  { %4031 = vmatprep.subr.bf16.mxu1 %v8153_v0  ;;  %4072 = vmatprep.subr.bf16.mxu0 %v8027_v3  ;;  %v1597_v0 = vadd.f32 %v1596_v47, %v1595_v14  ;;  %v1624_v27 = vrot.slane %v1623_v22, 1  ;;  %v8257_v56 = vcombine.high %v1944_v34, %v1948_v24  ;;  %v8131_v54 = vcombine.high %v1817_v26, %v1821_v42  ;;  %v1793_v41 = vld [vmem:[%s12539_s5 + $0x310] sm:$0xff]  ;;  %v10305_v47 = vld [vmem:[%s12539_s5 + $0x6c8] sm:$0xff] }
 0x19b   :  { %v10245_v50 = vsel %vm2605_vm1, %v4240_v19, %v4236_v59  ;;  %v5875_v3 = vunpack.c.l.b16 %v1692_v43  ;;  %v8256_v8 = vcombine.low %v1944_v34, %v1948_v24  ;;  %v8130_v37 = vcombine.low %v1817_v26, %v1821_v42  ;;  %v1932_v59 = vld [vmem:[%s12539_s5 + $0x768] sm:$0xff]  ;;  %v1801_v19 = vld [vmem:[%s12539_s5 + $0x350] sm:$0xff] }
 0x19c   :  { %v1663_v46 = vmul.f32 0.25, %v1597_v0  ;;  %v1625_v57 = vadd.f32 %v1624_v27, %v1623_v22  ;;  %v8249_v61 = vcombine.high %v1936_v49, %v1940_v60  ;;  %v8122_v28 = vcombine.low %v1809_v58, %v1813_v17  ;;  %v1101_v22 = vpop.f32.mrf.mxu1  ;;  %v1916_v34 = vld [vmem:[%s12539_s5 + $0x6e8] sm:$0xff]  ;;  %v1785_v24 = vld [vmem:[%s12539_s5 + $0x2d0] sm:$0xff] }
 0x19d   :  { %4032 = vmatpush1.bf16.msra.mxu1 %v8152_v30  ;;  %4073 = vmatpush1.bf16.msra.mxu0 %v8026_v48  ;;  %v10263_v35 = vsel %vm2605_vm1, %v5875_v3, %v5871_v63  ;;  %v8123_v48 = vcombine.high %v1809_v58, %v1813_v17  ;;  %v8115_v18 = vcombine.high %v1801_v19, %v1805_v62 }
 0x19e   :  { %4033 = vmatprep.subr.bf16.mxu1 %v8145_v2  ;;  %4074 = vmatprep.subr.bf16.mxu0 %v8019_v4  ;;  %v1687_v30 = vpack.c.bf16 %v1663_v46, %v1663_v46  ;;  %v1667_v36 = vmul.f32 0.25, %v1625_v57  ;;  %v1928_v2 = vld [vmem:[%s12539_s5 + $0x748] sm:$0xff]  ;;  %v8248_v4 = vcombine.low %v1936_v49, %v1940_v60  ;;  %v1100_v44 = vadd.f32 %v1099_v40, %v10070_v6  ;;  %v1789_v6 = vld [vmem:[%s12539_s5 + $0x2f0] sm:$0xff]  ;;  %v1103_v63 = vpop.f32.mrf.mxu1 }
 0x19f   :  { %v8241_v14 = vcombine.high %v1928_v2, %v1932_v59  ;;  %v1102_v43 = vadd.f32 %v1101_v22, %v10081_v12  ;;  %v8225_v46 = vcombine.high %v10305_v47, %v1916_v34  ;;  %v1904_v12 = vld [vmem:[%s12539_s5 + $0x688] sm:$0xff]  ;;  %v1773_v40 = vld [vmem:[%s12539_s5 + $0x270] sm:$0xff] }
 0x1a0   :  { %v1691_v1 = vpack.c.bf16 %v1667_v36, %v1667_v36  ;;  %v5870_v31 = vunpack.c.l.b16 %v1687_v30  ;;  %v1104_v49 = vpop.f32.mrf.mxu1  ;;  %v1908_v57 = vld [vmem:[%s12539_s5 + $0x6a8] sm:$0xff]  ;;  %v1777_v36 = vld [vmem:[%s12539_s5 + $0x290] sm:$0xff] }
 0x1a1   :  { %4034 = vmatpush1.bf16.msra.mxu1 %v8144_v16  ;;  %4075 = vmatpush1.bf16.msra.mxu0 %v8018_v51  ;;  %v1924_v16 = vld [vmem:[%s12539_s5 + $0x728] sm:$0xff]  ;;  %v1797_v51 = vld [vmem:[%s12539_s5 + $0x330] sm:$0xff]  ;;  %v10317_v0 = vcombine.low %v1100_v44, %v1102_v43  ;;  %v10319_v3 = vcombine.high %v1100_v44, %v1102_v43  ;;  %v8003_v27 = vcombine.low %v1102_v43, %v1102_v43 }
 0x1a2   :  { %4035 = vmatprep.subr.bf16.mxu1 %v8137_v39  ;;  %4076 = vmatprep.subr.bf16.mxu0 %v8011_v52  ;;  %v5874_v25 = vunpack.c.l.b16 %v1691_v1  ;;  %v8240_v39 = vcombine.low %v1928_v2, %v1932_v59  ;;  %v8114_v52 = vcombine.low %v1801_v19, %v1805_v62  ;;  %v8233_v26 = vcombine.high %v1920_v15, %v1924_v16 }
 0x1a3   :  { %v8107_v42 = vcombine.high %v1793_v41, %v1797_v51  ;;  %v1293_v60 = vsel %vm1166_vm0, %v10317_v0, -inf  ;;  %v1300_v58 = vsel %vm1166_vm0, %v8003_v27, -inf  ;;  %v1321_v17 = vsel %vm1166_vm0, %v10319_v3, -inf }
 0x1a4   :  { %v10290_v33 = vsel %vm2605_vm1, %v5874_v25, %v5870_v31  ;;  %v8224_v1 = vcombine.low %v10305_v47, %v1916_v34  ;;  %v8098_v25 = vcombine.low %v1785_v24, %v1789_v6  ;;  %v8216_v47 = vcombine.low %v1904_v12, %v1908_v57 }
 0x1a5   :  { %4036 = vmatpush1.bf16.msra.mxu1 %v8136_v20  ;;  %4077 = vmatpush1.bf16.msra.mxu0 %v8010_v53  ;;  %v8005_v20 = vcombine.high %v1102_v43, %v1102_v43  ;;  %v8232_v53 = vcombine.low %v1920_v15, %v1924_v16  ;;  %v1769_v15 = vld [vmem:[%s12539_s5 + $0x250] sm:$0xff] }
 0x1a6   :  { %4037 = vmatprep.subr.bf16.mxu1 %v8257_v56  ;;  %4078 = vmatprep.subr.bf16.mxu0 %v8131_v54  ;;  %v8106_v56 = vcombine.low %v1793_v41, %v1797_v51  ;;  %v8099_v54 = vcombine.high %v1785_v24, %v1789_v6  ;;  %v8083_v43 = vcombine.high %v1769_v15, %v1773_v40 }
 0x1a7   :  { %v1328_v30 = vsel %vm1166_vm0, %v8005_v20, -inf }
 0x1a8   :  { %v1329_v2 = vrot.slane %v1328_v30, 4 }
 0x1a9   :  { %4038 = vmatpush2.bf16.msra.mxu1 %v8256_v8  ;;  %4079 = vmatpush2.bf16.msra.mxu0 %v8130_v37  ;;  %v1781_v8 = vld [vmem:[%s12539_s5 + $0x2b0] sm:$0xff]  ;;  %v1294_v37 = vrot.slane %v1293_v60, 4 }
 0x1aa   :  { %4039 = vmatprep.subr.bf16.mxu1 %v8249_v61  ;;  %4080 = vmatprep.subr.bf16.mxu0 %v8123_v48  ;;  %v1301_v61 = vrot.slane %v1300_v58, 4  ;;  %v1322_v48 = vrot.slane %v1321_v17, 4  ;;  %v1330_v62 = vmax.f32 %v1328_v30, %v1329_v2  ;;  %v8090_v24 = vcombine.low %v1777_v36, %v1781_v8  ;;  %v1758_v2 = vld [vmem:[%s12539_s5 + $0x1f8] sm:$0xff] }
 0x1ab   :  { %v1295_v31 = vmax.f32 %v1293_v60, %v1294_v37 }
 0x1ac   :  { %v1302_v59 = vmax.f32 %v1300_v58, %v1301_v61  ;;  %v1323_v19 = vmax.f32 %v1321_v17, %v1322_v48  ;;  %v1331_v44 = vrot.slane %v1330_v62, 2  ;;  %v8082_v58 = vcombine.low %v1769_v15, %v1773_v40  ;;  %v1885_v61 = vld [vmem:[%s12539_s5 + $0x5f0] sm:$0xff]  ;;  %v1754_v48 = vld [vmem:[%s12539_s5 + $0x1d8] sm:$0xff] }
 0x1ad   :  { %4040 = vmatpush2.bf16.msra.mxu1 %v8248_v4  ;;  %4081 = vmatpush2.bf16.msra.mxu0 %v8122_v28  ;;  %v8217_v4 = vcombine.high %v1904_v12, %v1908_v57  ;;  %v8091_v28 = vcombine.high %v1777_v36, %v1781_v8  ;;  %v1296_v16 = vrot.slane %v1295_v31, 2  ;;  %v1881_v36 = vld [vmem:[%s12539_s5 + $0x5d0] sm:$0xff] }
 0x1ae   :  { %4041 = vmatprep.subr.bf16.mxu1 %v8241_v14  ;;  %4082 = vmatprep.subr.bf16.mxu0 %v8115_v18  ;;  %v1896_v14 = vld [vmem:[%s12539_s5 + $0x648] sm:$0xff]  ;;  %v1303_v41 = vrot.slane %v1302_v59, 2  ;;  %v1324_v51 = vrot.slane %v1323_v19, 2  ;;  %v1332_v34 = vmax.f32 %v1330_v62, %v1331_v44  ;;  %v8195_v62 = vcombine.high %v1881_v36, %v1885_v61  ;;  %v1742_v44 = vld [vmem:[%s12539_s5 + $0x178] sm:$0xff] }
 0x1af   :  { %v1900_v18 = vld [vmem:[%s12539_s5 + $0x668] sm:$0xff]  ;;  %v1297_v22 = vmax.f32 %v1295_v31, %v1296_v16  ;;  %v1865_v16 = vld [vmem:[%s12539_s5 + $0x550] sm:$0xff] }
 0x1b0   :  { %v8209_v6 = vcombine.high %v1896_v14, %v1900_v18  ;;  %v8208_v60 = vcombine.low %v1896_v14, %v1900_v18  ;;  %v8194_v14 = vcombine.low %v1881_v36, %v1885_v61  ;;  %v8068_v18 = vcombine.low %v1754_v48, %v1758_v2  ;;  %v1833_v61 = vld [vmem:[%s12539_s5 + $0x450] sm:$0xff] }
 0x1b1   :  { %4042 = vmatpush2.bf16.msra.mxu1 %v8240_v39  ;;  %4083 = vmatpush2.bf16.msra.mxu0 %v8114_v52  ;;  %v1304_v39 = vmax.f32 %v1302_v59, %v1303_v41  ;;  %v1325_v52 = vmax.f32 %v1323_v19, %v1324_v51  ;;  %v1298_v63 = vrot.slane %v1297_v22, 1  ;;  %v1869_v41 = vld [vmem:[%s12539_s5 + $0x570] sm:$0xff]  ;;  %v1738_v51 = vld [vmem:[%s12539_s5 + $0x158] sm:$0xff] }
 0x1b2   :  { %4043 = vmatprep.subr.bf16.mxu1 %v8233_v26  ;;  %4084 = vmatprep.subr.bf16.mxu0 %v8107_v42  ;;  %v1888_v26 = vld [vmem:[%s12539_s5 + $0x608] sm:$0xff] }
 0x1b3   :  { %v1892_v42 = vld [vmem:[%s12539_s5 + $0x628] sm:$0xff]  ;;  %v1305_v27 = vrot.slane %v1304_v39, 1  ;;  %v1326_v20 = vrot.slane %v1325_v52, 1 }
 0x1b4   :  { %v8201_v17 = vcombine.high %v1888_v26, %v1892_v42  ;;  %v8200_v59 = vcombine.low %v1888_v26, %v1892_v42  ;;  %v8052_v26 = vcombine.low %v1738_v51, %v1742_v44 }
 0x1b5   :  { %4044 = vmatpush2.bf16.msra.mxu1 %v8232_v53  ;;  %4085 = vmatpush2.bf16.msra.mxu0 %v8106_v56  ;;  %v1333_v53 = vrot.slane %v1332_v34, 1  ;;  %v1761_v56 = vld [vmem:[%s12539_s5 + $0x210] sm:$0xff]  ;;  %v1306_v49 = vmax.f32 %v1304_v39, %v1305_v27  ;;  %v1327_v12 = vmax.f32 %v1325_v52, %v1326_v20  ;;  %v8179_v39 = vcombine.high %v1865_v16, %v1869_v41 }
 0x1b6   :  { %4045 = vmatprep.subr.bf16.mxu1 %v8225_v46  ;;  %4086 = vmatprep.subr.bf16.mxu0 %v8099_v54  ;;  %v1765_v46 = vld [vmem:[%s12539_s5 + $0x230] sm:$0xff]  ;;  %v1299_v54 = vmax.f32 %v1297_v22, %v1298_v63  ;;  %v8053_v52 = vcombine.high %v1738_v51, %v1742_v44  ;;  %v1818_v44 = vld [vmem:[%s12539_s5 + $0x3d8] sm:$0xff] }
 0x1b7   :  { %v1334_v57 = vmax.f32 %v1332_v34, %v1333_v53  ;;  %v8075_v30 = vcombine.high %v1761_v56, %v1765_v46  ;;  %v8074_v19 = vcombine.low %v1761_v56, %v1765_v46  ;;  %v1857_v34 = vld [vmem:[%s12539_s5 + $0x510] sm:$0xff]  ;;  %v1722_v53 = vld [vmem:[%s12539_s5 + $0xd8] sm:$0xff] }
 0x1b8   :  { %v1368_v8 = vcombine.low %v1299_v54, %v1306_v49  ;;  %v1849_v27 = vld [vmem:[%s12539_s5 + $0x4d0] sm:$0xff]  ;;  %v1726_v56 = vld [vmem:[%s12539_s5 + $0xf8] sm:$0xff] }
 0x1b9   :  { %4046 = vmatpush2.bf16.msra.mxu1 %v8224_v1  ;;  %4087 = vmatpush2.bf16.msra.mxu0 %v8098_v25  ;;  %v1370_v37 = vcombine.low %v1327_v12, %v1334_v57  ;;  %v8069_v25 = vcombine.high %v1754_v48, %v1758_v2  ;;  %v1853_v20 = vld [vmem:[%s12539_s5 + $0x4f0] sm:$0xff]  ;;  %v8037_v12 = vcombine.high %v1722_v53, %v1726_v56  ;;  %v1706_v2 = vld [vmem:[%s12539_s5 + $0x58] sm:$0xff] }
 0x1ba   :  { %4047 = vmatprep.subr.bf16.mxu1 %v8217_v4  ;;  %4088 = vmatprep.subr.bf16.mxu0 %v8091_v28  ;;  %v10378_v1 = vsub.f32 %v10317_v0, %v1368_v8  ;;  %v1873_v4 = vld [vmem:[%s12539_s5 + $0x590] sm:$0xff]  ;;  %v1750_v28 = vld [vmem:[%s12539_s5 + $0x1b8] sm:$0xff]  ;;  %v8163_v49 = vcombine.high %v1849_v27, %v1853_v20  ;;  %v8036_v36 = vcombine.low %v1722_v53, %v1726_v56 }
 0x1bb   :  { %v10381_v31 = vsub.f32 %v10319_v3, %v1370_v37  ;;  %v1877_v0 = vld [vmem:[%s12539_s5 + $0x5b0] sm:$0xff]  ;;  %v1746_v3 = vld [vmem:[%s12539_s5 + $0x198] sm:$0xff] }
 0x1bc   :  { %v8187_v15 = vcombine.high %v1873_v4, %v1877_v0  ;;  %v8061_v40 = vcombine.high %v1746_v3, %v1750_v28  ;;  %v8060_v22 = vcombine.low %v1746_v3, %v1750_v28  ;;  %v1841_v57 = vld [vmem:[%s12539_s5 + $0x490] sm:$0xff]  ;;  %v1698_v28 = vld [vmem:[%s12539_s5 + $0x18] sm:$0xff] }
 0x1bd   :  { %4048 = vmatpush2.bf16.msra.mxu1 %v8216_v47  ;;  %4089 = vmatpush2.bf16.msra.mxu0 %v8090_v24  ;;  %v8186_v47 = vcombine.low %v1873_v4, %v1877_v0  ;;  %v1861_v24 = vld [vmem:[%s12539_s5 + $0x530] sm:$0xff]  ;;  %v1802_v56 = vld [vmem:[%s12539_s5 + $0x358] sm:$0xff] }
 0x1be   :  { %4049 = vmatprep.subr.bf16.mxu1 %v8209_v6  ;;  %4090 = vmatprep.subr.bf16.mxu0 %v8083_v43  ;;  %v1730_v6 = vld [vmem:[%s12539_s5 + $0x118] sm:$0xff]  ;;  %v8178_v43 = vcombine.low %v1865_v16, %v1869_v41  ;;  %v8171_v42 = vcombine.high %v1857_v34, %v1861_v24  ;;  %v8170_v46 = vcombine.low %v1857_v34, %v1861_v24  ;;  %v1837_v48 = vld [vmem:[%s12539_s5 + $0x470] sm:$0xff] }
 0x1bf   :  { %v1825_v0 = vld [vmem:[%s12539_s5 + $0x410] sm:$0xff] }
 0x1c0   :  { %v1829_v3 = vld [vmem:[%s12539_s5 + $0x430] sm:$0xff] }
 0x1c1   :  { %4050 = vmatpush2.bf16.msra.mxu1 %v8208_v60  ;;  %4091 = vmatpush2.bf16.msra.mxu0 %v8082_v58  ;;  %v1845_v60 = vld [vmem:[%s12539_s5 + $0x4b0] sm:$0xff]  ;;  %v1714_v58 = vld [vmem:[%s12539_s5 + $0x98] sm:$0xff] }
 0x1c2   :  { %4051 = vmatprep.subr.bf16.mxu1 %v8201_v17  ;;  %4092 = vmatprep.subr.bf16.mxu0 %v8075_v30  ;;  %v1718_v17 = vld [vmem:[%s12539_s5 + $0xb8] sm:$0xff]  ;;  %v8162_v30 = vcombine.low %v1849_v27, %v1853_v20  ;;  %v8155_v8 = vcombine.high %v1841_v57, %v1845_v60  ;;  %v1945_v41 = vld [vmem:[%s12539_s5 + $0x7d0] sm:$0xff] }
 0x1c3   :  { %v8029_v37 = vcombine.high %v1714_v58, %v1718_v17  ;;  %v1949_v51 = vld [vmem:[%s12539_s5 + $0x7f0] sm:$0xff] }
 0x1c4   :  { %v1937_v24 = vld [vmem:[%s12539_s5 + $0x790] sm:$0xff] }
 0x1c5   :  { %4052 = vmatpush2.bf16.msra.mxu1 %v8200_v59  ;;  %4093 = vmatpush2.bf16.msra.mxu0 %v8074_v19  ;;  %v1710_v59 = vld [vmem:[%s12539_s5 + $0x78] sm:$0xff]  ;;  %v8154_v19 = vcombine.low %v1841_v57, %v1845_v60  ;;  %v1929_v20 = vld [vmem:[%s12539_s5 + $0x750] sm:$0xff] }
 0x1c6   :  { %4103 = vmatprep.subr.bf16.mxu1 %v8195_v62  ;;  %4144 = vmatprep.subr.bf16.mxu0 %v8069_v25  ;;  %v8028_v62 = vcombine.low %v1714_v58, %v1718_v17  ;;  %v8147_v25 = vcombine.high %v1833_v61, %v1837_v48  ;;  %v8021_v4 = vcombine.high %v1706_v2, %v1710_v59  ;;  %v1933_v53 = vld [vmem:[%s12539_s5 + $0x770] sm:$0xff]  ;;  %v1794_v17 = vld [vmem:[%s12539_s5 + $0x318] sm:$0xff] }
 0x1c7   :  { %v1921_v60 = vld [vmem:[%s12539_s5 + $0x710] sm:$0xff] }
 0x1c8   :  { %4054 = vmatmul.mubr.bf16.vlgmr.msra.gmra.mxu1 %v10099_v9  ;;  %4095 = vmatmul.mubr.bf16.vlgmr.msra.gmra.mxu0 %v9864_v23  ;;  %v1925_v58 = vld [vmem:[%s12539_s5 + $0x730] sm:$0xff] }
 0x1c9   :  { %4104 = vmatpush1.bf16.msra.mxu1 %v8194_v14  ;;  %4135 = vmatprep.mubr.bf16.mxu1 %v10097_v21  ;;  %v1702_v14 = vld [vmem:[%s12539_s5 + $0x38] sm:$0xff] }
 0x1ca   :  { %4145 = vmatpush1.bf16.msra.mxu0 %v8068_v18  ;;  %4176 = vmatprep.mubr.bf16.mxu0 %v9845_v10  ;;  %v1734_v10 = vld [vmem:[%s12539_s5 + $0x138] sm:$0xff]  ;;  %v8146_v18 = vcombine.low %v1833_v61, %v1837_v48  ;;  %v8013_v16 = vcombine.high %v1698_v28, %v1702_v14  ;;  %v1913_v48 = vld [vmem:[%s12539_s5 + $0x6d0] sm:$0xff] }
 0x1cb   :  { %4105 = vmatprep.subr.bf16.mxu1 %v8187_v15  ;;  %4146 = vmatprep.subr.bf16.mxu0 %v8061_v40  ;;  %v8045_v63 = vcombine.high %v1730_v6, %v1734_v10  ;;  %v8044_v54 = vcombine.low %v1730_v6, %v1734_v10  ;;  %v8020_v15 = vcombine.low %v1706_v2, %v1710_v59  ;;  %v1941_v6 = vld [vmem:[%s12539_s5 + $0x7b0] sm:$0xff]  ;;  %v1810_v10 = vld [vmem:[%s12539_s5 + $0x398] sm:$0xff] }
 0x1cc   :  { %v8139_v40 = vcombine.high %v1825_v0, %v1829_v3  ;;  %v1917_v2 = vld [vmem:[%s12539_s5 + $0x6f0] sm:$0xff]  ;;  %v1786_v59 = vld [vmem:[%s12539_s5 + $0x2d8] sm:$0xff] }
 0x1cd   :  { %4106 = vmatpush1.bf16.msra.mxu1 %v8186_v47  ;;  %v1822_v47 = vld [vmem:[%s12539_s5 + $0x3f8] sm:$0xff] }
 0x1ce   :  { %4147 = vmatpush1.bf16.msra.mxu0 %v8060_v22  ;;  %4107 = vmatprep.subr.bf16.mxu1 %v8179_v39  ;;  %v8138_v22 = vcombine.low %v1825_v0, %v1829_v3  ;;  %v8012_v39 = vcombine.low %v1698_v28, %v1702_v14  ;;  %v8133_v34 = vcombine.high %v1818_v44, %v1822_v47  ;;  %v1905_v3 = vld [vmem:[%s12539_s5 + $0x690] sm:$0xff]  ;;  %v1778_v14 = vld [vmem:[%s12539_s5 + $0x298] sm:$0xff] }
 0x1cf   :  { %4148 = vmatprep.subr.bf16.mxu0 %v8053_v52  ;;  %v8259_v52 = vcombine.high %v1945_v41, %v1949_v51  ;;  %v1909_v28 = vld [vmem:[%s12539_s5 + $0x6b0] sm:$0xff] }
 0x1d1   :  { %4108 = vmatpush1.bf16.msra.mxu1 %v8178_v43  ;;  %v1814_v43 = vld [vmem:[%s12539_s5 + $0x3b8] sm:$0xff] }
 0x1d2   :  { %4149 = vmatpush1.bf16.msra.mxu0 %v8052_v26  ;;  %4109 = vmatprep.subr.bf16.mxu1 %v8171_v42  ;;  %v8258_v26 = vcombine.low %v1945_v41, %v1949_v51  ;;  %v8132_v42 = vcombine.low %v1818_v44, %v1822_v47  ;;  %v8125_v27 = vcombine.high %v1810_v10, %v1814_v43  ;;  %v1897_v51 = vld [vmem:[%s12539_s5 + $0x650] sm:$0xff]  ;;  %v1770_v47 = vld [vmem:[%s12539_s5 + $0x258] sm:$0xff] }
 0x1d3   :  { %4150 = vmatprep.subr.bf16.mxu0 %v8045_v63  ;;  %v8251_v63 = vcombine.high %v1937_v24, %v1941_v6  ;;  %v1901_v44 = vld [vmem:[%s12539_s5 + $0x670] sm:$0xff] }
 0x1d5   :  { %4110 = vmatpush1.bf16.msra.mxu1 %v8170_v46  ;;  %v1806_v46 = vld [vmem:[%s12539_s5 + $0x378] sm:$0xff] }
 0x1d6   :  { %4151 = vmatpush1.bf16.msra.mxu0 %v8044_v54  ;;  %4111 = vmatprep.subr.bf16.mxu1 %v8163_v49  ;;  %v8250_v54 = vcombine.low %v1937_v24, %v1941_v6  ;;  %v8124_v49 = vcombine.low %v1810_v10, %v1814_v43  ;;  %v8117_v57 = vcombine.high %v1802_v56, %v1806_v46  ;;  %v1889_v6 = vld [vmem:[%s12539_s5 + $0x610] sm:$0xff]  ;;  %v1762_v43 = vld [vmem:[%s12539_s5 + $0x218] sm:$0xff] }
 0x1d7   :  { %4152 = vmatprep.subr.bf16.mxu0 %v8037_v12  ;;  %v8243_v12 = vcombine.high %v1929_v20, %v1933_v53  ;;  %v1893_v10 = vld [vmem:[%s12539_s5 + $0x630] sm:$0xff] }
 0x1d9   :  { %4112 = vmatpush1.bf16.msra.mxu1 %v8162_v30  ;;  %v1798_v30 = vld [vmem:[%s12539_s5 + $0x338] sm:$0xff] }
 0x1da   :  { %4153 = vmatpush1.bf16.msra.mxu0 %v8036_v36  ;;  %4113 = vmatprep.subr.bf16.mxu1 %v8155_v8  ;;  %v8242_v36 = vcombine.low %v1929_v20, %v1933_v53  ;;  %v8116_v8 = vcombine.low %v1802_v56, %v1806_v46  ;;  %v8109_v61 = vcombine.high %v1794_v17, %v1798_v30  ;;  %v1882_v53 = vld [vmem:[%s12539_s5 + $0x5d8] sm:$0xff]  ;;  %v2007_v46 = vld [vmem:[%s12539_s5 + $0x9c0] sm:$0xff] }
 0x1db   :  { %4154 = vmatprep.subr.bf16.mxu0 %v8029_v37  ;;  %v8235_v37 = vcombine.high %v1921_v60, %v1925_v58  ;;  %v1886_v56 = vld [vmem:[%s12539_s5 + $0x5f8] sm:$0xff] }
 0x1dd   :  { %4114 = vmatpush1.bf16.msra.mxu1 %v8154_v19  ;;  %v1790_v19 = vld [vmem:[%s12539_s5 + $0x2f8] sm:$0xff] }
 0x1de   :  { %4155 = vmatpush1.bf16.msra.mxu0 %v8028_v62  ;;  %4115 = vmatprep.subr.bf16.mxu1 %v8147_v25  ;;  %v8234_v62 = vcombine.low %v1921_v60, %v1925_v58  ;;  %v8108_v25 = vcombine.low %v1794_v17, %v1798_v30  ;;  %v8101_v0 = vcombine.high %v1786_v59, %v1790_v19  ;;  %v1413_v58 = vmul.f32 1.442695, %v10378_v1  ;;  %v1874_v17 = vld [vmem:[%s12539_s5 + $0x598] sm:$0xff]  ;;  %v2003_v1 = vld [vmem:[%s12539_s5 + $0x9a0] sm:$0xff] }
 0x1df   :  { %4156 = vmatprep.subr.bf16.mxu0 %v8021_v4  ;;  %v8227_v4 = vcombine.high %v1913_v48, %v1917_v2  ;;  %v1878_v30 = vld [vmem:[%s12539_s5 + $0x5b8] sm:$0xff] }
 0x1e0   :  { %8996 = vpow2.f32 %v1413_v58 }
 0x1e1   :  { %4116 = vmatpush1.bf16.msra.mxu1 %v8146_v18  ;;  %v1782_v18 = vld [vmem:[%s12539_s5 + $0x2b8] sm:$0xff] }
 0x1e2   :  { %4157 = vmatpush1.bf16.msra.mxu0 %v8020_v15  ;;  %4117 = vmatprep.subr.bf16.mxu1 %v8139_v40  ;;  %v8226_v15 = vcombine.low %v1913_v48, %v1917_v2  ;;  %v8100_v40 = vcombine.low %v1786_v59, %v1790_v19  ;;  %v8093_v41 = vcombine.high %v1778_v14, %v1782_v18  ;;  %v1866_v2 = vld [vmem:[%s12539_s5 + $0x558] sm:$0xff] }
 0x1e3   :  { %4158 = vmatprep.subr.bf16.mxu0 %v8013_v16  ;;  %v8219_v16 = vcombine.high %v1905_v3, %v1909_v28  ;;  %v8189_v48 = vcombine.high %v1874_v17, %v1878_v30 }
 0x1e5   :  { %4118 = vmatpush1.bf16.msra.mxu1 %v8138_v22  ;;  %v1774_v22 = vld [vmem:[%s12539_s5 + $0x278] sm:$0xff] }
 0x1e6   :  { %4159 = vmatpush1.bf16.msra.mxu0 %v8012_v39  ;;  %4119 = vmatprep.subr.bf16.mxu1 %v8259_v52  ;;  %v8218_v39 = vcombine.low %v1905_v3, %v1909_v28  ;;  %v8092_v52 = vcombine.low %v1778_v14, %v1782_v18  ;;  %v8085_v24 = vcombine.high %v1770_v47, %v1774_v22 }
 0x1e7   :  { %4160 = vmatprep.subr.bf16.mxu0 %v8133_v34  ;;  %v8211_v34 = vcombine.high %v1897_v51, %v1901_v44 }
 0x1e9   :  { %4120 = vmatpush2.bf16.msra.mxu1 %v8258_v26  ;;  %v1766_v26 = vld [vmem:[%s12539_s5 + $0x238] sm:$0xff] }
 0x1ea   :  { %4161 = vmatpush2.bf16.msra.mxu0 %v8132_v42  ;;  %4121 = vmatprep.subr.bf16.mxu1 %v8251_v63  ;;  %v8210_v42 = vcombine.low %v1897_v51, %v1901_v44  ;;  %v8084_v63 = vcombine.low %v1770_v47, %v1774_v22  ;;  %v8077_v20 = vcombine.high %v1762_v43, %v1766_v26  ;;  %v1850_v22 = vld [vmem:[%s12539_s5 + $0x4d8] sm:$0xff] }
 0x1eb   :  { %4162 = vmatprep.subr.bf16.mxu0 %v8125_v27  ;;  %v8203_v27 = vcombine.high %v1889_v6, %v1893_v10 }
 0x1ed   :  { %4122 = vmatpush2.bf16.msra.mxu1 %v8250_v54  ;;  %v2011_v54 = vld [vmem:[%s12539_s5 + $0x9e0] sm:$0xff] }
 0x1ee   :  { %4163 = vmatpush2.bf16.msra.mxu0 %v8124_v49  ;;  %4123 = vmatprep.subr.bf16.mxu1 %v8243_v12  ;;  %v8202_v49 = vcombine.low %v1889_v6, %v1893_v10  ;;  %v8076_v12 = vcombine.low %v1762_v43, %v1766_v26  ;;  %v8319_v60 = vcombine.high %v2007_v46, %v2011_v54  ;;  %v1842_v26 = vld [vmem:[%s12539_s5 + $0x498] sm:$0xff] }
 0x1ef   :  { %4164 = vmatprep.subr.bf16.mxu0 %v8117_v57  ;;  %v8197_v57 = vcombine.high %v1882_v53, %v1886_v56 }
 0x1f1   :  { %4124 = vmatpush2.bf16.msra.mxu1 %v8242_v36  ;;  %v1417_v36 = vmul.f32 1.442695, %v10381_v31  ;;  %v1870_v31 = vld [vmem:[%s12539_s5 + $0x578] sm:$0xff] }
 0x1f2   :  { %4165 = vmatpush2.bf16.msra.mxu0 %v8116_v8  ;;  %4125 = vmatprep.subr.bf16.mxu1 %v8235_v37  ;;  %v8196_v8 = vcombine.low %v1882_v53, %v1886_v56  ;;  %v1999_v37 = vld [vmem:[%s12539_s5 + $0x980] sm:$0xff]  ;;  %v8181_v14 = vcombine.high %v1866_v2, %v1870_v31  ;;  %v9007_v53 = vld [vmem:[%s12538_s2 + $0x8] sm:$0xff] }
 0x1f3   :  { %4166 = vmatprep.subr.bf16.mxu0 %v8109_v61  ;;  %v8318_v61 = vcombine.low %v2007_v46, %v2011_v54  ;;  %v8311_v19 = vcombine.high %v1999_v37, %v2003_v1  ;;  %8998 = vpow2.f32 %v1417_v36  ;;  %v8310_v28 = vcombine.low %v1999_v37, %v2003_v1  ;;  %v1967_v46 = vld [vmem:[%s12539_s5 + $0x880] sm:$0xff] }
 0x1f4   :  { %v1430_v56 = vunpack.c.h.bf16 %v9007_v53  ;;  %v1971_v54 = vld [vmem:[%s12539_s5 + $0x8a0] sm:$0xff] }
 0x1f5   :  { %4126 = vmatpush2.bf16.msra.mxu1 %v8234_v62  ;;  %v1991_v62 = vld [vmem:[%s12539_s5 + $0x940] sm:$0xff]  ;;  %v8279_v58 = vcombine.high %v1967_v46, %v1971_v54 }
 0x1f6   :  { %4167 = vmatpush2.bf16.msra.mxu0 %v8108_v25  ;;  %4127 = vmatprep.subr.bf16.mxu1 %v8227_v4  ;;  %v1995_v25 = vld [vmem:[%s12539_s5 + $0x960] sm:$0xff]  ;;  %v10611_v4 = vpack.c.b16 %v10073_v55, %v10073_v55  ;;  %v1862_v55 = vld [vmem:[%s12539_s5 + $0x538] sm:$0xff] }
 0x1f7   :  { %4168 = vmatprep.subr.bf16.mxu0 %v8101_v0  ;;  %v8188_v0 = vcombine.low %v1874_v17, %v1878_v30  ;;  %v8303_v18 = vcombine.high %v1991_v62, %v1995_v25  ;;  %v8302_v51 = vcombine.low %v1991_v62, %v1995_v25  ;;  %v1834_v17 = vld [vmem:[%s12539_s5 + $0x458] sm:$0xff]  ;;  %v1959_v36 = vld [vmem:[%s12539_s5 + $0x840] sm:$0xff] }
 0x1f8   :  { %v1838_v30 = vld [vmem:[%s12539_s5 + $0x478] sm:$0xff] }
 0x1f9   :  { %4128 = vmatpush2.bf16.msra.mxu1 %v8226_v15  ;;  %v1830_v62 = vld [vmem:[%s12539_s5 + $0x438] sm:$0xff] }
 0x1fa   :  { %4169 = vmatpush2.bf16.msra.mxu0 %v8100_v40  ;;  %4129 = vmatprep.subr.bf16.mxu1 %v8219_v16  ;;  %v1987_v40 = vld [vmem:[%s12539_s5 + $0x920] sm:$0xff]  ;;  %v8180_v16 = vcombine.low %v1866_v2, %v1870_v31  ;;  %v8149_v2 = vcombine.high %v1834_v17, %v1838_v30 }
 0x1fb   :  { %4170 = vmatprep.subr.bf16.mxu0 %v8093_v41 }
 0x1fd   :  { %4130 = vmatpush2.bf16.msra.mxu1 %v8218_v39  ;;  %v1854_v39 = vld [vmem:[%s12539_s5 + $0x4f8] sm:$0xff] }
 0x1fe   :  { %4171 = vmatpush2.bf16.msra.mxu0 %v8092_v52  ;;  %4131 = vmatprep.subr.bf16.mxu1 %v8211_v34  ;;  %v1975_v52 = vld [vmem:[%s12539_s5 + $0x8c0] sm:$0xff]  ;;  %v8165_v10 = vcombine.high %v1850_v22, %v1854_v39 }
 0x1ff   :  { %4172 = vmatprep.subr.bf16.mxu0 %v8085_v24  ;;  %v1979_v34 = vld [vmem:[%s12539_s5 + $0x8e0] sm:$0xff] }
 0x200   :  { %v8287_v43 = vcombine.high %v1975_v52, %v1979_v34 }
 0x201   :  { %4132 = vmatpush2.bf16.msra.mxu1 %v8210_v42  ;;  %v1846_v42 = vld [vmem:[%s12539_s5 + $0x4b8] sm:$0xff] }
 0x202   :  { %4173 = vmatpush2.bf16.msra.mxu0 %v8084_v63  ;;  %4133 = vmatprep.subr.bf16.mxu1 %v8203_v27  ;;  %v8997_v63 = vpop.eup %8996  ;;  %v9006_v27 = vld [vmem:[%s12538_s2] sm:$0xff] }
 0x203   :  { %4174 = vmatprep.subr.bf16.mxu0 %v8077_v20  ;;  %v1428_v20 = vunpack.c.h.bf16 %v9006_v27  ;;  %v2067_v27 = vld [vmem:[%s12539_s5 + $0xba0] sm:$0xff] }
 0x205   :  { %4134 = vmatpush2.bf16.msra.mxu1 %v8202_v49  ;;  %v8999_v49 = vpop.eup %8998  ;;  %v1440_v37 = vmul.f32 %v8997_v63, %v1428_v20  ;;  %v2063_v63 = vld [vmem:[%s12539_s5 + $0xb80] sm:$0xff] }
 0x206   :  { %4175 = vmatpush2.bf16.msra.mxu0 %v8076_v12  ;;  %4185 = vmatprep.subr.bf16.mxu1 %v8197_v57  ;;  %v8164_v12 = vcombine.low %v1850_v22, %v1854_v39  ;;  %v8286_v57 = vcombine.low %v1975_v52, %v1979_v34  ;;  %v1442_v1 = vmul.f32 %v8999_v49, %v1430_v56 }
 0x207   :  { %5534 = vmatprep.subr.bf16.mxu0 %v8319_v60  ;;  %v8157_v60 = vcombine.high %v1842_v26, %v1846_v42  ;;  %v1464_v25 = vcombine.high %v1440_v37, %v1440_v37 }
 0x208   :  { %4136 = vmatmul.mubr.bf16.vlgmr.msra.gmra.mxu1 %v10099_v9  ;;  %v10600_v59 = vpop.f32.mrf.mxu0  ;;  %v1633_v49 = vsel %vm1166_vm0, %v1442_v1, 0.0 }
 0x209   :  { %4177 = vmatmul.mubr.bf16.vlgmr.msra.gmra.mxu0 %v9864_v23  ;;  %4186 = vmatpush1.bf16.msra.mxu1 %v8196_v8  ;;  %v1858_v23 = vld [vmem:[%s12539_s5 + $0x518] sm:$0xff]  ;;  %v1963_v8 = vld [vmem:[%s12539_s5 + $0x860] sm:$0xff] }
 0x20a   :  { %4217 = vmatprep.mubr.bf16.mxu1 %v10097_v21  ;;  %5535 = vmatpush1.bf16.msra.mxu0 %v8318_v61  ;;  %v10614_v3 = vpop.f32.mrf.mxu0  ;;  %v1983_v21 = vld [vmem:[%s12539_s5 + $0x900] sm:$0xff]  ;;  %v8173_v44 = vcombine.high %v1858_v23, %v1862_v55  ;;  %v8172_v24 = vcombine.low %v1858_v23, %v1862_v55  ;;  %v8156_v61 = vcombine.low %v1842_v26, %v1846_v42  ;;  %v1612_v23 = vsel %vm1166_vm0, %v1464_v25, 0.0  ;;  %v1942_v26 = vld [vmem:[%s12539_s5 + $0x7b8] sm:$0xff] }
 0x20b   :  { %5566 = vmatprep.mubr.bf16.mxu0 %v10611_v4  ;;  %4187 = vmatprep.subr.bf16.mxu1 %v8189_v48  ;;  %v8295_v47 = vcombine.high %v1983_v21, %v1987_v40  ;;  %v8294_v6 = vcombine.low %v1983_v21, %v1987_v40  ;;  %v8278_v48 = vcombine.low %v1967_v46, %v1971_v54  ;;  %v1613_v21 = vrot.slane %v1612_v23, 4 }
 0x20c   :  { %5536 = vmatprep.subr.bf16.mxu0 %v8311_v19  ;;  %v3936_v15 = vpop.f32.mrf.mxu0  ;;  %v8271_v31 = vcombine.high %v1959_v36, %v1963_v8  ;;  %v1826_v19 = vld [vmem:[%s12539_s5 + $0x418] sm:$0xff]  ;;  %v8270_v55 = vcombine.low %v1959_v36, %v1963_v8 }
 0x20d   :  { %4188 = vmatpush1.bf16.msra.mxu1 %v8188_v0  ;;  %v1466_v0 = vcombine.high %v1442_v1, %v1442_v1  ;;  %v8141_v15 = vcombine.high %v1826_v19, %v1830_v62  ;;  %v8140_v22 = vcombine.low %v1826_v19, %v1830_v62  ;;  %v1614_v39 = vadd.f32 %v1613_v21, %v1612_v23  ;;  %v1934_v36 = vld [vmem:[%s12539_s5 + $0x778] sm:$0xff]  ;;  %v2059_v1 = vld [vmem:[%s12539_s5 + $0xb60] sm:$0xff] }
 0x20e   :  { %5537 = vmatpush1.bf16.msra.mxu0 %v8310_v28  ;;  %v3937_v41 = vpop.f32.mrf.mxu0  ;;  %4189 = vmatprep.subr.bf16.mxu1 %v8181_v14  ;;  %v1951_v28 = vld [vmem:[%s12539_s5 + $0x800] sm:$0xff]  ;;  %v8374_v62 = vcombine.low %v2063_v63, %v2067_v27  ;;  %v1926_v23 = vld [vmem:[%s12539_s5 + $0x738] sm:$0xff] }
 0x20f   :  { %5538 = vmatprep.subr.bf16.mxu0 %v8303_v18  ;;  %v1955_v14 = vld [vmem:[%s12539_s5 + $0x820] sm:$0xff]  ;;  %v8148_v18 = vcombine.low %v1834_v17, %v1838_v30  ;;  %v1950_v41 = vld [vmem:[%s12539_s5 + $0x7f8] sm:$0xff]  ;;  %v1615_v42 = vrot.slane %v1614_v39, 2  ;;  %v8375_v17 = vcombine.high %v2063_v63, %v2067_v27 }
 0x210   :  { %v8263_v40 = vcombine.high %v1951_v28, %v1955_v14  ;;  %v8262_v34 = vcombine.low %v1951_v28, %v1955_v14  ;;  %v1930_v30 = vld [vmem:[%s12539_s5 + $0x758] sm:$0xff]  ;;  %v2047_v21 = vld [vmem:[%s12539_s5 + $0xb00] sm:$0xff] }
 0x211   :  { %4190 = vmatpush1.bf16.msra.mxu1 %v8180_v16  ;;  %v1946_v16 = vld [vmem:[%s12539_s5 + $0x7d8] sm:$0xff]  ;;  %v1616_v54 = vadd.f32 %v1615_v42, %v1614_v39  ;;  %v8245_v25 = vcombine.high %v1930_v30, %v1934_v36  ;;  %v2043_v42 = vld [vmem:[%s12539_s5 + $0xae0] sm:$0xff] }
 0x212   :  { %5539 = vmatpush1.bf16.msra.mxu0 %v8302_v51  ;;  %4191 = vmatprep.subr.bf16.mxu1 %v8173_v44  ;;  %v1640_v51 = vsel %vm1166_vm0, %v1466_v0, 0.0  ;;  %v2071_v44 = vld [vmem:[%s12539_s5 + $0xbc0] sm:$0xff]  ;;  %v8260_v56 = vcombine.low %v1946_v16, %v1950_v41 }
 0x213   :  { %5540 = vmatprep.subr.bf16.mxu0 %v8295_v47  ;;  %v2075_v47 = vld [vmem:[%s12539_s5 + $0xbe0] sm:$0xff]  ;;  %v1641_v52 = vrot.slane %v1640_v51, 4  ;;  %v1617_v8 = vrot.slane %v1616_v54, 1 }
 0x214   :  { %v8382_v46 = vcombine.low %v2071_v44, %v2075_v47 }
 0x215   :  { %4192 = vmatpush1.bf16.msra.mxu1 %v8172_v24  ;;  %v8261_v24 = vcombine.high %v1946_v16, %v1950_v41  ;;  %v1642_v20 = vadd.f32 %v1641_v52, %v1640_v51  ;;  %v8244_v51 = vcombine.low %v1930_v30, %v1934_v36  ;;  %v2031_v30 = vld [vmem:[%s12539_s5 + $0xa80] sm:$0xff] }
 0x216   :  { %5541 = vmatpush1.bf16.msra.mxu0 %v8294_v6  ;;  %4193 = vmatprep.subr.bf16.mxu1 %v8165_v10  ;;  %v1605_v6 = vsel %vm1166_vm0, %v1440_v37, 0.0  ;;  %v8383_v10 = vcombine.high %v2071_v44, %v2075_v47  ;;  %v2055_v37 = vld [vmem:[%s12539_s5 + $0xb40] sm:$0xff] }
 0x217   :  { %5542 = vmatprep.subr.bf16.mxu0 %v8287_v43  ;;  %v1938_v43 = vld [vmem:[%s12539_s5 + $0x798] sm:$0xff]  ;;  %v1606_v53 = vrot.slane %v1605_v6, 4  ;;  %v8367_v14 = vcombine.high %v2055_v37, %v2059_v1  ;;  %v2035_v36 = vld [vmem:[%s12539_s5 + $0xaa0] sm:$0xff] }
 0x219   :  { %4194 = vmatpush1.bf16.msra.mxu1 %v8164_v12  ;;  %v8253_v12 = vcombine.high %v1938_v43, %v1942_v26 }
 0x21a   :  { %5543 = vmatpush1.bf16.msra.mxu0 %v8286_v57  ;;  %4195 = vmatprep.subr.bf16.mxu1 %v8157_v60  ;;  %v1643_v57 = vrot.slane %v1642_v20, 2  ;;  %v1607_v60 = vadd.f32 %v1606_v53, %v1605_v6  ;;  %v1914_v6 = vld [vmem:[%s12539_s5 + $0x6d8] sm:$0xff] }
 0x21b   :  { %5544 = vmatprep.subr.bf16.mxu0 %v8279_v58  ;;  %v1634_v58 = vrot.slane %v1633_v49, 4 }
 0x21d   :  { %4196 = vmatpush1.bf16.msra.mxu1 %v8156_v61  ;;  %v1644_v61 = vadd.f32 %v1643_v57, %v1642_v20  ;;  %v1635_v19 = vadd.f32 %v1634_v58, %v1633_v49  ;;  %v1910_v58 = vld [vmem:[%s12539_s5 + $0x6b8] sm:$0xff] }
 0x21e   :  { %5545 = vmatpush1.bf16.msra.mxu0 %v8278_v48  ;;  %4197 = vmatprep.subr.bf16.mxu1 %v8149_v2  ;;  %v1608_v48 = vrot.slane %v1607_v60, 2  ;;  %v8252_v2 = vcombine.low %v1938_v43, %v1942_v26  ;;  %v2039_v26 = vld [vmem:[%s12539_s5 + $0xac0] sm:$0xff] }
 0x21f   :  { %5546 = vmatprep.subr.bf16.mxu0 %v8271_v31  ;;  %v1618_v31 = vadd.f32 %v1617_v8, %v1616_v54  ;;  %v1645_v0 = vrot.slane %v1644_v61, 1  ;;  %v8351_v57 = vcombine.high %v2039_v26, %v2043_v42 }
 0x220   :  { %v1609_v28 = vadd.f32 %v1608_v48, %v1607_v60  ;;  %v1906_v60 = vld [vmem:[%s12539_s5 + $0x698] sm:$0xff]  ;;  %v8350_v48 = vcombine.low %v2039_v26, %v2043_v42 }
 0x221   :  { %4198 = vmatpush1.bf16.msra.mxu1 %v8148_v18  ;;  %v1922_v18 = vld [vmem:[%s12539_s5 + $0x718] sm:$0xff]  ;;  %v1646_v16 = vadd.f32 %v1645_v0, %v1644_v61  ;;  %v2023_v0 = vld [vmem:[%s12539_s5 + $0xa40] sm:$0xff] }
 0x222   :  { %5547 = vmatpush1.bf16.msra.mxu0 %v8270_v55  ;;  %4199 = vmatprep.subr.bf16.mxu1 %v8141_v15  ;;  %v1666_v55 = vmul.f32 0.25, %v1618_v31  ;;  %v1636_v15 = vrot.slane %v1635_v19, 2  ;;  %v1610_v41 = vrot.slane %v1609_v28, 1  ;;  %v8237_v39 = vcombine.high %v1922_v18, %v1926_v23 }
 0x223   :  { %5548 = vmatprep.subr.bf16.mxu0 %v8263_v40  ;;  %v2051_v40 = vld [vmem:[%s12539_s5 + $0xb20] sm:$0xff]  ;;  %v1670_v52 = vmul.f32 0.25, %v1646_v16  ;;  %v8236_v53 = vcombine.low %v1922_v18, %v1926_v23  ;;  %v8343_v31 = vcombine.high %v2031_v30, %v2035_v36  ;;  %v8342_v23 = vcombine.low %v2031_v30, %v2035_v36 }
 0x224   :  { %v1690_v44 = vpack.c.bf16 %v1666_v55, %v1666_v55  ;;  %v1637_v47 = vadd.f32 %v1636_v15, %v1635_v19  ;;  %v1898_v19 = vld [vmem:[%s12539_s5 + $0x658] sm:$0xff]  ;;  %v2015_v16 = vld [vmem:[%s12539_s5 + $0xa00] sm:$0xff] }
 0x225   :  { %4200 = vmatpush1.bf16.msra.mxu1 %v8140_v22  ;;  %v8366_v22 = vcombine.low %v2055_v37, %v2059_v1  ;;  %v1694_v63 = vpack.c.bf16 %v1670_v52, %v1670_v52  ;;  %v2139_v52 = vld [vmem:[%s12539_s5 + $0xde0] sm:$0xff] }
 0x226   :  { %5549 = vmatpush1.bf16.msra.mxu0 %v8262_v34  ;;  %4201 = vmatprep.subr.bf16.mxu1 %v8261_v24  ;;  %v1611_v34 = vadd.f32 %v1610_v41, %v1609_v28  ;;  %v8359_v24 = vcombine.high %v2047_v21, %v2051_v40  ;;  %v1638_v43 = vrot.slane %v1637_v47, 1  ;;  %v5873_v27 = vunpack.c.l.b16 %v1690_v44  ;;  %v2027_v28 = vld [vmem:[%s12539_s5 + $0xa60] sm:$0xff] }
 0x227   :  { %5550 = vmatprep.subr.bf16.mxu0 %v8383_v10  ;;  %v1918_v10 = vld [vmem:[%s12539_s5 + $0x6f8] sm:$0xff]  ;;  %v5877_v49 = vunpack.c.l.b16 %v1694_v63  ;;  %v8335_v15 = vcombine.high %v2023_v0, %v2027_v28  ;;  %v2019_v41 = vld [vmem:[%s12539_s5 + $0xa20] sm:$0xff]  ;;  %v8334_v44 = vcombine.low %v2023_v0, %v2027_v28 }
 0x228   :  { %v1665_v20 = vmul.f32 0.25, %v1611_v34  ;;  %v8229_v54 = vcombine.high %v1914_v6, %v1918_v10  ;;  %v8228_v37 = vcombine.low %v1914_v6, %v1918_v10  ;;  %v10798_v34 = vld [vmem:[%s12541_s6] sm:$0xff]  ;;  %v2012_v6 = vld [vmem:[%s12539_s5 + $0x9e8] sm:$0xff] }
 0x229   :  { %4202 = vmatpush2.bf16.msra.mxu1 %v8260_v56  ;;  %v1639_v56 = vadd.f32 %v1638_v43, %v1637_v47  ;;  %v10760_v8 = vsel %vm2605_vm1, %v5877_v49, %v5873_v27  ;;  %v8326_v43 = vcombine.low %v2015_v16, %v2019_v41  ;;  %v2472_v42 = vrot.slane %v10798_v34, %v9702_v29  ;;  %v2127_v27 = vld [vmem:[%s12539_s5 + $0xd80] sm:$0xff] }
 0x22a   :  { %5551 = vmatpush2.bf16.msra.mxu0 %v8382_v46  ;;  %4203 = vmatprep.subr.bf16.mxu1 %v8253_v12  ;;  %v8358_v46 = vcombine.low %v2047_v21, %v2051_v40  ;;  %v1689_v12 = vpack.c.bf16 %v1665_v20, %v1665_v20  ;;  %v1890_v21 = vld [vmem:[%s12539_s5 + $0x618] sm:$0xff]  ;;  %v2131_v20 = vld [vmem:[%s12539_s5 + $0xda0] sm:$0xff] }
 0x22b   :  { %5552 = vmatprep.subr.bf16.mxu0 %v8375_v17  ;;  %v1669_v17 = vmul.f32 0.25, %v1639_v56  ;;  %v1894_v40 = vld [vmem:[%s12539_s5 + $0x638] sm:$0xff]  ;;  %v2111_v0 = vld [vmem:[%s12539_s5 + $0xd00] sm:$0xff] }
 0x22c   :  { %v5872_v61 = vunpack.c.l.b16 %v1689_v12  ;;  %v8205_v47 = vcombine.high %v1890_v21, %v1894_v40  ;;  %v8204_v10 = vcombine.low %v1890_v21, %v1894_v40  ;;  %v3933_v12 = vadd.f32 %v10600_v59, %v2472_v42  ;;  %v2115_v28 = vld [vmem:[%s12539_s5 + $0xd20] sm:$0xff]  ;;  %v1988_v21 = vld [vmem:[%s12539_s5 + $0x928] sm:$0xff] }
 0x22d   :  { %4204 = vmatpush2.bf16.msra.mxu1 %v8252_v2  ;;  %v1693_v1 = vpack.c.bf16 %v1669_v17, %v1669_v17  ;;  %v8221_v2 = vcombine.high %v1906_v60, %v1910_v58  ;;  %v2123_v17 = vld [vmem:[%s12539_s5 + $0xd60] sm:$0xff]  ;;  %v1976_v42 = vld [vmem:[%s12539_s5 + $0x8c8] sm:$0xff] }
 0x22e   :  { %5553 = vmatpush2.bf16.msra.mxu0 %v8374_v62  ;;  %4205 = vmatprep.subr.bf16.mxu1 %v8245_v25  ;;  %v1902_v62 = vld [vmem:[%s12539_s5 + $0x678] sm:$0xff] }
 0x22f   :  { %5554 = vmatprep.subr.bf16.mxu0 %v8367_v14  ;;  %v5876_v25 = vunpack.c.l.b16 %v1693_v1  ;;  %v8220_v14 = vcombine.low %v1906_v60, %v1910_v58  ;;  %v8213_v55 = vcombine.high %v1898_v19, %v1902_v62  ;;  %v8439_v60 = vcombine.high %v2127_v27, %v2131_v20  ;;  %v2119_v58 = vld [vmem:[%s12539_s5 + $0xd40] sm:$0xff]  ;;  %v1996_v1 = vld [vmem:[%s12539_s5 + $0x968] sm:$0xff] }
 0x231   :  { %4206 = vmatpush2.bf16.msra.mxu1 %v8244_v51  ;;  %v10775_v18 = vsel %vm2605_vm1, %v5876_v25, %v5872_v61  ;;  %v8212_v51 = vcombine.low %v1898_v19, %v1902_v62  ;;  %v8431_v19 = vcombine.high %v2119_v58, %v2123_v17 }
 0x232   :  { %5555 = vmatpush2.bf16.msra.mxu0 %v8366_v22  ;;  %4207 = vmatprep.subr.bf16.mxu1 %v8237_v39  ;;  %v8327_v22 = vcombine.high %v2015_v16, %v2019_v41  ;;  %v2135_v39 = vld [vmem:[%s12539_s5 + $0xdc0] sm:$0xff]  ;;  %v8430_v16 = vcombine.low %v2119_v58, %v2123_v17 }
 0x233   :  { %5556 = vmatprep.subr.bf16.mxu0 %v8359_v24  ;;  %v2008_v24 = vld [vmem:[%s12539_s5 + $0x9c8] sm:$0xff]  ;;  %v8447_v26 = vcombine.high %v2135_v39, %v2139_v52  ;;  %v8446_v56 = vcombine.low %v2135_v39, %v2139_v52  ;;  %v8423_v52 = vcombine.high %v2111_v0, %v2115_v28 }
 0x234   :  { %v8321_v63 = vcombine.high %v2008_v24, %v2012_v6  ;;  %v8320_v49 = vcombine.low %v2008_v24, %v2012_v6  ;;  %v2103_v6 = vld [vmem:[%s12539_s5 + $0xcc0] sm:$0xff] }
 0x235   :  { %4208 = vmatpush2.bf16.msra.mxu1 %v8236_v53  ;;  %v2476_v53 = vrot.slane %v10798_v34, %v9710_v32 }
 0x236   :  { %5557 = vmatpush2.bf16.msra.mxu0 %v8358_v46  ;;  %4209 = vmatprep.subr.bf16.mxu1 %v8229_v54  ;;  %v2000_v46 = vld [vmem:[%s12539_s5 + $0x988] sm:$0xff] }
 0x237   :  { %5558 = vmatprep.subr.bf16.mxu0 %v8351_v57  ;;  %v2004_v54 = vld [vmem:[%s12539_s5 + $0x9a8] sm:$0xff]  ;;  %v10825_v57 = vpack.c.b16 %v10095_v5, %v10095_v5  ;;  %v10838_v5 = vpack.c.b16 %v10233_v11, %v10233_v11  ;;  %v3935_v61 = vadd.f32 %v10614_v3, %v2476_v53 }
 0x238   :  { %v8313_v59 = vcombine.high %v2000_v46, %v2004_v54 }
 0x239   :  { %4210 = vmatpush2.bf16.msra.mxu1 %v8228_v37  ;;  %v1992_v37 = vld [vmem:[%s12539_s5 + $0x948] sm:$0xff] }
 0x23a   :  { %5559 = vmatpush2.bf16.msra.mxu0 %v8350_v48  ;;  %4211 = vmatprep.subr.bf16.mxu1 %v8221_v2  ;;  %v8438_v48 = vcombine.low %v2127_v27, %v2131_v20  ;;  %v8305_v3 = vcombine.high %v1992_v37, %v1996_v1  ;;  %v8304_v39 = vcombine.low %v1992_v37, %v1996_v1 }
 0x23b   :  { %5560 = vmatprep.subr.bf16.mxu0 %v8343_v31  ;;  %v8312_v31 = vcombine.low %v2000_v46, %v2004_v54  ;;  %v8422_v20 = vcombine.low %v2111_v0, %v2115_v28  ;;  %v1964_v0 = vld [vmem:[%s12539_s5 + $0x868] sm:$0xff] }
 0x23d   :  { %4212 = vmatpush2.bf16.msra.mxu1 %v8220_v14 }
 0x23e   :  { %5561 = vmatpush2.bf16.msra.mxu0 %v8342_v23  ;;  %4213 = vmatprep.subr.bf16.mxu1 %v8213_v55 }
 0x23f   :  { %5562 = vmatprep.subr.bf16.mxu0 %v8335_v15  ;;  %v1984_v15 = vld [vmem:[%s12539_s5 + $0x908] sm:$0xff] }
 0x240   :  { %v8297_v24 = vcombine.high %v1984_v15, %v1988_v21  ;;  %v8296_v46 = vcombine.low %v1984_v15, %v1988_v21 }
 0x241   :  { %4214 = vmatpush2.bf16.msra.mxu1 %v8212_v51  ;;  %v10869_v51 = vld [vmem:[%s12542_s7] sm:$0xff] }
 0x242   :  { %5563 = vmatpush2.bf16.msra.mxu0 %v8334_v44  ;;  %4215 = vmatprep.subr.bf16.mxu1 %v8205_v47  ;;  %v7673_v27 = vunpack.c.l.bf16 %v10869_v51 }
 0x243   :  { %5564 = vmatprep.subr.bf16.mxu0 %v8327_v22 }
 0x244   :  { %v7697_v37 = vcombine.high %v7673_v27, %v7673_v27 }
 0x245   :  { %4216 = vmatpush2.bf16.msra.mxu1 %v8204_v10  ;;  %v2107_v10 = vld [vmem:[%s12539_s5 + $0xce0] sm:$0xff] }
 0x246   :  { %5565 = vmatpush2.bf16.msra.mxu0 %v8326_v43  ;;  %5575 = vmatprep.subr.bf16.mxu1 %v8447_v26  ;;  %v8415_v54 = vcombine.high %v2103_v6, %v2107_v10  ;;  %v8414_v1 = vcombine.low %v2103_v6, %v2107_v10  ;;  %v2199_v10 = vld [vmem:[%s12539_s5 + $0xfc0] sm:$0xff] }
 0x247   :  { %5616 = vmatprep.subr.bf16.mxu0 %v8321_v63  ;;  %v1980_v63 = vld [vmem:[%s12539_s5 + $0x8e8] sm:$0xff] }
 0x248   :  { %v10833_v30 = vpop.f32.mrf.mxu0  ;;  %4218 = vmatmul.mubr.bf16.vlgmr.msra.gmra.mxu1 %v10099_v9  ;;  %v3973_v36 = vpop.f32.mrf.mxu1 }
 0x249   :  { %5567 = vmatmul.mubr.bf16.vlgmr.msra.gmra.mxu0 %v10825_v57  ;;  %v3974_v9 = vadd.f32 %v3973_v36, %v3933_v12  ;;  %5576 = vmatpush1.bf16.msra.mxu1 %v8446_v56  ;;  %v2095_v12 = vld [vmem:[%s12539_s5 + $0xc80] sm:$0xff]  ;;  %v1968_v36 = vld [vmem:[%s12539_s5 + $0x888] sm:$0xff] }
 0x24a   :  { %5607 = vmatprep.mubr.bf16.mxu1 %v10838_v5  ;;  %5617 = vmatpush1.bf16.msra.mxu0 %v8320_v49  ;;  %v10849_v11 = vpop.f32.mrf.mxu0  ;;  %v3975_v2 = vpop.f32.mrf.mxu1  ;;  %v8289_v49 = vcombine.high %v1976_v42, %v1980_v63 }
 0x24b   :  { %v7499_v62 = vsel %vm7498_vm2, %v3974_v9, -inf  ;;  %5648 = vmatprep.mubr.bf16.mxu0 %v10611_v4  ;;  %v3976_v25 = vadd.f32 %v3975_v2, %v3935_v61  ;;  %5577 = vmatprep.subr.bf16.mxu1 %v8439_v60  ;;  %v2099_v60 = vld [vmem:[%s12539_s5 + $0xca0] sm:$0xff] }
 0x24c   :  { %v7500_v14 = vrot.slane %v7499_v62, 4  ;;  %v4018_v23 = vpop.f32.mrf.mxu0  ;;  %5618 = vmatprep.subr.bf16.mxu0 %v8313_v59  ;;  %v3977_v55 = vpop.f32.mrf.mxu1  ;;  %v1972_v59 = vld [vmem:[%s12539_s5 + $0x8a8] sm:$0xff]  ;;  %v8407_v2 = vcombine.high %v2095_v12, %v2099_v60  ;;  %v8406_v28 = vcombine.low %v2095_v12, %v2099_v60 }
 0x24d   :  { %v7506_v40 = vsel %vm7498_vm2, %v3976_v25, -inf  ;;  %5578 = vmatpush1.bf16.msra.mxu1 %v8438_v48  ;;  %v8288_v48 = vcombine.low %v1976_v42, %v1980_v63  ;;  %v2072_v42 = vld [vmem:[%s12539_s5 + $0xbc8] sm:$0xff] }
 0x24e   :  { %v7501_v41 = vmax.f32 %v7499_v62, %v7500_v14  ;;  %v7507_v44 = vrot.slane %v7506_v40, 4  ;;  %5619 = vmatpush1.bf16.msra.mxu0 %v8312_v31  ;;  %v4019_v47 = vpop.f32.mrf.mxu0  ;;  %v3978_v22 = vpop.f32.mrf.mxu1  ;;  %5579 = vmatprep.subr.bf16.mxu1 %v8431_v19  ;;  %v8281_v31 = vcombine.high %v1968_v36, %v1972_v59  ;;  %v2087_v19 = vld [vmem:[%s12539_s5 + $0xc40] sm:$0xff]  ;;  %v8280_v14 = vcombine.low %v1968_v36, %v1972_v59  ;;  %v2076_v63 = vld [vmem:[%s12539_s5 + $0xbe8] sm:$0xff] }
 0x24f   :  { %5620 = vmatprep.subr.bf16.mxu0 %v8305_v3  ;;  %v2091_v62 = vld [vmem:[%s12539_s5 + $0xc60] sm:$0xff]  ;;  %v1960_v3 = vld [vmem:[%s12539_s5 + $0x848] sm:$0xff] }
 0x250   :  { %v7502_v43 = vrot.slane %v7501_v41, 2  ;;  %v7508_v26 = vmax.f32 %v7506_v40, %v7507_v44  ;;  %v8399_v15 = vcombine.high %v2087_v19, %v2091_v62  ;;  %v8273_v21 = vcombine.high %v1960_v3, %v1964_v0  ;;  %v2079_v40 = vld [vmem:[%s12539_s5 + $0xc00] sm:$0xff]  ;;  %v1952_v44 = vld [vmem:[%s12539_s5 + $0x808] sm:$0xff] }
 0x251   :  { %5580 = vmatpush1.bf16.msra.mxu1 %v8430_v16  ;;  %v2083_v16 = vld [vmem:[%s12539_s5 + $0xc20] sm:$0xff]  ;;  %v1956_v47 = vld [vmem:[%s12539_s5 + $0x828] sm:$0xff]  ;;  %v8398_v22 = vcombine.low %v2087_v19, %v2091_v62 }
 0x252   :  { %v7503_v53 = vmax.f32 %v7501_v41, %v7502_v43  ;;  %v7509_v56 = vrot.slane %v7508_v26, 2  ;;  %5621 = vmatpush1.bf16.msra.mxu0 %v8304_v39  ;;  %5581 = vmatprep.subr.bf16.mxu1 %v8423_v52  ;;  %v8272_v52 = vcombine.low %v1960_v3, %v1964_v0  ;;  %v8265_v6 = vcombine.high %v1952_v44, %v1956_v47  ;;  %v2203_v43 = vld [vmem:[%s12539_s5 + $0xfe0] sm:$0xff]  ;;  %v2068_v12 = vld [vmem:[%s12539_s5 + $0xba8] sm:$0xff] }
 0x253   :  { %5622 = vmatprep.subr.bf16.mxu0 %v8297_v24  ;;  %v8391_v24 = vcombine.high %v2079_v40, %v2083_v16  ;;  %v8510_v60 = vcombine.low %v2199_v10, %v2203_v43  ;;  %v2183_v59 = vld [vmem:[%s12539_s5 + $0xf40] sm:$0xff]  ;;  %v2052_v3 = vld [vmem:[%s12539_s5 + $0xb28] sm:$0xff] }
 0x254   :  { %v7504_v58 = vrot.slane %v7503_v53, 1  ;;  %v7510_v17 = vmax.f32 %v7508_v26, %v7509_v56  ;;  %v8385_v56 = vcombine.high %v2072_v42, %v2076_v63  ;;  %v2175_v19 = vld [vmem:[%s12539_s5 + $0xf00] sm:$0xff] }
 0x255   :  { %5582 = vmatpush1.bf16.msra.mxu1 %v8422_v20  ;;  %v8264_v20 = vcombine.low %v1952_v44, %v1956_v47  ;;  %v2179_v62 = vld [vmem:[%s12539_s5 + $0xf20] sm:$0xff] }
 0x256   :  { %v7505_v61 = vmax.f32 %v7503_v53, %v7504_v58  ;;  %v7511_v9 = vrot.slane %v7510_v17, 1  ;;  %5623 = vmatpush1.bf16.msra.mxu0 %v8296_v46  ;;  %5583 = vmatprep.subr.bf16.mxu1 %v8415_v54  ;;  %v8511_v53 = vcombine.high %v2199_v10, %v2203_v43  ;;  %v2191_v46 = vld [vmem:[%s12539_s5 + $0xf80] sm:$0xff]  ;;  %v8384_v58 = vcombine.low %v2072_v42, %v2076_v63 }
 0x257   :  { %5624 = vmatprep.subr.bf16.mxu0 %v8289_v49  ;;  %v2195_v54 = vld [vmem:[%s12539_s5 + $0xfa0] sm:$0xff]  ;;  %v2064_v49 = vld [vmem:[%s12539_s5 + $0xb88] sm:$0xff] }
 0x258   :  { %v7512_v25 = vmax.f32 %v7510_v17, %v7511_v9  ;;  %v7721_v23 = vmul.f32 %v7673_v27, %v7505_v61  ;;  %v8390_v27 = vcombine.low %v2079_v40, %v2083_v16  ;;  %v8503_v17 = vcombine.high %v2191_v46, %v2195_v54  ;;  %v2060_v61 = vld [vmem:[%s12539_s5 + $0xb68] sm:$0xff]  ;;  %v2151_v63 = vld [vmem:[%s12539_s5 + $0xe40] sm:$0xff] }
 0x259   :  { %5584 = vmatpush1.bf16.msra.mxu1 %v8414_v1  ;;  %v8377_v36 = vcombine.high %v2064_v49, %v2068_v12  ;;  %v2056_v1 = vld [vmem:[%s12539_s5 + $0xb48] sm:$0xff]  ;;  %v8502_v9 = vcombine.low %v2191_v46, %v2195_v54  ;;  %v8486_v16 = vcombine.low %v2175_v19, %v2179_v62 }
 0x25a   :  { %v7722_v55 = vmul.f32 %v7697_v37, %v7512_v25  ;;  %5625 = vmatpush1.bf16.msra.mxu0 %v8288_v48  ;;  %5585 = vmatprep.subr.bf16.mxu1 %v8407_v2  ;;  %v7746_v39 = vsel %vm7745_vm3, %v7721_v23, 0.0  ;;  %v2187_v37 = vld [vmem:[%s12539_s5 + $0xf60] sm:$0xff]  ;;  %v8376_v48 = vcombine.low %v2064_v49, %v2068_v12  ;;  %v2048_v25 = vld [vmem:[%s12539_s5 + $0xb08] sm:$0xff] }
 0x25b   :  { %5626 = vmatprep.subr.bf16.mxu0 %v8281_v31  ;;  %v8495_v2 = vcombine.high %v2183_v59, %v2187_v37  ;;  %v8369_v31 = vcombine.high %v2056_v1, %v2060_v61  ;;  %v8494_v0 = vcombine.low %v2183_v59, %v2187_v37  ;;  %v8361_v23 = vcombine.high %v2048_v25, %v2052_v3  ;;  %v2044_v40 = vld [vmem:[%s12539_s5 + $0xae8] sm:$0xff]  ;;  %v2143_v12 = vld [vmem:[%s12539_s5 + $0xe00] sm:$0xff] }
 0x25c   :  { %v7747_v41 = vsel %vm7745_vm3, %v7722_v55, 0.0  ;;  %v2167_v55 = vld [vmem:[%s12539_s5 + $0xec0] sm:$0xff] }
 0x25d   :  { %5586 = vmatpush1.bf16.msra.mxu1 %v8406_v28  ;;  %v10928_v26 = vadd.f32 %v7747_v41, %v7746_v39  ;;  %v8368_v28 = vcombine.low %v2056_v1, %v2060_v61  ;;  %v8360_v41 = vcombine.low %v2048_v25, %v2052_v3  ;;  %v2163_v39 = vld [vmem:[%s12539_s5 + $0xea0] sm:$0xff]  ;;  %v2136_v61 = vld [vmem:[%s12539_s5 + $0xdc8] sm:$0xff]  ;;  %v2480_v25 = vrot.slane %v10798_v34, %v9793_v7 }
 0x25e   :  { %5627 = vmatpush1.bf16.msra.mxu0 %v8280_v14  ;;  %5587 = vmatprep.subr.bf16.mxu1 %v8399_v15  ;;  %v8487_v14 = vcombine.high %v2175_v19, %v2179_v62  ;;  %v2171_v15 = vld [vmem:[%s12539_s5 + $0xee0] sm:$0xff] }
 0x25f   :  { %5628 = vmatprep.subr.bf16.mxu0 %v8273_v21  ;;  %v2040_v21 = vld [vmem:[%s12539_s5 + $0xac8] sm:$0xff]  ;;  %v8479_v44 = vcombine.high %v2167_v55, %v2171_v15 }
 0x260   :  { %v8353_v47 = vcombine.high %v2040_v21, %v2044_v40  ;;  %v8352_v10 = vcombine.low %v2040_v21, %v2044_v40  ;;  %v11050_v21 = vpack.c.b16 %v10245_v50, %v10245_v50 }
 0x261   :  { %5588 = vmatpush1.bf16.msra.mxu1 %v8398_v22  ;;  %v2159_v22 = vld [vmem:[%s12539_s5 + $0xe80] sm:$0xff] }
 0x262   :  { %5629 = vmatpush1.bf16.msra.mxu0 %v8272_v52  ;;  %5589 = vmatprep.subr.bf16.mxu1 %v8391_v24  ;;  %v2032_v52 = vld [vmem:[%s12539_s5 + $0xa88] sm:$0xff]  ;;  %v8471_v43 = vcombine.high %v2159_v22, %v2163_v39 }
 0x263   :  { %5630 = vmatprep.subr.bf16.mxu0 %v8265_v6  ;;  %v2036_v24 = vld [vmem:[%s12539_s5 + $0xaa8] sm:$0xff]  ;;  %v8478_v6 = vcombine.low %v2167_v55, %v2171_v15  ;;  %v2001_v55 = vld [vmem:[%s12539_s5 + $0x990] sm:$0xff] }
 0x264   :  { %v8345_v42 = vcombine.high %v2032_v52, %v2036_v24  ;;  %v8344_v46 = vcombine.low %v2032_v52, %v2036_v24  ;;  %v2005_v15 = vld [vmem:[%s12539_s5 + $0x9b0] sm:$0xff] }
 0x265   :  { %5590 = vmatpush1.bf16.msra.mxu1 %v8390_v27  ;;  %v2155_v27 = vld [vmem:[%s12539_s5 + $0xe60] sm:$0xff]  ;;  %v8315_v50 = vcombine.high %v2001_v55, %v2005_v15  ;;  %v1997_v52 = vld [vmem:[%s12539_s5 + $0x970] sm:$0xff] }
 0x266   :  { %5631 = vmatpush1.bf16.msra.mxu0 %v8264_v20  ;;  %5591 = vmatprep.subr.bf16.mxu1 %v8511_v53  ;;  %v2024_v20 = vld [vmem:[%s12539_s5 + $0xa48] sm:$0xff]  ;;  %v8463_v54 = vcombine.high %v2151_v63, %v2155_v27 }
 0x267   :  { %5632 = vmatprep.subr.bf16.mxu0 %v8385_v56  ;;  %v2028_v53 = vld [vmem:[%s12539_s5 + $0xa68] sm:$0xff]  ;;  %v8470_v56 = vcombine.low %v2159_v22, %v2163_v39 }
 0x268   :  { %v8337_v49 = vcombine.high %v2024_v20, %v2028_v53  ;;  %v8336_v59 = vcombine.low %v2024_v20, %v2028_v53 }
 0x269   :  { %5592 = vmatpush2.bf16.msra.mxu1 %v8510_v60  ;;  %v2147_v60 = vld [vmem:[%s12539_s5 + $0xe20] sm:$0xff] }
 0x26a   :  { %5633 = vmatpush2.bf16.msra.mxu0 %v8384_v58  ;;  %5593 = vmatprep.subr.bf16.mxu1 %v8503_v17  ;;  %v2016_v58 = vld [vmem:[%s12539_s5 + $0xa08] sm:$0xff]  ;;  %v8455_v37 = vcombine.high %v2143_v12, %v2147_v60 }
 0x26b   :  { %5634 = vmatprep.subr.bf16.mxu0 %v8377_v36  ;;  %v2020_v17 = vld [vmem:[%s12539_s5 + $0xa28] sm:$0xff]  ;;  %v8462_v36 = vcombine.low %v2151_v63, %v2155_v27  ;;  %v8314_v63 = vcombine.low %v2001_v55, %v2005_v15 }
 0x26c   :  { %v8329_v1 = vcombine.high %v2016_v58, %v2020_v17  ;;  %v8328_v19 = vcombine.low %v2016_v58, %v2020_v17  ;;  %v1989_v58 = vld [vmem:[%s12539_s5 + $0x930] sm:$0xff] }
 0x26d   :  { %5594 = vmatpush2.bf16.msra.mxu1 %v8502_v9  ;;  %v2140_v9 = vld [vmem:[%s12539_s5 + $0xde8] sm:$0xff] }
 0x26e   :  { %5635 = vmatpush2.bf16.msra.mxu0 %v8376_v48  ;;  %5595 = vmatprep.subr.bf16.mxu1 %v8495_v2  ;;  %v2009_v48 = vld [vmem:[%s12539_s5 + $0x9d0] sm:$0xff]  ;;  %v8449_v62 = vcombine.high %v2136_v61, %v2140_v9 }
 0x26f   :  { %5636 = vmatprep.subr.bf16.mxu0 %v8369_v31  ;;  %v2013_v2 = vld [vmem:[%s12539_s5 + $0x9f0] sm:$0xff]  ;;  %v8454_v31 = vcombine.low %v2143_v12, %v2147_v60 }
 0x270   :  { %v8323_v3 = vcombine.high %v2009_v48, %v2013_v2  ;;  %v8322_v40 = vcombine.low %v2009_v48, %v2013_v2  ;;  %v1985_v60 = vld [vmem:[%s12539_s5 + $0x910] sm:$0xff] }
 0x271   :  { %5596 = vmatpush2.bf16.msra.mxu1 %v8494_v0  ;;  %v2128_v0 = vld [vmem:[%s12539_s5 + $0xd88] sm:$0xff]  ;;  %v8299_v2 = vcombine.high %v1985_v60, %v1989_v58  ;;  %v8298_v15 = vcombine.low %v1985_v60, %v1989_v58 }
 0x272   :  { %5637 = vmatpush2.bf16.msra.mxu0 %v8368_v28  ;;  %5597 = vmatprep.subr.bf16.mxu1 %v8487_v14  ;;  %v2132_v28 = vld [vmem:[%s12539_s5 + $0xda8] sm:$0xff]  ;;  %v2484_v14 = vrot.slane %v10798_v34, %v9796_v13 }
 0x273   :  { %5638 = vmatprep.subr.bf16.mxu0 %v8361_v23  ;;  %v8448_v23 = vcombine.low %v2136_v61, %v2140_v9 }
 0x274   :  { %v4017_v24 = vadd.f32 %v10849_v11, %v2484_v14 }
 0x275   :  { %5598 = vmatpush2.bf16.msra.mxu1 %v8486_v16  ;;  %v4015_v16 = vadd.f32 %v10833_v30, %v2480_v25  ;;  %v1993_v30 = vld [vmem:[%s12539_s5 + $0x950] sm:$0xff] }
 0x276   :  { %5639 = vmatpush2.bf16.msra.mxu0 %v8360_v41  ;;  %5599 = vmatprep.subr.bf16.mxu1 %v8479_v44  ;;  %v8441_v41 = vcombine.high %v2128_v0, %v2132_v28  ;;  %v2120_v44 = vld [vmem:[%s12539_s5 + $0xd48] sm:$0xff]  ;;  %v8307_v11 = vcombine.high %v1993_v30, %v1997_v52  ;;  %v8306_v9 = vcombine.low %v1993_v30, %v1997_v52 }
 0x277   :  { %5640 = vmatprep.subr.bf16.mxu0 %v8353_v47  ;;  %v2124_v47 = vld [vmem:[%s12539_s5 + $0xd68] sm:$0xff] }
 0x278   :  { %v8433_v27 = vcombine.high %v2120_v44, %v2124_v47 }
 0x279   :  { %5600 = vmatpush2.bf16.msra.mxu1 %v8478_v6 }
 0x27a   :  { %5641 = vmatpush2.bf16.msra.mxu0 %v8352_v10  ;;  %5601 = vmatprep.subr.bf16.mxu1 %v8471_v43  ;;  %v8440_v10 = vcombine.low %v2128_v0, %v2132_v28  ;;  %v1981_v0 = vld [vmem:[%s12539_s5 + $0x8f0] sm:$0xff]  ;;  %v7674_v28 = vunpack.c.h.bf16 %v10869_v51 }
 0x27b   :  { %5642 = vmatprep.subr.bf16.mxu0 %v8345_v42 }
 0x27c   :  { %v7698_v30 = vcombine.high %v7674_v28, %v7674_v28 }
 0x27d   :  { %5602 = vmatpush2.bf16.msra.mxu1 %v8470_v56  ;;  %v2112_v56 = vld [vmem:[%s12539_s5 + $0xd08] sm:$0xff] }
 0x27e   :  { %5643 = vmatpush2.bf16.msra.mxu0 %v8344_v46  ;;  %5603 = vmatprep.subr.bf16.mxu1 %v8463_v54  ;;  %v2116_v46 = vld [vmem:[%s12539_s5 + $0xd28] sm:$0xff] }
 0x27f   :  { %5644 = vmatprep.subr.bf16.mxu0 %v8337_v49  ;;  %v8425_v48 = vcombine.high %v2112_v56, %v2116_v46  ;;  %v8424_v14 = vcombine.low %v2112_v56, %v2116_v46  ;;  %v1961_v56 = vld [vmem:[%s12539_s5 + $0x850] sm:$0xff] }
 0x280   :  { %v1965_v46 = vld [vmem:[%s12539_s5 + $0x870] sm:$0xff] }
 0x281   :  { %5604 = vmatpush2.bf16.msra.mxu1 %v8462_v36  ;;  %v8432_v36 = vcombine.low %v2120_v44, %v2124_v47  ;;  %v2100_v44 = vld [vmem:[%s12539_s5 + $0xca8] sm:$0xff] }
 0x282   :  { %5645 = vmatpush2.bf16.msra.mxu0 %v8336_v59  ;;  %5605 = vmatprep.subr.bf16.mxu1 %v8455_v37 }
 0x283   :  { %5646 = vmatprep.subr.bf16.mxu0 %v8329_v1 }
 0x285   :  { %5606 = vmatpush2.bf16.msra.mxu1 %v8454_v31  ;;  %v2104_v31 = vld [vmem:[%s12539_s5 + $0xcc8] sm:$0xff] }
 0x286   :  { %5647 = vmatpush2.bf16.msra.mxu0 %v8328_v19  ;;  %5657 = vmatprep.subr.bf16.mxu1 %v8449_v62  ;;  %v2108_v19 = vld [vmem:[%s12539_s5 + $0xce8] sm:$0xff] }
 0x287   :  { %5698 = vmatprep.subr.bf16.mxu0 %v8323_v3  ;;  %v1977_v3 = vld [vmem:[%s12539_s5 + $0x8d0] sm:$0xff]  ;;  %v8416_v52 = vcombine.low %v2104_v31, %v2108_v19 }
 0x288   :  { %v4055_v22 = vpop.f32.mrf.mxu1  ;;  %v11059_v39 = vpop.f32.mrf.mxu0  ;;  %5608 = vmatmul.mubr.bf16.vlgmr.msra.gmra.mxu1 %v11050_v21 }
 0x289   :  { %v4056_v6 = vadd.f32 %v4055_v22, %v4015_v16  ;;  %5649 = vmatmul.mubr.bf16.vlgmr.msra.gmra.mxu0 %v10825_v57  ;;  %5658 = vmatpush1.bf16.msra.mxu1 %v8448_v23  ;;  %v8291_v16 = vcombine.high %v1977_v3, %v1981_v0  ;;  %v1969_v22 = vld [vmem:[%s12539_s5 + $0x890] sm:$0xff] }
 0x28a   :  { %5689 = vmatprep.mubr.bf16.mxu1 %v10838_v5  ;;  %5699 = vmatpush1.bf16.msra.mxu0 %v8322_v40  ;;  %v4057_v43 = vpop.f32.mrf.mxu1  ;;  %v11071_v42 = vpop.f32.mrf.mxu0  ;;  %v8417_v40 = vcombine.high %v2104_v31, %v2108_v19 }
 0x28b   :  { %v7513_v20 = vsel %vm7498_vm2, %v4056_v6, -inf  ;;  %5730 = vmatprep.mubr.bf16.mxu0 %v10611_v4  ;;  %v4058_v53 = vadd.f32 %v4057_v43, %v4017_v24  ;;  %5659 = vmatprep.subr.bf16.mxu1 %v8441_v41  ;;  %v2096_v41 = vld [vmem:[%s12539_s5 + $0xc88] sm:$0xff] }
 0x28c   :  { %v7514_v54 = vrot.slane %v7513_v20, 4  ;;  %v4059_v49 = vpop.f32.mrf.mxu1  ;;  %v4100_v12 = vpop.f32.mrf.mxu0  ;;  %5700 = vmatprep.subr.bf16.mxu0 %v8315_v50  ;;  %v1973_v50 = vld [vmem:[%s12539_s5 + $0x8b0] sm:$0xff]  ;;  %v8409_v43 = vcombine.high %v2096_v41, %v2100_v44 }
 0x28d   :  { %v7520_v17 = vsel %vm7498_vm2, %v4058_v53, -inf  ;;  %5660 = vmatpush1.bf16.msra.mxu1 %v8440_v10  ;;  %v8290_v10 = vcombine.low %v1977_v3, %v1981_v0  ;;  %v8282_v12 = vcombine.low %v1969_v22, %v1973_v50  ;;  %v2073_v3 = vld [vmem:[%s12539_s5 + $0xbd0] sm:$0xff] }
 0x28e   :  { %v7515_v59 = vmax.f32 %v7513_v20, %v7514_v54  ;;  %v7521_v37 = vrot.slane %v7520_v17, 4  ;;  %5701 = vmatpush1.bf16.msra.mxu0 %v8314_v63  ;;  %v4060_v1 = vpop.f32.mrf.mxu1  ;;  %v4101_v61 = vpop.f32.mrf.mxu0  ;;  %5661 = vmatprep.subr.bf16.mxu1 %v8433_v27  ;;  %v8283_v63 = vcombine.high %v1969_v22, %v1973_v50  ;;  %v2088_v27 = vld [vmem:[%s12539_s5 + $0xc48] sm:$0xff]  ;;  %v8408_v54 = vcombine.low %v2096_v41, %v2100_v44  ;;  %v2077_v0 = vld [vmem:[%s12539_s5 + $0xbf0] sm:$0xff] }
 0x28f   :  { %5702 = vmatprep.subr.bf16.mxu0 %v8307_v11  ;;  %v2092_v20 = vld [vmem:[%s12539_s5 + $0xc68] sm:$0xff]  ;;  %v1957_v1 = vld [vmem:[%s12539_s5 + $0x830] sm:$0xff] }
 0x290   :  { %v7516_v62 = vrot.slane %v7515_v59, 2  ;;  %v7522_v25 = vmax.f32 %v7520_v17, %v7521_v37  ;;  %v8401_v60 = vcombine.high %v2088_v27, %v2092_v20  ;;  %v8275_v17 = vcombine.high %v1961_v56, %v1965_v46  ;;  %v1953_v37 = vld [vmem:[%s12539_s5 + $0x810] sm:$0xff]  ;;  %v2184_v50 = vld [vmem:[%s12539_s5 + $0xf48] sm:$0xff] }
 0x291   :  { %5662 = vmatpush1.bf16.msra.mxu1 %v8432_v36  ;;  %v2080_v36 = vld [vmem:[%s12539_s5 + $0xc08] sm:$0xff]  ;;  %v2069_v41 = vld [vmem:[%s12539_s5 + $0xbb0] sm:$0xff] }
 0x292   :  { %v7517_v23 = vmax.f32 %v7515_v59, %v7516_v62  ;;  %v7523_v55 = vrot.slane %v7522_v25, 2  ;;  %5703 = vmatpush1.bf16.msra.mxu0 %v8306_v9  ;;  %5663 = vmatprep.subr.bf16.mxu1 %v8425_v48  ;;  %v2084_v59 = vld [vmem:[%s12539_s5 + $0xc28] sm:$0xff]  ;;  %v8400_v9 = vcombine.low %v2088_v27, %v2092_v20  ;;  %v8267_v62 = vcombine.high %v1953_v37, %v1957_v1 }
 0x293   :  { %5704 = vmatprep.subr.bf16.mxu0 %v8299_v2  ;;  %v8274_v2 = vcombine.low %v1961_v56, %v1965_v46  ;;  %v8393_v31 = vcombine.high %v2080_v36, %v2084_v59  ;;  %v2176_v27 = vld [vmem:[%s12539_s5 + $0xf08] sm:$0xff] }
 0x294   :  { %v7518_v47 = vrot.slane %v7517_v23, 1  ;;  %v7524_v51 = vmax.f32 %v7522_v25, %v7523_v55  ;;  %v2200_v25 = vld [vmem:[%s12539_s5 + $0xfc8] sm:$0xff]  ;;  %v8387_v55 = vcombine.high %v2073_v3, %v2077_v0 }
 0x295   :  { %5664 = vmatpush1.bf16.msra.mxu1 %v8424_v14  ;;  %v8266_v14 = vcombine.low %v1953_v37, %v1957_v1  ;;  %v2180_v20 = vld [vmem:[%s12539_s5 + $0xf28] sm:$0xff] }
 0x296   :  { %v7519_v24 = vmax.f32 %v7517_v23, %v7518_v47  ;;  %v7525_v6 = vrot.slane %v7524_v51, 1  ;;  %5705 = vmatpush1.bf16.msra.mxu0 %v8298_v15  ;;  %5665 = vmatprep.subr.bf16.mxu1 %v8417_v40  ;;  %v2192_v15 = vld [vmem:[%s12539_s5 + $0xf88] sm:$0xff]  ;;  %v8386_v47 = vcombine.low %v2073_v3, %v2077_v0 }
 0x297   :  { %5706 = vmatprep.subr.bf16.mxu0 %v8291_v16  ;;  %v2196_v40 = vld [vmem:[%s12539_s5 + $0xfa8] sm:$0xff]  ;;  %v2065_v16 = vld [vmem:[%s12539_s5 + $0xb90] sm:$0xff] }
 0x298   :  { %v7723_v53 = vmul.f32 %v7674_v28, %v7519_v24  ;;  %v7526_v11 = vmax.f32 %v7524_v51, %v7525_v6  ;;  %v8392_v28 = vcombine.low %v2080_v36, %v2084_v59  ;;  %v8505_v51 = vcombine.high %v2192_v15, %v2196_v40  ;;  %v2061_v24 = vld [vmem:[%s12539_s5 + $0xb70] sm:$0xff]  ;;  %v2152_v3 = vld [vmem:[%s12539_s5 + $0xe48] sm:$0xff] }
 0x299   :  { %5666 = vmatpush1.bf16.msra.mxu1 %v8416_v52  ;;  %v8379_v22 = vcombine.high %v2065_v16, %v2069_v41  ;;  %v2057_v52 = vld [vmem:[%s12539_s5 + $0xb50] sm:$0xff]  ;;  %v8504_v6 = vcombine.low %v2192_v15, %v2196_v40  ;;  %v8488_v36 = vcombine.low %v2176_v27, %v2180_v20  ;;  %v2156_v0 = vld [vmem:[%s12539_s5 + $0xe68] sm:$0xff] }
 0x29a   :  { %v7724_v49 = vmul.f32 %v7698_v30, %v7526_v11  ;;  %5707 = vmatpush1.bf16.msra.mxu0 %v8290_v10  ;;  %5667 = vmatprep.subr.bf16.mxu1 %v8409_v43  ;;  %v7749_v58 = vsel %vm7745_vm3, %v7723_v53, 0.0  ;;  %v2188_v30 = vld [vmem:[%s12539_s5 + $0xf68] sm:$0xff]  ;;  %v8378_v10 = vcombine.low %v2065_v16, %v2069_v41  ;;  %v2049_v53 = vld [vmem:[%s12539_s5 + $0xb10] sm:$0xff]  ;;  %v8370_v46 = vcombine.low %v2057_v52, %v2061_v24 }
 0x29b   :  { %5708 = vmatprep.subr.bf16.mxu0 %v8283_v63  ;;  %v7750_v61 = vadd.f32 %v7749_v58, %v10928_v26  ;;  %v2204_v26 = vld [vmem:[%s12539_s5 + $0xfe8] sm:$0xff]  ;;  %v8497_v43 = vcombine.high %v2184_v50, %v2188_v30  ;;  %v8371_v63 = vcombine.high %v2057_v52, %v2061_v24  ;;  %v2053_v11 = vld [vmem:[%s12539_s5 + $0xb30] sm:$0xff]  ;;  %v8496_v56 = vcombine.low %v2184_v50, %v2188_v30 }
 0x29c   :  { %v7751_v48 = vsel %vm7745_vm3, %v7724_v49, 0.0  ;;  %v8513_v23 = vcombine.high %v2200_v25, %v2204_v26  ;;  %v8512_v44 = vcombine.low %v2200_v25, %v2204_v26  ;;  %v8363_v49 = vcombine.high %v2049_v53, %v2053_v11  ;;  %v2041_v58 = vld [vmem:[%s12539_s5 + $0xad0] sm:$0xff] }
 0x29d   :  { %5668 = vmatpush1.bf16.msra.mxu1 %v8408_v54  ;;  %v11140_v19 = vadd.f32 %v7751_v48, %v7750_v61  ;;  %v8489_v54 = vcombine.high %v2176_v27, %v2180_v20  ;;  %v8362_v59 = vcombine.low %v2049_v53, %v2053_v11  ;;  %v2160_v61 = vld [vmem:[%s12539_s5 + $0xe88] sm:$0xff]  ;;  %v2033_v48 = vld [vmem:[%s12539_s5 + $0xa90] sm:$0xff]  ;;  %v8465_v16 = vcombine.high %v2152_v3, %v2156_v0  ;;  %v2014_v27 = vld [vmem:[%s12539_s5 + $0x9f8] sm:$0xff] }
 0x29e   :  { %5709 = vmatpush1.bf16.msra.mxu0 %v8282_v12  ;;  %5669 = vmatprep.subr.bf16.mxu1 %v8401_v60  ;;  %v2168_v12 = vld [vmem:[%s12539_s5 + $0xec8] sm:$0xff]  ;;  %v8464_v50 = vcombine.low %v2152_v3, %v2156_v0  ;;  %v11243_v24 = vsub.s32 4, %v9190_v45  ;;  %v11258_v20 = vsub.s32 5, %v9190_v45 }
 0x29f   :  { %5710 = vmatprep.subr.bf16.mxu0 %v8275_v17  ;;  %v2172_v60 = vld [vmem:[%s12539_s5 + $0xee8] sm:$0xff]  ;;  %v2045_v17 = vld [vmem:[%s12539_s5 + $0xaf0] sm:$0xff] }
 0x2a0   :  { %v8481_v37 = vcombine.high %v2168_v12, %v2172_v60  ;;  %v8355_v1 = vcombine.high %v2041_v58, %v2045_v17 }
 0x2a1   :  { %5670 = vmatpush1.bf16.msra.mxu1 %v8400_v9  ;;  %v2164_v9 = vld [vmem:[%s12539_s5 + $0xea8] sm:$0xff] }
 0x2a2   :  { %5711 = vmatpush1.bf16.msra.mxu0 %v8274_v2  ;;  %5671 = vmatprep.subr.bf16.mxu1 %v8393_v31  ;;  %v2037_v2 = vld [vmem:[%s12539_s5 + $0xab0] sm:$0xff]  ;;  %v8480_v31 = vcombine.low %v2168_v12, %v2172_v60  ;;  %v8473_v25 = vcombine.high %v2160_v61, %v2164_v9  ;;  %v8472_v15 = vcombine.low %v2160_v61, %v2164_v9 }
 0x2a3   :  { %5712 = vmatprep.subr.bf16.mxu0 %v8267_v62  ;;  %v8354_v62 = vcombine.low %v2041_v58, %v2045_v17  ;;  %v8347_v26 = vcombine.high %v2033_v48, %v2037_v2  ;;  %v8346_v40 = vcombine.low %v2033_v48, %v2037_v2  ;;  %v2133_v12 = vld [vmem:[%s12539_s5 + $0xdb0] sm:$0xff]  ;;  %v2492_v60 = vrot.slane %v10798_v34, %v11258_v20  ;;  %v2002_v17 = vld [vmem:[%s12539_s5 + $0x998] sm:$0xff] }
 0x2a4   :  { %v2125_v61 = vld [vmem:[%s12539_s5 + $0xd70] sm:$0xff]  ;;  %v1994_v2 = vld [vmem:[%s12539_s5 + $0x958] sm:$0xff] }
 0x2a5   :  { %5672 = vmatpush1.bf16.msra.mxu1 %v8392_v28  ;;  %v7797_v28 = vld [vmem:[%s12543_s8] sm:$0x7] }
 0x2a6   :  { %5713 = vmatpush1.bf16.msra.mxu0 %v8266_v14  ;;  %5673 = vmatprep.subr.bf16.mxu1 %v8513_v23  ;;  %v2025_v14 = vld [vmem:[%s12539_s5 + $0xa50] sm:$0xff] }
 0x2a7   :  { %5714 = vmatprep.subr.bf16.mxu0 %v8387_v55  ;;  %v2029_v23 = vld [vmem:[%s12539_s5 + $0xa70] sm:$0xff]  ;;  %v7802_v55 = vrot.slane %v7797_v28, %v9702_v29 }
 0x2a8   :  { %v8339_v41 = vcombine.high %v2025_v14, %v2029_v23  ;;  %v8338_v30 = vcombine.low %v2025_v14, %v2029_v23 }
 0x2a9   :  { %5674 = vmatpush2.bf16.msra.mxu1 %v8512_v44  ;;  %v2144_v44 = vld [vmem:[%s12539_s5 + $0xe08] sm:$0xff]  ;;  %7804 = vbcast.lane.b32.xlu1 %v7802_v55, 256 }
 0x2aa   :  { %5715 = vmatpush2.bf16.msra.mxu0 %v8386_v47  ;;  %5675 = vmatprep.subr.bf16.mxu1 %v8505_v51  ;;  %v2148_v47 = vld [vmem:[%s12539_s5 + $0xe28] sm:$0xff]  ;;  %v2017_v51 = vld [vmem:[%s12539_s5 + $0xa10] sm:$0xff] }
 0x2ab   :  { %5716 = vmatprep.subr.bf16.mxu0 %v8379_v22  ;;  %v2021_v22 = vld [vmem:[%s12539_s5 + $0xa30] sm:$0xff]  ;;  %v8457_v52 = vcombine.high %v2144_v44, %v2148_v47  ;;  %v8456_v53 = vcombine.low %v2144_v44, %v2148_v47  ;;  %v1990_v44 = vld [vmem:[%s12539_s5 + $0x938] sm:$0xff] }
 0x2ac   :  { %v8330_v11 = vcombine.low %v2017_v51, %v2021_v22 }
 0x2ad   :  { %5676 = vmatpush2.bf16.msra.mxu1 %v8504_v6  ;;  %v8331_v6 = vcombine.high %v2017_v51, %v2021_v22 }
 0x2ae   :  { %5717 = vmatpush2.bf16.msra.mxu0 %v8378_v10  ;;  %5677 = vmatprep.subr.bf16.mxu1 %v8497_v43  ;;  %v2137_v10 = vld [vmem:[%s12539_s5 + $0xdd0] sm:$0xff] }
 0x2af   :  { %5718 = vmatprep.subr.bf16.mxu0 %v8371_v63  ;;  %v2141_v43 = vld [vmem:[%s12539_s5 + $0xdf0] sm:$0xff]  ;;  %v2010_v63 = vld [vmem:[%s12539_s5 + $0x9d8] sm:$0xff] }
 0x2b0   :  { %v8450_v58 = vcombine.low %v2137_v10, %v2141_v43 }
 0x2b1   :  { %5678 = vmatpush2.bf16.msra.mxu1 %v8496_v56  ;;  %v8451_v56 = vcombine.high %v2137_v10, %v2141_v43 }
 0x2b2   :  { %5719 = vmatpush2.bf16.msra.mxu0 %v8370_v46  ;;  %5679 = vmatprep.subr.bf16.mxu1 %v8489_v54  ;;  %v2488_v46 = vrot.slane %v10798_v34, %v11243_v24  ;;  %v8325_v54 = vcombine.high %v2010_v63, %v2014_v27  ;;  %v2121_v34 = vld [vmem:[%s12539_s5 + $0xd50] sm:$0xff] }
 0x2b3   :  { %5720 = vmatprep.subr.bf16.mxu0 %v8363_v49  ;;  %v2129_v49 = vld [vmem:[%s12539_s5 + $0xd90] sm:$0xff]  ;;  %v8435_v28 = vcombine.high %v2121_v34, %v2125_v61  ;;  %v8434_v22 = vcombine.low %v2121_v34, %v2125_v61 }
 0x2b4   :  { %v2101_v34 = vld [vmem:[%s12539_s5 + $0xcb0] sm:$0xff] }
 0x2b5   :  { %5680 = vmatpush2.bf16.msra.mxu1 %v8488_v36  ;;  %v2006_v36 = vld [vmem:[%s12539_s5 + $0x9b8] sm:$0xff] }
 0x2b6   :  { %5721 = vmatpush2.bf16.msra.mxu0 %v8362_v59  ;;  %5681 = vmatprep.subr.bf16.mxu1 %v8481_v37  ;;  %v8324_v59 = vcombine.low %v2010_v63, %v2014_v27  ;;  %v4097_v37 = vadd.f32 %v11059_v39, %v2488_v46  ;;  %v8317_v48 = vcombine.high %v2002_v17, %v2006_v36  ;;  %v1998_v39 = vld [vmem:[%s12539_s5 + $0x978] sm:$0xff]  ;;  %v2105_v27 = vld [vmem:[%s12539_s5 + $0xcd0] sm:$0xff] }
 0x2b7   :  { %5722 = vmatprep.subr.bf16.mxu0 %v8355_v1  ;;  %v8443_v1 = vcombine.high %v2129_v49, %v2133_v12  ;;  %v8316_v0 = vcombine.low %v2002_v17, %v2006_v36 }
 0x2b9   :  { %5682 = vmatpush2.bf16.msra.mxu1 %v8480_v31  ;;  %v4099_v31 = vadd.f32 %v11071_v42, %v2492_v60  ;;  %v8309_v42 = vcombine.high %v1994_v2, %v1998_v39 }
 0x2ba   :  { %5723 = vmatpush2.bf16.msra.mxu0 %v8354_v62  ;;  %5683 = vmatprep.subr.bf16.mxu1 %v8473_v25 }
 0x2bb   :  { %5724 = vmatprep.subr.bf16.mxu0 %v8347_v26  ;;  %v8442_v26 = vcombine.low %v2129_v49, %v2133_v12  ;;  %v1982_v49 = vld [vmem:[%s12539_s5 + $0x8f8] sm:$0xff] }
 0x2bd   :  { %5684 = vmatpush2.bf16.msra.mxu1 %v8472_v15  ;;  %v2113_v15 = vld [vmem:[%s12539_s5 + $0xd10] sm:$0xff] }
 0x2be   :  { %5725 = vmatpush2.bf16.msra.mxu0 %v8346_v40  ;;  %5685 = vmatprep.subr.bf16.mxu1 %v8465_v16  ;;  %v2117_v40 = vld [vmem:[%s12539_s5 + $0xd30] sm:$0xff] }
 0x2bf   :  { %5726 = vmatprep.subr.bf16.mxu0 %v8339_v41  ;;  %v8427_v10 = vcombine.high %v2113_v15, %v2117_v40  ;;  %v8426_v12 = vcombine.low %v2113_v15, %v2117_v40  ;;  %v1962_v15 = vld [vmem:[%s12539_s5 + $0x858] sm:$0xff] }
 0x2c0   :  { %v1966_v40 = vld [vmem:[%s12539_s5 + $0x878] sm:$0xff] }
 0x2c1   :  { %5686 = vmatpush2.bf16.msra.mxu1 %v8464_v50 }
 0x2c2   :  { %5727 = vmatpush2.bf16.msra.mxu0 %v8338_v30  ;;  %5687 = vmatprep.subr.bf16.mxu1 %v8457_v52 }
 0x2c3   :  { %5728 = vmatprep.subr.bf16.mxu0 %v8331_v6  ;;  %v8308_v6 = vcombine.low %v1994_v2, %v1998_v39  ;;  %v1974_v2 = vld [vmem:[%s12539_s5 + $0x8b8] sm:$0xff] }
 0x2c5   :  { %5688 = vmatpush2.bf16.msra.mxu1 %v8456_v53  ;;  %v2109_v53 = vld [vmem:[%s12539_s5 + $0xcf0] sm:$0xff] }
 0x2c6   :  { %5729 = vmatpush2.bf16.msra.mxu0 %v8330_v11  ;;  %5739 = vmatprep.subr.bf16.mxu1 %v8451_v56  ;;  %v11321_v11 = vld [vmem:[%s12542_s7 + $0x8] sm:$0xff]  ;;  %v8419_v36 = vcombine.high %v2105_v27, %v2109_v53  ;;  %v8418_v39 = vcombine.low %v2105_v27, %v2109_v53  ;;  %v8276_v53 = vcombine.low %v1962_v15, %v1966_v40 }
 0x2c7   :  { %5780 = vmatprep.subr.bf16.mxu0 %v8325_v54  ;;  %v1978_v54 = vld [vmem:[%s12539_s5 + $0x8d8] sm:$0xff] }
 0x2c8   :  { %v4137_v9 = vpop.f32.mrf.mxu1  ;;  %5690 = vmatmul.mubr.bf16.vlgmr.msra.gmra.mxu1 %v11050_v21 }
 0x2c9   :  { %v4138_v62 = vadd.f32 %v4137_v9, %v4097_v37  ;;  %v11291_v25 = vpop.f32.mrf.mxu0  ;;  %5731 = vmatmul.mubr.bf16.vlgmr.msra.gmra.mxu0 %v10825_v57  ;;  %5740 = vmatpush1.bf16.msra.mxu1 %v8450_v58  ;;  %v8293_v37 = vcombine.high %v1978_v54, %v1982_v49 }
 0x2ca   :  { %5771 = vmatprep.mubr.bf16.mxu1 %v10838_v5  ;;  %5781 = vmatpush1.bf16.msra.mxu0 %v8324_v59  ;;  %v4139_v3 = vpop.f32.mrf.mxu1  ;;  %v7675_v59 = vunpack.c.l.bf16 %v11321_v11 }
 0x2cb   :  { %v7527_v14 = vsel %vm7498_vm2, %v4138_v62, -inf  ;;  %5812 = vmatprep.mubr.bf16.mxu0 %v10611_v4  ;;  %v4140_v23 = vadd.f32 %v4139_v3, %v4099_v31  ;;  %v11297_v55 = vpop.f32.mrf.mxu0  ;;  %5741 = vmatprep.subr.bf16.mxu1 %v8443_v1  ;;  %v1986_v4 = vld [vmem:[%s12539_s5 + $0x918] sm:$0xff]  ;;  %v2097_v1 = vld [vmem:[%s12539_s5 + $0xc90] sm:$0xff]  ;;  %v8292_v31 = vcombine.low %v1978_v54, %v1982_v49 }
 0x2cc   :  { %v7528_v16 = vrot.slane %v7527_v14, 4  ;;  %v4141_v41 = vpop.f32.mrf.mxu1  ;;  %5782 = vmatprep.subr.bf16.mxu0 %v8317_v48  ;;  %v8301_v63 = vcombine.high %v1986_v4, %v1990_v44  ;;  %v8300_v60 = vcombine.low %v1986_v4, %v1990_v44  ;;  %v1970_v48 = vld [vmem:[%s12539_s5 + $0x898] sm:$0xff]  ;;  %v8411_v3 = vcombine.high %v2097_v1, %v2101_v34  ;;  %v2205_v54 = vld [vmem:[%s12539_s5 + $0xff0] sm:$0xff] }
 0x2cd   :  { %v7534_v47 = vsel %vm7498_vm2, %v4140_v23, -inf  ;;  %v4182_v51 = vpop.f32.mrf.mxu0  ;;  %5742 = vmatpush1.bf16.msra.mxu1 %v8442_v26  ;;  %v2093_v23 = vld [vmem:[%s12539_s5 + $0xc70] sm:$0xff]  ;;  %v8410_v41 = vcombine.low %v2097_v1, %v2101_v34  ;;  %v8284_v4 = vcombine.low %v1970_v48, %v1974_v2  ;;  %v2074_v49 = vld [vmem:[%s12539_s5 + $0xbd8] sm:$0xff] }
 0x2ce   :  { %v7529_v50 = vmax.f32 %v7527_v14, %v7528_v16  ;;  %v7535_v30 = vrot.slane %v7534_v47, 4  ;;  %5783 = vmatpush1.bf16.msra.mxu0 %v8316_v0  ;;  %v4142_v52 = vpop.f32.mrf.mxu1  ;;  %5743 = vmatprep.subr.bf16.mxu1 %v8435_v28  ;;  %v7699_v0 = vcombine.high %v7675_v59, %v7675_v59  ;;  %v8285_v28 = vcombine.high %v1970_v48, %v1974_v2  ;;  %v2089_v14 = vld [vmem:[%s12539_s5 + $0xc50] sm:$0xff]  ;;  %v2066_v1 = vld [vmem:[%s12539_s5 + $0xb98] sm:$0xff] }
 0x2cf   :  { %v4183_v43 = vpop.f32.mrf.mxu0  ;;  %5784 = vmatprep.subr.bf16.mxu0 %v8309_v42  ;;  %v8403_v44 = vcombine.high %v2089_v14, %v2093_v23  ;;  %v2070_v34 = vld [vmem:[%s12539_s5 + $0xbb8] sm:$0xff] }
 0x2d0   :  { %v7530_v56 = vrot.slane %v7529_v50, 2  ;;  %v7536_v46 = vmax.f32 %v7534_v47, %v7535_v30  ;;  %v2085_v30 = vld [vmem:[%s12539_s5 + $0xc30] sm:$0xff]  ;;  %v8381_v2 = vcombine.high %v2066_v1, %v2070_v34 }
 0x2d1   :  { %5744 = vmatpush1.bf16.msra.mxu1 %v8434_v22  ;;  %v8277_v22 = vcombine.high %v1962_v15, %v1966_v40  ;;  %v2050_v15 = vld [vmem:[%s12539_s5 + $0xb18] sm:$0xff] }
 0x2d2   :  { %v7531_v58 = vmax.f32 %v7529_v50, %v7530_v56  ;;  %v7537_v17 = vrot.slane %v7536_v46, 2  ;;  %5785 = vmatpush1.bf16.msra.mxu0 %v8308_v6  ;;  %5745 = vmatprep.subr.bf16.mxu1 %v8427_v10  ;;  %v2081_v50 = vld [vmem:[%s12539_s5 + $0xc10] sm:$0xff]  ;;  %v1954_v6 = vld [vmem:[%s12539_s5 + $0x818] sm:$0xff] }
 0x2d3   :  { %5786 = vmatprep.subr.bf16.mxu0 %v8301_v63  ;;  %v1958_v10 = vld [vmem:[%s12539_s5 + $0x838] sm:$0xff]  ;;  %v8402_v63 = vcombine.low %v2089_v14, %v2093_v23  ;;  %v8395_v56 = vcombine.high %v2081_v50, %v2085_v30  ;;  %v2177_v23 = vld [vmem:[%s12539_s5 + $0xf10] sm:$0xff] }
 0x2d4   :  { %v7532_v61 = vrot.slane %v7531_v58, 1  ;;  %v7538_v9 = vmax.f32 %v7536_v46, %v7537_v17  ;;  %v2201_v46 = vld [vmem:[%s12539_s5 + $0xfd0] sm:$0xff]  ;;  %v2054_v40 = vld [vmem:[%s12539_s5 + $0xb38] sm:$0xff] }
 0x2d5   :  { %5746 = vmatpush1.bf16.msra.mxu1 %v8426_v12  ;;  %v2078_v12 = vld [vmem:[%s12539_s5 + $0xbf8] sm:$0xff]  ;;  %v8515_v17 = vcombine.high %v2201_v46, %v2205_v54 }
 0x2d6   :  { %v7533_v62 = vmax.f32 %v7531_v58, %v7532_v61  ;;  %v7539_v26 = vrot.slane %v7538_v9, 1  ;;  %5787 = vmatpush1.bf16.msra.mxu0 %v8300_v60  ;;  %5747 = vmatprep.subr.bf16.mxu1 %v8419_v36  ;;  %v8394_v60 = vcombine.low %v2081_v50, %v2085_v30  ;;  %v8268_v58 = vcombine.low %v1954_v6, %v1958_v10  ;;  %v2046_v50 = vld [vmem:[%s12539_s5 + $0xaf8] sm:$0xff] }
 0x2d7   :  { %5788 = vmatprep.subr.bf16.mxu0 %v8293_v37  ;;  %v8389_v36 = vcombine.high %v2074_v49, %v2078_v12  ;;  %v2197_v37 = vld [vmem:[%s12539_s5 + $0xfb0] sm:$0xff]  ;;  %v8514_v61 = vcombine.low %v2201_v46, %v2205_v54 }
 0x2d8   :  { %v7540_v42 = vmax.f32 %v7538_v9, %v7539_v26  ;;  %v7725_v16 = vmul.f32 %v7675_v59, %v7533_v62  ;;  %v2193_v59 = vld [vmem:[%s12539_s5 + $0xf90] sm:$0xff]  ;;  %v8388_v9 = vcombine.low %v2074_v49, %v2078_v12  ;;  %v2058_v62 = vld [vmem:[%s12539_s5 + $0xb58] sm:$0xff] }
 0x2d9   :  { %5748 = vmatpush1.bf16.msra.mxu1 %v8418_v39  ;;  %v8507_v48 = vcombine.high %v2193_v59, %v2197_v37  ;;  %v2185_v39 = vld [vmem:[%s12539_s5 + $0xf50] sm:$0xff]  ;;  %v2062_v26 = vld [vmem:[%s12539_s5 + $0xb78] sm:$0xff] }
 0x2da   :  { %5789 = vmatpush1.bf16.msra.mxu0 %v8292_v31  ;;  %5749 = vmatprep.subr.bf16.mxu1 %v8411_v3  ;;  %v7726_v47 = vmul.f32 %v7699_v0, %v7540_v42  ;;  %v7753_v51 = vsel %vm7745_vm3, %v7725_v16, 0.0  ;;  %v2189_v31 = vld [vmem:[%s12539_s5 + $0xf70] sm:$0xff]  ;;  %v8506_v3 = vcombine.low %v2193_v59, %v2197_v37  ;;  %v8380_v0 = vcombine.low %v2066_v1, %v2070_v34 }
 0x2db   :  { %5790 = vmatprep.subr.bf16.mxu0 %v8285_v28  ;;  %v7754_v52 = vadd.f32 %v7753_v51, %v11140_v19  ;;  %v8269_v19 = vcombine.high %v1954_v6, %v1958_v10  ;;  %v8499_v28 = vcombine.high %v2185_v39, %v2189_v31  ;;  %v8373_v14 = vcombine.high %v2058_v62, %v2062_v26  ;;  %v2181_v42 = vld [vmem:[%s12539_s5 + $0xf30] sm:$0xff] }
 0x2dc   :  { %v7755_v43 = vsel %vm7745_vm3, %v7726_v47, 0.0  ;;  %v8498_v16 = vcombine.low %v2185_v39, %v2189_v31  ;;  %v2169_v47 = vld [vmem:[%s12539_s5 + $0xed0] sm:$0xff]  ;;  %v8490_v30 = vcombine.low %v2177_v23, %v2181_v42 }
 0x2dd   :  { %5750 = vmatpush1.bf16.msra.mxu1 %v8410_v41  ;;  %v11369_v27 = vadd.f32 %v7755_v43, %v7754_v52  ;;  %v8372_v41 = vcombine.low %v2058_v62, %v2062_v26  ;;  %v2173_v51 = vld [vmem:[%s12539_s5 + $0xef0] sm:$0xff]  ;;  %v8364_v52 = vcombine.low %v2050_v15, %v2054_v40  ;;  %v11468_v62 = vsub.s32 6, %v9190_v45 }
 0x2de   :  { %5791 = vmatpush1.bf16.msra.mxu0 %v8284_v4  ;;  %5751 = vmatprep.subr.bf16.mxu1 %v8403_v44  ;;  %v8491_v4 = vcombine.high %v2177_v23, %v2181_v42  ;;  %v8365_v44 = vcombine.high %v2050_v15, %v2054_v40  ;;  %v8483_v6 = vcombine.high %v2169_v47, %v2173_v51  ;;  %v2161_v43 = vld [vmem:[%s12539_s5 + $0xe90] sm:$0xff]  ;;  %v11483_v23 = vsub.s32 7, %v9190_v45 }
 0x2df   :  { %5792 = vmatprep.subr.bf16.mxu0 %v8277_v22  ;;  %v2042_v22 = vld [vmem:[%s12539_s5 + $0xad8] sm:$0xff]  ;;  %v2153_v12 = vld [vmem:[%s12539_s5 + $0xe50] sm:$0xff] }
 0x2e0   :  { %v8357_v10 = vcombine.high %v2042_v22, %v2046_v50  ;;  %v8356_v46 = vcombine.low %v2042_v22, %v2046_v50  ;;  %v2145_v34 = vld [vmem:[%s12539_s5 + $0xe10] sm:$0xff]  ;;  %v2255_v50 = vld [vmem:[%s12539_s5 + $0x1180] sm:$0xff] }
 0x2e1   :  { %5752 = vmatpush1.bf16.msra.mxu1 %v8402_v63  ;;  %v2165_v63 = vld [vmem:[%s12539_s5 + $0xeb0] sm:$0xff] }
 0x2e2   :  { %5793 = vmatpush1.bf16.msra.mxu0 %v8276_v53  ;;  %5753 = vmatprep.subr.bf16.mxu1 %v8395_v56  ;;  %v2034_v53 = vld [vmem:[%s12539_s5 + $0xa98] sm:$0xff]  ;;  %v8475_v54 = vcombine.high %v2161_v43, %v2165_v63 }
 0x2e3   :  { %5794 = vmatprep.subr.bf16.mxu0 %v8269_v19  ;;  %v2038_v56 = vld [vmem:[%s12539_s5 + $0xab8] sm:$0xff]  ;;  %v8482_v19 = vcombine.low %v2169_v47, %v2173_v51 }
 0x2e4   :  { %v8349_v49 = vcombine.high %v2034_v53, %v2038_v56  ;;  %v8348_v59 = vcombine.low %v2034_v53, %v2038_v56  ;;  %v2134_v47 = vld [vmem:[%s12539_s5 + $0xdb8] sm:$0xff]  ;;  %v11512_v56 = vpack.c.b16 %v10263_v35, %v10263_v35 }
 0x2e5   :  { %5754 = vmatpush1.bf16.msra.mxu1 %v8394_v60  ;;  %v2157_v60 = vld [vmem:[%s12539_s5 + $0xe70] sm:$0xff] }
 0x2e6   :  { %5795 = vmatpush1.bf16.msra.mxu0 %v8268_v58  ;;  %5755 = vmatprep.subr.bf16.mxu1 %v8515_v17  ;;  %v2026_v58 = vld [vmem:[%s12539_s5 + $0xa58] sm:$0xff]  ;;  %v8467_v37 = vcombine.high %v2153_v12, %v2157_v60 }
 0x2e7   :  { %5796 = vmatprep.subr.bf16.mxu0 %v8389_v36  ;;  %v2030_v17 = vld [vmem:[%s12539_s5 + $0xa78] sm:$0xff]  ;;  %v8474_v36 = vcombine.low %v2161_v43, %v2165_v63 }
 0x2e8   :  { %v8341_v1 = vcombine.high %v2026_v58, %v2030_v17  ;;  %v8340_v39 = vcombine.low %v2026_v58, %v2030_v17  ;;  %v2122_v43 = vld [vmem:[%s12539_s5 + $0xd58] sm:$0xff] }
 0x2e9   :  { %5756 = vmatpush2.bf16.msra.mxu1 %v8514_v61  ;;  %v2149_v61 = vld [vmem:[%s12539_s5 + $0xe30] sm:$0xff]  ;;  %v2126_v63 = vld [vmem:[%s12539_s5 + $0xd78] sm:$0xff] }
 0x2ea   :  { %5797 = vmatpush2.bf16.msra.mxu0 %v8388_v9  ;;  %5757 = vmatprep.subr.bf16.mxu1 %v8507_v48  ;;  %v2018_v9 = vld [vmem:[%s12539_s5 + $0xa18] sm:$0xff]  ;;  %v8459_v31 = vcombine.high %v2145_v34, %v2149_v61  ;;  %v8458_v42 = vcombine.low %v2145_v34, %v2149_v61  ;;  %v8437_v17 = vcombine.high %v2122_v43, %v2126_v63  ;;  %v2239_v61 = vld [vmem:[%s12539_s5 + $0x1100] sm:$0xff] }
 0x2eb   :  { %5798 = vmatprep.subr.bf16.mxu0 %v8381_v2  ;;  %v2022_v48 = vld [vmem:[%s12539_s5 + $0xa38] sm:$0xff]  ;;  %v8466_v2 = vcombine.low %v2153_v12, %v2157_v60 }
 0x2ec   :  { %v8333_v26 = vcombine.high %v2018_v9, %v2022_v48  ;;  %v8332_v15 = vcombine.low %v2018_v9, %v2022_v48  ;;  %v2243_v9 = vld [vmem:[%s12539_s5 + $0x1120] sm:$0xff] }
 0x2ed   :  { %5758 = vmatpush2.bf16.msra.mxu1 %v8506_v3  ;;  %v2138_v3 = vld [vmem:[%s12539_s5 + $0xdd8] sm:$0xff] }
 0x2ee   :  { %5799 = vmatpush2.bf16.msra.mxu0 %v8380_v0  ;;  %5759 = vmatprep.subr.bf16.mxu1 %v8499_v28  ;;  %v2142_v0 = vld [vmem:[%s12539_s5 + $0xdf8] sm:$0xff]  ;;  %v2263_v28 = vld [vmem:[%s12539_s5 + $0x11c0] sm:$0xff] }
 0x2ef   :  { %5800 = vmatprep.subr.bf16.mxu0 %v8373_v14  ;;  %v2267_v14 = vld [vmem:[%s12539_s5 + $0x11e0] sm:$0xff]  ;;  %v8453_v40 = vcombine.high %v2138_v3, %v2142_v0  ;;  %v8452_v22 = vcombine.low %v2138_v3, %v2142_v0 }
 0x2f1   :  { %5760 = vmatpush2.bf16.msra.mxu1 %v8498_v16  ;;  %v9008_v16 = vld [vmem:[%s12541_s6] sm:$0xff] }
 0x2f2   :  { %5801 = vmatpush2.bf16.msra.mxu0 %v8372_v41  ;;  %5761 = vmatprep.subr.bf16.mxu1 %v8491_v4  ;;  %v2496_v41 = vrot.slane %v9008_v16, %v11468_v62  ;;  %v8575_v4 = vcombine.high %v2263_v28, %v2267_v14  ;;  %v2500_v51 = vrot.slane %v9008_v16, %v11483_v23 }
 0x2f3   :  { %5802 = vmatprep.subr.bf16.mxu0 %v8365_v44  ;;  %v2130_v44 = vld [vmem:[%s12539_s5 + $0xd98] sm:$0xff] }
 0x2f4   :  { %v8444_v60 = vcombine.low %v2130_v44, %v2134_v47 }
 0x2f5   :  { %5762 = vmatpush2.bf16.msra.mxu1 %v8490_v30  ;;  %v2259_v30 = vld [vmem:[%s12539_s5 + $0x11a0] sm:$0xff] }
 0x2f6   :  { %5803 = vmatpush2.bf16.msra.mxu0 %v8364_v52  ;;  %5763 = vmatprep.subr.bf16.mxu1 %v8483_v6  ;;  %v8574_v52 = vcombine.low %v2263_v28, %v2267_v14  ;;  %v4179_v6 = vadd.f32 %v11291_v25, %v2496_v41  ;;  %v2247_v25 = vld [vmem:[%s12539_s5 + $0x1140] sm:$0xff]  ;;  %v8566_v58 = vcombine.low %v2255_v50, %v2259_v30 }
 0x2f7   :  { %5804 = vmatprep.subr.bf16.mxu0 %v8357_v10  ;;  %v8445_v10 = vcombine.high %v2130_v44, %v2134_v47  ;;  %v2235_v44 = vld [vmem:[%s12539_s5 + $0x10e0] sm:$0xff] }
 0x2f9   :  { %5764 = vmatpush2.bf16.msra.mxu1 %v8482_v19  ;;  %v8567_v19 = vcombine.high %v2255_v50, %v2259_v30 }
 0x2fa   :  { %5805 = vmatpush2.bf16.msra.mxu0 %v8356_v46  ;;  %5765 = vmatprep.subr.bf16.mxu1 %v8475_v54  ;;  %v2251_v46 = vld [vmem:[%s12539_s5 + $0x1160] sm:$0xff]  ;;  %v4181_v54 = vadd.f32 %v11297_v55, %v2500_v51  ;;  %v8550_v51 = vcombine.low %v2239_v61, %v2243_v9 }
 0x2fb   :  { %5806 = vmatprep.subr.bf16.mxu0 %v8349_v49  ;;  %v8559_v55 = vcombine.high %v2247_v25, %v2251_v46  ;;  %v8558_v0 = vcombine.low %v2247_v25, %v2251_v46 }
 0x2fd   :  { %5766 = vmatpush2.bf16.msra.mxu1 %v8474_v36 }
 0x2fe   :  { %5807 = vmatpush2.bf16.msra.mxu0 %v8348_v59  ;;  %5767 = vmatprep.subr.bf16.mxu1 %v8467_v37 }
 0x2ff   :  { %5808 = vmatprep.subr.bf16.mxu0 %v8341_v1 }
 0x301   :  { %5768 = vmatpush2.bf16.msra.mxu1 %v8466_v2 }
 0x302   :  { %5809 = vmatpush2.bf16.msra.mxu0 %v8340_v39  ;;  %5769 = vmatprep.subr.bf16.mxu1 %v8459_v31  ;;  %v8436_v39 = vcombine.low %v2122_v43, %v2126_v63  ;;  %v2102_v43 = vld [vmem:[%s12539_s5 + $0xcb8] sm:$0xff] }
 0x303   :  { %5810 = vmatprep.subr.bf16.mxu0 %v8333_v26 }
 0x305   :  { %5770 = vmatpush2.bf16.msra.mxu1 %v8458_v42  ;;  %v8551_v42 = vcombine.high %v2239_v61, %v2243_v9 }
 0x306   :  { %5811 = vmatpush2.bf16.msra.mxu0 %v8332_v15  ;;  %5821 = vmatprep.subr.bf16.mxu1 %v8453_v40  ;;  %v2106_v15 = vld [vmem:[%s12539_s5 + $0xcd8] sm:$0xff] }
 0x307   :  { %7170 = vmatprep.subr.bf16.mxu0 %v8575_v4  ;;  %v2110_v40 = vld [vmem:[%s12539_s5 + $0xcf8] sm:$0xff]  ;;  %v2231_v4 = vld [vmem:[%s12539_s5 + $0x10c0] sm:$0xff] }
 0x308   :  { %v4219_v53 = vpop.f32.mrf.mxu1  ;;  %5772 = vmatmul.mubr.bf16.vlgmr.msra.gmra.mxu1 %v11050_v21  ;;  %v8421_v30 = vcombine.high %v2106_v15, %v2110_v40  ;;  %v8420_v25 = vcombine.low %v2106_v15, %v2110_v40  ;;  %v8542_v46 = vcombine.low %v2231_v4, %v2235_v44 }
 0x309   :  { %v4220_v49 = vadd.f32 %v4219_v53, %v4179_v6  ;;  %v11521_v12 = vpop.f32.mrf.mxu0  ;;  %5813 = vmatmul.mubr.bf16.vlgmr.msra.gmra.mxu0 %v10825_v57  ;;  %5822 = vmatpush1.bf16.msra.mxu1 %v8452_v22  ;;  %v2114_v57 = vld [vmem:[%s12539_s5 + $0xd18] sm:$0xff]  ;;  %v8543_v6 = vcombine.high %v2231_v4, %v2235_v44  ;;  %v2327_v4 = vld [vmem:[%s12539_s5 + $0x13c0] sm:$0xff] }
 0x30a   :  { %5853 = vmatprep.mubr.bf16.mxu1 %v10838_v5  ;;  %7171 = vmatpush1.bf16.msra.mxu0 %v8574_v52  ;;  %v4221_v35 = vpop.f32.mrf.mxu1  ;;  %v2118_v5 = vld [vmem:[%s12539_s5 + $0xd38] sm:$0xff]  ;;  %v7676_v52 = vunpack.c.h.bf16 %v11321_v11  ;;  %v2227_v11 = vld [vmem:[%s12539_s5 + $0x10a0] sm:$0xff] }
 0x30b   :  { %v7541_v36 = vsel %vm7498_vm2, %v4220_v49, -inf  ;;  %7202 = vmatprep.mubr.bf16.mxu0 %v11512_v56  ;;  %v4222_v59 = vadd.f32 %v4221_v35, %v4181_v54  ;;  %v11527_v37 = vpop.f32.mrf.mxu0  ;;  %5823 = vmatprep.subr.bf16.mxu1 %v8445_v10  ;;  %v8429_v28 = vcombine.high %v2114_v57, %v2118_v5  ;;  %v8428_v47 = vcombine.low %v2114_v57, %v2118_v5  ;;  %v2098_v10 = vld [vmem:[%s12539_s5 + $0xc98] sm:$0xff]  ;;  %v2215_v57 = vld [vmem:[%s12539_s5 + $0x1040] sm:$0xff] }
 0x30c   :  { %v7542_v1 = vrot.slane %v7541_v36, 4  ;;  %v4223_v34 = vpop.f32.mrf.mxu1  ;;  %7172 = vmatprep.subr.bf16.mxu0 %v8567_v19  ;;  %v2223_v19 = vld [vmem:[%s12539_s5 + $0x1080] sm:$0xff]  ;;  %v8413_v54 = vcombine.high %v2098_v10, %v2102_v43  ;;  %v7700_v35 = vcombine.high %v7676_v52, %v7676_v52 }
 0x30d   :  { %v7548_v48 = vsel %vm7498_vm2, %v4222_v59, -inf  ;;  %v5572_v2 = vpop.f32.mrf.mxu0  ;;  %5824 = vmatpush1.bf16.msra.mxu1 %v8444_v60  ;;  %v2219_v5 = vld [vmem:[%s12539_s5 + $0x1060] sm:$0xff]  ;;  %v8534_v34 = vcombine.low %v2223_v19, %v2227_v11 }
 0x30e   :  { %v7543_v31 = vmax.f32 %v7541_v36, %v7542_v1  ;;  %v7549_v26 = vrot.slane %v7548_v48, 4  ;;  %7173 = vmatpush1.bf16.msra.mxu0 %v8566_v58  ;;  %v4224_v3 = vpop.f32.mrf.mxu1  ;;  %5825 = vmatprep.subr.bf16.mxu1 %v8437_v17  ;;  %v8535_v58 = vcombine.high %v2223_v19, %v2227_v11  ;;  %v2090_v17 = vld [vmem:[%s12539_s5 + $0xc58] sm:$0xff]  ;;  %v8412_v1 = vcombine.low %v2098_v10, %v2102_v43  ;;  %v2331_v44 = vld [vmem:[%s12539_s5 + $0x13e0] sm:$0xff] }
 0x30f   :  { %v5573_v14 = vpop.f32.mrf.mxu0  ;;  %7174 = vmatprep.subr.bf16.mxu0 %v8559_v55  ;;  %v2094_v36 = vld [vmem:[%s12539_s5 + $0xc78] sm:$0xff]  ;;  %v2323_v10 = vld [vmem:[%s12539_s5 + $0x13a0] sm:$0xff] }
 0x310   :  { %v7544_v16 = vrot.slane %v7543_v31, 2  ;;  %v7550_v41 = vmax.f32 %v7548_v48, %v7549_v26  ;;  %v8405_v48 = vcombine.high %v2090_v17, %v2094_v36  ;;  %v2086_v26 = vld [vmem:[%s12539_s5 + $0xc38] sm:$0xff]  ;;  %v8404_v14 = vcombine.low %v2090_v17, %v2094_v36 }
 0x311   :  { %5826 = vmatpush1.bf16.msra.mxu1 %v8436_v39  ;;  %v8527_v39 = vcombine.high %v2215_v57, %v2219_v5  ;;  %v2186_v11 = vld [vmem:[%s12539_s5 + $0xf58] sm:$0xff] }
 0x312   :  { %v7545_v22 = vmax.f32 %v7543_v31, %v7544_v16  ;;  %v7551_v50 = vrot.slane %v7550_v41, 2  ;;  %7175 = vmatpush1.bf16.msra.mxu0 %v8558_v0  ;;  %5827 = vmatprep.subr.bf16.mxu1 %v8429_v28  ;;  %v2082_v31 = vld [vmem:[%s12539_s5 + $0xc18] sm:$0xff]  ;;  %v2207_v0 = vld [vmem:[%s12539_s5 + $0x1000] sm:$0xff] }
 0x313   :  { %7176 = vmatprep.subr.bf16.mxu0 %v8551_v42  ;;  %v2211_v28 = vld [vmem:[%s12539_s5 + $0x1020] sm:$0xff]  ;;  %v8526_v42 = vcombine.low %v2215_v57, %v2219_v5  ;;  %v8397_v15 = vcombine.high %v2082_v31, %v2086_v26  ;;  %v2202_v16 = vld [vmem:[%s12539_s5 + $0xfd8] sm:$0xff] }
 0x314   :  { %v7546_v63 = vrot.slane %v7545_v22, 1  ;;  %v7552_v53 = vmax.f32 %v7550_v41, %v7551_v50  ;;  %v8519_v40 = vcombine.high %v2207_v0, %v2211_v28  ;;  %v2206_v41 = vld [vmem:[%s12539_s5 + $0xff8] sm:$0xff]  ;;  %v8639_v50 = vcombine.high %v2327_v4, %v2331_v44 }
 0x315   :  { %5828 = vmatpush1.bf16.msra.mxu1 %v8428_v47  ;;  %v8396_v47 = vcombine.low %v2082_v31, %v2086_v26  ;;  %v8516_v43 = vcombine.low %v2202_v16, %v2206_v41  ;;  %v2178_v17 = vld [vmem:[%s12539_s5 + $0xf18] sm:$0xff] }
 0x316   :  { %7177 = vmatpush1.bf16.msra.mxu0 %v8550_v51  ;;  %5829 = vmatprep.subr.bf16.mxu1 %v8421_v30  ;;  %v7547_v49 = vmax.f32 %v7545_v22, %v7546_v63  ;;  %v7553_v60 = vrot.slane %v7552_v53, 1  ;;  %v8518_v51 = vcombine.low %v2207_v0, %v2211_v28  ;;  %v8517_v22 = vcombine.high %v2202_v16, %v2206_v41  ;;  %v2194_v30 = vld [vmem:[%s12539_s5 + $0xf98] sm:$0xff] }
 0x317   :  { %7178 = vmatprep.subr.bf16.mxu0 %v8543_v6  ;;  %v2319_v6 = vld [vmem:[%s12539_s5 + $0x1380] sm:$0xff]  ;;  %v8638_v63 = vcombine.low %v2327_v4, %v2331_v44  ;;  %v2182_v36 = vld [vmem:[%s12539_s5 + $0xf38] sm:$0xff] }
 0x318   :  { %v7554_v59 = vmax.f32 %v7552_v53, %v7553_v60  ;;  %v7727_v55 = vmul.f32 %v7676_v52, %v7547_v49  ;;  %v2198_v52 = vld [vmem:[%s12539_s5 + $0xfb8] sm:$0xff]  ;;  %v8631_v19 = vcombine.high %v2319_v6, %v2323_v10  ;;  %v8630_v60 = vcombine.low %v2319_v6, %v2323_v10  ;;  %v2279_v44 = vld [vmem:[%s12539_s5 + $0x1240] sm:$0xff] }
 0x319   :  { %5830 = vmatpush1.bf16.msra.mxu1 %v8420_v25  ;;  %v8509_v53 = vcombine.high %v2194_v30, %v2198_v52  ;;  %v2190_v25 = vld [vmem:[%s12539_s5 + $0xf78] sm:$0xff]  ;;  %v8508_v49 = vcombine.low %v2194_v30, %v2198_v52  ;;  %v2271_v10 = vld [vmem:[%s12539_s5 + $0x1200] sm:$0xff] }
 0x31a   :  { %7179 = vmatpush1.bf16.msra.mxu0 %v8542_v46  ;;  %5831 = vmatprep.subr.bf16.mxu1 %v8413_v54  ;;  %v7728_v61 = vmul.f32 %v7700_v35, %v7554_v59  ;;  %v7757_v9 = vsel %vm7745_vm3, %v7727_v55, 0.0  ;;  %v2311_v46 = vld [vmem:[%s12539_s5 + $0x1340] sm:$0xff]  ;;  %v8501_v35 = vcombine.high %v2186_v11, %v2190_v25  ;;  %v8500_v57 = vcombine.low %v2186_v11, %v2190_v25  ;;  %v2162_v0 = vld [vmem:[%s12539_s5 + $0xe98] sm:$0xff] }
 0x31b   :  { %7180 = vmatprep.subr.bf16.mxu0 %v8535_v58  ;;  %v7758_v2 = vadd.f32 %v7757_v9, %v11369_v27  ;;  %v2315_v54 = vld [vmem:[%s12539_s5 + $0x1360] sm:$0xff]  ;;  %v2174_v9 = vld [vmem:[%s12539_s5 + $0xef8] sm:$0xff] }
 0x31c   :  { %v7759_v3 = vsel %vm7745_vm3, %v7728_v61, 0.0  ;;  %v8623_v58 = vcombine.high %v2311_v46, %v2315_v54  ;;  %v2303_v59 = vld [vmem:[%s12539_s5 + $0x1300] sm:$0xff]  ;;  %v8622_v5 = vcombine.low %v2311_v46, %v2315_v54  ;;  %v2170_v61 = vld [vmem:[%s12539_s5 + $0xed8] sm:$0xff]  ;;  %v11699_v54 = vld [vmem:[%s12541_s6 + $0x8] sm:$0xff] }
 0x31d   :  { %5832 = vmatpush1.bf16.msra.mxu1 %v8412_v1  ;;  %v7760_v27 = vadd.f32 %v7759_v3, %v7758_v2  ;;  %v2307_v55 = vld [vmem:[%s12539_s5 + $0x1320] sm:$0xff]  ;;  %v8493_v1 = vcombine.high %v2178_v17, %v2182_v36  ;;  %v8485_v26 = vcombine.high %v2170_v61, %v2174_v9  ;;  %v2166_v28 = vld [vmem:[%s12539_s5 + $0xeb8] sm:$0xff] }
 0x31e   :  { %7181 = vmatpush1.bf16.msra.mxu0 %v8534_v34  ;;  %5833 = vmatprep.subr.bf16.mxu1 %v8405_v48  ;;  %v8615_v34 = vcombine.high %v2303_v59, %v2307_v55  ;;  %v2295_v48 = vld [vmem:[%s12539_s5 + $0x12c0] sm:$0xff]  ;;  %v8614_v31 = vcombine.low %v2303_v59, %v2307_v55  ;;  %v2154_v41 = vld [vmem:[%s12539_s5 + $0xe58] sm:$0xff] }
 0x31f   :  { %7761 = vadd.xlane.f32.xlu0 %v7760_v27  ;;  %7182 = vmatprep.subr.bf16.mxu0 %v8527_v39  ;;  %v2299_v2 = vld [vmem:[%s12539_s5 + $0x12e0] sm:$0xff]  ;;  %v8492_v39 = vcombine.low %v2178_v17, %v2182_v36  ;;  %v2158_v4 = vld [vmem:[%s12539_s5 + $0xe78] sm:$0xff]  ;;  %v2504_v36 = vrot.slane %v11699_v54, %v9702_v29 }
 0x320   :  { %v8607_v3 = vcombine.high %v2295_v48, %v2299_v2  ;;  %v2287_v27 = vld [vmem:[%s12539_s5 + $0x1280] sm:$0xff]  ;;  %v2146_v52 = vld [vmem:[%s12539_s5 + $0xe18] sm:$0xff] }
 0x321   :  { %5834 = vmatpush1.bf16.msra.mxu1 %v8404_v14  ;;  %v2291_v14 = vld [vmem:[%s12539_s5 + $0x12a0] sm:$0xff]  ;;  %v2150_v6 = vld [vmem:[%s12539_s5 + $0xe38] sm:$0xff] }
 0x322   :  { %7183 = vmatpush1.bf16.msra.mxu0 %v8526_v42  ;;  %5835 = vmatprep.subr.bf16.mxu1 %v8397_v15  ;;  %v8484_v42 = vcombine.low %v2170_v61, %v2174_v9  ;;  %v8606_v15 = vcombine.low %v2295_v48, %v2299_v2  ;;  %v8599_v16 = vcombine.high %v2287_v27, %v2291_v14  ;;  %v2391_v25 = vld [vmem:[%s12539_s5 + $0x15c0] sm:$0xff]  ;;  %v2260_v61 = vld [vmem:[%s12539_s5 + $0x11a8] sm:$0xff] }
 0x323   :  { %7184 = vmatprep.subr.bf16.mxu0 %v8519_v40  ;;  %v8477_v40 = vcombine.high %v2162_v0, %v2166_v28  ;;  %v2395_v46 = vld [vmem:[%s12539_s5 + $0x15e0] sm:$0xff]  ;;  %v5569_v48 = vadd.f32 %v11521_v12, %v2504_v36  ;;  %v11726_v2 = vpack.c.b16 %v10290_v33, %v10290_v33  ;;  %v11737_v12 = vpack.c.b16 %v10760_v8, %v10760_v8  ;;  %v2248_v33 = vld [vmem:[%s12539_s5 + $0x1148] sm:$0xff] }
 0x324   :  { %v8703_v17 = vcombine.high %v2391_v25, %v2395_v46  ;;  %v2383_v55 = vld [vmem:[%s12539_s5 + $0x1580] sm:$0xff]  ;;  %v2232_v36 = vld [vmem:[%s12539_s5 + $0x10c8] sm:$0xff] }
 0x325   :  { %5836 = vmatpush1.bf16.msra.mxu1 %v8396_v47  ;;  %v2283_v47 = vld [vmem:[%s12539_s5 + $0x1260] sm:$0xff] }
 0x326   :  { %7185 = vmatpush1.bf16.msra.mxu0 %v8518_v51  ;;  %5837 = vmatprep.subr.bf16.mxu1 %v8517_v22  ;;  %v8476_v51 = vcombine.low %v2162_v0, %v2166_v28  ;;  %v8598_v22 = vcombine.low %v2287_v27, %v2291_v14  ;;  %v8591_v30 = vcombine.high %v2279_v44, %v2283_v47  ;;  %v2252_v28 = vld [vmem:[%s12539_s5 + $0x1168] sm:$0xff] }
 0x327   :  { %7186 = vmatprep.subr.bf16.mxu0 %v8639_v50  ;;  %v8469_v50 = vcombine.high %v2154_v41, %v2158_v4 }
 0x329   :  { %5838 = vmatpush2.bf16.msra.mxu1 %v8516_v43  ;;  %v2275_v43 = vld [vmem:[%s12539_s5 + $0x1220] sm:$0xff] }
 0x32a   :  { %7187 = vmatpush2.bf16.msra.mxu0 %v8638_v63  ;;  %5839 = vmatprep.subr.bf16.mxu1 %v8509_v53  ;;  %v8468_v63 = vcombine.low %v2154_v41, %v2158_v4  ;;  %v8590_v53 = vcombine.low %v2279_v44, %v2283_v47  ;;  %v8583_v11 = vcombine.high %v2271_v10, %v2275_v43  ;;  %v2367_v44 = vld [vmem:[%s12539_s5 + $0x1500] sm:$0xff] }
 0x32b   :  { %7188 = vmatprep.subr.bf16.mxu0 %v8631_v19  ;;  %v8461_v19 = vcombine.high %v2146_v52, %v2150_v6  ;;  %v2371_v47 = vld [vmem:[%s12539_s5 + $0x1520] sm:$0xff] }
 0x32d   :  { %5840 = vmatpush2.bf16.msra.mxu1 %v8508_v49  ;;  %v2264_v49 = vld [vmem:[%s12539_s5 + $0x11c8] sm:$0xff] }
 0x32e   :  { %7189 = vmatpush2.bf16.msra.mxu0 %v8630_v60  ;;  %5841 = vmatprep.subr.bf16.mxu1 %v8501_v35  ;;  %v2268_v60 = vld [vmem:[%s12539_s5 + $0x11e8] sm:$0xff]  ;;  %v8460_v35 = vcombine.low %v2146_v52, %v2150_v6 }
 0x32f   :  { %7190 = vmatprep.subr.bf16.mxu0 %v8623_v58  ;;  %v8582_v58 = vcombine.low %v2271_v10, %v2275_v43  ;;  %v8577_v59 = vcombine.high %v2264_v49, %v2268_v60  ;;  %v8576_v9 = vcombine.low %v2264_v49, %v2268_v60  ;;  %v2359_v60 = vld [vmem:[%s12539_s5 + $0x14c0] sm:$0xff] }
 0x331   :  { %5842 = vmatpush2.bf16.msra.mxu1 %v8500_v57  ;;  %v2387_v57 = vld [vmem:[%s12539_s5 + $0x15a0] sm:$0xff] }
 0x332   :  { %7191 = vmatpush2.bf16.msra.mxu0 %v8622_v5  ;;  %5843 = vmatprep.subr.bf16.mxu1 %v8493_v1  ;;  %v2508_v5 = vrot.slane %v11699_v54, %v9710_v32  ;;  %v8702_v1 = vcombine.low %v2391_v25, %v2395_v46  ;;  %v8679_v25 = vcombine.high %v2367_v44, %v2371_v47 }
 0x333   :  { %7192 = vmatprep.subr.bf16.mxu0 %v8615_v34  ;;  %v2256_v34 = vld [vmem:[%s12539_s5 + $0x1188] sm:$0xff] }
 0x334   :  { %v8569_v0 = vcombine.high %v2256_v34, %v2260_v61  ;;  %v5571_v27 = vadd.f32 %v11527_v37, %v2508_v5  ;;  %v8561_v37 = vcombine.high %v2248_v33, %v2252_v28 }
 0x335   :  { %5844 = vmatpush2.bf16.msra.mxu1 %v8492_v39  ;;  %v8695_v39 = vcombine.high %v2383_v55, %v2387_v57 }
 0x336   :  { %7193 = vmatpush2.bf16.msra.mxu0 %v8614_v31  ;;  %5845 = vmatprep.subr.bf16.mxu1 %v8485_v26  ;;  %v2375_v31 = vld [vmem:[%s12539_s5 + $0x1540] sm:$0xff] }
 0x337   :  { %7194 = vmatprep.subr.bf16.mxu0 %v8607_v3  ;;  %v2379_v26 = vld [vmem:[%s12539_s5 + $0x1560] sm:$0xff] }
 0x338   :  { %v8686_v10 = vcombine.low %v2375_v31, %v2379_v26 }
 0x339   :  { %5846 = vmatpush2.bf16.msra.mxu1 %v8484_v42 }
 0x33a   :  { %7195 = vmatpush2.bf16.msra.mxu0 %v8606_v15  ;;  %5847 = vmatprep.subr.bf16.mxu1 %v8477_v40  ;;  %v8568_v15 = vcombine.low %v2256_v34, %v2260_v61  ;;  %v8687_v40 = vcombine.high %v2375_v31, %v2379_v26 }
 0x33b   :  { %7196 = vmatprep.subr.bf16.mxu0 %v8599_v16 }
 0x33d   :  { %5848 = vmatpush2.bf16.msra.mxu1 %v8476_v51 }
 0x33e   :  { %7197 = vmatpush2.bf16.msra.mxu0 %v8598_v22  ;;  %5849 = vmatprep.subr.bf16.mxu1 %v8469_v50  ;;  %v2240_v50 = vld [vmem:[%s12539_s5 + $0x1108] sm:$0xff] }
 0x33f   :  { %7198 = vmatprep.subr.bf16.mxu0 %v8591_v30  ;;  %v2244_v30 = vld [vmem:[%s12539_s5 + $0x1128] sm:$0xff] }
 0x340   :  { %v8553_v49 = vcombine.high %v2240_v50, %v2244_v30  ;;  %v8552_v34 = vcombine.low %v2240_v50, %v2244_v30 }
 0x341   :  { %5850 = vmatpush2.bf16.msra.mxu1 %v8468_v63  ;;  %v11770_v63 = vld [vmem:[%s12542_s7 + $0x10] sm:$0xff] }
 0x342   :  { %7199 = vmatpush2.bf16.msra.mxu0 %v8590_v53  ;;  %5851 = vmatprep.subr.bf16.mxu1 %v8461_v19 }
 0x343   :  { %7200 = vmatprep.subr.bf16.mxu0 %v8583_v11  ;;  %v8560_v11 = vcombine.low %v2248_v33, %v2252_v28 }
 0x345   :  { %5852 = vmatpush2.bf16.msra.mxu1 %v8460_v35  ;;  %v2363_v35 = vld [vmem:[%s12539_s5 + $0x14e0] sm:$0xff] }
 0x346   :  { %7201 = vmatpush2.bf16.msra.mxu0 %v8582_v58  ;;  %7211 = vmatprep.subr.bf16.mxu1 %v8703_v17  ;;  %v8671_v61 = vcombine.high %v2359_v60, %v2363_v35  ;;  %v8670_v28 = vcombine.low %v2359_v60, %v2363_v35 }
 0x347   :  { %7252 = vmatprep.subr.bf16.mxu0 %v8577_v59  ;;  %v2236_v59 = vld [vmem:[%s12539_s5 + $0x10e8] sm:$0xff] }
 0x348   :  { %v5609_v3 = vpop.f32.mrf.mxu1  ;;  %5854 = vmatmul.mubr.bf16.vlgmr.msra.gmra.mxu1 %v11050_v21  ;;  %v8694_v21 = vcombine.low %v2383_v55, %v2387_v57  ;;  %v7677_v55 = vunpack.c.l.bf16 %v11770_v63  ;;  %v8678_v57 = vcombine.low %v2367_v44, %v2371_v47  ;;  %v2216_v44 = vld [vmem:[%s12539_s5 + $0x1048] sm:$0xff] }
 0x349   :  { %v5610_v14 = vadd.f32 %v5609_v3, %v5569_v48  ;;  %v11746_v42 = vpop.f32.mrf.mxu0  ;;  %7203 = vmatmul.mubr.bf16.vlgmr.msra.gmra.mxu0 %v11726_v2  ;;  %7212 = vmatpush1.bf16.msra.mxu1 %v8702_v1  ;;  %v2351_v48 = vld [vmem:[%s12539_s5 + $0x1480] sm:$0xff]  ;;  %v2224_v3 = vld [vmem:[%s12539_s5 + $0x1088] sm:$0xff] }
 0x34a   :  { %7243 = vmatprep.mubr.bf16.mxu1 %v11737_v12  ;;  %7253 = vmatpush1.bf16.msra.mxu0 %v8576_v9  ;;  %v5611_v8 = vpop.f32.mrf.mxu1  ;;  %v8545_v9 = vcombine.high %v2232_v36, %v2236_v59  ;;  %v7701_v33 = vcombine.high %v7677_v55, %v7677_v55  ;;  %v2220_v47 = vld [vmem:[%s12539_s5 + $0x1068] sm:$0xff] }
 0x34b   :  { %v7555_v16 = vsel %vm7498_vm2, %v5610_v14, -inf  ;;  %7284 = vmatprep.mubr.bf16.mxu0 %v11512_v56  ;;  %v5612_v41 = vadd.f32 %v5611_v8, %v5571_v27  ;;  %v11752_v4 = vpop.f32.mrf.mxu0  ;;  %7213 = vmatprep.subr.bf16.mxu1 %v8695_v39  ;;  %v2355_v39 = vld [vmem:[%s12539_s5 + $0x14a0] sm:$0xff] }
 0x34c   :  { %v7556_v51 = vrot.slane %v7555_v16, 4  ;;  %v5613_v22 = vpop.f32.mrf.mxu1  ;;  %7254 = vmatprep.subr.bf16.mxu0 %v8569_v0  ;;  %v2228_v0 = vld [vmem:[%s12539_s5 + $0x10a8] sm:$0xff]  ;;  %v8663_v8 = vcombine.high %v2351_v48, %v2355_v39 }
 0x34d   :  { %v7562_v52 = vsel %vm7498_vm2, %v5612_v41, -inf  ;;  %v5654_v6 = vpop.f32.mrf.mxu0  ;;  %7214 = vmatpush1.bf16.msra.mxu1 %v8694_v21  ;;  %v8544_v21 = vcombine.low %v2232_v36, %v2236_v59  ;;  %v8536_v50 = vcombine.low %v2224_v3, %v2228_v0  ;;  %v2328_v36 = vld [vmem:[%s12539_s5 + $0x13c8] sm:$0xff] }
 0x34e   :  { %v7557_v43 = vmax.f32 %v7555_v16, %v7556_v51  ;;  %v7563_v53 = vrot.slane %v7562_v52, 4  ;;  %7255 = vmatpush1.bf16.msra.mxu0 %v8568_v15  ;;  %v5614_v19 = vpop.f32.mrf.mxu1  ;;  %7215 = vmatprep.subr.bf16.mxu1 %v8687_v40  ;;  %v8537_v15 = vcombine.high %v2224_v3, %v2228_v0  ;;  %v2343_v40 = vld [vmem:[%s12539_s5 + $0x1440] sm:$0xff]  ;;  %v8662_v51 = vcombine.low %v2351_v48, %v2355_v39  ;;  %v2332_v59 = vld [vmem:[%s12539_s5 + $0x13e8] sm:$0xff] }
 0x34f   :  { %v5655_v46 = vpop.f32.mrf.mxu0  ;;  %7256 = vmatprep.subr.bf16.mxu0 %v8561_v37  ;;  %v2347_v16 = vld [vmem:[%s12539_s5 + $0x1460] sm:$0xff]  ;;  %v2208_v19 = vld [vmem:[%s12539_s5 + $0x1008] sm:$0xff] }
 0x350   :  { %v7558_v58 = vrot.slane %v7557_v43, 2  ;;  %v7564_v17 = vmax.f32 %v7562_v52, %v7563_v53  ;;  %v8655_v30 = vcombine.high %v2343_v40, %v2347_v16  ;;  %v8529_v52 = vcombine.high %v2216_v44, %v2220_v47  ;;  %v2335_v6 = vld [vmem:[%s12539_s5 + $0x1400] sm:$0xff]  ;;  %v2324_v48 = vld [vmem:[%s12539_s5 + $0x13a8] sm:$0xff] }
 0x351   :  { %7216 = vmatpush1.bf16.msra.mxu1 %v8686_v10  ;;  %v2339_v10 = vld [vmem:[%s12539_s5 + $0x1420] sm:$0xff]  ;;  %v8654_v46 = vcombine.low %v2343_v40, %v2347_v16 }
 0x352   :  { %v7559_v5 = vmax.f32 %v7557_v43, %v7558_v58  ;;  %v7565_v1 = vrot.slane %v7564_v17, 2  ;;  %7257 = vmatpush1.bf16.msra.mxu0 %v8560_v11  ;;  %7217 = vmatprep.subr.bf16.mxu1 %v8679_v25  ;;  %v2212_v11 = vld [vmem:[%s12539_s5 + $0x1028] sm:$0xff]  ;;  %v8647_v60 = vcombine.high %v2335_v6, %v2339_v10  ;;  %v2455_v58 = vld [vmem:[%s12539_s5 + $0x17c0] sm:$0xff] }
 0x353   :  { %7258 = vmatprep.subr.bf16.mxu0 %v8553_v49  ;;  %v8528_v49 = vcombine.low %v2216_v44, %v2220_v47  ;;  %v8521_v35 = vcombine.high %v2208_v19, %v2212_v11  ;;  %v2439_v0 = vld [vmem:[%s12539_s5 + $0x1740] sm:$0xff] }
 0x354   :  { %v7560_v31 = vrot.slane %v7559_v5, 1  ;;  %v7566_v26 = vmax.f32 %v7564_v17, %v7565_v1  ;;  %v2459_v17 = vld [vmem:[%s12539_s5 + $0x17e0] sm:$0xff]  ;;  %v8641_v1 = vcombine.high %v2328_v36, %v2332_v59 }
 0x355   :  { %7218 = vmatpush1.bf16.msra.mxu1 %v8678_v57  ;;  %v8520_v57 = vcombine.low %v2208_v19, %v2212_v11  ;;  %v8766_v39 = vcombine.low %v2455_v58, %v2459_v17  ;;  %v2431_v40 = vld [vmem:[%s12539_s5 + $0x1700] sm:$0xff] }
 0x356   :  { %v7561_v27 = vmax.f32 %v7559_v5, %v7560_v31  ;;  %v7567_v14 = vrot.slane %v7566_v26, 1  ;;  %7259 = vmatpush1.bf16.msra.mxu0 %v8552_v34  ;;  %7219 = vmatprep.subr.bf16.mxu1 %v8671_v61  ;;  %v8767_v5 = vcombine.high %v2455_v58, %v2459_v17  ;;  %v2447_v34 = vld [vmem:[%s12539_s5 + $0x1780] sm:$0xff]  ;;  %v8640_v31 = vcombine.low %v2328_v36, %v2332_v59 }
 0x357   :  { %7260 = vmatprep.subr.bf16.mxu0 %v8545_v9  ;;  %v2451_v61 = vld [vmem:[%s12539_s5 + $0x17a0] sm:$0xff]  ;;  %v2320_v9 = vld [vmem:[%s12539_s5 + $0x1388] sm:$0xff] }
 0x358   :  { %v7729_v41 = vmul.f32 %v7677_v55, %v7561_v27  ;;  %v7568_v37 = vmax.f32 %v7566_v26, %v7567_v14  ;;  %v8646_v55 = vcombine.low %v2335_v6, %v2339_v10  ;;  %v8759_v26 = vcombine.high %v2447_v34, %v2451_v61  ;;  %v2316_v27 = vld [vmem:[%s12539_s5 + $0x1368] sm:$0xff]  ;;  %v2435_v16 = vld [vmem:[%s12539_s5 + $0x1720] sm:$0xff] }
 0x359   :  { %7220 = vmatpush1.bf16.msra.mxu1 %v8670_v28  ;;  %v8633_v3 = vcombine.high %v2320_v9, %v2324_v48  ;;  %v2312_v28 = vld [vmem:[%s12539_s5 + $0x1348] sm:$0xff]  ;;  %v8758_v14 = vcombine.low %v2447_v34, %v2451_v61  ;;  %v8742_v10 = vcombine.low %v2431_v40, %v2435_v16  ;;  %v2415_v11 = vld [vmem:[%s12539_s5 + $0x1680] sm:$0xff] }
 0x35a   :  { %v7730_v22 = vmul.f32 %v7701_v33, %v7568_v37  ;;  %7261 = vmatpush1.bf16.msra.mxu0 %v8544_v21  ;;  %7221 = vmatprep.subr.bf16.mxu1 %v8663_v8  ;;  %v7763_v43 = vsel %vm7745_vm3, %v7729_v41, 0.0  ;;  %v2443_v33 = vld [vmem:[%s12539_s5 + $0x1760] sm:$0xff]  ;;  %v8632_v21 = vcombine.low %v2320_v9, %v2324_v48  ;;  %v2304_v41 = vld [vmem:[%s12539_s5 + $0x1308] sm:$0xff]  ;;  %v8624_v47 = vcombine.low %v2312_v28, %v2316_v27 }
 0x35b   :  { %7262 = vmatprep.subr.bf16.mxu0 %v8537_v15  ;;  %v8751_v8 = vcombine.high %v2439_v0, %v2443_v33  ;;  %v8625_v15 = vcombine.high %v2312_v28, %v2316_v27  ;;  %v2308_v37 = vld [vmem:[%s12539_s5 + $0x1328] sm:$0xff]  ;;  %v8750_v44 = vcombine.low %v2439_v0, %v2443_v33  ;;  %v2407_v59 = vld [vmem:[%s12539_s5 + $0x1640] sm:$0xff] }
 0x35c   :  { %v7764_v53 = vsel %vm7745_vm3, %v7730_v22, 0.0  ;;  %v8617_v22 = vcombine.high %v2304_v41, %v2308_v37  ;;  %v2300_v6 = vld [vmem:[%s12539_s5 + $0x12e8] sm:$0xff]  ;;  %v2399_v48 = vld [vmem:[%s12539_s5 + $0x1600] sm:$0xff] }
 0x35d   :  { %v11823_v25 = vadd.f32 %v7764_v53, %v7763_v43  ;;  %7222 = vmatpush1.bf16.msra.mxu1 %v8662_v51  ;;  %v8743_v51 = vcombine.high %v2431_v40, %v2435_v16  ;;  %v8616_v43 = vcombine.low %v2304_v41, %v2308_v37  ;;  %v2392_v27 = vld [vmem:[%s12539_s5 + $0x15c8] sm:$0xff]  ;;  %v2512_v41 = vrot.slane %v11699_v54, %v9793_v7 }
 0x35e   :  { %7263 = vmatpush1.bf16.msra.mxu0 %v8536_v50  ;;  %7223 = vmatprep.subr.bf16.mxu1 %v8655_v30  ;;  %v2423_v50 = vld [vmem:[%s12539_s5 + $0x16c0] sm:$0xff] }
 0x35f   :  { %7264 = vmatprep.subr.bf16.mxu0 %v8529_v52  ;;  %v2427_v30 = vld [vmem:[%s12539_s5 + $0x16e0] sm:$0xff]  ;;  %v2296_v52 = vld [vmem:[%s12539_s5 + $0x12c8] sm:$0xff] }
 0x360   :  { %v8735_v53 = vcombine.high %v2423_v50, %v2427_v30  ;;  %v8609_v19 = vcombine.high %v2296_v52, %v2300_v6  ;;  %v8608_v58 = vcombine.low %v2296_v52, %v2300_v6  ;;  %v11951_v52 = vpack.c.b16 %v10775_v18, %v10775_v18  ;;  %v2249_v18 = vld [vmem:[%s12539_s5 + $0x1150] sm:$0xff] }
 0x361   :  { %7224 = vmatpush1.bf16.msra.mxu1 %v8654_v46  ;;  %v2419_v46 = vld [vmem:[%s12539_s5 + $0x16a0] sm:$0xff] }
 0x362   :  { %7265 = vmatpush1.bf16.msra.mxu0 %v8528_v49  ;;  %7225 = vmatprep.subr.bf16.mxu1 %v8647_v60  ;;  %v2288_v49 = vld [vmem:[%s12539_s5 + $0x1288] sm:$0xff]  ;;  %v8727_v17 = vcombine.high %v2415_v11, %v2419_v46 }
 0x363   :  { %7266 = vmatprep.subr.bf16.mxu0 %v8521_v35  ;;  %v2292_v60 = vld [vmem:[%s12539_s5 + $0x12a8] sm:$0xff]  ;;  %v8734_v35 = vcombine.low %v2423_v50, %v2427_v30  ;;  %v2257_v50 = vld [vmem:[%s12539_s5 + $0x1190] sm:$0xff] }
 0x364   :  { %v8601_v36 = vcombine.high %v2288_v49, %v2292_v60  ;;  %v8600_v34 = vcombine.low %v2288_v49, %v2292_v60  ;;  %v2261_v30 = vld [vmem:[%s12539_s5 + $0x11b0] sm:$0xff] }
 0x365   :  { %7226 = vmatpush1.bf16.msra.mxu1 %v8646_v55  ;;  %v2411_v55 = vld [vmem:[%s12539_s5 + $0x1660] sm:$0xff] }
 0x366   :  { %7267 = vmatpush1.bf16.msra.mxu0 %v8520_v57  ;;  %7227 = vmatprep.subr.bf16.mxu1 %v8767_v5  ;;  %v2280_v57 = vld [vmem:[%s12539_s5 + $0x1248] sm:$0xff]  ;;  %v8719_v61 = vcombine.high %v2407_v59, %v2411_v55 }
 0x367   :  { %7268 = vmatprep.subr.bf16.mxu0 %v8641_v1  ;;  %v2284_v5 = vld [vmem:[%s12539_s5 + $0x1268] sm:$0xff]  ;;  %v8726_v1 = vcombine.low %v2415_v11, %v2419_v46  ;;  %v8571_v46 = vcombine.high %v2257_v50, %v2261_v30 }
 0x368   :  { %v8593_v9 = vcombine.high %v2280_v57, %v2284_v5  ;;  %v8592_v0 = vcombine.low %v2280_v57, %v2284_v5 }
 0x369   :  { %7228 = vmatpush2.bf16.msra.mxu1 %v8766_v39  ;;  %v2403_v39 = vld [vmem:[%s12539_s5 + $0x1620] sm:$0xff] }
 0x36a   :  { %7269 = vmatpush2.bf16.msra.mxu0 %v8640_v31  ;;  %7229 = vmatprep.subr.bf16.mxu1 %v8759_v26  ;;  %v2272_v31 = vld [vmem:[%s12539_s5 + $0x1208] sm:$0xff]  ;;  %v8711_v33 = vcombine.high %v2399_v48, %v2403_v39 }
 0x36b   :  { %7270 = vmatprep.subr.bf16.mxu0 %v8633_v3  ;;  %v2276_v26 = vld [vmem:[%s12539_s5 + $0x1228] sm:$0xff]  ;;  %v8718_v3 = vcombine.low %v2407_v59, %v2411_v55 }
 0x36c   :  { %v8585_v28 = vcombine.high %v2272_v31, %v2276_v26  ;;  %v8584_v40 = vcombine.low %v2272_v31, %v2276_v26 }
 0x36d   :  { %7230 = vmatpush2.bf16.msra.mxu1 %v8758_v14  ;;  %v2396_v14 = vld [vmem:[%s12539_s5 + $0x15e8] sm:$0xff] }
 0x36e   :  { %7271 = vmatpush2.bf16.msra.mxu0 %v8632_v21  ;;  %7231 = vmatprep.subr.bf16.mxu1 %v8751_v8  ;;  %v2265_v21 = vld [vmem:[%s12539_s5 + $0x11d0] sm:$0xff]  ;;  %v8705_v16 = vcombine.high %v2392_v27, %v2396_v14 }
 0x36f   :  { %7272 = vmatprep.subr.bf16.mxu0 %v8625_v15  ;;  %v2269_v8 = vld [vmem:[%s12539_s5 + $0x11f0] sm:$0xff]  ;;  %v8710_v15 = vcombine.low %v2399_v48, %v2403_v39 }
 0x370   :  { %v8579_v37 = vcombine.high %v2265_v21, %v2269_v8  ;;  %v8578_v6 = vcombine.low %v2265_v21, %v2269_v8  ;;  %v2241_v48 = vld [vmem:[%s12539_s5 + $0x1110] sm:$0xff] }
 0x371   :  { %7232 = vmatpush2.bf16.msra.mxu1 %v8750_v44  ;;  %v2384_v44 = vld [vmem:[%s12539_s5 + $0x1588] sm:$0xff]  ;;  %v2245_v39 = vld [vmem:[%s12539_s5 + $0x1130] sm:$0xff] }
 0x372   :  { %7273 = vmatpush2.bf16.msra.mxu0 %v8624_v47  ;;  %7233 = vmatprep.subr.bf16.mxu1 %v8743_v51  ;;  %v2388_v47 = vld [vmem:[%s12539_s5 + $0x15a8] sm:$0xff]  ;;  %v2516_v51 = vrot.slane %v11699_v54, %v9796_v13  ;;  %v8555_v8 = vcombine.high %v2241_v48, %v2245_v39 }
 0x373   :  { %7274 = vmatprep.subr.bf16.mxu0 %v8617_v22  ;;  %v8704_v22 = vcombine.low %v2392_v27, %v2396_v14 }
 0x374   :  { %v5653_v49 = vadd.f32 %v11752_v4, %v2516_v51 }
 0x375   :  { %7234 = vmatpush2.bf16.msra.mxu1 %v8742_v10  ;;  %v5651_v10 = vadd.f32 %v11746_v42, %v2512_v41  ;;  %v2253_v42 = vld [vmem:[%s12539_s5 + $0x1170] sm:$0xff] }
 0x376   :  { %7275 = vmatpush2.bf16.msra.mxu0 %v8616_v43  ;;  %7235 = vmatprep.subr.bf16.mxu1 %v8735_v53  ;;  %v8697_v43 = vcombine.high %v2384_v44, %v2388_v47  ;;  %v2376_v53 = vld [vmem:[%s12539_s5 + $0x1548] sm:$0xff]  ;;  %v8563_v4 = vcombine.high %v2249_v18, %v2253_v42  ;;  %v8562_v27 = vcombine.low %v2249_v18, %v2253_v42 }
 0x377   :  { %7276 = vmatprep.subr.bf16.mxu0 %v8609_v19  ;;  %v2380_v19 = vld [vmem:[%s12539_s5 + $0x1568] sm:$0xff] }
 0x378   :  { %v8689_v59 = vcombine.high %v2376_v53, %v2380_v19 }
 0x379   :  { %7236 = vmatpush2.bf16.msra.mxu1 %v8734_v35 }
 0x37a   :  { %7277 = vmatpush2.bf16.msra.mxu0 %v8608_v58  ;;  %7237 = vmatprep.subr.bf16.mxu1 %v8727_v17  ;;  %v8696_v58 = vcombine.low %v2384_v44, %v2388_v47  ;;  %v2237_v44 = vld [vmem:[%s12539_s5 + $0x10f0] sm:$0xff]  ;;  %v7678_v47 = vunpack.c.h.bf16 %v11770_v63 }
 0x37b   :  { %7278 = vmatprep.subr.bf16.mxu0 %v8601_v36  ;;  %v8570_v36 = vcombine.low %v2257_v50, %v2261_v30  ;;  %v8554_v30 = vcombine.low %v2241_v48, %v2245_v39 }
 0x37c   :  { %v7702_v18 = vcombine.high %v7678_v47, %v7678_v47 }
 0x37d   :  { %7238 = vmatpush2.bf16.msra.mxu1 %v8726_v1  ;;  %v2368_v1 = vld [vmem:[%s12539_s5 + $0x1508] sm:$0xff] }
 0x37e   :  { %7279 = vmatpush2.bf16.msra.mxu0 %v8600_v34  ;;  %7239 = vmatprep.subr.bf16.mxu1 %v8719_v61  ;;  %v2372_v34 = vld [vmem:[%s12539_s5 + $0x1528] sm:$0xff] }
 0x37f   :  { %7280 = vmatprep.subr.bf16.mxu0 %v8593_v9  ;;  %v8681_v14 = vcombine.high %v2368_v1, %v2372_v34  ;;  %v8680_v51 = vcombine.low %v2368_v1, %v2372_v34  ;;  %v2217_v1 = vld [vmem:[%s12539_s5 + $0x1050] sm:$0xff] }
 0x380   :  { %v2221_v34 = vld [vmem:[%s12539_s5 + $0x1070] sm:$0xff] }
 0x381   :  { %7240 = vmatpush2.bf16.msra.mxu1 %v8718_v3  ;;  %v8688_v3 = vcombine.low %v2376_v53, %v2380_v19  ;;  %v2356_v53 = vld [vmem:[%s12539_s5 + $0x14a8] sm:$0xff] }
 0x382   :  { %7281 = vmatpush2.bf16.msra.mxu0 %v8592_v0  ;;  %7241 = vmatprep.subr.bf16.mxu1 %v8711_v33 }
 0x383   :  { %7282 = vmatprep.subr.bf16.mxu0 %v8585_v28 }
 0x385   :  { %7242 = vmatpush2.bf16.msra.mxu1 %v8710_v15  ;;  %v2360_v15 = vld [vmem:[%s12539_s5 + $0x14c8] sm:$0xff] }
 0x386   :  { %7283 = vmatpush2.bf16.msra.mxu0 %v8584_v40  ;;  %7293 = vmatprep.subr.bf16.mxu1 %v8705_v16  ;;  %v2364_v40 = vld [vmem:[%s12539_s5 + $0x14e8] sm:$0xff] }
 0x387   :  { %7334 = vmatprep.subr.bf16.mxu0 %v8579_v37  ;;  %v2233_v37 = vld [vmem:[%s12539_s5 + $0x10d0] sm:$0xff]  ;;  %v8672_v42 = vcombine.low %v2360_v15, %v2364_v40 }
 0x388   :  { %v5691_v11 = vpop.f32.mrf.mxu1  ;;  %7244 = vmatmul.mubr.bf16.vlgmr.msra.gmra.mxu1 %v11951_v52 }
 0x389   :  { %v5692_v60 = vadd.f32 %v5691_v11, %v5651_v10  ;;  %v11968_v35 = vpop.f32.mrf.mxu0  ;;  %7285 = vmatmul.mubr.bf16.vlgmr.msra.gmra.mxu0 %v11726_v2  ;;  %7294 = vmatpush1.bf16.msra.mxu1 %v8704_v22  ;;  %v8547_v10 = vcombine.high %v2233_v37, %v2237_v44  ;;  %v2225_v11 = vld [vmem:[%s12539_s5 + $0x1090] sm:$0xff] }
 0x38a   :  { %7325 = vmatprep.mubr.bf16.mxu1 %v11737_v12  ;;  %7335 = vmatpush1.bf16.msra.mxu0 %v8578_v6  ;;  %v5693_v17 = vpop.f32.mrf.mxu1  ;;  %v8673_v6 = vcombine.high %v2360_v15, %v2364_v40  ;;  %v8530_v15 = vcombine.low %v2217_v1, %v2221_v34 }
 0x38b   :  { %v7569_v55 = vsel %vm7498_vm2, %v5692_v60, -inf  ;;  %7366 = vmatprep.mubr.bf16.mxu0 %v11512_v56  ;;  %v5694_v57 = vadd.f32 %v5693_v17, %v5653_v49  ;;  %v11974_v5 = vpop.f32.mrf.mxu0  ;;  %7295 = vmatprep.subr.bf16.mxu1 %v8697_v43  ;;  %v2352_v43 = vld [vmem:[%s12539_s5 + $0x1488] sm:$0xff] }
 0x38c   :  { %v7570_v61 = vrot.slane %v7569_v55, 4  ;;  %v5695_v9 = vpop.f32.mrf.mxu1  ;;  %7336 = vmatprep.subr.bf16.mxu0 %v8571_v46  ;;  %v2229_v46 = vld [vmem:[%s12539_s5 + $0x10b0] sm:$0xff]  ;;  %v8665_v17 = vcombine.high %v2352_v43, %v2356_v53 }
 0x38d   :  { %v7576_v31 = vsel %vm7498_vm2, %v5694_v57, -inf  ;;  %v5736_v26 = vpop.f32.mrf.mxu0  ;;  %7296 = vmatpush1.bf16.msra.mxu1 %v8696_v58  ;;  %v8546_v58 = vcombine.low %v2233_v37, %v2237_v44  ;;  %v8538_v39 = vcombine.low %v2225_v11, %v2229_v46  ;;  %v2329_v37 = vld [vmem:[%s12539_s5 + $0x13d0] sm:$0xff] }
 0x38e   :  { %v7571_v0 = vmax.f32 %v7569_v55, %v7570_v61  ;;  %v7577_v33 = vrot.slane %v7576_v31, 4  ;;  %7337 = vmatpush1.bf16.msra.mxu0 %v8570_v36  ;;  %v5696_v28 = vpop.f32.mrf.mxu1  ;;  %7297 = vmatprep.subr.bf16.mxu1 %v8689_v59  ;;  %v8539_v36 = vcombine.high %v2225_v11, %v2229_v46  ;;  %v2344_v59 = vld [vmem:[%s12539_s5 + $0x1448] sm:$0xff]  ;;  %v8664_v61 = vcombine.low %v2352_v43, %v2356_v53  ;;  %v2333_v44 = vld [vmem:[%s12539_s5 + $0x13f0] sm:$0xff] }
 0x38f   :  { %v5737_v21 = vpop.f32.mrf.mxu0  ;;  %7338 = vmatprep.subr.bf16.mxu0 %v8563_v4  ;;  %v2348_v55 = vld [vmem:[%s12539_s5 + $0x1468] sm:$0xff]  ;;  %v8531_v26 = vcombine.high %v2217_v1, %v2221_v34  ;;  %v2209_v28 = vld [vmem:[%s12539_s5 + $0x1010] sm:$0xff] }
 0x390   :  { %v7572_v16 = vrot.slane %v7571_v0, 2  ;;  %v7578_v41 = vmax.f32 %v7576_v31, %v7577_v33  ;;  %v8657_v31 = vcombine.high %v2344_v59, %v2348_v55  ;;  %v8656_v21 = vcombine.low %v2344_v59, %v2348_v55  ;;  %v2325_v43 = vld [vmem:[%s12539_s5 + $0x13b0] sm:$0xff]  ;;  %v2440_v46 = vld [vmem:[%s12539_s5 + $0x1748] sm:$0xff] }
 0x391   :  { %7298 = vmatpush1.bf16.msra.mxu1 %v8688_v3  ;;  %v2336_v3 = vld [vmem:[%s12539_s5 + $0x1408] sm:$0xff] }
 0x392   :  { %v7573_v22 = vmax.f32 %v7571_v0, %v7572_v16  ;;  %v7579_v50 = vrot.slane %v7578_v41, 2  ;;  %7339 = vmatpush1.bf16.msra.mxu0 %v8562_v27  ;;  %7299 = vmatprep.subr.bf16.mxu1 %v8681_v14  ;;  %v2340_v0 = vld [vmem:[%s12539_s5 + $0x1428] sm:$0xff]  ;;  %v2213_v27 = vld [vmem:[%s12539_s5 + $0x1030] sm:$0xff] }
 0x393   :  { %7340 = vmatprep.subr.bf16.mxu0 %v8555_v8  ;;  %v8649_v40 = vcombine.high %v2336_v3, %v2340_v0  ;;  %v2456_v16 = vld [vmem:[%s12539_s5 + $0x17c8] sm:$0xff] }
 0x394   :  { %v7574_v19 = vrot.slane %v7573_v22, 1  ;;  %v7580_v63 = vmax.f32 %v7578_v41, %v7579_v50  ;;  %v2460_v41 = vld [vmem:[%s12539_s5 + $0x17e8] sm:$0xff]  ;;  %v8643_v50 = vcombine.high %v2329_v37, %v2333_v44 }
 0x395   :  { %7300 = vmatpush1.bf16.msra.mxu1 %v8680_v51  ;;  %v8522_v51 = vcombine.low %v2209_v28, %v2213_v27  ;;  %v8768_v53 = vcombine.low %v2456_v16, %v2460_v41  ;;  %v2432_v59 = vld [vmem:[%s12539_s5 + $0x1708] sm:$0xff] }
 0x396   :  { %v7575_v49 = vmax.f32 %v7573_v22, %v7574_v19  ;;  %v7581_v60 = vrot.slane %v7580_v63, 1  ;;  %7341 = vmatpush1.bf16.msra.mxu0 %v8554_v30  ;;  %7301 = vmatprep.subr.bf16.mxu1 %v8673_v6  ;;  %v8769_v22 = vcombine.high %v2456_v16, %v2460_v41  ;;  %v2448_v30 = vld [vmem:[%s12539_s5 + $0x1788] sm:$0xff]  ;;  %v8642_v19 = vcombine.low %v2329_v37, %v2333_v44 }
 0x397   :  { %7342 = vmatprep.subr.bf16.mxu0 %v8547_v10  ;;  %v2452_v6 = vld [vmem:[%s12539_s5 + $0x17a8] sm:$0xff]  ;;  %v2321_v10 = vld [vmem:[%s12539_s5 + $0x1390] sm:$0xff] }
 0x398   :  { %v7731_v57 = vmul.f32 %v7678_v47, %v7575_v49  ;;  %v7582_v4 = vmax.f32 %v7580_v63, %v7581_v60  ;;  %v8648_v47 = vcombine.low %v2336_v3, %v2340_v0  ;;  %v8761_v63 = vcombine.high %v2448_v30, %v2452_v6  ;;  %v2317_v49 = vld [vmem:[%s12539_s5 + $0x1370] sm:$0xff]  ;;  %v2436_v55 = vld [vmem:[%s12539_s5 + $0x1728] sm:$0xff] }
 0x399   :  { %7302 = vmatpush1.bf16.msra.mxu1 %v8672_v42  ;;  %v8635_v11 = vcombine.high %v2321_v10, %v2325_v43  ;;  %v2313_v42 = vld [vmem:[%s12539_s5 + $0x1350] sm:$0xff]  ;;  %v8760_v60 = vcombine.low %v2448_v30, %v2452_v6  ;;  %v8744_v3 = vcombine.low %v2432_v59, %v2436_v55  ;;  %v2408_v37 = vld [vmem:[%s12539_s5 + $0x1648] sm:$0xff] }
 0x39a   :  { %v7766_v9 = vsel %vm7745_vm3, %v7731_v57, 0.0  ;;  %v7732_v48 = vmul.f32 %v7702_v18, %v7582_v4  ;;  %7343 = vmatpush1.bf16.msra.mxu0 %v8546_v58  ;;  %7303 = vmatprep.subr.bf16.mxu1 %v8665_v17  ;;  %v2444_v18 = vld [vmem:[%s12539_s5 + $0x1768] sm:$0xff]  ;;  %v8634_v58 = vcombine.low %v2321_v10, %v2325_v43  ;;  %v2305_v57 = vld [vmem:[%s12539_s5 + $0x1310] sm:$0xff]  ;;  %v8626_v34 = vcombine.low %v2313_v42, %v2317_v49 }
 0x39b   :  { %7344 = vmatprep.subr.bf16.mxu0 %v8539_v36  ;;  %v7767_v33 = vadd.f32 %v7766_v9, %v11823_v25  ;;  %v8523_v25 = vcombine.high %v2209_v28, %v2213_v27  ;;  %v8753_v17 = vcombine.high %v2440_v46, %v2444_v18  ;;  %v8627_v36 = vcombine.high %v2313_v42, %v2317_v49  ;;  %v2309_v4 = vld [vmem:[%s12539_s5 + $0x1330] sm:$0xff]  ;;  %v2416_v27 = vld [vmem:[%s12539_s5 + $0x1688] sm:$0xff] }
 0x39c   :  { %v7768_v14 = vsel %vm7745_vm3, %v7732_v48, 0.0  ;;  %v8752_v1 = vcombine.low %v2440_v46, %v2444_v18  ;;  %v8619_v9 = vcombine.high %v2305_v57, %v2309_v4  ;;  %v2424_v48 = vld [vmem:[%s12539_s5 + $0x16c8] sm:$0xff]  ;;  %v8618_v0 = vcombine.low %v2305_v57, %v2309_v4  ;;  %v2393_v42 = vld [vmem:[%s12539_s5 + $0x15d0] sm:$0xff] }
 0x39d   :  { %7304 = vmatpush1.bf16.msra.mxu1 %v8664_v61  ;;  %v12041_v8 = vadd.f32 %v7768_v14, %v7767_v33  ;;  %v8745_v61 = vcombine.high %v2432_v59, %v2436_v55  ;;  %v2420_v14 = vld [vmem:[%s12539_s5 + $0x16a8] sm:$0xff]  ;;  %v2397_v49 = vld [vmem:[%s12539_s5 + $0x15f0] sm:$0xff]  ;;  %v2520_v55 = vrot.slane %v11699_v54, %v11243_v24 }
 0x39e   :  { %7345 = vmatpush1.bf16.msra.mxu0 %v8538_v39  ;;  %7305 = vmatprep.subr.bf16.mxu1 %v8657_v31  ;;  %v2428_v39 = vld [vmem:[%s12539_s5 + $0x16e8] sm:$0xff]  ;;  %v2297_v31 = vld [vmem:[%s12539_s5 + $0x12d0] sm:$0xff]  ;;  %v8729_v16 = vcombine.high %v2416_v27, %v2420_v14  ;;  %v8707_v59 = vcombine.high %v2393_v42, %v2397_v49 }
 0x39f   :  { %7346 = vmatprep.subr.bf16.mxu0 %v8531_v26  ;;  %v2301_v26 = vld [vmem:[%s12539_s5 + $0x12f0] sm:$0xff]  ;;  %v8737_v33 = vcombine.high %v2424_v48, %v2428_v39  ;;  %v2412_v44 = vld [vmem:[%s12539_s5 + $0x1668] sm:$0xff] }
 0x3a0   :  { %v8611_v28 = vcombine.high %v2297_v31, %v2301_v26  ;;  %v8721_v30 = vcombine.high %v2408_v37, %v2412_v44  ;;  %v2400_v10 = vld [vmem:[%s12539_s5 + $0x1608] sm:$0xff]  ;;  %v2385_v4 = vld [vmem:[%s12539_s5 + $0x1590] sm:$0xff] }
 0x3a1   :  { %7306 = vmatpush1.bf16.msra.mxu1 %v8656_v21  ;;  %v2289_v21 = vld [vmem:[%s12539_s5 + $0x1290] sm:$0xff]  ;;  %v2404_v43 = vld [vmem:[%s12539_s5 + $0x1628] sm:$0xff] }
 0x3a2   :  { %7347 = vmatpush1.bf16.msra.mxu0 %v8530_v15  ;;  %7307 = vmatprep.subr.bf16.mxu1 %v8649_v40  ;;  %v2293_v15 = vld [vmem:[%s12539_s5 + $0x12b0] sm:$0xff]  ;;  %v8736_v40 = vcombine.low %v2424_v48, %v2428_v39  ;;  %v8713_v46 = vcombine.high %v2400_v10, %v2404_v43  ;;  %v2262_v48 = vld [vmem:[%s12539_s5 + $0x11b8] sm:$0xff] }
 0x3a3   :  { %7348 = vmatprep.subr.bf16.mxu0 %v8523_v25  ;;  %v8610_v25 = vcombine.low %v2297_v31, %v2301_v26  ;;  %v8603_v41 = vcombine.high %v2289_v21, %v2293_v15  ;;  %v5733_v31 = vadd.f32 %v11968_v35, %v2520_v55  ;;  %v2254_v35 = vld [vmem:[%s12539_s5 + $0x1178] sm:$0xff] }
 0x3a4   :  { %v2238_v55 = vld [vmem:[%s12539_s5 + $0x10f8] sm:$0xff] }
 0x3a5   :  { %7308 = vmatpush1.bf16.msra.mxu1 %v8648_v47  ;;  %v2281_v47 = vld [vmem:[%s12539_s5 + $0x1250] sm:$0xff] }
 0x3a6   :  { %7349 = vmatpush1.bf16.msra.mxu0 %v8522_v51  ;;  %7309 = vmatprep.subr.bf16.mxu1 %v8769_v22  ;;  %v2285_v51 = vld [vmem:[%s12539_s5 + $0x1270] sm:$0xff]  ;;  %v8728_v22 = vcombine.low %v2416_v27, %v2420_v14 }
 0x3a7   :  { %7350 = vmatprep.subr.bf16.mxu0 %v8643_v50  ;;  %v8602_v50 = vcombine.low %v2289_v21, %v2293_v15  ;;  %v8595_v6 = vcombine.high %v2281_v47, %v2285_v51 }
 0x3a9   :  { %7310 = vmatpush2.bf16.msra.mxu1 %v8768_v53  ;;  %v2273_v53 = vld [vmem:[%s12539_s5 + $0x1210] sm:$0xff] }
 0x3aa   :  { %7351 = vmatpush2.bf16.msra.mxu0 %v8642_v19  ;;  %7311 = vmatprep.subr.bf16.mxu1 %v8761_v63  ;;  %v2277_v19 = vld [vmem:[%s12539_s5 + $0x1230] sm:$0xff]  ;;  %v8720_v63 = vcombine.low %v2408_v37, %v2412_v44 }
 0x3ab   :  { %7352 = vmatprep.subr.bf16.mxu0 %v8635_v11  ;;  %v8594_v11 = vcombine.low %v2281_v47, %v2285_v51  ;;  %v8587_v18 = vcombine.high %v2273_v53, %v2277_v19  ;;  %v2369_v47 = vld [vmem:[%s12539_s5 + $0x1510] sm:$0xff] }
 0x3ac   :  { %v2373_v51 = vld [vmem:[%s12539_s5 + $0x1530] sm:$0xff] }
 0x3ad   :  { %7312 = vmatpush2.bf16.msra.mxu1 %v8760_v60  ;;  %v2266_v60 = vld [vmem:[%s12539_s5 + $0x11d8] sm:$0xff] }
 0x3ae   :  { %7353 = vmatpush2.bf16.msra.mxu0 %v8634_v58  ;;  %7313 = vmatprep.subr.bf16.mxu1 %v8753_v17  ;;  %v2270_v58 = vld [vmem:[%s12539_s5 + $0x11f8] sm:$0xff]  ;;  %v8712_v17 = vcombine.low %v2400_v10, %v2404_v43 }
 0x3af   :  { %7354 = vmatprep.subr.bf16.mxu0 %v8627_v36  ;;  %v8586_v36 = vcombine.low %v2273_v53, %v2277_v19  ;;  %v8581_v57 = vcombine.high %v2266_v60, %v2270_v58  ;;  %v8580_v39 = vcombine.low %v2266_v60, %v2270_v58  ;;  %v12206_v19 = vld [vmem:[%s12542_s7 + $0x18] sm:$0xff]  ;;  %v2361_v60 = vld [vmem:[%s12539_s5 + $0x14d0] sm:$0xff] }
 0x3b0   :  { %v2365_v58 = vld [vmem:[%s12539_s5 + $0x14f0] sm:$0xff] }
 0x3b1   :  { %7314 = vmatpush2.bf16.msra.mxu1 %v8752_v1  ;;  %v2389_v1 = vld [vmem:[%s12539_s5 + $0x15b0] sm:$0xff] }
 0x3b2   :  { %7355 = vmatpush2.bf16.msra.mxu0 %v8626_v34  ;;  %7315 = vmatprep.subr.bf16.mxu1 %v8745_v61  ;;  %v2524_v34 = vrot.slane %v11699_v54, %v11258_v20  ;;  %v8706_v61 = vcombine.low %v2393_v42, %v2397_v49  ;;  %v8699_v26 = vcombine.high %v2385_v4, %v2389_v1  ;;  %v2377_v54 = vld [vmem:[%s12539_s5 + $0x1550] sm:$0xff] }
 0x3b3   :  { %7356 = vmatprep.subr.bf16.mxu0 %v8619_v9  ;;  %v2258_v9 = vld [vmem:[%s12539_s5 + $0x1198] sm:$0xff]  ;;  %v8698_v15 = vcombine.low %v2385_v4, %v2389_v1  ;;  %v8682_v4 = vcombine.low %v2369_v47, %v2373_v51 }
 0x3b4   :  { %v5735_v27 = vadd.f32 %v11974_v5, %v2524_v34 }
 0x3b5   :  { %7316 = vmatpush2.bf16.msra.mxu1 %v8744_v3  ;;  %v2381_v3 = vld [vmem:[%s12539_s5 + $0x1570] sm:$0xff] }
 0x3b6   :  { %7357 = vmatpush2.bf16.msra.mxu0 %v8618_v0  ;;  %7317 = vmatprep.subr.bf16.mxu1 %v8737_v33  ;;  %v8573_v33 = vcombine.high %v2258_v9, %v2262_v48  ;;  %v8690_v43 = vcombine.low %v2377_v54, %v2381_v3 }
 0x3b7   :  { %7358 = vmatprep.subr.bf16.mxu0 %v8611_v28  ;;  %v2250_v28 = vld [vmem:[%s12539_s5 + $0x1158] sm:$0xff] }
 0x3b8   :  { %v8565_v5 = vcombine.high %v2250_v28, %v2254_v35 }
 0x3b9   :  { %7318 = vmatpush2.bf16.msra.mxu1 %v8736_v40 }
 0x3ba   :  { %7359 = vmatpush2.bf16.msra.mxu0 %v8610_v25  ;;  %7319 = vmatprep.subr.bf16.mxu1 %v8729_v16  ;;  %v8572_v25 = vcombine.low %v2258_v9, %v2262_v48  ;;  %v8691_v16 = vcombine.high %v2377_v54, %v2381_v3  ;;  %v8675_v9 = vcombine.high %v2361_v60, %v2365_v58  ;;  %v2226_v3 = vld [vmem:[%s12539_s5 + $0x1098] sm:$0xff] }
 0x3bb   :  { %7360 = vmatprep.subr.bf16.mxu0 %v8603_v41 }
 0x3bd   :  { %7320 = vmatpush2.bf16.msra.mxu1 %v8728_v22 }
 0x3be   :  { %7361 = vmatpush2.bf16.msra.mxu0 %v8602_v50  ;;  %7321 = vmatprep.subr.bf16.mxu1 %v8721_v30  ;;  %v2246_v30 = vld [vmem:[%s12539_s5 + $0x1138] sm:$0xff] }
 0x3bf   :  { %7362 = vmatprep.subr.bf16.mxu0 %v8595_v6 }
 0x3c1   :  { %7322 = vmatpush2.bf16.msra.mxu1 %v8720_v63 }
 0x3c2   :  { %7363 = vmatpush2.bf16.msra.mxu0 %v8594_v11  ;;  %7323 = vmatprep.subr.bf16.mxu1 %v8713_v46  ;;  %v8564_v46 = vcombine.low %v2250_v28, %v2254_v35 }
 0x3c3   :  { %7364 = vmatprep.subr.bf16.mxu0 %v8587_v18  ;;  %v8683_v18 = vcombine.high %v2369_v47, %v2373_v51  ;;  %v2222_v47 = vld [vmem:[%s12539_s5 + $0x1078] sm:$0xff] }
 0x3c5   :  { %7324 = vmatpush2.bf16.msra.mxu1 %v8712_v17 }
 0x3c6   :  { %7365 = vmatpush2.bf16.msra.mxu0 %v8586_v36  ;;  %7375 = vmatprep.subr.bf16.mxu1 %v8707_v59  ;;  %v2234_v59 = vld [vmem:[%s12539_s5 + $0x10d8] sm:$0xff] }
 0x3c7   :  { %7416 = vmatprep.subr.bf16.mxu0 %v8581_v57  ;;  %v7679_v57 = vunpack.c.l.bf16 %v12206_v19  ;;  %v8549_v48 = vcombine.high %v2234_v59, %v2238_v55  ;;  %v8548_v28 = vcombine.low %v2234_v59, %v2238_v55  ;;  %v2334_v59 = vld [vmem:[%s12539_s5 + $0x13f8] sm:$0xff] }
 0x3c8   :  { %v5773_v0 = vpop.f32.mrf.mxu1  ;;  %7326 = vmatmul.mubr.bf16.vlgmr.msra.gmra.mxu1 %v11951_v52 }
 0x3c9   :  { %v5774_v14 = vadd.f32 %v5773_v0, %v5733_v31  ;;  %v12182_v21 = vpop.f32.mrf.mxu0  ;;  %7367 = vmatmul.mubr.bf16.vlgmr.msra.gmra.mxu0 %v11726_v2  ;;  %7376 = vmatpush1.bf16.msra.mxu1 %v8706_v61  ;;  %v2357_v31 = vld [vmem:[%s12539_s5 + $0x14b0] sm:$0xff]  ;;  %v2230_v0 = vld [vmem:[%s12539_s5 + $0x10b8] sm:$0xff] }
 0x3ca   :  { %7407 = vmatprep.mubr.bf16.mxu1 %v11737_v12  ;;  %7417 = vmatpush1.bf16.msra.mxu0 %v8580_v39  ;;  %v5775_v40 = vpop.f32.mrf.mxu1  ;;  %v2353_v39 = vld [vmem:[%s12539_s5 + $0x1490] sm:$0xff] }
 0x3cb   :  { %v7583_v41 = vsel %vm7498_vm2, %v5774_v14, -inf  ;;  %7448 = vmatprep.mubr.bf16.mxu0 %v11512_v56  ;;  %v5776_v37 = vadd.f32 %v5775_v40, %v5735_v27  ;;  %v12188_v44 = vpop.f32.mrf.mxu0  ;;  %7377 = vmatprep.subr.bf16.mxu1 %v8699_v26  ;;  %v2242_v56 = vld [vmem:[%s12539_s5 + $0x1118] sm:$0xff]  ;;  %v8667_v14 = vcombine.high %v2353_v39, %v2357_v31  ;;  %v8541_v40 = vcombine.high %v2226_v3, %v2230_v0 }
 0x3cc   :  { %v7584_v22 = vrot.slane %v7583_v41, 4  ;;  %v5777_v50 = vpop.f32.mrf.mxu1  ;;  %7418 = vmatprep.subr.bf16.mxu0 %v8573_v33  ;;  %v8557_v49 = vcombine.high %v2242_v56, %v2246_v30  ;;  %v8556_v61 = vcombine.low %v2242_v56, %v2246_v30  ;;  %v8674_v33 = vcombine.low %v2361_v60, %v2365_v58  ;;  %v2457_v58 = vld [vmem:[%s12539_s5 + $0x17d0] sm:$0xff] }
 0x3cd   :  { %v7590_v6 = vsel %vm7498_vm2, %v5776_v37, -inf  ;;  %v5818_v10 = vpop.f32.mrf.mxu0  ;;  %7378 = vmatpush1.bf16.msra.mxu1 %v8698_v15  ;;  %v7703_v15 = vcombine.high %v7679_v57, %v7679_v57  ;;  %v8666_v51 = vcombine.low %v2353_v39, %v2357_v31 }
 0x3ce   :  { %v7585_v53 = vmax.f32 %v7583_v41, %v7584_v22  ;;  %v7591_v63 = vrot.slane %v7590_v6, 4  ;;  %7419 = vmatpush1.bf16.msra.mxu0 %v8572_v25  ;;  %v5778_v11 = vpop.f32.mrf.mxu1  ;;  %7379 = vmatprep.subr.bf16.mxu1 %v8691_v16  ;;  %v2345_v25 = vld [vmem:[%s12539_s5 + $0x1450] sm:$0xff]  ;;  %v8540_v22 = vcombine.low %v2226_v3, %v2230_v0 }
 0x3cf   :  { %v5819_v42 = vpop.f32.mrf.mxu0  ;;  %7420 = vmatprep.subr.bf16.mxu0 %v8565_v5  ;;  %v2349_v16 = vld [vmem:[%s12539_s5 + $0x1470] sm:$0xff]  ;;  %v2218_v5 = vld [vmem:[%s12539_s5 + $0x1058] sm:$0xff] }
 0x3d0   :  { %v7586_v17 = vrot.slane %v7585_v53, 2  ;;  %v7592_v36 = vmax.f32 %v7590_v6, %v7591_v63  ;;  %v8659_v50 = vcombine.high %v2345_v25, %v2349_v16  ;;  %v8533_v6 = vcombine.high %v2218_v5, %v2222_v47  ;;  %v2337_v10 = vld [vmem:[%s12539_s5 + $0x1410] sm:$0xff]  ;;  %v2210_v63 = vld [vmem:[%s12539_s5 + $0x1018] sm:$0xff] }
 0x3d1   :  { %7380 = vmatpush1.bf16.msra.mxu1 %v8690_v43  ;;  %v2341_v43 = vld [vmem:[%s12539_s5 + $0x1430] sm:$0xff]  ;;  %v2214_v11 = vld [vmem:[%s12539_s5 + $0x1038] sm:$0xff] }
 0x3d2   :  { %v7587_v1 = vmax.f32 %v7585_v53, %v7586_v17  ;;  %v7593_v34 = vrot.slane %v7592_v36, 2  ;;  %7421 = vmatpush1.bf16.msra.mxu0 %v8564_v46  ;;  %7381 = vmatprep.subr.bf16.mxu1 %v8683_v18  ;;  %v8658_v18 = vcombine.low %v2345_v25, %v2349_v16  ;;  %v8651_v60 = vcombine.high %v2337_v10, %v2341_v43  ;;  %v2461_v17 = vld [vmem:[%s12539_s5 + $0x17f0] sm:$0xff]  ;;  %v2306_v16 = vld [vmem:[%s12539_s5 + $0x1318] sm:$0xff] }
 0x3d3   :  { %7422 = vmatprep.subr.bf16.mxu0 %v8557_v49  ;;  %v8532_v49 = vcombine.low %v2218_v5, %v2222_v47  ;;  %v8650_v55 = vcombine.low %v2337_v10, %v2341_v43  ;;  %v8770_v39 = vcombine.low %v2457_v58, %v2461_v17  ;;  %v2441_v3 = vld [vmem:[%s12539_s5 + $0x1750] sm:$0xff] }
 0x3d4   :  { %v7588_v26 = vrot.slane %v7587_v1, 1  ;;  %v7594_v54 = vmax.f32 %v7592_v36, %v7593_v34  ;;  %v2330_v36 = vld [vmem:[%s12539_s5 + $0x13d8] sm:$0xff]  ;;  %v2449_v34 = vld [vmem:[%s12539_s5 + $0x1790] sm:$0xff] }
 0x3d5   :  { %7382 = vmatpush1.bf16.msra.mxu1 %v8682_v4  ;;  %v8771_v4 = vcombine.high %v2457_v58, %v2461_v17  ;;  %v8644_v31 = vcombine.low %v2330_v36, %v2334_v59  ;;  %v2445_v0 = vld [vmem:[%s12539_s5 + $0x1770] sm:$0xff] }
 0x3d6   :  { %v7589_v35 = vmax.f32 %v7587_v1, %v7588_v26  ;;  %v7595_v27 = vrot.slane %v7594_v54, 1  ;;  %7423 = vmatpush1.bf16.msra.mxu0 %v8556_v61  ;;  %7383 = vmatprep.subr.bf16.mxu1 %v8675_v9  ;;  %v8645_v1 = vcombine.high %v2330_v36, %v2334_v59  ;;  %v2453_v61 = vld [vmem:[%s12539_s5 + $0x17b0] sm:$0xff]  ;;  %v2322_v9 = vld [vmem:[%s12539_s5 + $0x1398] sm:$0xff] }
 0x3d7   :  { %7424 = vmatprep.subr.bf16.mxu0 %v8549_v48  ;;  %v2326_v48 = vld [vmem:[%s12539_s5 + $0x13b8] sm:$0xff]  ;;  %v8763_v26 = vcombine.high %v2449_v34, %v2453_v61  ;;  %v2437_v25 = vld [vmem:[%s12539_s5 + $0x1730] sm:$0xff] }
 0x3d8   :  { %v7733_v41 = vmul.f32 %v7679_v57, %v7589_v35  ;;  %v7596_v37 = vmax.f32 %v7594_v54, %v7595_v27  ;;  %v8524_v57 = vcombine.low %v2210_v63, %v2214_v11  ;;  %v8637_v54 = vcombine.high %v2322_v9, %v2326_v48  ;;  %v2409_v17 = vld [vmem:[%s12539_s5 + $0x1650] sm:$0xff]  ;;  %v2282_v59 = vld [vmem:[%s12539_s5 + $0x1258] sm:$0xff] }
 0x3d9   :  { %7384 = vmatpush1.bf16.msra.mxu1 %v8674_v33  ;;  %v2314_v33 = vld [vmem:[%s12539_s5 + $0x1358] sm:$0xff]  ;;  %v8762_v35 = vcombine.low %v2449_v34, %v2453_v61  ;;  %v8636_v27 = vcombine.low %v2322_v9, %v2326_v48  ;;  %v2413_v36 = vld [vmem:[%s12539_s5 + $0x1670] sm:$0xff] }
 0x3da   :  { %7425 = vmatpush1.bf16.msra.mxu0 %v8548_v28  ;;  %7385 = vmatprep.subr.bf16.mxu1 %v8667_v14  ;;  %v7734_v56 = vmul.f32 %v7703_v15, %v7596_v37  ;;  %v7770_v30 = vsel %vm7745_vm3, %v7733_v41, 0.0  ;;  %v2318_v28 = vld [vmem:[%s12539_s5 + $0x1378] sm:$0xff]  ;;  %v8755_v14 = vcombine.high %v2441_v3, %v2445_v0  ;;  %v8754_v37 = vcombine.low %v2441_v3, %v2445_v0  ;;  %v2401_v61 = vld [vmem:[%s12539_s5 + $0x1610] sm:$0xff] }
 0x3db   :  { %7426 = vmatprep.subr.bf16.mxu0 %v8541_v40  ;;  %v7771_v53 = vadd.f32 %v7770_v30, %v12041_v8  ;;  %v8525_v8 = vcombine.high %v2210_v63, %v2214_v11  ;;  %v8629_v15 = vcombine.high %v2314_v33, %v2318_v28  ;;  %v2433_v40 = vld [vmem:[%s12539_s5 + $0x1710] sm:$0xff]  ;;  %v2310_v41 = vld [vmem:[%s12539_s5 + $0x1338] sm:$0xff]  ;;  %v8628_v5 = vcombine.low %v2314_v33, %v2318_v28 }
 0x3dc   :  { %v7772_v46 = vsel %vm7745_vm3, %v7734_v56, 0.0  ;;  %v8747_v47 = vcombine.high %v2433_v40, %v2437_v25  ;;  %v2298_v56 = vld [vmem:[%s12539_s5 + $0x12d8] sm:$0xff]  ;;  %v8620_v10 = vcombine.low %v2306_v16, %v2310_v41  ;;  %v2417_v63 = vld [vmem:[%s12539_s5 + $0x1690] sm:$0xff] }
 0x3dd   :  { %7386 = vmatpush1.bf16.msra.mxu1 %v8666_v51  ;;  %v12260_v42 = vadd.f32 %v7772_v46, %v7771_v53  ;;  %v8621_v51 = vcombine.high %v2306_v16, %v2310_v41  ;;  %v2302_v30 = vld [vmem:[%s12539_s5 + $0x12f8] sm:$0xff]  ;;  %v2421_v11 = vld [vmem:[%s12539_s5 + $0x16b0] sm:$0xff] }
 0x3de   :  { %7427 = vmatpush1.bf16.msra.mxu0 %v8540_v22  ;;  %7387 = vmatprep.subr.bf16.mxu1 %v8659_v50  ;;  %v2425_v22 = vld [vmem:[%s12539_s5 + $0x16d0] sm:$0xff]  ;;  %v8613_v53 = vcombine.high %v2298_v56, %v2302_v30  ;;  %v2290_v46 = vld [vmem:[%s12539_s5 + $0x1298] sm:$0xff] }
 0x3df   :  { %7428 = vmatprep.subr.bf16.mxu0 %v8533_v6  ;;  %v2429_v50 = vld [vmem:[%s12539_s5 + $0x16f0] sm:$0xff]  ;;  %v8746_v6 = vcombine.low %v2433_v40, %v2437_v25  ;;  %v2274_v48 = vld [vmem:[%s12539_s5 + $0x1218] sm:$0xff] }
 0x3e0   :  { %v8739_v43 = vcombine.high %v2425_v22, %v2429_v50  ;;  %v2405_v9 = vld [vmem:[%s12539_s5 + $0x1630] sm:$0xff]  ;;  %v2394_v0 = vld [vmem:[%s12539_s5 + $0x15d8] sm:$0xff] }
 0x3e1   :  { %7388 = vmatpush1.bf16.msra.mxu1 %v8658_v18  ;;  %v2294_v18 = vld [vmem:[%s12539_s5 + $0x12b8] sm:$0xff]  ;;  %v8714_v28 = vcombine.low %v2401_v61, %v2405_v9 }
 0x3e2   :  { %7429 = vmatpush1.bf16.msra.mxu0 %v8532_v49  ;;  %7389 = vmatprep.subr.bf16.mxu1 %v8651_v60  ;;  %v8738_v49 = vcombine.low %v2425_v22, %v2429_v50  ;;  %v8612_v60 = vcombine.low %v2298_v56, %v2302_v30  ;;  %v8605_v58 = vcombine.high %v2290_v46, %v2294_v18  ;;  %v2398_v33 = vld [vmem:[%s12539_s5 + $0x15f8] sm:$0xff] }
 0x3e3   :  { %7430 = vmatprep.subr.bf16.mxu0 %v8525_v8  ;;  %v8731_v8 = vcombine.high %v2417_v63, %v2421_v11  ;;  %v2386_v40 = vld [vmem:[%s12539_s5 + $0x1598] sm:$0xff]  ;;  %v8708_v41 = vcombine.low %v2394_v0, %v2398_v33 }
 0x3e4   :  { %v2390_v25 = vld [vmem:[%s12539_s5 + $0x15b8] sm:$0xff] }
 0x3e5   :  { %7390 = vmatpush1.bf16.msra.mxu1 %v8650_v55  ;;  %v2286_v55 = vld [vmem:[%s12539_s5 + $0x1278] sm:$0xff] }
 0x3e6   :  { %7431 = vmatpush1.bf16.msra.mxu0 %v8524_v57  ;;  %7391 = vmatprep.subr.bf16.mxu1 %v8771_v4  ;;  %v8730_v57 = vcombine.low %v2417_v63, %v2421_v11  ;;  %v8604_v4 = vcombine.low %v2290_v46, %v2294_v18  ;;  %v8597_v34 = vcombine.high %v2282_v59, %v2286_v55 }
 0x3e7   :  { %7432 = vmatprep.subr.bf16.mxu0 %v8645_v1  ;;  %v8723_v1 = vcombine.high %v2409_v17, %v2413_v36 }
 0x3e9   :  { %7392 = vmatpush2.bf16.msra.mxu1 %v8770_v39  ;;  %v2278_v39 = vld [vmem:[%s12539_s5 + $0x1238] sm:$0xff] }
 0x3ea   :  { %7433 = vmatpush2.bf16.msra.mxu0 %v8644_v31  ;;  %7393 = vmatprep.subr.bf16.mxu1 %v8763_v26  ;;  %v8722_v31 = vcombine.low %v2409_v17, %v2413_v36  ;;  %v8596_v26 = vcombine.low %v2282_v59, %v2286_v55  ;;  %v8589_v3 = vcombine.high %v2274_v48, %v2278_v39  ;;  %v2362_v59 = vld [vmem:[%s12539_s5 + $0x14d8] sm:$0xff] }
 0x3eb   :  { %7434 = vmatprep.subr.bf16.mxu0 %v8637_v54  ;;  %v8715_v54 = vcombine.high %v2401_v61, %v2405_v9  ;;  %v2366_v55 = vld [vmem:[%s12539_s5 + $0x14f8] sm:$0xff] }
 0x3ec   :  { %v8677_v9 = vcombine.high %v2362_v59, %v2366_v55 }
 0x3ed   :  { %7394 = vmatpush2.bf16.msra.mxu1 %v8762_v35  ;;  %v8588_v35 = vcombine.low %v2274_v48, %v2278_v39  ;;  %v7680_v48 = vunpack.c.h.bf16 %v12206_v19  ;;  %v2354_v39 = vld [vmem:[%s12539_s5 + $0x1498] sm:$0xff] }
 0x3ee   :  { %7435 = vmatpush2.bf16.msra.mxu0 %v8636_v27  ;;  %7395 = vmatprep.subr.bf16.mxu1 %v8755_v14  ;;  %v8709_v27 = vcombine.high %v2394_v0, %v2398_v33  ;;  %v9009_v14 = vld [vmem:[%s12541_s6 + $0x8] sm:$0xff]  ;;  %v2346_v19 = vld [vmem:[%s12539_s5 + $0x1458] sm:$0xff] }
 0x3ef   :  { %7436 = vmatprep.subr.bf16.mxu0 %v8629_v15  ;;  %v2528_v15 = vrot.slane %v9009_v14, %v11468_v62  ;;  %v2532_v16 = vrot.slane %v9009_v14, %v11483_v23 }
 0x3f1   :  { %7396 = vmatpush2.bf16.msra.mxu1 %v8754_v37  ;;  %v8701_v37 = vcombine.high %v2386_v40, %v2390_v25  ;;  %v5817_v50 = vadd.f32 %v12188_v44, %v2532_v16  ;;  %v2370_v44 = vld [vmem:[%s12539_s5 + $0x1518] sm:$0xff] }
 0x3f2   :  { %7437 = vmatpush2.bf16.msra.mxu0 %v8628_v5  ;;  %7397 = vmatprep.subr.bf16.mxu1 %v8747_v47  ;;  %v5815_v5 = vadd.f32 %v12182_v21, %v2528_v15  ;;  %v2378_v47 = vld [vmem:[%s12539_s5 + $0x1558] sm:$0xff]  ;;  %v8700_v21 = vcombine.low %v2386_v40, %v2390_v25 }
 0x3f3   :  { %7438 = vmatprep.subr.bf16.mxu0 %v8621_v51  ;;  %v2382_v51 = vld [vmem:[%s12539_s5 + $0x1578] sm:$0xff] }
 0x3f5   :  { %7398 = vmatpush2.bf16.msra.mxu1 %v8746_v6 }
 0x3f6   :  { %7439 = vmatpush2.bf16.msra.mxu0 %v8620_v10  ;;  %7399 = vmatprep.subr.bf16.mxu1 %v8739_v43  ;;  %v8693_v10 = vcombine.high %v2378_v47, %v2382_v51 }
 0x3f7   :  { %7440 = vmatprep.subr.bf16.mxu0 %v8613_v53 }
 0x3f9   :  { %7400 = vmatpush2.bf16.msra.mxu1 %v8738_v49  ;;  %v8692_v49 = vcombine.low %v2378_v47, %v2382_v51  ;;  %v2342_v47 = vld [vmem:[%s12539_s5 + $0x1438] sm:$0xff] }
 0x3fa   :  { %7441 = vmatpush2.bf16.msra.mxu0 %v8612_v60  ;;  %7401 = vmatprep.subr.bf16.mxu1 %v8731_v8 }
 0x3fb   :  { %7442 = vmatprep.subr.bf16.mxu0 %v8605_v58 }
 0x3fd   :  { %7402 = vmatpush2.bf16.msra.mxu1 %v8730_v57 }
 0x3fe   :  { %7443 = vmatpush2.bf16.msra.mxu0 %v8604_v4  ;;  %7403 = vmatprep.subr.bf16.mxu1 %v8723_v1 }
 0x3ff   :  { %7444 = vmatprep.subr.bf16.mxu0 %v8597_v34 }
 0x401   :  { %7404 = vmatpush2.bf16.msra.mxu1 %v8722_v31  ;;  %v2358_v31 = vld [vmem:[%s12539_s5 + $0x14b8] sm:$0xff] }
 0x402   :  { %7445 = vmatpush2.bf16.msra.mxu0 %v8596_v26  ;;  %7405 = vmatprep.subr.bf16.mxu1 %v8715_v54  ;;  %v8668_v40 = vcombine.low %v2354_v39, %v2358_v31 }
 0x403   :  { %7446 = vmatprep.subr.bf16.mxu0 %v8589_v3  ;;  %v8676_v3 = vcombine.low %v2362_v59, %v2366_v55  ;;  %v12459_v55 = vld [vmem:[%s12543_s8] sm:$0x7] }
 0x405   :  { %7406 = vmatpush2.bf16.msra.mxu1 %v8714_v28  ;;  %v8669_v28 = vcombine.high %v2354_v39, %v2358_v31  ;;  %v2414_v39 = vld [vmem:[%s12539_s5 + $0x1678] sm:$0xff] }
 0x406   :  { %7447 = vmatpush2.bf16.msra.mxu0 %v8588_v35  ;;  %7457 = vmatprep.subr.bf16.mxu1 %v8709_v27  ;;  %v7704_v35 = vcombine.high %v7680_v48, %v7680_v48  ;;  %v2350_v27 = vld [vmem:[%s12539_s5 + $0x1478] sm:$0xff] }
 0x408   :  { %v5855_v22 = vpop.f32.mrf.mxu1  ;;  %7408 = vmatmul.mubr.bf16.vlgmr.msra.gmra.mxu1 %v11951_v52 }
 0x409   :  { %v5856_v56 = vadd.f32 %v5855_v22, %v5815_v5  ;;  %v12384_v30 = vpop.f32.mrf.mxu0  ;;  %7449 = vmatmul.mubr.bf16.vlgmr.msra.gmra.mxu0 %v11726_v2  ;;  %7458 = vmatpush1.bf16.msra.mxu1 %v8708_v41  ;;  %v2374_v2 = vld [vmem:[%s12539_s5 + $0x1538] sm:$0xff]  ;;  %v8661_v41 = vcombine.high %v2346_v19, %v2350_v27 }
 0x40a   :  { %7489 = vmatprep.mubr.bf16.mxu1 %v11737_v12  ;;  %v5857_v6 = vpop.f32.mrf.mxu1  ;;  %7459 = vmatprep.subr.bf16.mxu1 %v8701_v37  ;;  %v8685_v17 = vcombine.high %v2370_v44, %v2374_v2  ;;  %v8684_v1 = vcombine.low %v2370_v44, %v2374_v2  ;;  %v2338_v5 = vld [vmem:[%s12539_s5 + $0x1418] sm:$0xff] }
 0x40b   :  { %v7597_v43 = vsel %vm7498_vm2, %v5856_v56, -inf  ;;  %v5858_v53 = vadd.f32 %v5857_v6, %v5817_v50  ;;  %v12389_v63 = vpop.f32.mrf.mxu0  ;;  %v8660_v50 = vcombine.low %v2346_v19, %v2350_v27  ;;  %v8653_v56 = vcombine.high %v2338_v5, %v2342_v47 }
 0x40c   :  { %v7598_v11 = vrot.slane %v7597_v43, 4  ;;  %v5859_v46 = vpop.f32.mrf.mxu1  ;;  %v8652_v6 = vcombine.low %v2338_v5, %v2342_v47 }
 0x40d   :  { %v7604_v12 = vsel %vm7498_vm2, %v5858_v53, -inf  ;;  %v7208_v18 = vpop.f32.mrf.mxu0  ;;  %7460 = vmatpush1.bf16.msra.mxu1 %v8700_v21  ;;  %v2462_v21 = vld [vmem:[%s12539_s5 + $0x17f8] sm:$0xff] }
 0x40e   :  { %v7599_v60 = vmax.f32 %v7597_v43, %v7598_v11  ;;  %v7605_v8 = vrot.slane %v7604_v12, 4  ;;  %v5860_v58 = vpop.f32.mrf.mxu1  ;;  %7461 = vmatprep.subr.bf16.mxu1 %v8693_v10  ;;  %v2450_v43 = vld [vmem:[%s12539_s5 + $0x1798] sm:$0xff] }
 0x40f   :  { %v7209_v36 = vpop.f32.mrf.mxu0  ;;  %v2454_v53 = vld [vmem:[%s12539_s5 + $0x17b8] sm:$0xff] }
 0x410   :  { %v7600_v57 = vrot.slane %v7599_v60, 2  ;;  %v7606_v4 = vmax.f32 %v7604_v12, %v7605_v8  ;;  %v8765_v2 = vcombine.high %v2450_v43, %v2454_v53  ;;  %v2442_v11 = vld [vmem:[%s12539_s5 + $0x1758] sm:$0xff]  ;;  %v8764_v12 = vcombine.low %v2450_v43, %v2454_v53 }
 0x411   :  { %7462 = vmatpush1.bf16.msra.mxu1 %v8692_v49  ;;  %v2446_v46 = vld [vmem:[%s12539_s5 + $0x1778] sm:$0xff] }
 0x412   :  { %v7601_v34 = vmax.f32 %v7599_v60, %v7600_v57  ;;  %v7607_v61 = vrot.slane %v7606_v4, 2  ;;  %7463 = vmatprep.subr.bf16.mxu1 %v8685_v17  ;;  %v8757_v18 = vcombine.high %v2442_v11, %v2446_v46  ;;  %v2434_v49 = vld [vmem:[%s12539_s5 + $0x1718] sm:$0xff]  ;;  %v8756_v8 = vcombine.low %v2442_v11, %v2446_v46 }
 0x413   :  { %v2438_v60 = vld [vmem:[%s12539_s5 + $0x1738] sm:$0xff]  ;;  %v7809_v57 = vrot.slane %v12459_v55, %v9710_v32 }
 0x414   :  { %v7602_v26 = vrot.slane %v7601_v34, 1  ;;  %v7608_v54 = vmax.f32 %v7606_v4, %v7607_v61  ;;  %v8749_v58 = vcombine.high %v2434_v49, %v2438_v60  ;;  %v2426_v17 = vld [vmem:[%s12539_s5 + $0x16d8] sm:$0xff]  ;;  %v8748_v59 = vcombine.low %v2434_v49, %v2438_v60 }
 0x415   :  { %7464 = vmatpush1.bf16.msra.mxu1 %v8684_v1  ;;  %v2430_v36 = vld [vmem:[%s12539_s5 + $0x16f8] sm:$0xff] }
 0x416   :  { %v7603_v0 = vmax.f32 %v7601_v34, %v7602_v26  ;;  %v7609_v33 = vrot.slane %v7608_v54, 1  ;;  %7465 = vmatprep.subr.bf16.mxu1 %v8677_v9  ;;  %v8741_v4 = vcombine.high %v2426_v17, %v2430_v36  ;;  %v2418_v1 = vld [vmem:[%s12539_s5 + $0x1698] sm:$0xff]  ;;  %v8740_v61 = vcombine.low %v2426_v17, %v2430_v36 }
 0x417   :  { %v2422_v34 = vld [vmem:[%s12539_s5 + $0x16b8] sm:$0xff] }
 0x418   :  { %v7610_v14 = vmax.f32 %v7608_v54, %v7609_v33  ;;  %v7735_v15 = vmul.f32 %v7680_v48, %v7603_v0  ;;  %v8733_v9 = vcombine.high %v2418_v1, %v2422_v34  ;;  %v2410_v48 = vld [vmem:[%s12539_s5 + $0x1658] sm:$0xff]  ;;  %v8732_v31 = vcombine.low %v2418_v1, %v2422_v34 }
 0x419   :  { %7466 = vmatpush1.bf16.msra.mxu1 %v8676_v3  ;;  %v8725_v26 = vcombine.high %v2410_v48, %v2414_v39  ;;  %v2402_v54 = vld [vmem:[%s12539_s5 + $0x1618] sm:$0xff]  ;;  %v8724_v0 = vcombine.low %v2410_v48, %v2414_v39 }
 0x41a   :  { %7467 = vmatprep.subr.bf16.mxu1 %v8669_v28  ;;  %v7736_v25 = vmul.f32 %v7704_v35, %v7610_v14  ;;  %v7774_v16 = vsel %vm7745_vm3, %v7735_v15, 0.0  ;;  %v2406_v3 = vld [vmem:[%s12539_s5 + $0x1638] sm:$0xff]  ;;  %v12484_v28 = vld [vmem:[%s12541_s6 + $0x10] sm:$0xff] }
 0x41b   :  { %v7775_v37 = vadd.f32 %v7774_v16, %v12260_v42  ;;  %v2458_v42 = vld [vmem:[%s12539_s5 + $0x17d8] sm:$0xff]  ;;  %v8717_v33 = vcombine.high %v2402_v54, %v2406_v3  ;;  %v8716_v35 = vcombine.low %v2402_v54, %v2406_v3  ;;  %v2536_v19 = vrot.slane %v12484_v28, %v9702_v29 }
 0x41c   :  { %v7776_v51 = vsel %vm7745_vm3, %v7736_v25, 0.0  ;;  %v8773_v10 = vcombine.high %v2458_v42, %v2462_v21  ;;  %v8772_v44 = vcombine.low %v2458_v42, %v2462_v21  ;;  %v2540_v27 = vrot.slane %v12484_v28, %v9710_v32 }
 0x41d   :  { %7468 = vmatpush1.bf16.msra.mxu1 %v8668_v40  ;;  %v7777_v22 = vadd.f32 %v7776_v51, %v7775_v37  ;;  %v7205_v14 = vadd.f32 %v12384_v30, %v2536_v19  ;;  %v2544_v17 = vrot.slane %v12484_v28, %v9793_v7  ;;  %v2548_v36 = vrot.slane %v12484_v28, %v9796_v13 }
 0x41e   :  { %7469 = vmatprep.subr.bf16.mxu1 %v8661_v41  ;;  %v7207_v40 = vadd.f32 %v12389_v63, %v2540_v27 }
 0x41f   :  { %7778 = vadd.xlane.f32.xlu0 %v7777_v22 }
 0x421   :  { %7470 = vmatpush1.bf16.msra.mxu1 %v8660_v50 }
 0x422   :  { %7471 = vmatprep.subr.bf16.mxu1 %v8653_v56 }
 0x425   :  { %7472 = vmatpush1.bf16.msra.mxu1 %v8652_v6 }
 0x426   :  { %7473 = vmatprep.subr.bf16.mxu1 %v8773_v10 }
 0x429   :  { %7474 = vmatpush2.bf16.msra.mxu1 %v8772_v44 }
 0x42a   :  { %7475 = vmatprep.subr.bf16.mxu1 %v8765_v2 }
 0x42d   :  { %7476 = vmatpush2.bf16.msra.mxu1 %v8764_v12 }
 0x42e   :  { %7477 = vmatprep.subr.bf16.mxu1 %v8757_v18 }
 0x431   :  { %7478 = vmatpush2.bf16.msra.mxu1 %v8756_v8 }
 0x432   :  { %7479 = vmatprep.subr.bf16.mxu1 %v8749_v58 }
 0x435   :  { %7480 = vmatpush2.bf16.msra.mxu1 %v8748_v59  ;;  %7811 = vbcast.lane.b32.xlu0 %v7809_v57, 256 }
 0x436   :  { %7481 = vmatprep.subr.bf16.mxu1 %v8741_v4 }
 0x439   :  { %7482 = vmatpush2.bf16.msra.mxu1 %v8740_v61 }
 0x43a   :  { %7483 = vmatprep.subr.bf16.mxu1 %v8733_v9 }
 0x43d   :  { %7484 = vmatpush2.bf16.msra.mxu1 %v8732_v31 }
 0x43e   :  { %7485 = vmatprep.subr.bf16.mxu1 %v8725_v26 }
 0x441   :  { %7486 = vmatpush2.bf16.msra.mxu1 %v8724_v0 }
 0x442   :  { %7487 = vmatprep.subr.bf16.mxu1 %v8717_v33 }
 0x445   :  { %7488 = vmatpush2.bf16.msra.mxu1 %v8716_v35 }
 0x448   :  { %v7245_v15 = vpop.f32.mrf.mxu1  ;;  %7490 = vmatmul.mubr.bf16.vlgmr.msra.gmra.mxu1 %v11951_v52  ;;  %v7671_v52 = vld [vmem:[%s12542_s7 + $0x20] sm:$0xff] }
 0x449   :  { %v7246_v25 = vadd.f32 %v7245_v15, %v7205_v14  ;;  %v7286_v16 = vpop.f32.mrf.mxu0  ;;  %v7681_v10 = vunpack.c.l.bf16 %v7671_v52  ;;  %v7682_v15 = vunpack.c.h.bf16 %v7671_v52  ;;  %v2552_v52 = vrot.slane %v12484_v28, %v11243_v24 }
 0x44a   :  { %v7247_v41 = vpop.f32.mrf.mxu1  ;;  %v7287_v59 = vadd.f32 %v7286_v16, %v2544_v17 }
 0x44b   :  { %v7611_v37 = vsel %vm7498_vm2, %v7246_v25, -inf  ;;  %v7248_v5 = vadd.f32 %v7247_v41, %v7207_v40  ;;  %v7288_v47 = vpop.f32.mrf.mxu0  ;;  %v7705_v46 = vcombine.high %v7681_v10, %v7681_v10 }
 0x44c   :  { %v7612_v51 = vrot.slane %v7611_v37, 4  ;;  %v7249_v29 = vpop.f32.mrf.mxu1  ;;  %v7289_v4 = vadd.f32 %v7288_v47, %v2548_v36 }
 0x44d   :  { %v7618_v22 = vsel %vm7498_vm2, %v7248_v5, -inf  ;;  %v7290_v32 = vpop.f32.mrf.mxu0  ;;  %v7706_v5 = vcombine.high %v7682_v15, %v7682_v15 }
 0x44e   :  { %v7613_v50 = vmax.f32 %v7611_v37, %v7612_v51  ;;  %v7619_v56 = vrot.slane %v7618_v22, 4  ;;  %v7250_v30 = vpop.f32.mrf.mxu1 }
 0x44f   :  { %v7291_v63 = vpop.f32.mrf.mxu0  ;;  %v9012_v30 = vmov 0  }
 0x450   :  { %v7614_v42 = vrot.slane %v7613_v50, 2  ;;  %v7620_v21 = vmax.f32 %v7618_v22, %v7619_v56  ;;  %8776 = vset.pattern.permute.xlu1 %v9012_v30  ;;  %8777 = vset.pattern.permute.xlu0 %v9012_v30  ;;  %v2556_v63 = vrot.slane %v12484_v28, %v11258_v20  ;;  %v7672_v20 = vld [vmem:[%s12542_s7 + $0x28] sm:$0xff] }
 0x452   :  { %v7615_v6 = vmax.f32 %v7613_v50, %v7614_v42  ;;  %v7621_v43 = vrot.slane %v7620_v21, 2 }
 0x454   :  { %v7616_v53 = vrot.slane %v7615_v6, 1  ;;  %v7622_v44 = vmax.f32 %v7620_v21, %v7621_v43 }
 0x456   :  { %v7617_v2 = vmax.f32 %v7615_v6, %v7616_v53  ;;  %v7623_v11 = vrot.slane %v7622_v44, 1 }
 0x458   :  { %v7737_v12 = vmul.f32 %v7681_v10, %v7617_v2  ;;  %v7624_v18 = vmax.f32 %v7622_v44, %v7623_v11 }
 0x45a   :  { %v7738_v49 = vmul.f32 %v7705_v46, %v7624_v18  ;;  %v7780_v60 = vsel %vm7745_vm3, %v7737_v12, 0.0 }
 0x45c   :  { %v7781_v8 = vsel %vm7745_vm3, %v7738_v49, 0.0 }
 0x45d   :  { %v7782_v58 = vadd.f32 %v7781_v8, %v7780_v60 }
 0x488   :  { %v7327_v57 = vpop.f32.mrf.mxu1 }
 0x489   :  { %v7328_v1 = vadd.f32 %v7327_v57, %v7287_v59  ;;  %v7368_v34 = vpop.f32.mrf.mxu0  ;;  %v7683_v57 = vunpack.c.l.bf16 %v7672_v20 }
 0x48a   :  { %v7329_v61 = vpop.f32.mrf.mxu1  ;;  %v7369_v42 = vadd.f32 %v7368_v34, %v2552_v52 }
 0x48b   :  { %v7625_v9 = vsel %vm7498_vm2, %v7328_v1, -inf  ;;  %v7330_v48 = vadd.f32 %v7329_v61, %v7289_v4  ;;  %v7370_v39 = vpop.f32.mrf.mxu0 }
 0x48c   :  { %v7626_v31 = vrot.slane %v7625_v9, 4  ;;  %v7331_v26 = vpop.f32.mrf.mxu1  ;;  %v7371_v6 = vadd.f32 %v7370_v39, %v2556_v63 }
 0x48d   :  { %v7632_v54 = vsel %vm7498_vm2, %v7330_v48, -inf  ;;  %v7372_v3 = vpop.f32.mrf.mxu0  ;;  %v7707_v48 = vcombine.high %v7683_v57, %v7683_v57 }
 0x48e   :  { %v7627_v0 = vmax.f32 %v7625_v9, %v7626_v31  ;;  %v7633_v33 = vrot.slane %v7632_v54, 4  ;;  %v7332_v35 = vpop.f32.mrf.mxu1 }
 0x48f   :  { %v7373_v19 = vpop.f32.mrf.mxu0  ;;  %v2560_v35 = vrot.slane %v12484_v28, %v11468_v62 }
 0x490   :  { %v7628_v13 = vrot.slane %v7627_v0, 2  ;;  %v7634_v27 = vmax.f32 %v7632_v54, %v7633_v33  ;;  %v2564_v19 = vrot.slane %v12484_v28, %v11483_v23  ;;  %v7684_v23 = vunpack.c.h.bf16 %v7672_v20 }
 0x492   :  { %v7629_v14 = vmax.f32 %v7627_v0, %v7628_v13  ;;  %v7635_v40 = vrot.slane %v7634_v27, 2  ;;  %v7708_v63 = vcombine.high %v7684_v23, %v7684_v23 }
 0x494   :  { %v7630_v25 = vrot.slane %v7629_v14, 1  ;;  %v7636_v16 = vmax.f32 %v7634_v27, %v7635_v40 }
 0x496   :  { %v7631_v41 = vmax.f32 %v7629_v14, %v7630_v25  ;;  %v7637_v37 = vrot.slane %v7636_v16, 1 }
 0x498   :  { %v7739_v47 = vmul.f32 %v7682_v15, %v7631_v41  ;;  %v7638_v51 = vmax.f32 %v7636_v16, %v7637_v37 }
 0x49a   :  { %v7783_v29 = vsel %vm7745_vm3, %v7739_v47, 0.0  ;;  %v7740_v22 = vmul.f32 %v7706_v5, %v7638_v51 }
 0x49b   :  { %v7784_v32 = vadd.f32 %v7783_v29, %v7782_v58 }
 0x49c   :  { %v7785_v50 = vsel %vm7745_vm3, %v7740_v22, 0.0 }
 0x49d   :  { %v7786_v56 = vadd.f32 %v7785_v50, %v7784_v32 }
 0x4c8   :  { %v7409_v21 = vpop.f32.mrf.mxu1 }
 0x4c9   :  { %v7410_v10 = vadd.f32 %v7409_v21, %v7369_v42  ;;  %v7450_v43 = vpop.f32.mrf.mxu0 }
 0x4ca   :  { %v7411_v53 = vpop.f32.mrf.mxu1  ;;  %v7451_v13 = vadd.f32 %v7450_v43, %v2560_v35 }
 0x4cb   :  { %v7639_v44 = vsel %vm7498_vm2, %v7410_v10, -inf  ;;  %v7412_v2 = vadd.f32 %v7411_v53, %v7371_v6  ;;  %v7452_v11 = vpop.f32.mrf.mxu0 }
 0x4cc   :  { %v7640_v46 = vrot.slane %v7639_v44, 4  ;;  %v7413_v12 = vpop.f32.mrf.mxu1  ;;  %v7453_v14 = vadd.f32 %v7452_v11, %v2564_v19  ;;  %v7816_v11 = vrot.slane %v12459_v55, %v9793_v7 }
 0x4cd   :  { %v7646_v18 = vsel %vm7498_vm2, %v7412_v2, -inf  ;;  %v7454_v49 = vpop.f32.mrf.mxu0  ;;  %v7762_v2 = vpop.xlane.xlu0 %7761 }
 0x4ce   :  { %v7641_v60 = vmax.f32 %v7639_v44, %v7640_v46  ;;  %v7647_v24 = vrot.slane %v7646_v18, 4  ;;  %v7414_v8 = vpop.f32.mrf.mxu1  ;;  %v7805_v12 = vpop.permute.xlu1 %7804 }
 0x4cf   :  { %v7455_v58 = vpop.f32.mrf.mxu0 }
 0x4d0   :  { %v7642_v17 = vrot.slane %v7641_v60, 2  ;;  %v7648_v36 = vmax.f32 %v7646_v18, %v7647_v24  ;;  %v7823_v18 = vadd.f32 %v7805_v12, %v7762_v2 }
 0x4d1   :  { %v7779_v46 = vpop.xlane.xlu0 %7778 }
 0x4d2   :  { %v7643_v59 = vmax.f32 %v7641_v60, %v7642_v17  ;;  %v7649_v4 = vrot.slane %v7648_v36, 2  ;;  %v7839_v17 = vand.u32 127, %v168_v38 }
 0x4d4   :  { %v7644_v1 = vrot.slane %v7643_v59, 1  ;;  %v7650_v34 = vmax.f32 %v7648_v36, %v7649_v4 }
 0x4d5   :  { %v7812_v49 = vpop.permute.xlu0 %7811 }
 0x4d6   :  { %v7645_v61 = vmax.f32 %v7643_v59, %v7644_v1  ;;  %v7651_v9 = vrot.slane %v7650_v34, 1  ;;  %v7824_v60 = vadd.f32 %v7812_v49, %v7779_v46  ;;  %v7842_v59 = vsub.s32 %v7839_v17, %v9190_v45 }
 0x4d8   :  { %v7741_v39 = vmul.f32 %v7683_v57, %v7645_v61  ;;  %v7652_v31 = vmax.f32 %v7650_v34, %v7651_v9 }
 0x4da   :  { %v7742_v26 = vmul.f32 %v7707_v48, %v7652_v31  ;;  %v7787_v54 = vsel %vm7745_vm3, %v7741_v39, 0.0 }
 0x4db   :  { %v7788_v3 = vadd.f32 %v7787_v54, %v7786_v56 }
 0x4dc   :  { %v7789_v0 = vsel %vm7745_vm3, %v7742_v26, 0.0 }
 0x4dd   :  { %v7790_v33 = vadd.f32 %v7789_v0, %v7788_v3 }
 0x508   :  { %v7491_v27 = vpop.f32.mrf.mxu1 }
 0x509   :  { %v7492_v15 = vadd.f32 %v7491_v27, %v7451_v13 }
 0x50a   :  { %v7493_v40 = vpop.f32.mrf.mxu1 }
 0x50b   :  { %v7653_v25 = vsel %vm7498_vm2, %v7492_v15, -inf  ;;  %v7494_v16 = vadd.f32 %v7493_v40, %v7453_v14 }
 0x50c   :  { %v7654_v41 = vrot.slane %v7653_v25, 4  ;;  %v7495_v37 = vpop.f32.mrf.mxu1 }
 0x50d   :  { %v7660_v5 = vsel %vm7498_vm2, %v7494_v16, -inf }
 0x50e   :  { %v7655_v47 = vmax.f32 %v7653_v25, %v7654_v41  ;;  %v7661_v51 = vrot.slane %v7660_v5, 4  ;;  %v7496_v29 = vpop.f32.mrf.mxu1 }
 0x510   :  { %v7656_v22 = vrot.slane %v7655_v47, 2  ;;  %v7662_v62 = vmax.f32 %v7660_v5, %v7661_v51 }
 0x512   :  { %v7657_v32 = vmax.f32 %v7655_v47, %v7656_v22  ;;  %v7663_v50 = vrot.slane %v7662_v62, 2 }
 0x514   :  { %v7658_v28 = vrot.slane %v7657_v32, 1  ;;  %v7664_v56 = vmax.f32 %v7662_v62, %v7663_v50 }
 0x516   :  { %v7659_v30 = vmax.f32 %v7657_v32, %v7658_v28  ;;  %v7665_v52 = vrot.slane %v7664_v56, 1 }
 0x518   :  { %v7666_v42 = vmax.f32 %v7664_v56, %v7665_v52  ;;  %v7743_v21 = vmul.f32 %v7684_v23, %v7659_v30 }
 0x51a   :  { %v7744_v6 = vmul.f32 %v7708_v63, %v7666_v42  ;;  %v7791_v10 = vsel %vm7745_vm3, %v7743_v21, 0.0 }
 0x51b   :  { %v7792_v43 = vadd.f32 %v7791_v10, %v7790_v33 }
 0x51c   :  { %v7793_v53 = vsel %vm7745_vm3, %v7744_v6, 0.0 }
 0x51d   :  { %v7794_v44 = vadd.f32 %v7793_v53, %v7792_v43 }
 0x51f   :  { %7795 = vadd.xlane.f32.xlu1 %v7794_v44 }
 0x530   :  { %7818 = vbcast.lane.b32.xlu1 %v7816_v11, 256 }
 0x534   :  { %7830 = vperm.xlu1 %8776, %v7823_v18  }
 0x538   :  { %7833 = vperm.xlu1 %8776, %v7824_v60  }
 0x5a8   :  { %v7796_v24 = vpop.xlane.xlu1 %7795 }
 0x5ac   :  { %v7819_v8 = vpop.permute.xlu1 %7818 }
 0x5ad   :  { %v7825_v20 = vadd.f32 %v7819_v8, %v7796_v24 }
 0x5af   :  { %7836 = vperm.xlu0 %8777, %v7825_v20  }
 0x5b0   :  { %v7831_v58 = vpop.permute.xlu1 %7830 }
 0x5b1   :  { %v7843_v7 = vrot.slane %v7831_v58, %v7842_v59 }
 0x5b4   :  { %v7834_v36 = vpop.permute.xlu1 %7833 }
 0x5b5   :  { %v7847_v57 = vrot.slane %v7834_v36, %v7842_v59 }
 0x5b7   :  { %v7852_v1 = vsel %vm2605_vm1, %v7847_v57, %v7843_v7 }
 0x62a   :  { %v7837_v55 = vpop.permute.xlu0 %7836 }
 0x62b   :  { %v7851_v4 = vrot.slane %v7837_v55, %v7842_v59 }
 0x62d   :  { %v7854_v34 = vsel %vm7853_vm4, %v7851_v4, %v7852_v1 }
 0x62e   :  { %7857 = vst.msk [vmem:[%s12544_s9] sm:$0x7] %vm7856_vm5, %v7854_v34 }

</bundles_post_ra>
